<compile_context>
chip_gen: v5e
topology: v5e:2x2
jax: 0.10.0
libtpu: 0.0.40
codegen_flags: <defaults>
</compile_context>

<pallas_src>
import numpy as np

import jax
import jax.numpy as jnp
from jax import lax
from jax.experimental import pallas as pl
from jax.experimental.pallas import tpu as pltpu

LEAKY_SLOPE = 0.2
BN_EPS = 1e-5


# ------------------------- in-kernel helper math ----------------------------

def _lrelu(v):
    return jnp.where(v >= 0, v, LEAKY_SLOPE * v)


def _bn_cols(z, gamma, beta):
    # Channels on lanes: training-mode BN, one-pass sum/sumsq, stats over rows.
    inv_n = 1.0 / float(z.shape[0])
    s1 = jnp.sum(z, axis=0, keepdims=True)
    s2 = jnp.sum(z * z, axis=0, keepdims=True)
    mean = s1 * inv_n
    var = jnp.maximum(s2 * inv_n - mean * mean, 0.0)
    return (z - mean) * (lax.rsqrt(var + BN_EPS) * gamma) + beta


def _bn_rows(z, gamma, beta):
    # Channels on sublanes: stats reduce over the lane axis (fast direction).
    inv_n = 1.0 / float(z.shape[1])
    s1 = jnp.sum(z, axis=1, keepdims=True)
    s2 = jnp.sum(z * z, axis=1, keepdims=True)
    mean = s1 * inv_n
    var = jnp.maximum(s2 * inv_n - mean * mean, 0.0)
    return (z - mean) * (lax.rsqrt(var + BN_EPS) * gamma) + beta


# ------------------------------ fused kernel --------------------------------

def _decoder_kernel(x_ref,
                    w3_ref, w4_ref, w5_ref, w6_ref, w7_ref, w8_ref, b8_ref,
                    g3_ref, be3_ref, g4_ref, be4_ref, g5_ref, be5_ref,
                    g6_ref, be6_ref, g7_ref, be7_ref,
                    out_ref,
                    z4_ref, z5_ref, z6_ref, z7_ref):
    f32 = jnp.float32
    bf16 = jnp.bfloat16

    # ---- stage A (NT layout: spatial rows, channel lanes) ----
    # deconv3 (1x1, stride 1) -> leaky_relu -> bd3                  (P, 512)
    y = jnp.dot(x_ref[...], w3_ref[...], preferred_element_type=f32)
    a = _bn_cols(_lrelu(y), g3_ref[...], be3_ref[...])

    # deconv4 / deconv5 (k=2, s=2) -> leaky_relu -> depth-to-space -> bd
    for w_ref, g_ref, be_ref, z_ref in ((w4_ref, g4_ref, be4_ref, z4_ref),
                                        (w5_ref, g5_ref, be5_ref, z5_ref)):
        c_out = w_ref.shape[1] // 4      # cols ordered (kh, kw, c_out)
        m_in = a.shape[0]
        y = _lrelu(jnp.dot(a.astype(bf16), w_ref[...],
                           preferred_element_type=f32))     # (m_in, 4*c_out)
        # depth-to-space: sub-pixel block q -> new row block q (all slices are
        # whole-vreg aligned; spatial order unscrambled once in the wrapper).
        for q in range(4):
            z_ref[q * m_in:(q + 1) * m_in, :] = y[:, q * c_out:(q + 1) * c_out]
        a = _bn_cols(z_ref[...], g_ref[...], be_ref[...])    # (4*m_in, c_out)

    # ---- stage B (T layout: channel rows, spatial lanes) ----
    # deconv6: contract the channel axis of both operands (A @ B^T form), so
    # the output lands directly in the transposed layout — no transpose op.
    c_out = w6_ref.shape[0] // 4
    m_in = a.shape[0]
    y = lax.dot_general(w6_ref[...], a.astype(bf16),
                        dimension_numbers=(((1,), (1,)), ((), ())),
                        preferred_element_type=f32)          # (4*c_out, m_in)
    y = _lrelu(y)
    for q in range(4):
        z6_ref[:, q * m_in:(q + 1) * m_in] = y[q * c_out:(q + 1) * c_out, :]
    a = _bn_rows(z6_ref[...], g6_ref[...], be6_ref[...])     # (c_out, 4*m_in)

    # deconv7
    c_out = w7_ref.shape[0] // 4
    m_in = a.shape[1]
    y = _lrelu(jnp.dot(w7_ref[...], a.astype(bf16),
                       preferred_element_type=f32))          # (4*c_out, m_in)
    for q in range(4):
        z7_ref[:, q * m_in:(q + 1) * m_in] = y[q * c_out:(q + 1) * c_out, :]
    a = _bn_rows(z7_ref[...], g7_ref[...], be7_ref[...])

    # deconv8 (k=2, s=2, bias=True) -> tanh.  Rows 4..7 of w8 are zero padding
    # (ignored by the wrapper gather); output is a lane-dense (8, P*256) slab.
    y = jnp.dot(w8_ref[...], a.astype(bf16), preferred_element_type=f32)
    out_ref[...] = jnp.tanh(y + b8_ref[...])


# --------------------------------- wrapper ----------------------------------

def _build_output_perm(n, h_in, w_in):
    """NCHW output pixel -> flat index into the kernel's (8, 256*P0) slab."""
    m0 = n * h_in * w_in
    h_out, w_out = 32 * h_in, 32 * w_in
    perm = np.empty((n, h_out, w_out), dtype=np.int32)
    for nn in range(n):
        for h in range(h_out):
            h0, hr = divmod(h, 32)
            ha = [(hr >> k) & 1 for k in range(5)]   # ha[4]=a(deconv4) ... ha[0]=a(deconv8)
            for w in range(w_out):
                w0, wr = divmod(w, 32)
                wb = [(wr >> k) & 1 for k in range(5)]
                p = nn * (h_in * w_in) + h0 * w_in + w0
                m = m0
                for k in (4, 3, 2, 1):               # deconv4..deconv7 d2s steps
                    p = (ha[k] * 2 + wb[k]) * m + p
                    m *= 4
                perm[nn, h, w] = (ha[0] * 2 + wb[0]) * m + p
    return perm.reshape(-1)


def decoder_forward(x_nchw, kp):
    n, c_in, h, w = x_nchw.shape
    assert c_in == 1024
    m0 = n * h * w

    # NHWC-flattened, bf16 operand for the MXU.
    x_nt = jnp.transpose(x_nchw, (0, 2, 3, 1)).reshape(m0, c_in).astype(jnp.bfloat16)

    out = pl.pallas_call(
        _decoder_kernel,
        out_shape=jax.ShapeDtypeStruct((8, 256 * m0), jnp.float32),
        scratch_shapes=[
            pltpu.VMEM((4 * m0, 256), jnp.float32),    # deconv4 d2s buffer
            pltpu.VMEM((16 * m0, 128), jnp.float32),   # deconv5 d2s buffer
            pltpu.VMEM((64, 64 * m0), jnp.float32),    # deconv6 d2s buffer
            pltpu.VMEM((32, 256 * m0), jnp.float32),   # deconv7 d2s buffer
        ],
        compiler_params=pltpu.CompilerParams(
            vmem_limit_bytes=32 * 1024 * 1024),        # safe on v5e/v6e/v7x
    )(x_nt,
      kp["w3"], kp["w4"], kp["w5"], kp["w6"], kp["w7"], kp["w8"], kp["bias8"],
      kp["g3"], kp["b3"], kp["g4"], kp["b4"], kp["g5"], kp["b5"],
      kp["g6"], kp["b6"], kp["g7"], kp["b7"])

    perm = jnp.asarray(_build_output_perm(n, h, w))    # static constant
    return out.reshape(-1)[perm].reshape(n, 1, 32 * h, 32 * w)


# ------------------------- deterministic parameter init ---------------------

def _kaiming_weight(key, c_in, c_out, k):
    # kaiming_normal_ on ConvTranspose2d weight (c_in, c_out, kH, kW)
    fan_in = c_out * k * k
    std = (2.0 / fan_in) ** 0.5
    return std * jax.random.normal(key, (c_in, c_out, k, k), jnp.float32)


def _xavier_weight(key, c_in, c_out, k):
    fan_in = c_out * k * k
    fan_out = c_in * k * k
    std = (2.0 / (fan_in + fan_out)) ** 0.5
    return std * jax.random.normal(key, (c_in, c_out, k, k), jnp.float32)


def make_params(key):
    ks = jax.random.split(key, 8)
    params = {
        "w3": _kaiming_weight(ks[0], 1024, 512, 1),
        "w4": _kaiming_weight(ks[1], 512, 256, 2),
        "w5": _kaiming_weight(ks[2], 256, 128, 2),
        "w6": _kaiming_weight(ks[3], 128, 64, 2),
        "w7": _kaiming_weight(ks[4], 64, 32, 2),
        "w8": _xavier_weight(ks[5], 32, 1, 2),
        "bias8": 0.01 * jnp.ones((1,), jnp.float32),
    }
    for name, c in (("3", 512), ("4", 256), ("5", 128), ("6", 64), ("7", 32)):
        params["g" + name] = jnp.ones((c,), jnp.float32)   # BatchNorm weight
        params["b" + name] = jnp.zeros((c,), jnp.float32)  # BatchNorm bias
    return params


def prepare_params(raw):
    """One-time relayout + bf16 cast of the PyTorch-layout params."""
    def wmat_nt(wt):   # (c_in, c_out, kh, kw) -> (c_in, kh*kw*c_out)
        c_in, c_out, kh, kw = wt.shape
        return jnp.transpose(wt, (0, 2, 3, 1)).reshape(c_in, kh * kw * c_out).astype(jnp.bfloat16)

    def wmat_t(wt):    # (c_in, c_out, kh, kw) -> (kh*kw*c_out, c_in)
        c_in, c_out, kh, kw = wt.shape
        return jnp.transpose(wt, (2, 3, 1, 0)).reshape(kh * kw * c_out, c_in).astype(jnp.bfloat16)

    kp = {
        "w3": wmat_nt(raw["w3"]),
        "w4": wmat_nt(raw["w4"]),
        "w5": wmat_nt(raw["w5"]),
        "w6": wmat_t(raw["w6"]),
        "w7": wmat_t(raw["w7"]),
    }
    w8 = wmat_t(raw["w8"])                                   # (4, 32)
    kp["w8"] = jnp.concatenate(
        [w8, jnp.zeros((4, w8.shape[1]), jnp.bfloat16)], axis=0)  # pad rows -> 8
    kp["bias8"] = raw["bias8"].reshape(1, 1).astype(jnp.float32)
    for name in ("3", "4", "5"):                             # NT-layout BN params
        kp["g" + name] = raw["g" + name].reshape(1, -1)
        kp["b" + name] = raw["b" + name].reshape(1, -1)
    for name in ("6", "7"):                                  # T-layout BN params
        kp["g" + name] = raw["g" + name].reshape(-1, 1)
        kp["b" + name] = raw["b" + name].reshape(-1, 1)
    return kp


# ------------------------- plain-JAX f32 reference ---------------------------

def _reference_forward(x_nchw, raw):
    n, c_in, h, w = x_nchw.shape
    hp = lax.Precision.HIGHEST

    def bn(v, g, b):
        mean = jnp.mean(v, axis=0, keepdims=True)
        var = jnp.mean(jnp.square(v - mean), axis=0, keepdims=True)
        return (v - mean) * lax.rsqrt(var + BN_EPS) * g[None, :] + b[None, :]

    def d2s(y, nn, hh, ww, c_out):
        y = y.reshape(nn, hh, ww, c_out, 2, 2)
        y = jnp.transpose(y, (0, 1, 4, 2, 5, 3))
        return y.reshape(nn, hh * 2, ww * 2, c_out)

    x = jnp.transpose(x_nchw, (0, 2, 3, 1)).reshape(n * h * w, c_in)
    x = bn(_lrelu(jnp.dot(x, raw["w3"].reshape(1024, 512), precision=hp)),
           raw["g3"], raw["b3"])
    cur_h, cur_w, cur_c = h, w, 512
    for name, c_out in (("4", 256), ("5", 128), ("6", 64), ("7", 32)):
        wmat = raw["w" + name].reshape(cur_c, c_out * 4)     # cols (co, kh, kw)
        y = _lrelu(jnp.dot(x, wmat, precision=hp))
        y = d2s(y, n, cur_h, cur_w, c_out)
        cur_h, cur_w, cur_c = cur_h * 2, cur_w * 2, c_out
        x = bn(y.reshape(n * cur_h * cur_w, c_out), raw["g" + name], raw["b" + name])

    y = jnp.tanh(jnp.dot(x, raw["w8"].reshape(32, 4), precision=hp) + raw["bias8"][0])
    y = d2s(y, n, cur_h, cur_w, 1)
    return jnp.transpose(y, (0, 3, 1, 2))


# ----------------------------------- main -----------------------------------

if __name__ == "__main__":
    root = jax.random.PRNGKey(0)
    k_params, k_x = jax.random.split(root)
    raw = make_params(k_params)
    kp = prepare_params(raw)

    # Input consistent with the module: batch=2, channels=1024, 2x2 spatial.
    x = jax.random.normal(k_x, (2, 1024, 2, 2), jnp.float32)

    out = jax.block_until_ready(jax.jit(decoder_forward)(x, kp))

    assert out.shape == (2, 1, 64, 64), out.shape
    assert bool(jnp.all(jnp.isfinite(out)))
    assert bool(jnp.all(jnp.abs(out) <= 1.0 + 1e-6))         # tanh range

    # Cross-check the fused bf16 kernel against a plain-JAX f32 reference
    # (loose tolerance: bf16 MXU operands vs f32 reference).
    ref = jax.block_until_ready(jax.jit(_reference_forward)(x, raw))
    max_err = float(jnp.max(jnp.abs(out - ref)))
    assert max_err < 0.15, f"max abs error vs f32 reference: {max_err}"

    print("KERNEL_OK")
</pallas_src>

<mosaic_0001>
module attributes {stable_mosaic.version = 11 : i64} {
  func.func @_decoder_kernel(%arg0: memref<8x1024xbf16, #tpu.memory_space<vmem>>, %arg1: memref<1024x512xbf16, #tpu.memory_space<vmem>>, %arg2: memref<512x1024xbf16, #tpu.memory_space<vmem>>, %arg3: memref<256x512xbf16, #tpu.memory_space<vmem>>, %arg4: memref<256x128xbf16, #tpu.memory_space<vmem>>, %arg5: memref<128x64xbf16, #tpu.memory_space<vmem>>, %arg6: memref<8x32xbf16, #tpu.memory_space<vmem>>, %arg7: memref<1x1xf32, #tpu.memory_space<vmem>>, %arg8: memref<1x512xf32, #tpu.memory_space<vmem>>, %arg9: memref<1x512xf32, #tpu.memory_space<vmem>>, %arg10: memref<1x256xf32, #tpu.memory_space<vmem>>, %arg11: memref<1x256xf32, #tpu.memory_space<vmem>>, %arg12: memref<1x128xf32, #tpu.memory_space<vmem>>, %arg13: memref<1x128xf32, #tpu.memory_space<vmem>>, %arg14: memref<64x1xf32, #tpu.memory_space<vmem>>, %arg15: memref<64x1xf32, #tpu.memory_space<vmem>>, %arg16: memref<32x1xf32, #tpu.memory_space<vmem>>, %arg17: memref<32x1xf32, #tpu.memory_space<vmem>>, %arg18: memref<8x2048xf32, #tpu.memory_space<vmem>>, %arg19: memref<32x256xf32, #tpu.memory_space<vmem>>, %arg20: memref<128x128xf32, #tpu.memory_space<vmem>>, %arg21: memref<64x512xf32, #tpu.memory_space<vmem>>, %arg22: memref<32x2048xf32, #tpu.memory_space<vmem>>) attributes {dimension_semantics = [], scalar_prefetch = 0 : i64, scratch_operands = 4 : i64, tpu.core_type = #tpu.core_type<tc>} {
    %c0 = arith.constant 0 : index
    %c0_0 = arith.constant 0 : index
    %0 = vector.load %arg0[%c0, %c0_0] : memref<8x1024xbf16, #tpu.memory_space<vmem>>, vector<8x1024xbf16>
    %c0_1 = arith.constant 0 : index
    %c0_2 = arith.constant 0 : index
    %1 = vector.load %arg1[%c0_1, %c0_2] : memref<1024x512xbf16, #tpu.memory_space<vmem>>, vector<1024x512xbf16>
    %cst = arith.constant dense<0.000000e+00> : vector<8x512xf32>
    %2 = tpu.matmul %0, %1, %cst {dimension_numbers = #tpu.dot_dimension_numbers<[1], [0], [0], [1], [0, 0, 1, 1], [], []>} : vector<8x1024xbf16>, vector<1024x512xbf16>, vector<8x512xf32> -> vector<8x512xf32>
    %cst_3 = arith.constant 0.000000e+00 : f32
    %3 = vector.broadcast %cst_3 : f32 to vector<8x512xf32>
    %4 = arith.cmpf oge, %2, %3 : vector<8x512xf32>
    %cst_4 = arith.constant 2.000000e-01 : f32
    %5 = vector.broadcast %cst_4 : f32 to vector<8x512xf32>
    %6 = arith.mulf %5, %2 : vector<8x512xf32>
    %7 = arith.select %4, %2, %6 : vector<8x512xi1>, vector<8x512xf32>
    %c0_5 = arith.constant 0 : index
    %c0_6 = arith.constant 0 : index
    %8 = vector.load %arg8[%c0_5, %c0_6] : memref<1x512xf32, #tpu.memory_space<vmem>>, vector<1x512xf32>
    %c0_7 = arith.constant 0 : index
    %c0_8 = arith.constant 0 : index
    %9 = vector.load %arg9[%c0_7, %c0_8] : memref<1x512xf32, #tpu.memory_space<vmem>>, vector<1x512xf32>
    %cst_9 = arith.constant dense<0.000000e+00> : vector<512xf32>
    %10 = vector.multi_reduction <add>, %7, %cst_9 [0] : vector<8x512xf32> to vector<512xf32>
    %11 = vector.shape_cast %10 : vector<512xf32> to vector<1x512xf32>
    %12 = arith.mulf %7, %7 : vector<8x512xf32>
    %cst_10 = arith.constant dense<0.000000e+00> : vector<512xf32>
    %13 = vector.multi_reduction <add>, %12, %cst_10 [0] : vector<8x512xf32> to vector<512xf32>
    %14 = vector.shape_cast %13 : vector<512xf32> to vector<1x512xf32>
    %cst_11 = arith.constant 1.250000e-01 : f32
    %15 = vector.broadcast %cst_11 : f32 to vector<1x512xf32>
    %16 = arith.mulf %11, %15 : vector<1x512xf32>
    %cst_12 = arith.constant 1.250000e-01 : f32
    %17 = vector.broadcast %cst_12 : f32 to vector<1x512xf32>
    %18 = arith.mulf %14, %17 : vector<1x512xf32>
    %19 = arith.mulf %16, %16 : vector<1x512xf32>
    %20 = arith.subf %18, %19 : vector<1x512xf32>
    %cst_13 = arith.constant 0.000000e+00 : f32
    %21 = vector.broadcast %cst_13 : f32 to vector<1x512xf32>
    %22 = arith.maximumf %20, %21 : vector<1x512xf32>
    %23 = vector.broadcast %16 : vector<1x512xf32> to vector<8x512xf32>
    %24 = arith.subf %7, %23 : vector<8x512xf32>
    %cst_14 = arith.constant 9.99999974E-6 : f32
    %25 = vector.broadcast %cst_14 : f32 to vector<1x512xf32>
    %26 = arith.addf %22, %25 : vector<1x512xf32>
    %27 = math.rsqrt %26 : vector<1x512xf32>
    %28 = arith.mulf %27, %8 : vector<1x512xf32>
    %29 = vector.broadcast %28 : vector<1x512xf32> to vector<8x512xf32>
    %30 = arith.mulf %24, %29 : vector<8x512xf32>
    %31 = vector.broadcast %9 : vector<1x512xf32> to vector<8x512xf32>
    %32 = arith.addf %30, %31 : vector<8x512xf32>
    %33 = arith.truncf %32 : vector<8x512xf32> to vector<8x512xbf16>
    %c0_15 = arith.constant 0 : index
    %c0_16 = arith.constant 0 : index
    %34 = vector.load %arg2[%c0_15, %c0_16] : memref<512x1024xbf16, #tpu.memory_space<vmem>>, vector<512x1024xbf16>
    %cst_17 = arith.constant dense<0.000000e+00> : vector<8x1024xf32>
    %35 = tpu.matmul %33, %34, %cst_17 {dimension_numbers = #tpu.dot_dimension_numbers<[1], [0], [0], [1], [0, 0, 1, 1], [], []>} : vector<8x512xbf16>, vector<512x1024xbf16>, vector<8x1024xf32> -> vector<8x1024xf32>
    %cst_18 = arith.constant 0.000000e+00 : f32
    %36 = vector.broadcast %cst_18 : f32 to vector<8x1024xf32>
    %37 = arith.cmpf oge, %35, %36 : vector<8x1024xf32>
    %cst_19 = arith.constant 2.000000e-01 : f32
    %38 = vector.broadcast %cst_19 : f32 to vector<8x1024xf32>
    %39 = arith.mulf %38, %35 : vector<8x1024xf32>
    %40 = arith.select %37, %35, %39 : vector<8x1024xi1>, vector<8x1024xf32>
    %41 = vector.extract_strided_slice %40 {offsets = [0, 0], sizes = [8, 256], strides = [1, 1]} : vector<8x1024xf32> to vector<8x256xf32>
    %c0_20 = arith.constant 0 : index
    %c0_21 = arith.constant 0 : index
    %42 = vector.load %arg19[%c0_20, %c0_21] : memref<32x256xf32, #tpu.memory_space<vmem>>, vector<8x256xf32>
    tpu.vector_store %arg19[%c0_20, %c0_21], %41 {strides = array<i32>} : memref<32x256xf32, #tpu.memory_space<vmem>>, vector<8x256xf32>,
    %43 = vector.extract_strided_slice %40 {offsets = [0, 256], sizes = [8, 256], strides = [1, 1]} : vector<8x1024xf32> to vector<8x256xf32>
    %c8 = arith.constant 8 : index
    %c0_22 = arith.constant 0 : index
    %44 = vector.load %arg19[%c8, %c0_22] : memref<32x256xf32, #tpu.memory_space<vmem>>, vector<8x256xf32>
    tpu.vector_store %arg19[%c8, %c0_22], %43 {strides = array<i32>} : memref<32x256xf32, #tpu.memory_space<vmem>>, vector<8x256xf32>,
    %45 = vector.extract_strided_slice %40 {offsets = [0, 512], sizes = [8, 256], strides = [1, 1]} : vector<8x1024xf32> to vector<8x256xf32>
    %c16 = arith.constant 16 : index
    %c0_23 = arith.constant 0 : index
    %46 = vector.load %arg19[%c16, %c0_23] : memref<32x256xf32, #tpu.memory_space<vmem>>, vector<8x256xf32>
    tpu.vector_store %arg19[%c16, %c0_23], %45 {strides = array<i32>} : memref<32x256xf32, #tpu.memory_space<vmem>>, vector<8x256xf32>,
    %47 = vector.extract_strided_slice %40 {offsets = [0, 768], sizes = [8, 256], strides = [1, 1]} : vector<8x1024xf32> to vector<8x256xf32>
    %c24 = arith.constant 24 : index
    %c0_24 = arith.constant 0 : index
    %48 = vector.load %arg19[%c24, %c0_24] : memref<32x256xf32, #tpu.memory_space<vmem>>, vector<8x256xf32>
    tpu.vector_store %arg19[%c24, %c0_24], %47 {strides = array<i32>} : memref<32x256xf32, #tpu.memory_space<vmem>>, vector<8x256xf32>,
    %c0_25 = arith.constant 0 : index
    %c0_26 = arith.constant 0 : index
    %49 = vector.load %arg19[%c0_25, %c0_26] : memref<32x256xf32, #tpu.memory_space<vmem>>, vector<32x256xf32>
    %c0_27 = arith.constant 0 : index
    %c0_28 = arith.constant 0 : index
    %50 = vector.load %arg10[%c0_27, %c0_28] : memref<1x256xf32, #tpu.memory_space<vmem>>, vector<1x256xf32>
    %c0_29 = arith.constant 0 : index
    %c0_30 = arith.constant 0 : index
    %51 = vector.load %arg11[%c0_29, %c0_30] : memref<1x256xf32, #tpu.memory_space<vmem>>, vector<1x256xf32>
    %cst_31 = arith.constant dense<0.000000e+00> : vector<256xf32>
    %52 = vector.multi_reduction <add>, %49, %cst_31 [0] : vector<32x256xf32> to vector<256xf32>
    %53 = vector.shape_cast %52 : vector<256xf32> to vector<1x256xf32>
    %54 = arith.mulf %49, %49 : vector<32x256xf32>
    %cst_32 = arith.constant dense<0.000000e+00> : vector<256xf32>
    %55 = vector.multi_reduction <add>, %54, %cst_32 [0] : vector<32x256xf32> to vector<256xf32>
    %56 = vector.shape_cast %55 : vector<256xf32> to vector<1x256xf32>
    %cst_33 = arith.constant 3.125000e-02 : f32
    %57 = vector.broadcast %cst_33 : f32 to vector<1x256xf32>
    %58 = arith.mulf %53, %57 : vector<1x256xf32>
    %cst_34 = arith.constant 3.125000e-02 : f32
    %59 = vector.broadcast %cst_34 : f32 to vector<1x256xf32>
    %60 = arith.mulf %56, %59 : vector<1x256xf32>
    %61 = arith.mulf %58, %58 : vector<1x256xf32>
    %62 = arith.subf %60, %61 : vector<1x256xf32>
    %cst_35 = arith.constant 0.000000e+00 : f32
    %63 = vector.broadcast %cst_35 : f32 to vector<1x256xf32>
    %64 = arith.maximumf %62, %63 : vector<1x256xf32>
    %65 = vector.broadcast %58 : vector<1x256xf32> to vector<32x256xf32>
    %66 = arith.subf %49, %65 : vector<32x256xf32>
    %cst_36 = arith.constant 9.99999974E-6 : f32
    %67 = vector.broadcast %cst_36 : f32 to vector<1x256xf32>
    %68 = arith.addf %64, %67 : vector<1x256xf32>
    %69 = math.rsqrt %68 : vector<1x256xf32>
    %70 = arith.mulf %69, %50 : vector<1x256xf32>
    %71 = vector.broadcast %70 : vector<1x256xf32> to vector<32x256xf32>
    %72 = arith.mulf %66, %71 : vector<32x256xf32>
    %73 = vector.broadcast %51 : vector<1x256xf32> to vector<32x256xf32>
    %74 = arith.addf %72, %73 : vector<32x256xf32>
    %75 = arith.truncf %74 : vector<32x256xf32> to vector<32x256xbf16>
    %c0_37 = arith.constant 0 : index
    %c0_38 = arith.constant 0 : index
    %76 = vector.load %arg3[%c0_37, %c0_38] : memref<256x512xbf16, #tpu.memory_space<vmem>>, vector<256x512xbf16>
    %cst_39 = arith.constant dense<0.000000e+00> : vector<32x512xf32>
    %77 = tpu.matmul %75, %76, %cst_39 {dimension_numbers = #tpu.dot_dimension_numbers<[1], [0], [0], [1], [0, 0, 1, 1], [], []>} : vector<32x256xbf16>, vector<256x512xbf16>, vector<32x512xf32> -> vector<32x512xf32>
    %cst_40 = arith.constant 0.000000e+00 : f32
    %78 = vector.broadcast %cst_40 : f32 to vector<32x512xf32>
    %79 = arith.cmpf oge, %77, %78 : vector<32x512xf32>
    %cst_41 = arith.constant 2.000000e-01 : f32
    %80 = vector.broadcast %cst_41 : f32 to vector<32x512xf32>
    %81 = arith.mulf %80, %77 : vector<32x512xf32>
    %82 = arith.select %79, %77, %81 : vector<32x512xi1>, vector<32x512xf32>
    %83 = vector.extract_strided_slice %82 {offsets = [0, 0], sizes = [32, 128], strides = [1, 1]} : vector<32x512xf32> to vector<32x128xf32>
    %c0_42 = arith.constant 0 : index
    %c0_43 = arith.constant 0 : index
    %84 = vector.load %arg20[%c0_42, %c0_43] : memref<128x128xf32, #tpu.memory_space<vmem>>, vector<32x128xf32>
    tpu.vector_store %arg20[%c0_42, %c0_43], %83 {strides = array<i32>} : memref<128x128xf32, #tpu.memory_space<vmem>>, vector<32x128xf32>,
    %85 = vector.extract_strided_slice %82 {offsets = [0, 128], sizes = [32, 128], strides = [1, 1]} : vector<32x512xf32> to vector<32x128xf32>
    %c32 = arith.constant 32 : index
    %c0_44 = arith.constant 0 : index
    %86 = vector.load %arg20[%c32, %c0_44] : memref<128x128xf32, #tpu.memory_space<vmem>>, vector<32x128xf32>
    tpu.vector_store %arg20[%c32, %c0_44], %85 {strides = array<i32>} : memref<128x128xf32, #tpu.memory_space<vmem>>, vector<32x128xf32>,
    %87 = vector.extract_strided_slice %82 {offsets = [0, 256], sizes = [32, 128], strides = [1, 1]} : vector<32x512xf32> to vector<32x128xf32>
    %c64 = arith.constant 64 : index
    %c0_45 = arith.constant 0 : index
    %88 = vector.load %arg20[%c64, %c0_45] : memref<128x128xf32, #tpu.memory_space<vmem>>, vector<32x128xf32>
    tpu.vector_store %arg20[%c64, %c0_45], %87 {strides = array<i32>} : memref<128x128xf32, #tpu.memory_space<vmem>>, vector<32x128xf32>,
    %89 = vector.extract_strided_slice %82 {offsets = [0, 384], sizes = [32, 128], strides = [1, 1]} : vector<32x512xf32> to vector<32x128xf32>
    %c96 = arith.constant 96 : index
    %c0_46 = arith.constant 0 : index
    %90 = vector.load %arg20[%c96, %c0_46] : memref<128x128xf32, #tpu.memory_space<vmem>>, vector<32x128xf32>
    tpu.vector_store %arg20[%c96, %c0_46], %89 {strides = array<i32>} : memref<128x128xf32, #tpu.memory_space<vmem>>, vector<32x128xf32>,
    %c0_47 = arith.constant 0 : index
    %c0_48 = arith.constant 0 : index
    %91 = vector.load %arg20[%c0_47, %c0_48] : memref<128x128xf32, #tpu.memory_space<vmem>>, vector<128x128xf32>
    %c0_49 = arith.constant 0 : index
    %c0_50 = arith.constant 0 : index
    %92 = vector.load %arg12[%c0_49, %c0_50] : memref<1x128xf32, #tpu.memory_space<vmem>>, vector<1x128xf32>
    %c0_51 = arith.constant 0 : index
    %c0_52 = arith.constant 0 : index
    %93 = vector.load %arg13[%c0_51, %c0_52] : memref<1x128xf32, #tpu.memory_space<vmem>>, vector<1x128xf32>
    %cst_53 = arith.constant dense<0.000000e+00> : vector<128xf32>
    %94 = vector.multi_reduction <add>, %91, %cst_53 [0] : vector<128x128xf32> to vector<128xf32>
    %95 = vector.shape_cast %94 : vector<128xf32> to vector<1x128xf32>
    %96 = arith.mulf %91, %91 : vector<128x128xf32>
    %cst_54 = arith.constant dense<0.000000e+00> : vector<128xf32>
    %97 = vector.multi_reduction <add>, %96, %cst_54 [0] : vector<128x128xf32> to vector<128xf32>
    %98 = vector.shape_cast %97 : vector<128xf32> to vector<1x128xf32>
    %cst_55 = arith.constant 7.812500e-03 : f32
    %99 = vector.broadcast %cst_55 : f32 to vector<1x128xf32>
    %100 = arith.mulf %95, %99 : vector<1x128xf32>
    %cst_56 = arith.constant 7.812500e-03 : f32
    %101 = vector.broadcast %cst_56 : f32 to vector<1x128xf32>
    %102 = arith.mulf %98, %101 : vector<1x128xf32>
    %103 = arith.mulf %100, %100 : vector<1x128xf32>
    %104 = arith.subf %102, %103 : vector<1x128xf32>
    %cst_57 = arith.constant 0.000000e+00 : f32
    %105 = vector.broadcast %cst_57 : f32 to vector<1x128xf32>
    %106 = arith.maximumf %104, %105 : vector<1x128xf32>
    %107 = vector.broadcast %100 : vector<1x128xf32> to vector<128x128xf32>
    %108 = arith.subf %91, %107 : vector<128x128xf32>
    %cst_58 = arith.constant 9.99999974E-6 : f32
    %109 = vector.broadcast %cst_58 : f32 to vector<1x128xf32>
    %110 = arith.addf %106, %109 : vector<1x128xf32>
    %111 = math.rsqrt %110 : vector<1x128xf32>
    %112 = arith.mulf %111, %92 : vector<1x128xf32>
    %113 = vector.broadcast %112 : vector<1x128xf32> to vector<128x128xf32>
    %114 = arith.mulf %108, %113 : vector<128x128xf32>
    %115 = vector.broadcast %93 : vector<1x128xf32> to vector<128x128xf32>
    %116 = arith.addf %114, %115 : vector<128x128xf32>
    %c0_59 = arith.constant 0 : index
    %c0_60 = arith.constant 0 : index
    %117 = vector.load %arg4[%c0_59, %c0_60] : memref<256x128xbf16, #tpu.memory_space<vmem>>, vector<256x128xbf16>
    %118 = arith.truncf %116 : vector<128x128xf32> to vector<128x128xbf16>
    %cst_61 = arith.constant dense<0.000000e+00> : vector<256x128xf32>
    %119 = tpu.matmul %117, %118, %cst_61 {dimension_numbers = #tpu.dot_dimension_numbers<[1], [1], [0], [0], [0, 0, 1, 0], [], []>} : vector<256x128xbf16>, vector<128x128xbf16>, vector<256x128xf32> -> vector<256x128xf32>
    %cst_62 = arith.constant 0.000000e+00 : f32
    %120 = vector.broadcast %cst_62 : f32 to vector<256x128xf32>
    %121 = arith.cmpf oge, %119, %120 : vector<256x128xf32>
    %cst_63 = arith.constant 2.000000e-01 : f32
    %122 = vector.broadcast %cst_63 : f32 to vector<256x128xf32>
    %123 = arith.mulf %122, %119 : vector<256x128xf32>
    %124 = arith.select %121, %119, %123 : vector<256x128xi1>, vector<256x128xf32>
    %125 = vector.extract_strided_slice %124 {offsets = [0, 0], sizes = [64, 128], strides = [1, 1]} : vector<256x128xf32> to vector<64x128xf32>
    %c0_64 = arith.constant 0 : index
    %c0_65 = arith.constant 0 : index
    %126 = vector.load %arg21[%c0_64, %c0_65] : memref<64x512xf32, #tpu.memory_space<vmem>>, vector<64x128xf32>
    tpu.vector_store %arg21[%c0_64, %c0_65], %125 {strides = array<i32>} : memref<64x512xf32, #tpu.memory_space<vmem>>, vector<64x128xf32>,
    %127 = vector.extract_strided_slice %124 {offsets = [64, 0], sizes = [64, 128], strides = [1, 1]} : vector<256x128xf32> to vector<64x128xf32>
    %c0_66 = arith.constant 0 : index
    %c128 = arith.constant 128 : index
    %128 = vector.load %arg21[%c0_66, %c128] : memref<64x512xf32, #tpu.memory_space<vmem>>, vector<64x128xf32>
    tpu.vector_store %arg21[%c0_66, %c128], %127 {strides = array<i32>} : memref<64x512xf32, #tpu.memory_space<vmem>>, vector<64x128xf32>,
    %129 = vector.extract_strided_slice %124 {offsets = [128, 0], sizes = [64, 128], strides = [1, 1]} : vector<256x128xf32> to vector<64x128xf32>
    %c0_67 = arith.constant 0 : index
    %c256 = arith.constant 256 : index
    %130 = vector.load %arg21[%c0_67, %c256] : memref<64x512xf32, #tpu.memory_space<vmem>>, vector<64x128xf32>
    tpu.vector_store %arg21[%c0_67, %c256], %129 {strides = array<i32>} : memref<64x512xf32, #tpu.memory_space<vmem>>, vector<64x128xf32>,
    %131 = vector.extract_strided_slice %124 {offsets = [192, 0], sizes = [64, 128], strides = [1, 1]} : vector<256x128xf32> to vector<64x128xf32>
    %c0_68 = arith.constant 0 : index
    %c384 = arith.constant 384 : index
    %132 = vector.load %arg21[%c0_68, %c384] : memref<64x512xf32, #tpu.memory_space<vmem>>, vector<64x128xf32>
    tpu.vector_store %arg21[%c0_68, %c384], %131 {strides = array<i32>} : memref<64x512xf32, #tpu.memory_space<vmem>>, vector<64x128xf32>,
    %c0_69 = arith.constant 0 : index
    %c0_70 = arith.constant 0 : index
    %133 = vector.load %arg21[%c0_69, %c0_70] : memref<64x512xf32, #tpu.memory_space<vmem>>, vector<64x512xf32>
    %c0_71 = arith.constant 0 : index
    %c0_72 = arith.constant 0 : index
    %134 = vector.load %arg14[%c0_71, %c0_72] : memref<64x1xf32, #tpu.memory_space<vmem>>, vector<64x1xf32>
    %c0_73 = arith.constant 0 : index
    %c0_74 = arith.constant 0 : index
    %135 = vector.load %arg15[%c0_73, %c0_74] : memref<64x1xf32, #tpu.memory_space<vmem>>, vector<64x1xf32>
    %cst_75 = arith.constant dense<0.000000e+00> : vector<64xf32>
    %136 = vector.multi_reduction <add>, %133, %cst_75 [1] : vector<64x512xf32> to vector<64xf32>
    %137 = vector.shape_cast %136 : vector<64xf32> to vector<64x1xf32>
    %138 = arith.mulf %133, %133 : vector<64x512xf32>
    %cst_76 = arith.constant dense<0.000000e+00> : vector<64xf32>
    %139 = vector.multi_reduction <add>, %138, %cst_76 [1] : vector<64x512xf32> to vector<64xf32>
    %140 = vector.shape_cast %139 : vector<64xf32> to vector<64x1xf32>
    %cst_77 = arith.constant 0.001953125 : f32
    %141 = vector.broadcast %cst_77 : f32 to vector<64x1xf32>
    %142 = arith.mulf %137, %141 : vector<64x1xf32>
    %cst_78 = arith.constant 0.001953125 : f32
    %143 = vector.broadcast %cst_78 : f32 to vector<64x1xf32>
    %144 = arith.mulf %140, %143 : vector<64x1xf32>
    %145 = arith.mulf %142, %142 : vector<64x1xf32>
    %146 = arith.subf %144, %145 : vector<64x1xf32>
    %cst_79 = arith.constant 0.000000e+00 : f32
    %147 = vector.broadcast %cst_79 : f32 to vector<64x1xf32>
    %148 = arith.maximumf %146, %147 : vector<64x1xf32>
    %149 = vector.broadcast %142 : vector<64x1xf32> to vector<64x512xf32>
    %150 = arith.subf %133, %149 : vector<64x512xf32>
    %cst_80 = arith.constant 9.99999974E-6 : f32
    %151 = vector.broadcast %cst_80 : f32 to vector<64x1xf32>
    %152 = arith.addf %148, %151 : vector<64x1xf32>
    %153 = math.rsqrt %152 : vector<64x1xf32>
    %154 = arith.mulf %153, %134 : vector<64x1xf32>
    %155 = vector.broadcast %154 : vector<64x1xf32> to vector<64x512xf32>
    %156 = arith.mulf %150, %155 : vector<64x512xf32>
    %157 = vector.broadcast %135 : vector<64x1xf32> to vector<64x512xf32>
    %158 = arith.addf %156, %157 : vector<64x512xf32>
    %c0_81 = arith.constant 0 : index
    %c0_82 = arith.constant 0 : index
    %159 = vector.load %arg5[%c0_81, %c0_82] : memref<128x64xbf16, #tpu.memory_space<vmem>>, vector<128x64xbf16>
    %160 = arith.truncf %158 : vector<64x512xf32> to vector<64x512xbf16>
    %cst_83 = arith.constant dense<0.000000e+00> : vector<128x512xf32>
    %161 = tpu.matmul %159, %160, %cst_83 {dimension_numbers = #tpu.dot_dimension_numbers<[1], [0], [0], [1], [0, 0, 1, 1], [], []>} : vector<128x64xbf16>, vector<64x512xbf16>, vector<128x512xf32> -> vector<128x512xf32>
    %cst_84 = arith.constant 0.000000e+00 : f32
    %162 = vector.broadcast %cst_84 : f32 to vector<128x512xf32>
    %163 = arith.cmpf oge, %161, %162 : vector<128x512xf32>
    %cst_85 = arith.constant 2.000000e-01 : f32
    %164 = vector.broadcast %cst_85 : f32 to vector<128x512xf32>
    %165 = arith.mulf %164, %161 : vector<128x512xf32>
    %166 = arith.select %163, %161, %165 : vector<128x512xi1>, vector<128x512xf32>
    %167 = vector.extract_strided_slice %166 {offsets = [0, 0], sizes = [32, 512], strides = [1, 1]} : vector<128x512xf32> to vector<32x512xf32>
    %c0_86 = arith.constant 0 : index
    %c0_87 = arith.constant 0 : index
    %168 = vector.load %arg22[%c0_86, %c0_87] : memref<32x2048xf32, #tpu.memory_space<vmem>>, vector<32x512xf32>
    tpu.vector_store %arg22[%c0_86, %c0_87], %167 {strides = array<i32>} : memref<32x2048xf32, #tpu.memory_space<vmem>>, vector<32x512xf32>,
    %169 = vector.extract_strided_slice %166 {offsets = [32, 0], sizes = [32, 512], strides = [1, 1]} : vector<128x512xf32> to vector<32x512xf32>
    %c0_88 = arith.constant 0 : index
    %c512 = arith.constant 512 : index
    %170 = vector.load %arg22[%c0_88, %c512] : memref<32x2048xf32, #tpu.memory_space<vmem>>, vector<32x512xf32>
    tpu.vector_store %arg22[%c0_88, %c512], %169 {strides = array<i32>} : memref<32x2048xf32, #tpu.memory_space<vmem>>, vector<32x512xf32>,
    %171 = vector.extract_strided_slice %166 {offsets = [64, 0], sizes = [32, 512], strides = [1, 1]} : vector<128x512xf32> to vector<32x512xf32>
    %c0_89 = arith.constant 0 : index
    %c1024 = arith.constant 1024 : index
    %172 = vector.load %arg22[%c0_89, %c1024] : memref<32x2048xf32, #tpu.memory_space<vmem>>, vector<32x512xf32>
    tpu.vector_store %arg22[%c0_89, %c1024], %171 {strides = array<i32>} : memref<32x2048xf32, #tpu.memory_space<vmem>>, vector<32x512xf32>,
    %173 = vector.extract_strided_slice %166 {offsets = [96, 0], sizes = [32, 512], strides = [1, 1]} : vector<128x512xf32> to vector<32x512xf32>
    %c0_90 = arith.constant 0 : index
    %c1536 = arith.constant 1536 : index
    %174 = vector.load %arg22[%c0_90, %c1536] : memref<32x2048xf32, #tpu.memory_space<vmem>>, vector<32x512xf32>
    tpu.vector_store %arg22[%c0_90, %c1536], %173 {strides = array<i32>} : memref<32x2048xf32, #tpu.memory_space<vmem>>, vector<32x512xf32>,
    %c0_91 = arith.constant 0 : index
    %c0_92 = arith.constant 0 : index
    %175 = vector.load %arg22[%c0_91, %c0_92] : memref<32x2048xf32, #tpu.memory_space<vmem>>, vector<32x2048xf32>
    %c0_93 = arith.constant 0 : index
    %c0_94 = arith.constant 0 : index
    %176 = vector.load %arg16[%c0_93, %c0_94] : memref<32x1xf32, #tpu.memory_space<vmem>>, vector<32x1xf32>
    %c0_95 = arith.constant 0 : index
    %c0_96 = arith.constant 0 : index
    %177 = vector.load %arg17[%c0_95, %c0_96] : memref<32x1xf32, #tpu.memory_space<vmem>>, vector<32x1xf32>
    %cst_97 = arith.constant dense<0.000000e+00> : vector<32xf32>
    %178 = vector.multi_reduction <add>, %175, %cst_97 [1] : vector<32x2048xf32> to vector<32xf32>
    %179 = vector.shape_cast %178 : vector<32xf32> to vector<32x1xf32>
    %180 = arith.mulf %175, %175 : vector<32x2048xf32>
    %cst_98 = arith.constant dense<0.000000e+00> : vector<32xf32>
    %181 = vector.multi_reduction <add>, %180, %cst_98 [1] : vector<32x2048xf32> to vector<32xf32>
    %182 = vector.shape_cast %181 : vector<32xf32> to vector<32x1xf32>
    %cst_99 = arith.constant 4.8828125E-4 : f32
    %183 = vector.broadcast %cst_99 : f32 to vector<32x1xf32>
    %184 = arith.mulf %179, %183 : vector<32x1xf32>
    %cst_100 = arith.constant 4.8828125E-4 : f32
    %185 = vector.broadcast %cst_100 : f32 to vector<32x1xf32>
    %186 = arith.mulf %182, %185 : vector<32x1xf32>
    %187 = arith.mulf %184, %184 : vector<32x1xf32>
    %188 = arith.subf %186, %187 : vector<32x1xf32>
    %cst_101 = arith.constant 0.000000e+00 : f32
    %189 = vector.broadcast %cst_101 : f32 to vector<32x1xf32>
    %190 = arith.maximumf %188, %189 : vector<32x1xf32>
    %191 = vector.broadcast %184 : vector<32x1xf32> to vector<32x2048xf32>
    %192 = arith.subf %175, %191 : vector<32x2048xf32>
    %cst_102 = arith.constant 9.99999974E-6 : f32
    %193 = vector.broadcast %cst_102 : f32 to vector<32x1xf32>
    %194 = arith.addf %190, %193 : vector<32x1xf32>
    %195 = math.rsqrt %194 : vector<32x1xf32>
    %196 = arith.mulf %195, %176 : vector<32x1xf32>
    %197 = vector.broadcast %196 : vector<32x1xf32> to vector<32x2048xf32>
    %198 = arith.mulf %192, %197 : vector<32x2048xf32>
    %199 = vector.broadcast %177 : vector<32x1xf32> to vector<32x2048xf32>
    %200 = arith.addf %198, %199 : vector<32x2048xf32>
    %c0_103 = arith.constant 0 : index
    %c0_104 = arith.constant 0 : index
    %201 = vector.load %arg6[%c0_103, %c0_104] : memref<8x32xbf16, #tpu.memory_space<vmem>>, vector<8x32xbf16>
    %202 = arith.truncf %200 : vector<32x2048xf32> to vector<32x2048xbf16>
    %cst_105 = arith.constant dense<0.000000e+00> : vector<8x2048xf32>
    %203 = tpu.matmul %201, %202, %cst_105 {dimension_numbers = #tpu.dot_dimension_numbers<[1], [0], [0], [1], [0, 0, 1, 1], [], []>} : vector<8x32xbf16>, vector<32x2048xbf16>, vector<8x2048xf32> -> vector<8x2048xf32>
    %c0_106 = arith.constant 0 : index
    %c0_107 = arith.constant 0 : index
    %204 = vector.load %arg7[%c0_106, %c0_107] : memref<1x1xf32, #tpu.memory_space<vmem>>, vector<1x1xf32>
    %205 = vector.broadcast %204 : vector<1x1xf32> to vector<8x2048xf32>
    %206 = arith.addf %203, %205 : vector<8x2048xf32>
    %207 = math.tanh %206 : vector<8x2048xf32>
    %c0_108 = arith.constant 0 : index
    %c0_109 = arith.constant 0 : index
    %208 = vector.load %arg18[%c0_108, %c0_109] : memref<8x2048xf32, #tpu.memory_space<vmem>>, vector<8x2048xf32>
    tpu.vector_store %arg18[%c0_108, %c0_109], %207 {strides = array<i32>} : memref<8x2048xf32, #tpu.memory_space<vmem>>, vector<8x2048xf32>,
    return
  }
}

</mosaic_0001>

<bundles_post_ra>
// kernel: decoder_forward.1
= control target key start
LH: loop header
LB: loop body
LE: loop exit
PB: predicated region body
PF: predicated region fallthrough
CT: control target
= control target key end

     0   :  { %s13128_s0 = inlined_call_operand.vmem [shape: bf16[8,1024], index: 0, kind: input, shape index: {}]   ;;  %s13129_s1 = inlined_call_operand.hbm [shape: bf16[1024,512], index: 1, kind: input, shape index: {}]   ;;  %s13130_s2 = inlined_call_operand.hbm [shape: bf16[512,1024], index: 2, kind: input, shape index: {}]   ;;  %s13131_s3 = inlined_call_operand.hbm [shape: bf16[256,512], index: 3, kind: input, shape index: {}]   ;;  %s13132_s4 = inlined_call_operand.vmem [shape: bf16[256,128], index: 4, kind: input, shape index: {}]   ;;  %s13133_s5 = inlined_call_operand.vmem [shape: bf16[128,64], index: 5, kind: input, shape index: {}]   ;;  %s13134_s6 = inlined_call_operand.vmem [shape: bf16[8,32], index: 6, kind: input, shape index: {}]   ;;  %s13135_s7 = inlined_call_operand.<no memory space> [shape: f32[1,1], index: 7, kind: input, shape index: {}]   ;;  %s13136_s8 = inlined_call_operand.vmem [shape: f32[1,512], index: 8, kind: input, shape index: {}]   ;;  %s13137_s9 = inlined_call_operand.vmem [shape: f32[1,512], index: 9, kind: input, shape index: {}]   ;;  %s13138_s10 = inlined_call_operand.vmem [shape: f32[1,256], index: 10, kind: input, shape index: {}]   ;;  %s13139_s11 = inlined_call_operand.vmem [shape: f32[1,256], index: 11, kind: input, shape index: {}]   ;;  %s13140_s12 = inlined_call_operand.vmem [shape: f32[1,128], index: 12, kind: input, shape index: {}]   ;;  %s13141_s13 = inlined_call_operand.vmem [shape: f32[1,128], index: 13, kind: input, shape index: {}]   ;;  %s13142_s14 = inlined_call_operand.vmem [shape: f32[64,1], index: 14, kind: input, shape index: {}]   ;;  %s13143_s15 = inlined_call_operand.vmem [shape: f32[64,1], index: 15, kind: input, shape index: {}]   ;;  %s13144_s16 = inlined_call_operand.vmem [shape: f32[32,1], index: 16, kind: input, shape index: {}]   ;;  %s13145_s17 = inlined_call_operand.vmem [shape: f32[32,1], index: 17, kind: input, shape index: {}]   ;;  %s13146_s18 = inlined_call_operand.vmem [shape: f32[8,2048], index: 18, kind: output, shape index: {}]  }
   0x1   :  { %13216 = sst [smem:[#allocation48_spill]] %s13128_s0  ;;  %v23_v0 = vstv %s13135_s7 }
   0x2   :  { %13217 = sst [smem:[#allocation49_spill]] %s13129_s1  ;;  %24 = vst [vmem:[#allocation6] sm:$0x1] %v23_v0 }
   0x3   :  { %13218 = sst [smem:[#allocation50_spill]] %s13130_s2 }
   0x4   :  { %13219 = sst [smem:[#allocation51_spill]] %s13146_s18 }
   0x5   :  { %25 = vsyncpa [#allocation8], 0 }
   0x6   :  { %26 = vsyncpa [#allocation10], 0  ;;  %s13220_s0 = sld [smem:[#allocation50_spill]]  ;;  %s10567_s1 = smov [#allocation9]  }
   0x7   :  { %s48_s20 = sshll.u32 %s10567_s1, 4  ;;  %s13221_s2 = sld [smem:[#allocation49_spill]]  ;;  %s49_s20 = int_to_ptr.vmem [resolvable:$true] %s48_s20 }
   0x8   :  { %s10568_s24 = smov 512   ;;  %s10569_s25 = smov 32  }
   0x9   :  { %s10570_s7 = smov [#allocation7]   ;;  %s10571_s27 = smov 256  }
   0xa   :  { %s35_s26 = sshll.u32 %s10570_s7, 4  ;;  %s10572_s28 = smov 16   ;;  %s36_s26 = int_to_ptr.vmem [resolvable:$true] %s35_s26 }
   0xb   :  { %s10573_s1 = smov [#allocation11]  }
   0xc   :  { %s46_s19 = sshll.u32 %s13220_s0, 4  ;;  %s59_s0 = sshll.u32 %s13131_s3, 4  ;;  %s47_s19 = int_to_ptr.hbm [resolvable:$true] %s46_s19  ;;  %s60_s0 = int_to_ptr.hbm [resolvable:$true] %s59_s0 }
   0xd   :  { %s33_s23 = sshll.u32 %s13221_s2, 4  ;;  %s61_s18 = sshll.u32 %s10573_s1, 4  ;;  %s34_s23 = int_to_ptr.hbm [resolvable:$true] %s33_s23  ;;  %s62_s18 = int_to_ptr.vmem [resolvable:$true] %s61_s18 }
   0xe   :  { %54 = dma.hbm_to_vmem [thread:$0]  %s47_s19, 32768, %s49_s20, [#allocation10], %s10568_s24, %s10568_s24, %s10569_s25  }
   0xf   :  { %41 = dma.hbm_to_vmem [thread:$0]  %s34_s23, 32768, %s36_s26, [#allocation8], %s10571_s27, %s10571_s27, %s10572_s28  }
  0x10   :  { %67 = dma.hbm_to_vmem [thread:$0]  %s60_s0, 8192, %s62_s18, [#allocation10], %s10571_s27, %s10571_s27, %s10572_s28  }
  0x11   :  { %10563 = dma.done.wait [#allocation8], 32768  }
  0x12   :  { %10564 = vsyncadd [#allocation8], 4294934528 }
  0x13   :  { %10565 = dma.done.wait [#allocation10], 40960  }
  0x14   :  { %10566 = vsyncadd [#allocation10], 4294926336  ;;  %v7472_v1 = vld [vmem:[#allocation7 + $0xe0] sm:$0xf]  ;;  %v9836_v2 = vld [vmem:[#allocation7 + $0xec] sm:$0xf0] }
  0x15   :  { %v7600_v3 = vld [vmem:[#allocation7 + $0x1e0] sm:$0xf]  ;;  %v7473_v4 = vor.u32 %v9836_v2, %v7472_v1  ;;  %v9868_v5 = vld [vmem:[#allocation7 + $0x1ec] sm:$0xf0]  ;;  %s13222_s19 = sld [smem:[#allocation48_spill]] }
  0x16   :  { %v7728_v6 = vld [vmem:[#allocation7 + $0x2e0] sm:$0xf]  ;;  %v9900_v7 = vld [vmem:[#allocation7 + $0x2ec] sm:$0xf0]  ;;  %v7601_v8 = vor.u32 %v9868_v5, %v7600_v3  ;;  %s13384_s0 = sld [smem:[#allocation51_spill]] }
  0x17   :  { %v7729_v9 = vor.u32 %v9900_v7, %v7728_v6  ;;  %v7856_v10 = vld [vmem:[#allocation7 + $0x3e0] sm:$0xf]  ;;  %v9932_v11 = vld [vmem:[#allocation7 + $0x3ec] sm:$0xf0]  ;;  %1677 = vmatpush.bf16.msra.mxu0 %v7473_v4 }
  0x18   :  { %v7456_v12 = vld [vmem:[#allocation7 + $0xc0] sm:$0xf]  ;;  %v7857_v13 = vor.u32 %v9932_v11, %v7856_v10  ;;  %v9832_v14 = vld [vmem:[#allocation7 + $0xcc] sm:$0xf0]  ;;  %1690 = vmatpush.bf16.msra.mxu1 %v7601_v8 }
  0x19   :  { %v7584_v15 = vld [vmem:[#allocation7 + $0x1c0] sm:$0xf]  ;;  %v9864_v16 = vld [vmem:[#allocation7 + $0x1cc] sm:$0xf0]  ;;  %1703 = vmatpush.bf16.msra.mxu2 %v7729_v9  ;;  %v7457_v17 = vor.u32 %v9832_v14, %v7456_v12 }
  0x1a   :  { %v7585_v18 = vor.u32 %v9864_v16, %v7584_v15  ;;  %v7712_v19 = vld [vmem:[#allocation7 + $0x2c0] sm:$0xf]  ;;  %v9896_v20 = vld [vmem:[#allocation7 + $0x2cc] sm:$0xf0]  ;;  %1716 = vmatpush.bf16.msra.mxu3 %v7857_v13 }
  0x1b   :  { %v7840_v21 = vld [vmem:[#allocation7 + $0x3c0] sm:$0xf]  ;;  %v7713_v22 = vor.u32 %v9896_v20, %v7712_v19  ;;  %v9928_v23 = vld [vmem:[#allocation7 + $0x3cc] sm:$0xf0]  ;;  %1678 = vmatpush.bf16.msra.mxu0 %v7457_v17 }
  0x1c   :  { %v7440_v24 = vld [vmem:[#allocation7 + $0xa0] sm:$0xf]  ;;  %v9828_v25 = vld [vmem:[#allocation7 + $0xac] sm:$0xf0]  ;;  %v7841_v26 = vor.u32 %v9928_v23, %v7840_v21  ;;  %1691 = vmatpush.bf16.msra.mxu1 %v7585_v18 }
  0x1d   :  { %v7568_v27 = vld [vmem:[#allocation7 + $0x1a0] sm:$0xf]  ;;  %v9860_v28 = vld [vmem:[#allocation7 + $0x1ac] sm:$0xf0]  ;;  %v7441_v30 = vor.u32 %v9828_v25, %v7440_v24  ;;  %1704 = vmatpush.bf16.msra.mxu2 %v7713_v22 }
  0x1e   :  { %v7696_v29 = vld [vmem:[#allocation7 + $0x2a0] sm:$0xf]  ;;  %v9892_v31 = vld [vmem:[#allocation7 + $0x2ac] sm:$0xf0]  ;;  %v7569_v34 = vor.u32 %v9860_v28, %v7568_v27  ;;  %1717 = vmatpush.bf16.msra.mxu3 %v7841_v26 }
  0x1f   :  { %v7824_v32 = vld [vmem:[#allocation7 + $0x3a0] sm:$0xf]  ;;  %v9924_v33 = vld [vmem:[#allocation7 + $0x3ac] sm:$0xf0]  ;;  %v7697_v35 = vor.u32 %v9892_v31, %v7696_v29  ;;  %1679 = vmatpush.bf16.msra.mxu0 %v7441_v30 }
  0x20   :  { %v7424_v36 = vld [vmem:[#allocation7 + $0x80] sm:$0xf]  ;;  %v9824_v37 = vld [vmem:[#allocation7 + $0x8c] sm:$0xf0]  ;;  %v7825_v39 = vor.u32 %v9924_v33, %v7824_v32  ;;  %1692 = vmatpush.bf16.msra.mxu1 %v7569_v34 }
  0x21   :  { %v7552_v38 = vld [vmem:[#allocation7 + $0x180] sm:$0xf]  ;;  %v9856_v40 = vld [vmem:[#allocation7 + $0x18c] sm:$0xf0]  ;;  %v7425_v45 = vor.u32 %v9824_v37, %v7424_v36  ;;  %1705 = vmatpush.bf16.msra.mxu2 %v7697_v35 }
  0x22   :  { %v7680_v41 = vld [vmem:[#allocation7 + $0x280] sm:$0xf]  ;;  %v9888_v42 = vld [vmem:[#allocation7 + $0x28c] sm:$0xf0]  ;;  %v7553_v46 = vor.u32 %v9856_v40, %v7552_v38  ;;  %1718 = vmatpush.bf16.msra.mxu3 %v7825_v39 }
  0x23   :  { %v7808_v43 = vld [vmem:[#allocation7 + $0x380] sm:$0xf]  ;;  %v9920_v44 = vld [vmem:[#allocation7 + $0x38c] sm:$0xf0]  ;;  %v7681_v47 = vor.u32 %v9888_v42, %v7680_v41  ;;  %1680 = vmatpush.bf16.msra.mxu0 %v7425_v45 }
  0x24   :  { %v7408_v48 = vld [vmem:[#allocation7 + $0x60] sm:$0xf]  ;;  %v9820_v49 = vld [vmem:[#allocation7 + $0x6c] sm:$0xf0]  ;;  %v7809_v51 = vor.u32 %v9920_v44, %v7808_v43  ;;  %1693 = vmatpush.bf16.msra.mxu1 %v7553_v46 }
  0x25   :  { %v7536_v50 = vld [vmem:[#allocation7 + $0x160] sm:$0xf]  ;;  %v9852_v52 = vld [vmem:[#allocation7 + $0x16c] sm:$0xf0]  ;;  %v7409_v57 = vor.u32 %v9820_v49, %v7408_v48  ;;  %1706 = vmatpush.bf16.msra.mxu2 %v7681_v47 }
  0x26   :  { %v7664_v53 = vld [vmem:[#allocation7 + $0x260] sm:$0xf]  ;;  %v9884_v54 = vld [vmem:[#allocation7 + $0x26c] sm:$0xf0]  ;;  %v7537_v58 = vor.u32 %v9852_v52, %v7536_v50  ;;  %1719 = vmatpush.bf16.msra.mxu3 %v7809_v51 }
  0x27   :  { %v7792_v55 = vld [vmem:[#allocation7 + $0x360] sm:$0xf]  ;;  %v9916_v56 = vld [vmem:[#allocation7 + $0x36c] sm:$0xf0]  ;;  %v7665_v59 = vor.u32 %v9884_v54, %v7664_v53  ;;  %1681 = vmatpush.bf16.msra.mxu0 %v7409_v57  ;;  %v110_v53 = vld [vmem:[%s13222_s19 + $0x8] sm:$0xff] }
  0x28   :  { %v7392_v60 = vld [vmem:[#allocation7 + $0x40] sm:$0xf]  ;;  %v9816_v61 = vld [vmem:[#allocation7 + $0x4c] sm:$0xf0]  ;;  %v7793_v63 = vor.u32 %v9916_v56, %v7792_v55  ;;  %1694 = vmatpush.bf16.msra.mxu1 %v7537_v58  ;;  %v375_v56 = vunpack.c.l.b16 %v110_v53  ;;  %v376_v57 = vunpack.c.h.b16 %v110_v53 }
  0x29   :  { %v7520_v62 = vld [vmem:[#allocation7 + $0x140] sm:$0xf]  ;;  %v9848_v0 = vld [vmem:[#allocation7 + $0x14c] sm:$0xf0]  ;;  %v7393_v5 = vor.u32 %v9816_v61, %v7392_v60  ;;  %1707 = vmatpush.bf16.msra.mxu2 %v7665_v59 }
  0x2a   :  { %v7648_v1 = vld [vmem:[#allocation7 + $0x240] sm:$0xf]  ;;  %v9880_v2 = vld [vmem:[#allocation7 + $0x24c] sm:$0xf0]  ;;  %v7521_v6 = vor.u32 %v9848_v0, %v7520_v62  ;;  %1720 = vmatpush.bf16.msra.mxu3 %v7793_v63 }
  0x2b   :  { %v7776_v3 = vld [vmem:[#allocation7 + $0x340] sm:$0xf]  ;;  %v9912_v4 = vld [vmem:[#allocation7 + $0x34c] sm:$0xf0]  ;;  %v7649_v7 = vor.u32 %v9880_v2, %v7648_v1  ;;  %1682 = vmatpush.bf16.msra.mxu0 %v7393_v5  ;;  %v10685_v2 = vpack.c.b16 %v375_v56, %v375_v56 }
  0x2c   :  { %v7376_v8 = vld [vmem:[#allocation7 + $0x20] sm:$0xf]  ;;  %v9812_v9 = vld [vmem:[#allocation7 + $0x2c] sm:$0xf0]  ;;  %v7777_v11 = vor.u32 %v9912_v4, %v7776_v3  ;;  %1695 = vmatpush.bf16.msra.mxu1 %v7521_v6 }
  0x2d   :  { %v7504_v10 = vld [vmem:[#allocation7 + $0x120] sm:$0xf]  ;;  %v9844_v12 = vld [vmem:[#allocation7 + $0x12c] sm:$0xf0]  ;;  %v7377_v17 = vor.u32 %v9812_v9, %v7376_v8  ;;  %1708 = vmatpush.bf16.msra.mxu2 %v7649_v7  ;;  %v10690_v7 = vpack.c.b16 %v376_v57, %v376_v57 }
  0x2e   :  { %v7632_v13 = vld [vmem:[#allocation7 + $0x220] sm:$0xf]  ;;  %v9876_v14 = vld [vmem:[#allocation7 + $0x22c] sm:$0xf0]  ;;  %v7505_v20 = vor.u32 %v9844_v12, %v7504_v10  ;;  %1721 = vmatpush.bf16.msra.mxu3 %v7777_v11 }
  0x2f   :  { %v7760_v15 = vld [vmem:[#allocation7 + $0x320] sm:$0xf]  ;;  %v9908_v16 = vld [vmem:[#allocation7 + $0x32c] sm:$0xf0]  ;;  %v7633_v21 = vor.u32 %v9876_v14, %v7632_v13  ;;  %1683 = vmatpush.bf16.msra.mxu0 %v7377_v17 }
  0x30   :  { %v7360_v18 = vld [vmem:[#allocation7] sm:$0xf]  ;;  %v9808_v19 = vld [vmem:[#allocation7 + $0xc] sm:$0xf0]  ;;  %v7761_v25 = vor.u32 %v9908_v16, %v7760_v15  ;;  %1696 = vmatpush.bf16.msra.mxu1 %v7505_v20 }
  0x31   :  { %v7488_v22 = vld [vmem:[#allocation7 + $0x100] sm:$0xf]  ;;  %v9840_v23 = vld [vmem:[#allocation7 + $0x10c] sm:$0xf0]  ;;  %v7361_v32 = vor.u32 %v9808_v19, %v7360_v18  ;;  %1709 = vmatpush.bf16.msra.mxu2 %v7633_v21 }
  0x32   :  { %v7616_v24 = vld [vmem:[#allocation7 + $0x200] sm:$0xf]  ;;  %v9872_v26 = vld [vmem:[#allocation7 + $0x20c] sm:$0xf0]  ;;  %v7489_v36 = vor.u32 %v9840_v23, %v7488_v22  ;;  %1722 = vmatpush.bf16.msra.mxu3 %v7761_v25 }
  0x33   :  { %v7744_v27 = vld [vmem:[#allocation7 + $0x300] sm:$0xf]  ;;  %v9904_v28 = vld [vmem:[#allocation7 + $0x30c] sm:$0xf0]  ;;  %v7617_v37 = vor.u32 %v9872_v26, %v7616_v24  ;;  %1684 = vmatpush.bf16.msra.mxu0 %v7361_v32 }
  0x34   :  { %v7984_v29 = vld [vmem:[#allocation7 + $0x4e0] sm:$0xf]  ;;  %v9964_v30 = vld [vmem:[#allocation7 + $0x4ec] sm:$0xf0]  ;;  %v7745_v40 = vor.u32 %v9904_v28, %v7744_v27  ;;  %1697 = vmatpush.bf16.msra.mxu1 %v7489_v36 }
  0x35   :  { %v8112_v31 = vld [vmem:[#allocation7 + $0x5e0] sm:$0xf]  ;;  %v9996_v33 = vld [vmem:[#allocation7 + $0x5ec] sm:$0xf0]  ;;  %v7985_v41 = vor.u32 %v9964_v30, %v7984_v29  ;;  %1710 = vmatpush.bf16.msra.mxu2 %v7617_v37 }
  0x36   :  { %v8240_v34 = vld [vmem:[#allocation7 + $0x6e0] sm:$0xf]  ;;  %v10028_v35 = vld [vmem:[#allocation7 + $0x6ec] sm:$0xf0]  ;;  %v8113_v42 = vor.u32 %v9996_v33, %v8112_v31  ;;  %1723 = vmatpush.bf16.msra.mxu3 %v7745_v40 }
  0x37   :  { %v8368_v38 = vld [vmem:[#allocation7 + $0x7e0] sm:$0xf]  ;;  %v10060_v39 = vld [vmem:[#allocation7 + $0x7ec] sm:$0xf0]  ;;  %v8241_v43 = vor.u32 %v10028_v35, %v8240_v34  ;;  %1729 = vmatpush.bf16.msrb.mxu0 %v7985_v41 }
  0x38   :  { %v7968_v44 = vld [vmem:[#allocation7 + $0x4c0] sm:$0xf]  ;;  %v9960_v45 = vld [vmem:[#allocation7 + $0x4cc] sm:$0xf0]  ;;  %v8369_v47 = vor.u32 %v10060_v39, %v8368_v38  ;;  %1742 = vmatpush.bf16.msrb.mxu1 %v8113_v42  ;;  %1711 = vmatmul.bf16.vlgmr.msra.gmra.mxu2 %v10685_v2 }
  0x39   :  { %v8096_v46 = vld [vmem:[#allocation7 + $0x5c0] sm:$0xf]  ;;  %v9992_v48 = vld [vmem:[#allocation7 + $0x5cc] sm:$0xf0]  ;;  %v7969_v54 = vor.u32 %v9960_v45, %v7968_v44  ;;  %1755 = vmatpush.bf16.msrb.mxu2 %v8241_v43  ;;  %1724 = vmatmul.bf16.vlgmr.msra.gmra.mxu3 %v10690_v7 }
  0x3a   :  { %v8224_v49 = vld [vmem:[#allocation7 + $0x6c0] sm:$0xf]  ;;  %v10024_v50 = vld [vmem:[#allocation7 + $0x6cc] sm:$0xf0]  ;;  %v8097_v58 = vor.u32 %v9992_v48, %v8096_v46  ;;  %1768 = vmatpush.bf16.msrb.mxu3 %v8369_v47 }
  0x3b   :  { %v8352_v51 = vld [vmem:[#allocation7 + $0x7c0] sm:$0xf]  ;;  %v10056_v52 = vld [vmem:[#allocation7 + $0x7cc] sm:$0xf0]  ;;  %v8225_v59 = vor.u32 %v10024_v50, %v8224_v49  ;;  %1730 = vmatpush.bf16.msrb.mxu0 %v7969_v54 }
  0x3c   :  { %v7952_v55 = vld [vmem:[#allocation7 + $0x4a0] sm:$0xf]  ;;  %v9956_v60 = vld [vmem:[#allocation7 + $0x4ac] sm:$0xf0]  ;;  %v8353_v63 = vor.u32 %v10056_v52, %v8352_v51  ;;  %1743 = vmatpush.bf16.msrb.mxu1 %v8097_v58 }
  0x3d   :  { %v8080_v61 = vld [vmem:[#allocation7 + $0x5a0] sm:$0xf]  ;;  %v9988_v62 = vld [vmem:[#allocation7 + $0x5ac] sm:$0xf0]  ;;  %v7953_v9 = vor.u32 %v9956_v60, %v7952_v55  ;;  %1756 = vmatpush.bf16.msrb.mxu2 %v8225_v59 }
  0x3e   :  { %v8208_v0 = vld [vmem:[#allocation7 + $0x6a0] sm:$0xf]  ;;  %v10020_v1 = vld [vmem:[#allocation7 + $0x6ac] sm:$0xf0]  ;;  %v8081_v10 = vor.u32 %v9988_v62, %v8080_v61  ;;  %1769 = vmatpush.bf16.msrb.mxu3 %v8353_v63 }
  0x3f   :  { %v109_v3 = vld [vmem:[%s13222_s19] sm:$0xff]  ;;  %v10052_v5 = vld [vmem:[#allocation7 + $0x7ac] sm:$0xf0]  ;;  %v8209_v11 = vor.u32 %v10020_v1, %v8208_v0  ;;  %1731 = vmatpush.bf16.msrb.mxu0 %v7953_v9 }
  0x40   :  { %v8336_v4 = vld [vmem:[#allocation7 + $0x7a0] sm:$0xf]  ;;  %v373_v6 = vunpack.c.l.b16 %v109_v3  ;;  %v374_v8 = vunpack.c.h.b16 %v109_v3  ;;  %v9952_v13 = vld [vmem:[#allocation7 + $0x48c] sm:$0xf0]  ;;  %1744 = vmatpush.bf16.msrb.mxu1 %v8081_v10 }
  0x41   :  { %v7936_v12 = vld [vmem:[#allocation7 + $0x480] sm:$0xf]  ;;  %v8337_v17 = vor.u32 %v10052_v5, %v8336_v4  ;;  %v9984_v18 = vld [vmem:[#allocation7 + $0x58c] sm:$0xf0]  ;;  %1757 = vmatpush.bf16.msrb.mxu2 %v8209_v11  ;;  %v112_v5 = vld [vmem:[%s13222_s19 + $0x18] sm:$0xff] }
  0x42   :  { %v8064_v14 = vld [vmem:[#allocation7 + $0x580] sm:$0xf]  ;;  %v10693_v15 = vpack.c.b16 %v373_v6, %v373_v6  ;;  %v10695_v16 = vpack.c.b16 %v374_v8, %v374_v8  ;;  %v10016_v20 = vld [vmem:[#allocation7 + $0x68c] sm:$0xf0]  ;;  %v7937_v23 = vor.u32 %v9952_v13, %v7936_v12  ;;  %v9834_v11 = vld [vmem:[#allocation7 + $0xe4] sm:$0xf] }
  0x43   :  { %v8192_v19 = vld [vmem:[#allocation7 + $0x680] sm:$0xf]  ;;  %v10048_v22 = vld [vmem:[#allocation7 + $0x78c] sm:$0xf0]  ;;  %v8065_v24 = vor.u32 %v9984_v18, %v8064_v14  ;;  %1770 = vmatpush.bf16.msrb.mxu3 %v8337_v17  ;;  %v7474_v12 = vld [vmem:[#allocation7 + $0xf0] sm:$0xf0] }
  0x44   :  { %v8320_v21 = vld [vmem:[#allocation7 + $0x780] sm:$0xf]  ;;  %1685 = vmatmul.bf16.vlgmr.msra.gmra.mxu0 %v10693_v15  ;;  %1698 = vmatmul.bf16.vlgmr.msra.gmra.mxu1 %v10695_v16  ;;  %v8193_v25 = vor.u32 %v10016_v20, %v8192_v19  ;;  %v9948_v27 = vld [vmem:[#allocation7 + $0x46c] sm:$0xf0]  ;;  %v9866_v13 = vld [vmem:[#allocation7 + $0x1e4] sm:$0xf]  ;;  %v379_v20 = vunpack.c.l.b16 %v112_v5 }
  0x45   :  { %v7920_v26 = vld [vmem:[#allocation7 + $0x460] sm:$0xf]  ;;  %v8321_v29 = vor.u32 %v10048_v22, %v8320_v21  ;;  %v9980_v30 = vld [vmem:[#allocation7 + $0x56c] sm:$0xf0]  ;;  %1732 = vmatpush.bf16.msrb.mxu0 %v7937_v23  ;;  %1745 = vmatpush.bf16.msrb.mxu1 %v8065_v24  ;;  %v7602_v17 = vld [vmem:[#allocation7 + $0x1f0] sm:$0xf0] }
  0x46   :  { %v8048_v28 = vld [vmem:[#allocation7 + $0x560] sm:$0xf]  ;;  %v10012_v32 = vld [vmem:[#allocation7 + $0x66c] sm:$0xf0]  ;;  %v7921_v35 = vor.u32 %v9948_v27, %v7920_v26  ;;  %1758 = vmatpush.bf16.msrb.mxu2 %v8193_v25  ;;  %v9898_v18 = vld [vmem:[#allocation7 + $0x2e4] sm:$0xf]  ;;  %v380_v26 = vunpack.c.h.b16 %v112_v5 }
  0x47   :  { %v8176_v31 = vld [vmem:[#allocation7 + $0x660] sm:$0xf]  ;;  %v10044_v34 = vld [vmem:[#allocation7 + $0x76c] sm:$0xf0]  ;;  %v8049_v36 = vor.u32 %v9980_v30, %v8048_v28  ;;  %1771 = vmatpush.bf16.msrb.mxu3 %v8321_v29  ;;  %v7730_v19 = vld [vmem:[#allocation7 + $0x2f0] sm:$0xf0]  ;;  %v7477_v28 = vor.u32 %v9834_v11, %v7474_v12  ;;  %v7605_v30 = vor.u32 %v9866_v13, %v7602_v17 }
  0x48   :  { %v8304_v33 = vld [vmem:[#allocation7 + $0x760] sm:$0xf]  ;;  %v8177_v37 = vor.u32 %v10012_v32, %v8176_v31  ;;  %v9944_v39 = vld [vmem:[#allocation7 + $0x44c] sm:$0xf0]  ;;  %v9930_v23 = vld [vmem:[#allocation7 + $0x3e4] sm:$0xf]  ;;  %v7733_v31 = vor.u32 %v9898_v18, %v7730_v19 }
  0x49   :  { %v7904_v38 = vld [vmem:[#allocation7 + $0x440] sm:$0xf]  ;;  %v8305_v41 = vor.u32 %v10044_v34, %v8304_v33  ;;  %v9976_v42 = vld [vmem:[#allocation7 + $0x54c] sm:$0xf0]  ;;  %1733 = vmatpush.bf16.msrb.mxu0 %v7921_v35  ;;  %1746 = vmatpush.bf16.msrb.mxu1 %v8049_v36  ;;  %v7858_v24 = vld [vmem:[#allocation7 + $0x3f0] sm:$0xf0]  ;;  %v10706_v36 = vpack.c.b16 %v379_v20, %v379_v20 }
  0x4a   :  { %v8032_v40 = vld [vmem:[#allocation7 + $0x540] sm:$0xf]  ;;  %v10008_v44 = vld [vmem:[#allocation7 + $0x64c] sm:$0xf0]  ;;  %v7905_v47 = vor.u32 %v9944_v39, %v7904_v38  ;;  %1759 = vmatpush.bf16.msrb.mxu2 %v8177_v37  ;;  %v9830_v32 = vld [vmem:[#allocation7 + $0xc4] sm:$0xf]  ;;  %v7861_v35 = vor.u32 %v9930_v23, %v7858_v24 }
  0x4b   :  { %v8160_v43 = vld [vmem:[#allocation7 + $0x640] sm:$0xf]  ;;  %v10040_v46 = vld [vmem:[#allocation7 + $0x74c] sm:$0xf0]  ;;  %v8033_v48 = vor.u32 %v9976_v42, %v8032_v40  ;;  %1772 = vmatpush.bf16.msrb.mxu3 %v8305_v41  ;;  %v7458_v33 = vld [vmem:[#allocation7 + $0xd0] sm:$0xf0]  ;;  %v10710_v41 = vpack.c.b16 %v380_v26, %v380_v26 }
  0x4c   :  { %v8288_v45 = vld [vmem:[#allocation7 + $0x740] sm:$0xf]  ;;  %v8161_v49 = vor.u32 %v10008_v44, %v8160_v43  ;;  %v9940_v51 = vld [vmem:[#allocation7 + $0x42c] sm:$0xf0]  ;;  %v9862_v34 = vld [vmem:[#allocation7 + $0x1c4] sm:$0xf]  ;;  %v7461_v44 = vor.u32 %v9830_v32, %v7458_v33 }
  0x4d   :  { %v7888_v50 = vld [vmem:[#allocation7 + $0x420] sm:$0xf]  ;;  %v8289_v53 = vor.u32 %v10040_v46, %v8288_v45  ;;  %v9972_v54 = vld [vmem:[#allocation7 + $0x52c] sm:$0xf0]  ;;  %1734 = vmatpush.bf16.msrb.mxu0 %v7905_v47  ;;  %1747 = vmatpush.bf16.msrb.mxu1 %v8033_v48  ;;  %v7586_v37 = vld [vmem:[#allocation7 + $0x1d0] sm:$0xf0] }
  0x4e   :  { %v8016_v52 = vld [vmem:[#allocation7 + $0x520] sm:$0xf]  ;;  %v10004_v56 = vld [vmem:[#allocation7 + $0x62c] sm:$0xf0]  ;;  %v7889_v60 = vor.u32 %v9940_v51, %v7888_v50  ;;  %1760 = vmatpush.bf16.msrb.mxu2 %v8161_v49  ;;  %v9894_v38 = vld [vmem:[#allocation7 + $0x2c4] sm:$0xf]  ;;  %v7589_v46 = vor.u32 %v9862_v34, %v7586_v37 }
  0x4f   :  { %v8144_v55 = vld [vmem:[#allocation7 + $0x620] sm:$0xf]  ;;  %v10036_v58 = vld [vmem:[#allocation7 + $0x72c] sm:$0xf0]  ;;  %v8017_v0 = vor.u32 %v9972_v54, %v8016_v52  ;;  %1773 = vmatpush.bf16.msrb.mxu3 %v8289_v53  ;;  %v7714_v39 = vld [vmem:[#allocation7 + $0x2d0] sm:$0xf0] }
  0x50   :  { %v8272_v57 = vld [vmem:[#allocation7 + $0x720] sm:$0xf]  ;;  %v9936_v61 = vld [vmem:[#allocation7 + $0x40c] sm:$0xf0]  ;;  %v8145_v1 = vor.u32 %v10004_v56, %v8144_v55  ;;  %v9926_v42 = vld [vmem:[#allocation7 + $0x3c4] sm:$0xf]  ;;  %v7717_v47 = vor.u32 %v9894_v38, %v7714_v39 }
  0x51   :  { %v7872_v59 = vld [vmem:[#allocation7 + $0x400] sm:$0xf]  ;;  %v9968_v63 = vld [vmem:[#allocation7 + $0x50c] sm:$0xf0]  ;;  %v8273_v6 = vor.u32 %v10036_v58, %v8272_v57  ;;  %1735 = vmatpush.bf16.msrb.mxu0 %v7889_v60  ;;  %1748 = vmatpush.bf16.msrb.mxu1 %v8017_v0  ;;  %v7842_v43 = vld [vmem:[#allocation7 + $0x3d0] sm:$0xf0] }
  0x52   :  { %v8000_v62 = vld [vmem:[#allocation7 + $0x500] sm:$0xf]  ;;  %v10000_v4 = vld [vmem:[#allocation7 + $0x60c] sm:$0xf0]  ;;  %v7873_v14 = vor.u32 %v9936_v61, %v7872_v59  ;;  %1761 = vmatpush.bf16.msrb.mxu2 %v8145_v1  ;;  %v9826_v48 = vld [vmem:[#allocation7 + $0xa4] sm:$0xf]  ;;  %v7845_v51 = vor.u32 %v9926_v42, %v7842_v43 }
  0x53   :  { %v8128_v3 = vld [vmem:[#allocation7 + $0x600] sm:$0xf]  ;;  %v10032_v9 = vld [vmem:[#allocation7 + $0x70c] sm:$0xf0]  ;;  %v8001_v21 = vor.u32 %v9968_v63, %v8000_v62  ;;  %1774 = vmatpush.bf16.msrb.mxu3 %v8273_v6  ;;  %v7442_v49 = vld [vmem:[#allocation7 + $0xb0] sm:$0xf0] }
  0x54   :  { %v8256_v8 = vld [vmem:[#allocation7 + $0x700] sm:$0xf]  ;;  %v111_v10 = vld [vmem:[%s13222_s19 + $0x10] sm:$0xff]  ;;  %v8129_v22 = vor.u32 %v10000_v4, %v8128_v3  ;;  %v9858_v50 = vld [vmem:[#allocation7 + $0x1a4] sm:$0xf]  ;;  %v7445_v57 = vor.u32 %v9826_v48, %v7442_v49 }
  0x55   :  { %v377_v25 = vunpack.c.l.b16 %v111_v10  ;;  %v8257_v27 = vor.u32 %v10032_v9, %v8256_v8  ;;  %v378_v29 = vunpack.c.h.b16 %v111_v10  ;;  %1736 = vmatpush.bf16.msrb.mxu0 %v7873_v14  ;;  %1749 = vmatpush.bf16.msrb.mxu1 %v8001_v21  ;;  %v7570_v52 = vld [vmem:[#allocation7 + $0x1b0] sm:$0xf0]  ;;  %v9890_v53 = vld [vmem:[#allocation7 + $0x2a4] sm:$0xf] }
  0x56   :  { %1762 = vmatpush.bf16.msrb.mxu2 %v8129_v22  ;;  %v7698_v54 = vld [vmem:[#allocation7 + $0x2b0] sm:$0xf0]  ;;  %v9922_v55 = vld [vmem:[#allocation7 + $0x3a4] sm:$0xf]  ;;  %v7573_v58 = vor.u32 %v9858_v50, %v7570_v52 }
  0x57   :  { %v10708_v40 = vpack.c.b16 %v377_v25, %v377_v25  ;;  %1775 = vmatpush.bf16.msrb.mxu3 %v8257_v27  ;;  %v10712_v45 = vpack.c.b16 %v378_v29, %v378_v29  ;;  %v7826_v56 = vld [vmem:[#allocation7 + $0x3b0] sm:$0xf0]  ;;  %v7701_v59 = vor.u32 %v9890_v53, %v7698_v54  ;;  %v9822_v60 = vld [vmem:[#allocation7 + $0x84] sm:$0xf] }
  0x58   :  { %v7426_v61 = vld [vmem:[#allocation7 + $0x90] sm:$0xf0]  ;;  %v9854_v62 = vld [vmem:[#allocation7 + $0x184] sm:$0xf]  ;;  %v7829_v63 = vor.u32 %v9922_v55, %v7826_v56 }
  0x59   :  { %1781 = vmatpush.bf16.msra.mxu0 %v7477_v28  ;;  %1794 = vmatpush.bf16.msra.mxu1 %v7605_v30  ;;  %v7554_v0 = vld [vmem:[#allocation7 + $0x190] sm:$0xf0]  ;;  %v9886_v1 = vld [vmem:[#allocation7 + $0x284] sm:$0xf]  ;;  %v7429_v6 = vor.u32 %v9822_v60, %v7426_v61 }
  0x5a   :  { %1807 = vmatpush.bf16.msra.mxu2 %v7733_v31  ;;  %1737 = vmatmul.bf16.vlgmr.msrb.gmra.mxu0 %v10708_v40  ;;  %v7682_v3 = vld [vmem:[#allocation7 + $0x290] sm:$0xf0]  ;;  %v9918_v4 = vld [vmem:[#allocation7 + $0x384] sm:$0xf]  ;;  %v7557_v8 = vor.u32 %v9854_v62, %v7554_v0 }
  0x5b   :  { %1820 = vmatpush.bf16.msra.mxu3 %v7861_v35  ;;  %1763 = vmatmul.bf16.vlgmr.msrb.gmra.mxu2 %v10706_v36  ;;  %v7810_v5 = vld [vmem:[#allocation7 + $0x390] sm:$0xf0]  ;;  %v7685_v9 = vor.u32 %v9886_v1, %v7682_v3  ;;  %v9818_v10 = vld [vmem:[#allocation7 + $0x64] sm:$0xf] }
  0x5c   :  { %1776 = vmatmul.bf16.vlgmr.msrb.gmra.mxu3 %v10710_v41  ;;  %1750 = vmatmul.bf16.vlgmr.msrb.gmra.mxu1 %v10712_v45  ;;  %v7410_v11 = vld [vmem:[#allocation7 + $0x70] sm:$0xf0]  ;;  %v9850_v12 = vld [vmem:[#allocation7 + $0x164] sm:$0xf]  ;;  %v7813_v13 = vor.u32 %v9918_v4, %v7810_v5 }
  0x5d   :  { %1782 = vmatpush.bf16.msra.mxu0 %v7461_v44  ;;  %1795 = vmatpush.bf16.msra.mxu1 %v7589_v46  ;;  %v7538_v14 = vld [vmem:[#allocation7 + $0x170] sm:$0xf0]  ;;  %v9882_v17 = vld [vmem:[#allocation7 + $0x264] sm:$0xf]  ;;  %v7413_v21 = vor.u32 %v9818_v10, %v7410_v11 }
  0x5e   :  { %1808 = vmatpush.bf16.msra.mxu2 %v7717_v47  ;;  %v7666_v18 = vld [vmem:[#allocation7 + $0x270] sm:$0xf0]  ;;  %v9914_v19 = vld [vmem:[#allocation7 + $0x364] sm:$0xf]  ;;  %v7541_v22 = vor.u32 %v9850_v12, %v7538_v14 }
  0x5f   :  { %1821 = vmatpush.bf16.msra.mxu3 %v7845_v51  ;;  %v7794_v20 = vld [vmem:[#allocation7 + $0x370] sm:$0xf0]  ;;  %v7669_v23 = vor.u32 %v9882_v17, %v7666_v18  ;;  %v9814_v24 = vld [vmem:[#allocation7 + $0x44] sm:$0xf] }
  0x60   :  { %v7394_v25 = vld [vmem:[#allocation7 + $0x50] sm:$0xf0]  ;;  %v9846_v26 = vld [vmem:[#allocation7 + $0x144] sm:$0xf]  ;;  %v7797_v27 = vor.u32 %v9914_v19, %v7794_v20 }
  0x61   :  { %1783 = vmatpush.bf16.msra.mxu0 %v7445_v57  ;;  %1796 = vmatpush.bf16.msra.mxu1 %v7573_v58  ;;  %v7522_v28 = vld [vmem:[#allocation7 + $0x150] sm:$0xf0]  ;;  %v9878_v29 = vld [vmem:[#allocation7 + $0x244] sm:$0xf]  ;;  %v7397_v33 = vor.u32 %v9814_v24, %v7394_v25 }
  0x62   :  { %1809 = vmatpush.bf16.msra.mxu2 %v7701_v59  ;;  %v7650_v30 = vld [vmem:[#allocation7 + $0x250] sm:$0xf0]  ;;  %v9910_v31 = vld [vmem:[#allocation7 + $0x344] sm:$0xf]  ;;  %v7525_v34 = vor.u32 %v9846_v26, %v7522_v28 }
  0x63   :  { %1822 = vmatpush.bf16.msra.mxu3 %v7829_v63  ;;  %v7778_v32 = vld [vmem:[#allocation7 + $0x350] sm:$0xf0]  ;;  %v7653_v35 = vor.u32 %v9878_v29, %v7650_v30  ;;  %v9810_v37 = vld [vmem:[#allocation7 + $0x24] sm:$0xf] }
  0x64   :  { %v7378_v38 = vld [vmem:[#allocation7 + $0x30] sm:$0xf0]  ;;  %v9842_v39 = vld [vmem:[#allocation7 + $0x124] sm:$0xf]  ;;  %v7781_v42 = vor.u32 %v9910_v31, %v7778_v32 }
  0x65   :  { %1784 = vmatpush.bf16.msra.mxu0 %v7429_v6  ;;  %1797 = vmatpush.bf16.msra.mxu1 %v7557_v8  ;;  %v7506_v43 = vld [vmem:[#allocation7 + $0x130] sm:$0xf0]  ;;  %v9874_v44 = vld [vmem:[#allocation7 + $0x224] sm:$0xf]  ;;  %v7381_v49 = vor.u32 %v9810_v37, %v7378_v38 }
  0x66   :  { %1810 = vmatpush.bf16.msra.mxu2 %v7685_v9  ;;  %v7634_v46 = vld [vmem:[#allocation7 + $0x230] sm:$0xf0]  ;;  %v9906_v47 = vld [vmem:[#allocation7 + $0x324] sm:$0xf]  ;;  %v7509_v52 = vor.u32 %v9842_v39, %v7506_v43 }
  0x67   :  { %1823 = vmatpush.bf16.msra.mxu3 %v7813_v13  ;;  %v7762_v48 = vld [vmem:[#allocation7 + $0x330] sm:$0xf0]  ;;  %v9806_v50 = vld [vmem:[#allocation7 + $0x4] sm:$0xf]  ;;  %v7637_v53 = vor.u32 %v9874_v44, %v7634_v46 }
  0x68   :  { %v7362_v51 = vld [vmem:[#allocation7 + $0x10] sm:$0xf0]  ;;  %v9838_v54 = vld [vmem:[#allocation7 + $0x104] sm:$0xf]  ;;  %v7765_v57 = vor.u32 %v9906_v47, %v7762_v48 }
  0x69   :  { %1785 = vmatpush.bf16.msra.mxu0 %v7413_v21  ;;  %1798 = vmatpush.bf16.msra.mxu1 %v7541_v22  ;;  %v7490_v55 = vld [vmem:[#allocation7 + $0x110] sm:$0xf0]  ;;  %v9870_v56 = vld [vmem:[#allocation7 + $0x204] sm:$0xf]  ;;  %v7365_v0 = vor.u32 %v9806_v50, %v7362_v51 }
  0x6a   :  { %1811 = vmatpush.bf16.msra.mxu2 %v7669_v23  ;;  %v7618_v58 = vld [vmem:[#allocation7 + $0x210] sm:$0xf0]  ;;  %v9902_v59 = vld [vmem:[#allocation7 + $0x304] sm:$0xf]  ;;  %v7493_v5 = vor.u32 %v9838_v54, %v7490_v55 }
  0x6b   :  { %1824 = vmatpush.bf16.msra.mxu3 %v7797_v27  ;;  %v7746_v60 = vld [vmem:[#allocation7 + $0x310] sm:$0xf0]  ;;  %v9962_v61 = vld [vmem:[#allocation7 + $0x4e4] sm:$0xf]  ;;  %v7621_v6 = vor.u32 %v9870_v56, %v7618_v58 }
  0x6c   :  { %v7986_v62 = vld [vmem:[#allocation7 + $0x4f0] sm:$0xf0]  ;;  %v9994_v63 = vld [vmem:[#allocation7 + $0x5e4] sm:$0xf]  ;;  %v7749_v10 = vor.u32 %v9902_v59, %v7746_v60 }
  0x6d   :  { %1786 = vmatpush.bf16.msra.mxu0 %v7397_v33  ;;  %1799 = vmatpush.bf16.msra.mxu1 %v7525_v34  ;;  %v8114_v1 = vld [vmem:[#allocation7 + $0x5f0] sm:$0xf0]  ;;  %v10026_v3 = vld [vmem:[#allocation7 + $0x6e4] sm:$0xf]  ;;  %v7989_v11 = vor.u32 %v9962_v61, %v7986_v62 }
  0x6e   :  { %1812 = vmatpush.bf16.msra.mxu2 %v7653_v35  ;;  %v8242_v4 = vld [vmem:[#allocation7 + $0x6f0] sm:$0xf0]  ;;  %v10058_v8 = vld [vmem:[#allocation7 + $0x7e4] sm:$0xf]  ;;  %v8117_v12 = vor.u32 %v9994_v63, %v8114_v1 }
  0x6f   :  { %1825 = vmatpush.bf16.msra.mxu3 %v7781_v42  ;;  %v8370_v9 = vld [vmem:[#allocation7 + $0x7f0] sm:$0xf0]  ;;  %v8245_v13 = vor.u32 %v10026_v3, %v8242_v4  ;;  %v9958_v14 = vld [vmem:[#allocation7 + $0x4c4] sm:$0xf] }
  0x70   :  { %v7970_v17 = vld [vmem:[#allocation7 + $0x4d0] sm:$0xf0]  ;;  %v9990_v18 = vld [vmem:[#allocation7 + $0x5c4] sm:$0xf]  ;;  %v8373_v19 = vor.u32 %v10058_v8, %v8370_v9 }
  0x71   :  { %1787 = vmatpush.bf16.msra.mxu0 %v7381_v49  ;;  %1800 = vmatpush.bf16.msra.mxu1 %v7509_v52  ;;  %v8098_v20 = vld [vmem:[#allocation7 + $0x5d0] sm:$0xf0]  ;;  %v10022_v21 = vld [vmem:[#allocation7 + $0x6c4] sm:$0xf]  ;;  %v7973_v25 = vor.u32 %v9958_v14, %v7970_v17 }
  0x72   :  { %1813 = vmatpush.bf16.msra.mxu2 %v7637_v53  ;;  %v8226_v22 = vld [vmem:[#allocation7 + $0x6d0] sm:$0xf0]  ;;  %v10054_v23 = vld [vmem:[#allocation7 + $0x7c4] sm:$0xf]  ;;  %v8101_v26 = vor.u32 %v9990_v18, %v8098_v20 }
  0x73   :  { %1826 = vmatpush.bf16.msra.mxu3 %v7765_v57  ;;  %v8354_v24 = vld [vmem:[#allocation7 + $0x7d0] sm:$0xf0]  ;;  %v8229_v27 = vor.u32 %v10022_v21, %v8226_v22  ;;  %v9954_v28 = vld [vmem:[#allocation7 + $0x4a4] sm:$0xf] }
  0x74   :  { %v7954_v29 = vld [vmem:[#allocation7 + $0x4b0] sm:$0xf0]  ;;  %v9986_v30 = vld [vmem:[#allocation7 + $0x5a4] sm:$0xf]  ;;  %v8357_v31 = vor.u32 %v10054_v23, %v8354_v24 }
  0x75   :  { %1788 = vmatpush.bf16.msra.mxu0 %v7365_v0  ;;  %1801 = vmatpush.bf16.msra.mxu1 %v7493_v5  ;;  %v8082_v32 = vld [vmem:[#allocation7 + $0x5b0] sm:$0xf0]  ;;  %v10018_v33 = vld [vmem:[#allocation7 + $0x6a4] sm:$0xf]  ;;  %v7957_v38 = vor.u32 %v9954_v28, %v7954_v29 }
  0x76   :  { %1814 = vmatpush.bf16.msra.mxu2 %v7621_v6  ;;  %v8210_v34 = vld [vmem:[#allocation7 + $0x6b0] sm:$0xf0]  ;;  %v10050_v35 = vld [vmem:[#allocation7 + $0x7a4] sm:$0xf]  ;;  %v8085_v39 = vor.u32 %v9986_v30, %v8082_v32 }
  0x77   :  { %1827 = vmatpush.bf16.msra.mxu3 %v7749_v10  ;;  %v8338_v37 = vld [vmem:[#allocation7 + $0x7b0] sm:$0xf0]  ;;  %v8213_v42 = vor.u32 %v10018_v33, %v8210_v34  ;;  %v9950_v43 = vld [vmem:[#allocation7 + $0x484] sm:$0xf] }
  0x78   :  { %1789 = vmatmul.bf16.vlgmr.msra.gmra.mxu0 %v10693_v15  ;;  %1802 = vmatmul.bf16.vlgmr.msra.gmra.mxu1 %v10695_v16  ;;  %v7938_v44 = vld [vmem:[#allocation7 + $0x490] sm:$0xf0]  ;;  %v9982_v46 = vld [vmem:[#allocation7 + $0x584] sm:$0xf]  ;;  %v8341_v47 = vor.u32 %v10050_v35, %v8338_v37 }
  0x79   :  { %1833 = vmatpush.bf16.msrb.mxu0 %v7989_v11  ;;  %1846 = vmatpush.bf16.msrb.mxu1 %v8117_v12  ;;  %v8066_v48 = vld [vmem:[#allocation7 + $0x590] sm:$0xf0]  ;;  %v10014_v49 = vld [vmem:[#allocation7 + $0x684] sm:$0xf]  ;;  %v7941_v53 = vor.u32 %v9950_v43, %v7938_v44  ;;  %v7480_v44 = vld [vmem:[#allocation7 + $0xe8] sm:$0xf] }
  0x7a   :  { %1859 = vmatpush.bf16.msrb.mxu2 %v8245_v13  ;;  %1828 = vmatmul.bf16.vlgmr.msra.gmra.mxu3 %v10690_v7  ;;  %v8194_v50 = vld [vmem:[#allocation7 + $0x690] sm:$0xf0]  ;;  %v10046_v51 = vld [vmem:[#allocation7 + $0x784] sm:$0xf]  ;;  %v8069_v54 = vor.u32 %v9982_v46, %v8066_v48  ;;  %v9837_v46 = vld [vmem:[#allocation7 + $0xf4] sm:$0xf0] }
  0x7b   :  { %1872 = vmatpush.bf16.msrb.mxu3 %v8373_v19  ;;  %1815 = vmatmul.bf16.vlgmr.msra.gmra.mxu2 %v10685_v2  ;;  %v8322_v52 = vld [vmem:[#allocation7 + $0x790] sm:$0xf0]  ;;  %v8197_v55 = vor.u32 %v10014_v49, %v8194_v50  ;;  %v9946_v56 = vld [vmem:[#allocation7 + $0x464] sm:$0xf]  ;;  %v9869_v49 = vld [vmem:[#allocation7 + $0x1f4] sm:$0xf0] }
  0x7c   :  { %v7922_v57 = vld [vmem:[#allocation7 + $0x470] sm:$0xf0]  ;;  %v9978_v58 = vld [vmem:[#allocation7 + $0x564] sm:$0xf]  ;;  %v8325_v59 = vor.u32 %v10046_v51, %v8322_v52  ;;  %v7736_v50 = vld [vmem:[#allocation7 + $0x2e8] sm:$0xf] }
  0x7d   :  { %1834 = vmatpush.bf16.msrb.mxu0 %v7973_v25  ;;  %1847 = vmatpush.bf16.msrb.mxu1 %v8101_v26  ;;  %v8050_v60 = vld [vmem:[#allocation7 + $0x570] sm:$0xf0]  ;;  %v10010_v61 = vld [vmem:[#allocation7 + $0x664] sm:$0xf]  ;;  %v7925_v1 = vor.u32 %v9946_v56, %v7922_v57  ;;  %v9901_v51 = vld [vmem:[#allocation7 + $0x2f4] sm:$0xf0]  ;;  %v7481_v57 = vor.u32 %v9837_v46, %v7480_v44 }
  0x7e   :  { %1860 = vmatpush.bf16.msrb.mxu2 %v8229_v27  ;;  %v8178_v62 = vld [vmem:[#allocation7 + $0x670] sm:$0xf0]  ;;  %v10042_v63 = vld [vmem:[#allocation7 + $0x764] sm:$0xf]  ;;  %v8053_v3 = vor.u32 %v9978_v58, %v8050_v60  ;;  %v7464_v60 = vld [vmem:[#allocation7 + $0xc8] sm:$0xf] }
  0x7f   :  { %1873 = vmatpush.bf16.msrb.mxu3 %v8357_v31  ;;  %v8306_v0 = vld [vmem:[#allocation7 + $0x770] sm:$0xf0]  ;;  %v8181_v4 = vor.u32 %v10010_v61, %v8178_v62  ;;  %v9942_v5 = vld [vmem:[#allocation7 + $0x444] sm:$0xf]  ;;  %v9833_v61 = vld [vmem:[#allocation7 + $0xd4] sm:$0xf0] }
  0x80   :  { %v7906_v6 = vld [vmem:[#allocation7 + $0x450] sm:$0xf0]  ;;  %v9974_v8 = vld [vmem:[#allocation7 + $0x544] sm:$0xf]  ;;  %v8309_v9 = vor.u32 %v10042_v63, %v8306_v0  ;;  %v7592_v62 = vld [vmem:[#allocation7 + $0x1c8] sm:$0xf] }
  0x81   :  { %1835 = vmatpush.bf16.msrb.mxu0 %v7957_v38  ;;  %1848 = vmatpush.bf16.msrb.mxu1 %v8085_v39  ;;  %v8034_v10 = vld [vmem:[#allocation7 + $0x550] sm:$0xf0]  ;;  %v10006_v11 = vld [vmem:[#allocation7 + $0x644] sm:$0xf]  ;;  %v7909_v17 = vor.u32 %v9942_v5, %v7906_v6  ;;  %v9865_v0 = vld [vmem:[#allocation7 + $0x1d4] sm:$0xf0]  ;;  %v7465_v6 = vor.u32 %v9833_v61, %v7464_v60 }
  0x82   :  { %1861 = vmatpush.bf16.msrb.mxu2 %v8213_v42  ;;  %v8162_v12 = vld [vmem:[#allocation7 + $0x650] sm:$0xf0]  ;;  %v10038_v13 = vld [vmem:[#allocation7 + $0x744] sm:$0xf]  ;;  %v8037_v18 = vor.u32 %v9974_v8, %v8034_v10  ;;  %v9929_v5 = vld [vmem:[#allocation7 + $0x3d4] sm:$0xf0]  ;;  %v7593_v8 = vor.u32 %v9865_v0, %v7592_v62 }
  0x83   :  { %1874 = vmatpush.bf16.msrb.mxu3 %v8341_v47  ;;  %v8290_v14 = vld [vmem:[#allocation7 + $0x750] sm:$0xf0]  ;;  %v8165_v19 = vor.u32 %v10006_v11, %v8162_v12  ;;  %v9938_v20 = vld [vmem:[#allocation7 + $0x424] sm:$0xf]  ;;  %v7608_v47 = vld [vmem:[#allocation7 + $0x1e8] sm:$0xf] }
  0x84   :  { %v7890_v21 = vld [vmem:[#allocation7 + $0x430] sm:$0xf0]  ;;  %v9970_v22 = vld [vmem:[#allocation7 + $0x524] sm:$0xf]  ;;  %v8293_v23 = vor.u32 %v10038_v13, %v8290_v14  ;;  %v7609_v58 = vor.u32 %v9869_v49, %v7608_v47  ;;  %v7448_v10 = vld [vmem:[#allocation7 + $0xa8] sm:$0xf] }
  0x85   :  { %1836 = vmatpush.bf16.msrb.mxu0 %v7941_v53  ;;  %1849 = vmatpush.bf16.msrb.mxu1 %v8069_v54  ;;  %v8018_v24 = vld [vmem:[#allocation7 + $0x530] sm:$0xf0]  ;;  %v10002_v25 = vld [vmem:[#allocation7 + $0x624] sm:$0xf]  ;;  %v7893_v29 = vor.u32 %v9938_v20, %v7890_v21  ;;  %v7864_v54 = vld [vmem:[#allocation7 + $0x3e8] sm:$0xf] }
  0x86   :  { %1862 = vmatpush.bf16.msrb.mxu2 %v8197_v55  ;;  %v8146_v26 = vld [vmem:[#allocation7 + $0x630] sm:$0xf0]  ;;  %v10034_v27 = vld [vmem:[#allocation7 + $0x724] sm:$0xf]  ;;  %v8021_v32 = vor.u32 %v9970_v22, %v8018_v24  ;;  %v9933_v55 = vld [vmem:[#allocation7 + $0x3f4] sm:$0xf0] }
  0x87   :  { %1875 = vmatpush.bf16.msrb.mxu3 %v8325_v59  ;;  %v8274_v28 = vld [vmem:[#allocation7 + $0x730] sm:$0xf0]  ;;  %v9934_v30 = vld [vmem:[#allocation7 + $0x404] sm:$0xf]  ;;  %v8149_v33 = vor.u32 %v10002_v25, %v8146_v26  ;;  %v7737_v59 = vor.u32 %v9901_v51, %v7736_v50  ;;  %v7865_v63 = vor.u32 %v9933_v55, %v7864_v54  ;;  %v9829_v11 = vld [vmem:[#allocation7 + $0xb4] sm:$0xf0] }
  0x88   :  { %v7874_v31 = vld [vmem:[#allocation7 + $0x410] sm:$0xf0]  ;;  %v9966_v34 = vld [vmem:[#allocation7 + $0x504] sm:$0xf]  ;;  %v8277_v38 = vor.u32 %v10034_v27, %v8274_v28  ;;  %v7576_v12 = vld [vmem:[#allocation7 + $0x1a8] sm:$0xf]  ;;  %v7449_v21 = vor.u32 %v9829_v11, %v7448_v10 }
  0x89   :  { %1837 = vmatpush.bf16.msrb.mxu0 %v7925_v1  ;;  %1850 = vmatpush.bf16.msrb.mxu1 %v8053_v3  ;;  %v8002_v35 = vld [vmem:[#allocation7 + $0x510] sm:$0xf0]  ;;  %v9998_v37 = vld [vmem:[#allocation7 + $0x604] sm:$0xf]  ;;  %v7877_v48 = vor.u32 %v9934_v30, %v7874_v31  ;;  %v7720_v1 = vld [vmem:[#allocation7 + $0x2c8] sm:$0xf] }
  0x8a   :  { %1863 = vmatpush.bf16.msrb.mxu2 %v8181_v4  ;;  %v8130_v39 = vld [vmem:[#allocation7 + $0x610] sm:$0xf0]  ;;  %v10030_v42 = vld [vmem:[#allocation7 + $0x704] sm:$0xf]  ;;  %v8005_v52 = vor.u32 %v9966_v34, %v8002_v35  ;;  %v9897_v3 = vld [vmem:[#allocation7 + $0x2d4] sm:$0xf0] }
  0x8b   :  { %1876 = vmatpush.bf16.msrb.mxu3 %v8309_v9  ;;  %v8258_v43 = vld [vmem:[#allocation7 + $0x710] sm:$0xf0]  ;;  %v8133_v53 = vor.u32 %v9998_v37, %v8130_v39  ;;  %v7848_v4 = vld [vmem:[#allocation7 + $0x3c8] sm:$0xf]  ;;  %v7721_v9 = vor.u32 %v9897_v3, %v7720_v1  ;;  %v9861_v14 = vld [vmem:[#allocation7 + $0x1b4] sm:$0xf0] }
  0x8c   :  { %v8261_v56 = vor.u32 %v10030_v42, %v8258_v43  ;;  %v7849_v13 = vor.u32 %v9929_v5, %v7848_v4  ;;  %v9925_v20 = vld [vmem:[#allocation7 + $0x3b4] sm:$0xf0]  ;;  %v7577_v22 = vor.u32 %v9861_v14, %v7576_v12  ;;  %v7432_v24 = vld [vmem:[#allocation7 + $0x88] sm:$0xf] }
  0x8d   :  { %1838 = vmatpush.bf16.msrb.mxu0 %v7909_v17  ;;  %1851 = vmatpush.bf16.msrb.mxu1 %v8037_v18  ;;  %v7704_v17 = vld [vmem:[#allocation7 + $0x2a8] sm:$0xf]  ;;  %v9893_v18 = vld [vmem:[#allocation7 + $0x2b4] sm:$0xf0] }
  0x8e   :  { %1864 = vmatpush.bf16.msrb.mxu2 %v8165_v19  ;;  %v7832_v19 = vld [vmem:[#allocation7 + $0x3a8] sm:$0xf]  ;;  %v9825_v25 = vld [vmem:[#allocation7 + $0x94] sm:$0xf0] }
  0x8f   :  { %1877 = vmatpush.bf16.msrb.mxu3 %v8293_v23  ;;  %v7705_v23 = vor.u32 %v9893_v18, %v7704_v17  ;;  %v7560_v26 = vld [vmem:[#allocation7 + $0x188] sm:$0xf]  ;;  %v7833_v27 = vor.u32 %v9925_v20, %v7832_v19  ;;  %v9857_v28 = vld [vmem:[#allocation7 + $0x194] sm:$0xf0] }
  0x90   :  { %v9889_v30 = vld [vmem:[#allocation7 + $0x294] sm:$0xf0]  ;;  %v7816_v31 = vld [vmem:[#allocation7 + $0x388] sm:$0xf]  ;;  %v7561_v34 = vor.u32 %v9857_v28, %v7560_v26 }
  0x91   :  { %1839 = vmatpush.bf16.msrb.mxu0 %v7893_v29  ;;  %1852 = vmatpush.bf16.msrb.mxu1 %v8021_v32  ;;  %v7688_v29 = vld [vmem:[#allocation7 + $0x288] sm:$0xf]  ;;  %v9921_v32 = vld [vmem:[#allocation7 + $0x394] sm:$0xf0] }
  0x92   :  { %1865 = vmatpush.bf16.msrb.mxu2 %v8149_v33  ;;  %v7433_v33 = vor.u32 %v9825_v25, %v7432_v24  ;;  %v7689_v35 = vor.u32 %v9889_v30, %v7688_v29  ;;  %v7416_v37 = vld [vmem:[#allocation7 + $0x68] sm:$0xf]  ;;  %v7817_v42 = vor.u32 %v9921_v32, %v7816_v31  ;;  %v9853_v43 = vld [vmem:[#allocation7 + $0x174] sm:$0xf0] }
  0x93   :  { %1878 = vmatpush.bf16.msrb.mxu3 %v8277_v38  ;;  %v9821_v38 = vld [vmem:[#allocation7 + $0x74] sm:$0xf0]  ;;  %v7544_v39 = vld [vmem:[#allocation7 + $0x168] sm:$0xf] }
  0x94   :  { %v7672_v44 = vld [vmem:[#allocation7 + $0x268] sm:$0xf]  ;;  %v9885_v46 = vld [vmem:[#allocation7 + $0x274] sm:$0xf0]  ;;  %v7417_v49 = vor.u32 %v9821_v38, %v7416_v37  ;;  %v7545_v50 = vor.u32 %v9853_v43, %v7544_v39 }
  0x95   :  { %1840 = vmatpush.bf16.msrb.mxu0 %v7877_v48  ;;  %1853 = vmatpush.bf16.msrb.mxu1 %v8005_v52  ;;  %v7800_v47 = vld [vmem:[#allocation7 + $0x368] sm:$0xf]  ;;  %v9917_v48 = vld [vmem:[#allocation7 + $0x374] sm:$0xf0]  ;;  %v7673_v51 = vor.u32 %v9885_v46, %v7672_v44 }
  0x96   :  { %1866 = vmatpush.bf16.msrb.mxu2 %v8133_v53  ;;  %v7400_v52 = vld [vmem:[#allocation7 + $0x48] sm:$0xf]  ;;  %v9817_v53 = vld [vmem:[#allocation7 + $0x54] sm:$0xf0]  ;;  %v7801_v55 = vor.u32 %v9917_v48, %v7800_v47 }
  0x97   :  { %1879 = vmatpush.bf16.msrb.mxu3 %v8261_v56  ;;  %v7528_v54 = vld [vmem:[#allocation7 + $0x148] sm:$0xf]  ;;  %v9849_v56 = vld [vmem:[#allocation7 + $0x154] sm:$0xf0]  ;;  %v7401_v61 = vor.u32 %v9817_v53, %v7400_v52 }
  0x98   :  { %1841 = vmatmul.bf16.vlgmr.msrb.gmra.mxu0 %v10708_v40  ;;  %1854 = vmatmul.bf16.vlgmr.msrb.gmra.mxu1 %v10712_v45  ;;  %v9913_v60 = vld [vmem:[#allocation7 + $0x354] sm:$0xf0]  ;;  %v7529_v62 = vor.u32 %v9849_v56, %v7528_v54  ;;  %v7384_v0 = vld [vmem:[#allocation7 + $0x28] sm:$0xf] }
  0x99   :  { %1885 = vmatpush.bf16.msra.mxu0 %v7481_v57  ;;  %1898 = vmatpush.bf16.msra.mxu1 %v7609_v58  ;;  %v7656_v57 = vld [vmem:[#allocation7 + $0x248] sm:$0xf]  ;;  %v9881_v58 = vld [vmem:[#allocation7 + $0x254] sm:$0xf0] }
  0x9a   :  { %1911 = vmatpush.bf16.msra.mxu2 %v7737_v59  ;;  %1880 = vmatmul.bf16.vlgmr.msrb.gmra.mxu3 %v10710_v41  ;;  %v7784_v59 = vld [vmem:[#allocation7 + $0x348] sm:$0xf]  ;;  %v9813_v1 = vld [vmem:[#allocation7 + $0x34] sm:$0xf0] }
  0x9b   :  { %1924 = vmatpush.bf16.msra.mxu3 %v7865_v63  ;;  %1867 = vmatmul.bf16.vlgmr.msrb.gmra.mxu2 %v10706_v36  ;;  %v7657_v63 = vor.u32 %v9881_v58, %v7656_v57  ;;  %v7512_v3 = vld [vmem:[#allocation7 + $0x128] sm:$0xf]  ;;  %v7785_v4 = vor.u32 %v9913_v60, %v7784_v59  ;;  %v9845_v5 = vld [vmem:[#allocation7 + $0x134] sm:$0xf0]  ;;  %v7385_v11 = vor.u32 %v9813_v1, %v7384_v0 }
  0x9c   :  { %v9909_v10 = vld [vmem:[#allocation7 + $0x334] sm:$0xf0]  ;;  %v7368_v12 = vld [vmem:[#allocation7 + $0x8] sm:$0xf]  ;;  %v7513_v14 = vor.u32 %v9845_v5, %v7512_v3 }
  0x9d   :  { %1886 = vmatpush.bf16.msra.mxu0 %v7465_v6  ;;  %1899 = vmatpush.bf16.msra.mxu1 %v7593_v8  ;;  %v7640_v6 = vld [vmem:[#allocation7 + $0x228] sm:$0xf]  ;;  %v9877_v8 = vld [vmem:[#allocation7 + $0x234] sm:$0xf0] }
  0x9e   :  { %1912 = vmatpush.bf16.msra.mxu2 %v7721_v9  ;;  %v7768_v9 = vld [vmem:[#allocation7 + $0x328] sm:$0xf]  ;;  %v7641_v17 = vor.u32 %v9877_v8, %v7640_v6  ;;  %v9841_v19 = vld [vmem:[#allocation7 + $0x114] sm:$0xf0] }
  0x9f   :  { %1925 = vmatpush.bf16.msra.mxu3 %v7849_v13  ;;  %v9809_v13 = vld [vmem:[#allocation7 + $0x14] sm:$0xf0]  ;;  %v7496_v18 = vld [vmem:[#allocation7 + $0x108] sm:$0xf] }
  0xa0   :  { %v7624_v20 = vld [vmem:[#allocation7 + $0x208] sm:$0xf]  ;;  %v9905_v24 = vld [vmem:[#allocation7 + $0x314] sm:$0xf0]  ;;  %v7369_v28 = vor.u32 %v9809_v13, %v7368_v12  ;;  %v7497_v32 = vor.u32 %v9841_v19, %v7496_v18 }
  0xa1   :  { %1887 = vmatpush.bf16.msra.mxu0 %v7449_v21  ;;  %1900 = vmatpush.bf16.msra.mxu1 %v7577_v22  ;;  %v7769_v21 = vor.u32 %v9909_v10, %v7768_v9  ;;  %v9873_v22 = vld [vmem:[#allocation7 + $0x214] sm:$0xf0]  ;;  %v7992_v25 = vld [vmem:[#allocation7 + $0x4e8] sm:$0xf] }
  0xa2   :  { %1913 = vmatpush.bf16.msra.mxu2 %v7705_v23  ;;  %v7752_v23 = vld [vmem:[#allocation7 + $0x308] sm:$0xf]  ;;  %v9965_v26 = vld [vmem:[#allocation7 + $0x4f4] sm:$0xf0] }
  0xa3   :  { %1926 = vmatpush.bf16.msra.mxu3 %v7833_v27  ;;  %v8120_v27 = vld [vmem:[#allocation7 + $0x5e8] sm:$0xf]  ;;  %v9997_v29 = vld [vmem:[#allocation7 + $0x5f4] sm:$0xf0]  ;;  %v7753_v37 = vor.u32 %v9905_v24, %v7752_v23  ;;  %v7993_v38 = vor.u32 %v9965_v26, %v7992_v25 }
  0xa4   :  { %v8248_v30 = vld [vmem:[#allocation7 + $0x6e8] sm:$0xf]  ;;  %v10029_v31 = vld [vmem:[#allocation7 + $0x6f4] sm:$0xf0]  ;;  %v8121_v39 = vor.u32 %v9997_v29, %v8120_v27 }
  0xa5   :  { %1888 = vmatpush.bf16.msra.mxu0 %v7433_v33  ;;  %1901 = vmatpush.bf16.msra.mxu1 %v7561_v34  ;;  %v7625_v33 = vor.u32 %v9873_v22, %v7624_v20  ;;  %v8376_v34 = vld [vmem:[#allocation7 + $0x7e8] sm:$0xf]  ;;  %v9961_v44 = vld [vmem:[#allocation7 + $0x4d4] sm:$0xf0] }
  0xa6   :  { %1914 = vmatpush.bf16.msra.mxu2 %v7689_v35  ;;  %v10061_v35 = vld [vmem:[#allocation7 + $0x7f4] sm:$0xf0]  ;;  %v7976_v43 = vld [vmem:[#allocation7 + $0x4c8] sm:$0xf] }
  0xa7   :  { %1927 = vmatpush.bf16.msra.mxu3 %v7817_v42  ;;  %v8249_v42 = vor.u32 %v10029_v31, %v8248_v30  ;;  %v8104_v46 = vld [vmem:[#allocation7 + $0x5c8] sm:$0xf]  ;;  %v8377_v47 = vor.u32 %v10061_v35, %v8376_v34  ;;  %v9993_v48 = vld [vmem:[#allocation7 + $0x5d4] sm:$0xf0]  ;;  %v7977_v53 = vor.u32 %v9961_v44, %v7976_v43 }
  0xa8   :  { %v10057_v52 = vld [vmem:[#allocation7 + $0x7d4] sm:$0xf0]  ;;  %v8105_v54 = vor.u32 %v9993_v48, %v8104_v46  ;;  %v7960_v56 = vld [vmem:[#allocation7 + $0x4a8] sm:$0xf] }
  0xa9   :  { %1889 = vmatpush.bf16.msra.mxu0 %v7417_v49  ;;  %1902 = vmatpush.bf16.msra.mxu1 %v7545_v50  ;;  %v8232_v49 = vld [vmem:[#allocation7 + $0x6c8] sm:$0xf]  ;;  %v10025_v50 = vld [vmem:[#allocation7 + $0x6d4] sm:$0xf0] }
  0xaa   :  { %1915 = vmatpush.bf16.msra.mxu2 %v7673_v51  ;;  %v8360_v51 = vld [vmem:[#allocation7 + $0x7c8] sm:$0xf]  ;;  %v9957_v57 = vld [vmem:[#allocation7 + $0x4b4] sm:$0xf0] }
  0xab   :  { %1928 = vmatpush.bf16.msra.mxu3 %v7801_v55  ;;  %v8233_v55 = vor.u32 %v10025_v50, %v8232_v49  ;;  %v8088_v58 = vld [vmem:[#allocation7 + $0x5a8] sm:$0xf]  ;;  %v8361_v59 = vor.u32 %v10057_v52, %v8360_v51  ;;  %v9989_v60 = vld [vmem:[#allocation7 + $0x5b4] sm:$0xf0]  ;;  %v7961_v1 = vor.u32 %v9957_v57, %v7960_v56 }
  0xac   :  { %v10053_v0 = vld [vmem:[#allocation7 + $0x7b4] sm:$0xf0]  ;;  %v8089_v3 = vor.u32 %v9989_v60, %v8088_v58  ;;  %v7944_v5 = vld [vmem:[#allocation7 + $0x488] sm:$0xf] }
  0xad   :  { %1890 = vmatpush.bf16.msra.mxu0 %v7401_v61  ;;  %1903 = vmatpush.bf16.msra.mxu1 %v7529_v62  ;;  %v8216_v61 = vld [vmem:[#allocation7 + $0x6a8] sm:$0xf]  ;;  %v10021_v62 = vld [vmem:[#allocation7 + $0x6b4] sm:$0xf0] }
  0xae   :  { %1916 = vmatpush.bf16.msra.mxu2 %v7657_v63  ;;  %v8344_v63 = vld [vmem:[#allocation7 + $0x7a8] sm:$0xf]  ;;  %v9953_v6 = vld [vmem:[#allocation7 + $0x494] sm:$0xf0] }
  0xaf   :  { %1929 = vmatpush.bf16.msra.mxu3 %v7785_v4  ;;  %v8217_v4 = vor.u32 %v10021_v62, %v8216_v61  ;;  %v8072_v8 = vld [vmem:[#allocation7 + $0x588] sm:$0xf]  ;;  %v8345_v9 = vor.u32 %v10053_v0, %v8344_v63  ;;  %v9985_v10 = vld [vmem:[#allocation7 + $0x594] sm:$0xf0] }
  0xb0   :  { %v10017_v12 = vld [vmem:[#allocation7 + $0x694] sm:$0xf0]  ;;  %v8328_v13 = vld [vmem:[#allocation7 + $0x788] sm:$0xf]  ;;  %v8073_v18 = vor.u32 %v9985_v10, %v8072_v8 }
  0xb1   :  { %1891 = vmatpush.bf16.msra.mxu0 %v7385_v11  ;;  %1904 = vmatpush.bf16.msra.mxu1 %v7513_v14  ;;  %v8200_v11 = vld [vmem:[#allocation7 + $0x688] sm:$0xf]  ;;  %v10049_v14 = vld [vmem:[#allocation7 + $0x794] sm:$0xf0] }
  0xb2   :  { %1917 = vmatpush.bf16.msra.mxu2 %v7641_v17  ;;  %v7945_v17 = vor.u32 %v9953_v6, %v7944_v5  ;;  %v8201_v19 = vor.u32 %v10017_v12, %v8200_v11  ;;  %v7928_v20 = vld [vmem:[#allocation7 + $0x468] sm:$0xf]  ;;  %v8329_v23 = vor.u32 %v10049_v14, %v8328_v13  ;;  %v9981_v24 = vld [vmem:[#allocation7 + $0x574] sm:$0xf0]  ;;  %v9835_v13 = vld [vmem:[#allocation7 + $0xec] sm:$0xf] }
  0xb3   :  { %1930 = vmatpush.bf16.msra.mxu3 %v7769_v21  ;;  %v9949_v21 = vld [vmem:[#allocation7 + $0x474] sm:$0xf0]  ;;  %v8056_v22 = vld [vmem:[#allocation7 + $0x568] sm:$0xf]  ;;  %v7482_v14 = vld [vmem:[#allocation7 + $0xf8] sm:$0xf0] }
  0xb4   :  { %v8184_v25 = vld [vmem:[#allocation7 + $0x668] sm:$0xf]  ;;  %v10013_v26 = vld [vmem:[#allocation7 + $0x674] sm:$0xf0]  ;;  %v7929_v29 = vor.u32 %v9949_v21, %v7928_v20  ;;  %v8057_v31 = vor.u32 %v9981_v24, %v8056_v22  ;;  %v7610_v20 = vld [vmem:[#allocation7 + $0x1f8] sm:$0xf0] }
  0xb5   :  { %1892 = vmatpush.bf16.msra.mxu0 %v7369_v28  ;;  %1905 = vmatpush.bf16.msra.mxu1 %v7497_v32  ;;  %v8312_v27 = vld [vmem:[#allocation7 + $0x768] sm:$0xf]  ;;  %v10045_v28 = vld [vmem:[#allocation7 + $0x774] sm:$0xf0]  ;;  %v8185_v32 = vor.u32 %v10013_v26, %v8184_v25  ;;  %v9899_v21 = vld [vmem:[#allocation7 + $0x2ec] sm:$0xf] }
  0xb6   :  { %1918 = vmatpush.bf16.msra.mxu2 %v7625_v33  ;;  %v7912_v33 = vld [vmem:[#allocation7 + $0x448] sm:$0xf]  ;;  %v9945_v34 = vld [vmem:[#allocation7 + $0x454] sm:$0xf0]  ;;  %v7738_v22 = vld [vmem:[#allocation7 + $0x2f8] sm:$0xf0] }
  0xb7   :  { %1931 = vmatpush.bf16.msra.mxu3 %v7753_v37  ;;  %v8040_v35 = vld [vmem:[#allocation7 + $0x548] sm:$0xf]  ;;  %v10009_v43 = vld [vmem:[#allocation7 + $0x654] sm:$0xf0]  ;;  %v7913_v48 = vor.u32 %v9945_v34, %v7912_v33  ;;  %v9931_v25 = vld [vmem:[#allocation7 + $0x3ec] sm:$0xf]  ;;  %v7741_v33 = vor.u32 %v9899_v21, %v7738_v22 }
  0xb8   :  { %1893 = vmatmul.bf16.vlgmr.msra.gmra.mxu0 %v10693_v15  ;;  %1906 = vmatmul.bf16.vlgmr.msra.gmra.mxu1 %v10695_v16  ;;  %v8296_v44 = vld [vmem:[#allocation7 + $0x748] sm:$0xf]  ;;  %v10041_v46 = vld [vmem:[#allocation7 + $0x754] sm:$0xf0]  ;;  %v7866_v26 = vld [vmem:[#allocation7 + $0x3f8] sm:$0xf0] }
  0xb9   :  { %1937 = vmatpush.bf16.msrb.mxu0 %v7993_v38  ;;  %1950 = vmatpush.bf16.msrb.mxu1 %v8121_v39  ;;  %v8313_v38 = vor.u32 %v10045_v28, %v8312_v27  ;;  %v9977_v39 = vld [vmem:[#allocation7 + $0x554] sm:$0xf0]  ;;  %v7896_v51 = vld [vmem:[#allocation7 + $0x428] sm:$0xf]  ;;  %v7485_v28 = vor.u32 %v9835_v13, %v7482_v14  ;;  %v9831_v34 = vld [vmem:[#allocation7 + $0xcc] sm:$0xf] }
  0xba   :  { %1963 = vmatpush.bf16.msrb.mxu2 %v8249_v42  ;;  %1932 = vmatmul.bf16.vlgmr.msra.gmra.mxu3 %v10690_v7  ;;  %v8168_v42 = vld [vmem:[#allocation7 + $0x648] sm:$0xf]  ;;  %v8041_v49 = vor.u32 %v9977_v39, %v8040_v35  ;;  %v9941_v52 = vld [vmem:[#allocation7 + $0x434] sm:$0xf0]  ;;  %v7466_v35 = vld [vmem:[#allocation7 + $0xd8] sm:$0xf0]  ;;  %v7869_v39 = vor.u32 %v9931_v25, %v7866_v26 }
  0xbb   :  { %1976 = vmatpush.bf16.msrb.mxu3 %v8377_v47  ;;  %1919 = vmatmul.bf16.vlgmr.msra.gmra.mxu2 %v10685_v2  ;;  %v10734_v47 = vpop.f32.mrf.mxu2  ;;  %v8169_v50 = vor.u32 %v10009_v43, %v8168_v42  ;;  %v8152_v56 = vld [vmem:[#allocation7 + $0x628] sm:$0xf]  ;;  %v10005_v57 = vld [vmem:[#allocation7 + $0x634] sm:$0xf0]  ;;  %v7897_v61 = vor.u32 %v9941_v52, %v7896_v51  ;;  %v7594_v42 = vld [vmem:[#allocation7 + $0x1d8] sm:$0xf0] }
  0xbc   :  { %v10736_v58 = vpop.f32.mrf.mxu3  ;;  %v10037_v60 = vld [vmem:[#allocation7 + $0x734] sm:$0xf0]  ;;  %v7880_v62 = vld [vmem:[#allocation7 + $0x408] sm:$0xf]  ;;  %v9895_v43 = vld [vmem:[#allocation7 + $0x2cc] sm:$0xf] }
  0xbd   :  { %1938 = vmatpush.bf16.msrb.mxu0 %v7977_v53  ;;  %1951 = vmatpush.bf16.msrb.mxu1 %v8105_v54  ;;  %v8024_v53 = vld [vmem:[#allocation7 + $0x528] sm:$0xf]  ;;  %v8297_v54 = vor.u32 %v10041_v46, %v8296_v44  ;;  %v9937_v63 = vld [vmem:[#allocation7 + $0x414] sm:$0xf0]  ;;  %v7722_v44 = vld [vmem:[#allocation7 + $0x2d8] sm:$0xf0] }
  0xbe   :  { %1964 = vmatpush.bf16.msrb.mxu2 %v8233_v55  ;;  %v9973_v55 = vld [vmem:[#allocation7 + $0x534] sm:$0xf0]  ;;  %v8136_v6 = vld [vmem:[#allocation7 + $0x608] sm:$0xf]  ;;  %v9927_v46 = vld [vmem:[#allocation7 + $0x3cc] sm:$0xf] }
  0xbf   :  { %1977 = vmatpush.bf16.msrb.mxu3 %v8361_v59  ;;  %v8280_v59 = vld [vmem:[#allocation7 + $0x728] sm:$0xf]  ;;  %v9969_v5 = vld [vmem:[#allocation7 + $0x514] sm:$0xf0]  ;;  %v9827_v51 = vld [vmem:[#allocation7 + $0xac] sm:$0xf] }
  0xc0   :  { %v10001_v10 = vld [vmem:[#allocation7 + $0x614] sm:$0xf0]  ;;  %v8264_v11 = vld [vmem:[#allocation7 + $0x708] sm:$0xf]  ;;  %v7450_v52 = vld [vmem:[#allocation7 + $0xb8] sm:$0xf0] }
  0xc1   :  { %1939 = vmatpush.bf16.msrb.mxu0 %v7961_v1  ;;  %1952 = vmatpush.bf16.msrb.mxu1 %v8089_v3  ;;  %v10730_v30 = vpop.f32.mrf.mxu0  ;;  %v10732_v37 = vpop.f32.mrf.mxu1  ;;  %v8025_v1 = vor.u32 %v9973_v55, %v8024_v53  ;;  %v8153_v3 = vor.u32 %v10005_v57, %v8152_v56  ;;  %v10033_v12 = vld [vmem:[#allocation7 + $0x714] sm:$0xf0]  ;;  %v8137_v24 = vor.u32 %v10001_v10, %v8136_v6  ;;  %v9859_v53 = vld [vmem:[#allocation7 + $0x1ac] sm:$0xf]  ;;  %v7578_v55 = vld [vmem:[#allocation7 + $0x1b8] sm:$0xf0] }
  0xc2   :  { %1965 = vmatpush.bf16.msrb.mxu2 %v8217_v4  ;;  %v8008_v4 = vld [vmem:[#allocation7 + $0x508] sm:$0xf]  ;;  %v8265_v27 = vor.u32 %v10033_v12, %v8264_v11  ;;  %v9891_v56 = vld [vmem:[#allocation7 + $0x2ac] sm:$0xf]  ;;  %v7706_v57 = vld [vmem:[#allocation7 + $0x2b8] sm:$0xf0] }
  0xc3   :  { %1978 = vmatpush.bf16.msrb.mxu3 %v8345_v9  ;;  %v8281_v9 = vor.u32 %v10037_v60, %v8280_v59  ;;  %v9923_v59 = vld [vmem:[#allocation7 + $0x3ac] sm:$0xf]  ;;  %v7834_v60 = vld [vmem:[#allocation7 + $0x3b8] sm:$0xf0] }
  0xc4   :  { %v9887_v6 = vld [vmem:[#allocation7 + $0x28c] sm:$0xf]  ;;  %v7818_v10 = vld [vmem:[#allocation7 + $0x398] sm:$0xf0] }
  0xc5   :  { %1940 = vmatpush.bf16.msrb.mxu0 %v7945_v17  ;;  %1953 = vmatpush.bf16.msrb.mxu1 %v8073_v18  ;;  %v9867_v17 = vld [vmem:[#allocation7 + $0x1ec] sm:$0xf]  ;;  %v1714_v18 = vpop.f32.mrf.mxu2  ;;  %v7546_v22 = vld [vmem:[#allocation7 + $0x178] sm:$0xf0] }
  0xc6   :  { %1966 = vmatpush.bf16.msrb.mxu2 %v8201_v19  ;;  %v7881_v19 = vor.u32 %v9937_v63, %v7880_v62  ;;  %v7581_v62 = vor.u32 %v9859_v53, %v7578_v55  ;;  %v7709_v63 = vor.u32 %v9891_v56, %v7706_v57  ;;  %v9819_v18 = vld [vmem:[#allocation7 + $0x6c] sm:$0xf]  ;;  %v7514_v56 = vld [vmem:[#allocation7 + $0x138] sm:$0xf0] }
  0xc7   :  { %1979 = vmatpush.bf16.msrb.mxu3 %v8329_v23  ;;  %v8009_v23 = vor.u32 %v9969_v5, %v8008_v4  ;;  %v7837_v4 = vor.u32 %v9923_v59, %v7834_v60  ;;  %v7562_v5 = vld [vmem:[#allocation7 + $0x198] sm:$0xf0]  ;;  %v9915_v26 = vld [vmem:[#allocation7 + $0x36c] sm:$0xf] }
  0xc8   :  { %v9843_v55 = vld [vmem:[#allocation7 + $0x12c] sm:$0xf] }
  0xc9   :  { %1941 = vmatpush.bf16.msrb.mxu0 %v7929_v29  ;;  %1954 = vmatpush.bf16.msrb.mxu1 %v8057_v31  ;;  %v1688_v0 = vpop.f32.mrf.mxu0  ;;  %v1701_v8 = vpop.f32.mrf.mxu1  ;;  %v1700_v31 = vadd.f32 %v10732_v37, %v10730_v30  ;;  %v9875_v57 = vld [vmem:[#allocation7 + $0x22c] sm:$0xf] }
  0xca   :  { %1967 = vmatpush.bf16.msrb.mxu2 %v8185_v32  ;;  %v1727_v29 = vpop.f32.mrf.mxu3  ;;  %v7613_v32 = vor.u32 %v9867_v17, %v7610_v20  ;;  %v9823_v0 = vld [vmem:[#allocation7 + $0x8c] sm:$0xf]  ;;  %v7690_v8 = vld [vmem:[#allocation7 + $0x298] sm:$0xf0] }
  0xcb   :  { %1980 = vmatpush.bf16.msrb.mxu3 %v8313_v38  ;;  %v9863_v38 = vld [vmem:[#allocation7 + $0x1cc] sm:$0xf]  ;;  %v1713_v30 = vadd.f32 %v10734_v47, %v1700_v31  ;;  %v7453_v47 = vor.u32 %v9827_v51, %v7450_v52  ;;  %v7693_v13 = vor.u32 %v9887_v6, %v7690_v8  ;;  %v7386_v51 = vld [vmem:[#allocation7 + $0x38] sm:$0xf0] }
  0xcc   :  { %v7597_v37 = vor.u32 %v9863_v38, %v7594_v42  ;;  %v9851_v20 = vld [vmem:[#allocation7 + $0x16c] sm:$0xf]  ;;  %v7498_v6 = vld [vmem:[#allocation7 + $0x118] sm:$0xf0] }
  0xcd   :  { %1942 = vmatpush.bf16.msrb.mxu0 %v7913_v48  ;;  %1955 = vmatpush.bf16.msrb.mxu1 %v8041_v49  ;;  %v7850_v48 = vld [vmem:[#allocation7 + $0x3d8] sm:$0xf0]  ;;  %v7469_v49 = vor.u32 %v9831_v34, %v7466_v35  ;;  %v7549_v29 = vor.u32 %v9851_v20, %v7546_v22  ;;  %v9847_v35 = vld [vmem:[#allocation7 + $0x14c] sm:$0xf] }
  0xce   :  { %1968 = vmatpush.bf16.msrb.mxu2 %v8169_v50  ;;  %v7725_v50 = vor.u32 %v9895_v43, %v7722_v44  ;;  %v7402_v34 = vld [vmem:[#allocation7 + $0x58] sm:$0xf0]  ;;  %v9879_v44 = vld [vmem:[#allocation7 + $0x24c] sm:$0xf] }
  0xcf   :  { %1981 = vmatpush.bf16.msrb.mxu3 %v8297_v54  ;;  %v7853_v54 = vor.u32 %v9927_v46, %v7850_v48  ;;  %v7530_v43 = vld [vmem:[#allocation7 + $0x158] sm:$0xf0]  ;;  %v9911_v48 = vld [vmem:[#allocation7 + $0x34c] sm:$0xf] }
  0xd0   :  { %v7658_v46 = vld [vmem:[#allocation7 + $0x258] sm:$0xf0]  ;;  %v7533_v53 = vor.u32 %v9847_v35, %v7530_v43 }
  0xd1   :  { %1943 = vmatpush.bf16.msrb.mxu0 %v7897_v61  ;;  %1956 = vmatpush.bf16.msrb.mxu1 %v8025_v1  ;;  %v1726_v61 = vadd.f32 %v10736_v58, %v1713_v30  ;;  %v7434_v1 = vld [vmem:[#allocation7 + $0x98] sm:$0xf0] }
  0xd2   :  { %1969 = vmatpush.bf16.msrb.mxu2 %v8153_v3  ;;  %v9855_v3 = vld [vmem:[#allocation7 + $0x18c] sm:$0xf]  ;;  %v7437_v11 = vor.u32 %v9823_v0, %v7434_v1  ;;  %v8378_v35 = vld [vmem:[#allocation7 + $0x7f8] sm:$0xf0] }
  0xd3   :  { %1982 = vmatpush.bf16.msrb.mxu3 %v8281_v9  ;;  %v9919_v9 = vld [vmem:[#allocation7 + $0x38c] sm:$0xf]  ;;  %v7565_v58 = vor.u32 %v9855_v3, %v7562_v5 }
  0xd4   :  { %v7821_v21 = vor.u32 %v9919_v9, %v7818_v10  ;;  %v9807_v0 = vld [vmem:[#allocation7 + $0xc] sm:$0xf]  ;;  %v7517_v10 = vor.u32 %v9843_v55, %v7514_v56  ;;  %v8362_v56 = vld [vmem:[#allocation7 + $0x7d8] sm:$0xf0] }
  0xd5   :  { %1944 = vmatpush.bf16.msrb.mxu0 %v7881_v19  ;;  %1957 = vmatpush.bf16.msrb.mxu1 %v8009_v23  ;;  %v7418_v19 = vld [vmem:[#allocation7 + $0x78] sm:$0xf0]  ;;  %v9883_v23 = vld [vmem:[#allocation7 + $0x26c] sm:$0xf] }
  0xd6   :  { %1970 = vmatpush.bf16.msrb.mxu2 %v8137_v24  ;;  %v7674_v24 = vld [vmem:[#allocation7 + $0x278] sm:$0xf0]  ;;  %v9839_v5 = vld [vmem:[#allocation7 + $0x10c] sm:$0xf] }
  0xd7   :  { %1983 = vmatpush.bf16.msrb.mxu3 %v8265_v27  ;;  %v1738_v12 = vpop.f32.mrf.mxu0  ;;  %v7802_v27 = vld [vmem:[#allocation7 + $0x378] sm:$0xf0]  ;;  %v7677_v31 = vor.u32 %v9883_v23, %v7674_v24  ;;  %v9995_v24 = vld [vmem:[#allocation7 + $0x5ec] sm:$0xf] }
  0xd8   :  { %1945 = vmatmul.bf16.vlgmr.msrb.gmra.mxu0 %v10708_v40  ;;  %1958 = vmatmul.bf16.vlgmr.msrb.gmra.mxu1 %v10712_v45  ;;  %v1739_v14 = vadd.f32 %v1738_v12, %v1726_v61  ;;  %v7805_v38 = vor.u32 %v9915_v26, %v7802_v27  ;;  %v7642_v61 = vld [vmem:[#allocation7 + $0x238] sm:$0xf0]  ;;  %v9871_v12 = vld [vmem:[#allocation7 + $0x20c] sm:$0xf] }
  0xd9   :  { %1989 = vmatpush.bf16.msra.mxu0 %v7485_v28  ;;  %2002 = vmatpush.bf16.msra.mxu1 %v7613_v32  ;;  %v1751_v17 = vpop.f32.mrf.mxu1  ;;  %v7421_v28 = vor.u32 %v9819_v18, %v7418_v19  ;;  %v7754_v18 = vld [vmem:[#allocation7 + $0x318] sm:$0xf0]  ;;  %v9963_v19 = vld [vmem:[#allocation7 + $0x4ec] sm:$0xf] }
  0xda   :  { %2015 = vmatpush.bf16.msra.mxu2 %v7741_v33  ;;  %1984 = vmatmul.bf16.vlgmr.msrb.gmra.mxu3 %v10710_v41  ;;  %v1752_v25 = vadd.f32 %v1751_v17, %v1739_v14  ;;  %v9815_v33 = vld [vmem:[#allocation7 + $0x4c] sm:$0xf]  ;;  %v7994_v23 = vld [vmem:[#allocation7 + $0x4f8] sm:$0xf0] }
  0xdb   :  { %2028 = vmatpush.bf16.msra.mxu3 %v7869_v39  ;;  %1971 = vmatmul.bf16.vlgmr.msrb.gmra.mxu2 %v10706_v36  ;;  %v9903_v17 = vld [vmem:[#allocation7 + $0x30c] sm:$0xf]  ;;  %v8122_v26 = vld [vmem:[#allocation7 + $0x5f8] sm:$0xf0] }
  0xdc   :  { %v10027_v27 = vld [vmem:[#allocation7 + $0x6ec] sm:$0xf] }
  0xdd   :  { %1990 = vmatpush.bf16.msra.mxu0 %v7469_v49  ;;  %2003 = vmatpush.bf16.msra.mxu1 %v7597_v37  ;;  %v7786_v49 = vld [vmem:[#allocation7 + $0x358] sm:$0xf0]  ;;  %v7405_v37 = vor.u32 %v9815_v33, %v7402_v34  ;;  %v10059_v34 = vld [vmem:[#allocation7 + $0x7ec] sm:$0xf] }
  0xde   :  { %2016 = vmatpush.bf16.msra.mxu2 %v7725_v50  ;;  %v1764_v32 = vpop.f32.mrf.mxu2  ;;  %v9811_v50 = vld [vmem:[#allocation7 + $0x2c] sm:$0xf] }
  0xdf   :  { %2029 = vmatpush.bf16.msra.mxu3 %v7853_v54  ;;  %v1765_v39 = vadd.f32 %v1764_v32, %v1752_v25  ;;  %v1777_v42 = vpop.f32.mrf.mxu3  ;;  %v1740_v52 = vpop.f32.mrf.mxu0  ;;  %v7661_v54 = vor.u32 %v9879_v44, %v7658_v46  ;;  %v7389_v3 = vor.u32 %v9811_v50, %v7386_v51  ;;  %v7501_v32 = vor.u32 %v9839_v5, %v7498_v6  ;;  %v8106_v50 = vld [vmem:[#allocation7 + $0x5d8] sm:$0xf0]  ;;  %v10023_v51 = vld [vmem:[#allocation7 + $0x6cc] sm:$0xf] }
  0xe0   :  { %v8125_v46 = vor.u32 %v9995_v24, %v8122_v26  ;;  %v8234_v52 = vld [vmem:[#allocation7 + $0x6d8] sm:$0xf0]  ;;  %v10055_v55 = vld [vmem:[#allocation7 + $0x7cc] sm:$0xf] }
  0xe1   :  { %1991 = vmatpush.bf16.msra.mxu0 %v7453_v47  ;;  %2004 = vmatpush.bf16.msra.mxu1 %v7581_v62  ;;  %v1778_v30 = vadd.f32 %v1777_v42, %v1765_v39  ;;  %v1753_v59 = vpop.f32.mrf.mxu1  ;;  %v7789_v47 = vor.u32 %v9911_v48, %v7786_v49  ;;  %v9907_v62 = vld [vmem:[#allocation7 + $0x32c] sm:$0xf]  ;;  %v7997_v39 = vor.u32 %v9963_v19, %v7994_v23  ;;  %v7978_v49 = vld [vmem:[#allocation7 + $0x4d8] sm:$0xf0] }
  0xe2   :  { %2017 = vmatpush.bf16.msra.mxu2 %v7709_v63  ;;  %v7770_v63 = vld [vmem:[#allocation7 + $0x338] sm:$0xf0]  ;;  %v9959_v42 = vld [vmem:[#allocation7 + $0x4cc] sm:$0xf] }
  0xe3   :  { %2030 = vmatpush.bf16.msra.mxu3 %v7837_v4  ;;  %vm2093_vm0 = vcmp.ge.f32.partialorder %v1778_v30, 0.0  ;;  %v2097_v60 = vmul.f32 0.2, %v1778_v30  ;;  %v7370_v4 = vld [vmem:[#allocation7 + $0x18] sm:$0xf0]  ;;  %v7773_v14 = vor.u32 %v9907_v62, %v7770_v63  ;;  %v8237_v62 = vor.u32 %v10023_v51, %v8234_v52 }
  0xe4   :  { %v7373_v25 = vor.u32 %v9807_v0, %v7370_v4  ;;  %v9955_v59 = vld [vmem:[#allocation7 + $0x4ac] sm:$0xf]  ;;  %v7962_v63 = vld [vmem:[#allocation7 + $0x4b8] sm:$0xf0] }
  0xe5   :  { %1992 = vmatpush.bf16.msra.mxu0 %v7437_v11  ;;  %2005 = vmatpush.bf16.msra.mxu1 %v7565_v58  ;;  %v10746_v1 = vsel %vm2093_vm0, %v1778_v30, %v2097_v60  ;;  %v7645_v11 = vor.u32 %v9875_v57, %v7642_v61  ;;  %v7626_v58 = vld [vmem:[#allocation7 + $0x218] sm:$0xf0]  ;;  %v9991_v30 = vld [vmem:[#allocation7 + $0x5cc] sm:$0xf]  ;;  %v7981_v57 = vor.u32 %v9959_v42, %v7978_v49 }
  0xe6   :  { %2018 = vmatpush.bf16.msra.mxu2 %v7693_v13  ;;  %v2107_v8 = vrot.slane %v10746_v1, 4  ;;  %v2131_v9 = vmul.f32 %v10746_v1, %v10746_v1  ;;  %v1766_v13 = vpop.f32.mrf.mxu2  ;;  %v7629_v33 = vor.u32 %v9871_v12, %v7626_v58  ;;  %v8109_v61 = vor.u32 %v9991_v30, %v8106_v50  ;;  %v9987_v0 = vld [vmem:[#allocation7 + $0x5ac] sm:$0xf]  ;;  %v8090_v4 = vld [vmem:[#allocation7 + $0x5b8] sm:$0xf0] }
  0xe7   :  { %2031 = vmatpush.bf16.msra.mxu3 %v7821_v21  ;;  %v1779_v20 = vpop.f32.mrf.mxu3  ;;  %v10019_v5 = vld [vmem:[#allocation7 + $0x6ac] sm:$0xf]  ;;  %v8218_v6 = vld [vmem:[#allocation7 + $0x6b8] sm:$0xf0]  ;;  %v7965_v12 = vor.u32 %v9955_v59, %v7962_v63 }
  0xe8   :  { %v2108_v21 = vadd.f32 %v2107_v8, %v10746_v1  ;;  %v2135_v22 = vrot.slane %v2131_v9, 4  ;;  %v9951_v58 = vld [vmem:[#allocation7 + $0x48c] sm:$0xf]  ;;  %v8330_v24 = vld [vmem:[#allocation7 + $0x798] sm:$0xf0] }
  0xe9   :  { %1993 = vmatpush.bf16.msra.mxu0 %v7421_v28  ;;  %2006 = vmatpush.bf16.msra.mxu1 %v7549_v29  ;;  %v8250_v28 = vld [vmem:[#allocation7 + $0x6f8] sm:$0xf0]  ;;  %v9983_v19 = vld [vmem:[#allocation7 + $0x58c] sm:$0xf] }
  0xea   :  { %2019 = vmatpush.bf16.msra.mxu2 %v7677_v31  ;;  %v2109_v29 = vrot.slane %v2108_v21, 2  ;;  %v2136_v31 = vadd.f32 %v2135_v22, %v2131_v9  ;;  %v8253_v48 = vor.u32 %v10027_v27, %v8250_v28  ;;  %v10047_v23 = vld [vmem:[#allocation7 + $0x78c] sm:$0xf]  ;;  %v8298_v59 = vld [vmem:[#allocation7 + $0x758] sm:$0xf0] }
  0xeb   :  { %2032 = vmatpush.bf16.msra.mxu3 %v7805_v38  ;;  %v7757_v38 = vor.u32 %v9903_v17, %v7754_v18  ;;  %v8221_v17 = vor.u32 %v10019_v5, %v8218_v6  ;;  %v7946_v18 = vld [vmem:[#allocation7 + $0x498] sm:$0xf0]  ;;  %v9943_v30 = vld [vmem:[#allocation7 + $0x44c] sm:$0xf] }
  0xec   :  { %v2110_v43 = vadd.f32 %v2109_v29, %v2108_v21  ;;  %v2137_v44 = vrot.slane %v2136_v31, 2  ;;  %v10015_v21 = vld [vmem:[#allocation7 + $0x68c] sm:$0xf]  ;;  %v8026_v6 = vld [vmem:[#allocation7 + $0x538] sm:$0xf0] }
  0xed   :  { %1994 = vmatpush.bf16.msra.mxu0 %v7405_v37  ;;  %2007 = vmatpush.bf16.msra.mxu1 %v7533_v53  ;;  %v8381_v37 = vor.u32 %v10059_v34, %v8378_v35  ;;  %v8333_v34 = vor.u32 %v10047_v23, %v8330_v24  ;;  %v8058_v35 = vld [vmem:[#allocation7 + $0x578] sm:$0xf0]  ;;  %v9975_v50 = vld [vmem:[#allocation7 + $0x54c] sm:$0xf] }
  0xee   :  { %2020 = vmatpush.bf16.msra.mxu2 %v7661_v54  ;;  %v2111_v53 = vrot.slane %v2110_v43, 1  ;;  %v2138_v54 = vadd.f32 %v2137_v44, %v2136_v31  ;;  %v7930_v31 = vld [vmem:[#allocation7 + $0x478] sm:$0xf0]  ;;  %v9939_v63 = vld [vmem:[#allocation7 + $0x42c] sm:$0xf] }
  0xef   :  { %2033 = vmatpush.bf16.msra.mxu3 %v7789_v47  ;;  %v8314_v44 = vld [vmem:[#allocation7 + $0x778] sm:$0xf0]  ;;  %v10031_v24 = vld [vmem:[#allocation7 + $0x70c] sm:$0xf] }
  0xf0   :  { %v2112_v60 = vadd.f32 %v2111_v53, %v2110_v43  ;;  %v2139_v47 = vrot.slane %v2138_v54, 1  ;;  %v10043_v43 = vld [vmem:[#allocation7 + $0x76c] sm:$0xf]  ;;  %v8042_v53 = vld [vmem:[#allocation7 + $0x558] sm:$0xf0] }
  0xf1   :  { %1995 = vmatpush.bf16.msra.mxu0 %v7389_v3  ;;  %2008 = vmatpush.bf16.msra.mxu1 %v7517_v10  ;;  %v8365_v3 = vor.u32 %v10055_v55, %v8362_v56  ;;  %v10051_v10 = vld [vmem:[#allocation7 + $0x7ac] sm:$0xf]  ;;  %v8317_v52 = vor.u32 %v10043_v43, %v8314_v44  ;;  %v8170_v55 = vld [vmem:[#allocation7 + $0x658] sm:$0xf0] }
  0xf2   :  { %2021 = vmatpush.bf16.msra.mxu2 %v7645_v11  ;;  %v2140_v8 = vadd.f32 %v2139_v47, %v2138_v54  ;;  %v10753_v9 = vmul.f32 0.125, %v2112_v60  ;;  %v8346_v11 = vld [vmem:[#allocation7 + $0x7b8] sm:$0xf0]  ;;  %v10007_v54 = vld [vmem:[#allocation7 + $0x64c] sm:$0xf] }
  0xf3   :  { %2034 = vmatpush.bf16.msra.mxu3 %v7773_v14  ;;  %v8093_v14 = vor.u32 %v9987_v0, %v8090_v4  ;;  %v8349_v20 = vor.u32 %v10051_v10, %v8346_v11  ;;  %v7898_v0 = vld [vmem:[#allocation7 + $0x438] sm:$0xf0] }
  0xf4   :  { %v2163_v13 = vmul.f32 0.125, %v2140_v8  ;;  %v10003_v8 = vld [vmem:[#allocation7 + $0x62c] sm:$0xf]  ;;  %v8154_v10 = vld [vmem:[#allocation7 + $0x638] sm:$0xf0] }
  0xf5   :  { %1996 = vmatpush.bf16.msra.mxu0 %v7373_v25  ;;  %2009 = vmatpush.bf16.msra.mxu1 %v7501_v32  ;;  %v9947_v25 = vld [vmem:[#allocation7 + $0x46c] sm:$0xf]  ;;  %v10760_v26 = vpop.f32.mrf.mxu0  ;;  %v8138_v23 = vld [vmem:[#allocation7 + $0x618] sm:$0xf0] }
  0xf6   :  { %2022 = vmatpush.bf16.msra.mxu2 %v7629_v33  ;;  %v9979_v32 = vld [vmem:[#allocation7 + $0x56c] sm:$0xf]  ;;  %v10762_v33 = vpop.f32.mrf.mxu1 }
  0xf7   :  { %2035 = vmatpush.bf16.msra.mxu3 %v7757_v38  ;;  %v10011_v38 = vld [vmem:[#allocation7 + $0x66c] sm:$0xf]  ;;  %v1804_v44 = vadd.f32 %v10762_v33, %v10760_v26 }
  0xf8   :  { %1997 = vmatmul.bf16.vlgmr.msra.gmra.mxu0 %v10693_v15  ;;  %2010 = vmatmul.bf16.vlgmr.msra.gmra.mxu1 %v10695_v16  ;;  %v8074_v15 = vld [vmem:[#allocation7 + $0x598] sm:$0xf0]  ;;  %v7949_v16 = vor.u32 %v9951_v58, %v7946_v18  ;;  %v8157_v18 = vor.u32 %v10003_v8, %v8154_v10 }
  0xf9   :  { %2041 = vmatpush.bf16.msrb.mxu0 %v7997_v39  ;;  %2054 = vmatpush.bf16.msrb.mxu1 %v8125_v46  ;;  %v8077_v28 = vor.u32 %v9983_v19, %v8074_v15  ;;  %v8186_v39 = vld [vmem:[#allocation7 + $0x678] sm:$0xf0]  ;;  %v7933_v46 = vor.u32 %v9947_v25, %v7930_v31 }
  0xfa   :  { %2067 = vmatpush.bf16.msrb.mxu2 %v8253_v48  ;;  %2036 = vmatmul.bf16.vlgmr.msra.gmra.mxu3 %v10690_v7  ;;  %v8202_v7 = vld [vmem:[#allocation7 + $0x698] sm:$0xf0]  ;;  %v8061_v48 = vor.u32 %v9979_v32, %v8058_v35  ;;  %v8189_v49 = vor.u32 %v10011_v38, %v8186_v39  ;;  %v8864_v32 = vld [vmem:[#allocation9 + $0x3c0] sm:$0xf] }
  0xfb   :  { %2080 = vmatpush.bf16.msrb.mxu3 %v8381_v37  ;;  %2023 = vmatmul.bf16.vlgmr.msra.gmra.mxu2 %v10685_v2  ;;  %v2167_v2 = vmul.f32 %v10753_v9, %v10753_v9  ;;  %v8205_v29 = vor.u32 %v10015_v21, %v8202_v7  ;;  %v7914_v37 = vld [vmem:[#allocation7 + $0x458] sm:$0xf0] }
  0xfc   :  { %v7917_v60 = vor.u32 %v9943_v30, %v7914_v37  ;;  %v8282_v58 = vld [vmem:[#allocation7 + $0x738] sm:$0xf0]  ;;  %v8832_v37 = vld [vmem:[#allocation9 + $0x380] sm:$0xf] }
  0xfd   :  { %2042 = vmatpush.bf16.msrb.mxu0 %v7981_v57  ;;  %2055 = vmatpush.bf16.msrb.mxu1 %v8109_v61  ;;  %v2171_v22 = vsub.f32 %v2163_v13, %v2167_v2  ;;  %v10769_v56 = vpop.f32.mrf.mxu3  ;;  %v10039_v57 = vld [vmem:[#allocation7 + $0x74c] sm:$0xf]  ;;  %v1792_v47 = vpop.f32.mrf.mxu0  ;;  %v8045_v61 = vor.u32 %v9975_v50, %v8042_v53  ;;  %v7901_v2 = vor.u32 %v9939_v63, %v7898_v0  ;;  %v7882_v19 = vld [vmem:[#allocation7 + $0x418] sm:$0xf0]  ;;  %v10178_v50 = vld [vmem:[#allocation9 + $0x39c] sm:$0xf0] }
  0xfe   :  { %2068 = vmatpush.bf16.msrb.mxu2 %v8237_v62  ;;  %v10767_v51 = vpop.f32.mrf.mxu2  ;;  %v8173_v62 = vor.u32 %v10007_v54, %v8170_v55  ;;  %v1805_v4 = vpop.f32.mrf.mxu1  ;;  %v8301_v5 = vor.u32 %v10039_v57, %v8298_v59  ;;  %v8010_v15 = vld [vmem:[#allocation7 + $0x518] sm:$0xf0]  ;;  %v8544_v54 = vld [vmem:[#allocation9 + $0x140] sm:$0xf]  ;;  %v8833_v26 = vor.u32 %v10178_v50, %v8832_v37  ;;  %v10118_v37 = vld [vmem:[#allocation9 + $0x1c4] sm:$0xf] }
  0xff   :  { %2081 = vmatpush.bf16.msrb.mxu3 %v8365_v3  ;;  %v2175_v27 = vmax.f32 %v2171_v22, 0.0  ;;  %v9971_v3 = vld [vmem:[#allocation7 + $0x52c] sm:$0xf]  ;;  %v8266_v25 = vld [vmem:[#allocation7 + $0x718] sm:$0xf0]  ;;  %v1817_v53 = vadd.f32 %v10767_v51, %v1804_v44 }
 0x100   :  { %v9999_v22 = vld [vmem:[#allocation7 + $0x60c] sm:$0xf]  ;;  %v8269_v39 = vor.u32 %v10031_v24, %v8266_v25  ;;  %v10106_v55 = vld [vmem:[#allocation9 + $0x15c] sm:$0xf0]  ;;  %v8610_v50 = vld [vmem:[#allocation9 + $0x1e0] sm:$0xf0] }
 0x101   :  { %2043 = vmatpush.bf16.msrb.mxu0 %v7965_v12  ;;  %2056 = vmatpush.bf16.msrb.mxu1 %v8093_v14  ;;  %v10764_v42 = vadd.f32 1e-05, %v2175_v27  ;;  %v10035_v12 = vld [vmem:[#allocation7 + $0x72c] sm:$0xf]  ;;  %v8608_v27 = vld [vmem:[#allocation9 + $0x1c0] sm:$0xf]  ;;  %v8141_v38 = vor.u32 %v9999_v22, %v8138_v23  ;;  %v1830_v47 = vadd.f32 %v10769_v56, %v1817_v53 }
 0x102   :  { %2069 = vmatpush.bf16.msrb.mxu2 %v8221_v17  ;;  %v9935_v14 = vld [vmem:[#allocation7 + $0x40c] sm:$0xf]  ;;  %v8029_v17 = vor.u32 %v9971_v3, %v8026_v6  ;;  %v8285_v7 = vor.u32 %v10035_v12, %v8282_v58  ;;  %v8800_v57 = vld [vmem:[#allocation9 + $0x340] sm:$0xf] }
 0x103   :  { %2082 = vmatpush.bf16.msrb.mxu3 %v8349_v20  ;;  %10419 = vrsqrt.f32 %v10764_v42  ;;  %v9967_v20 = vld [vmem:[#allocation7 + $0x50c] sm:$0xf]  ;;  %v7885_v31 = vor.u32 %v9935_v14, %v7882_v19  ;;  %v10170_v59 = vld [vmem:[#allocation9 + $0x35c] sm:$0xf0]  ;;  %vm2193_vm2 = vweird.f32 %v10764_v42 }
 0x104   :  { %v8013_v35 = vor.u32 %v9967_v20, %v8010_v15  ;;  %v8512_v51 = vld [vmem:[#allocation9 + $0x100] sm:$0xf] }
 0x105   :  { %2044 = vmatpush.bf16.msrb.mxu0 %v7949_v16  ;;  %2057 = vmatpush.bf16.msrb.mxu1 %v8077_v28  ;;  %v1831_v16 = vpop.f32.mrf.mxu3  ;;  %v10122_v28 = vld [vmem:[#allocation9 + $0x1dc] sm:$0xf0] }
 0x106   :  { %2070 = vmatpush.bf16.msrb.mxu2 %v8205_v29  ;;  %v1818_v21 = vpop.f32.mrf.mxu2  ;;  %v8609_v43 = vor.u32 %v10122_v28, %v8608_v27  ;;  %v10162_v63 = vld [vmem:[#allocation9 + $0x31c] sm:$0xf0] }
 0x107   :  { %2083 = vmatpush.bf16.msrb.mxu3 %v8333_v34  ;;  %v10186_v34 = vld [vmem:[#allocation9 + $0x3dc] sm:$0xf0] }
 0x108   :  { %v10090_v6 = vld [vmem:[#allocation9 + $0xdc] sm:$0xf0] }
 0x109   :  { %2045 = vmatpush.bf16.msrb.mxu0 %v7933_v46  ;;  %2058 = vmatpush.bf16.msrb.mxu1 %v8061_v48  ;;  %v10771_v11 = vpop.eup %10419  ;;  %v8576_v46 = vld [vmem:[#allocation9 + $0x180] sm:$0xf] }
 0x10a   :  { %2071 = vmatpush.bf16.msrb.mxu2 %v8189_v49  ;;  %v2188_v13 = vmul.f32 %v10771_v11, %v10764_v42  ;;  %v10114_v48 = vld [vmem:[#allocation9 + $0x19c] sm:$0xf0]  ;;  %v8865_v49 = vor.u32 %v10186_v34, %v8864_v32  ;;  %vm2194_vm1 = vweird.f32 %v10771_v11 }
 0x10b   :  { %2084 = vmatpush.bf16.msrb.mxu3 %v8317_v52  ;;  %v8577_v52 = vor.u32 %v10114_v48, %v8576_v46  ;;  %vm2195_vm3 = vmor %vm2193_vm2, %vm2194_vm1  ;;  %v8736_v12 = vld [vmem:[#allocation9 + $0x2c0] sm:$0xf] }
 0x10c   :  { %v2189_v29 = vmul.f32 %v10771_v11, %v2188_v13  ;;  %v10154_v58 = vld [vmem:[#allocation9 + $0x2dc] sm:$0xf0] }
 0x10d   :  { %2046 = vmatpush.bf16.msrb.mxu0 %v7917_v60  ;;  %2059 = vmatpush.bf16.msrb.mxu1 %v8045_v61  ;;  %v8545_v60 = vor.u32 %v10106_v55, %v8544_v54  ;;  %v10098_v61 = vld [vmem:[#allocation9 + $0x11c] sm:$0xf0]  ;;  %v8737_v19 = vor.u32 %v10154_v58, %v8736_v12  ;;  %v8546_v12 = vld [vmem:[#allocation9 + $0x160] sm:$0xf0] }
 0x10e   :  { %2072 = vmatpush.bf16.msrb.mxu2 %v8173_v62  ;;  %v2190_v30 = vmul.f32 0.5, %v2189_v29  ;;  %v10787_v62 = vld [vmem:[%s13136_s8] sm:$0xf] }
 0x10f   :  { %2085 = vmatpush.bf16.msrb.mxu3 %v8301_v5  ;;  %v2228_v0 = vperm.slane %v10787_v62, 0  ;;  %v8480_v5 = vld [vmem:[#allocation9 + $0xc0] sm:$0xf] }
 0x110   :  { %v2191_v33 = vsub.f32 1.5, %v2190_v30  ;;  %v8704_v21 = vld [vmem:[#allocation9 + $0x280] sm:$0xf] }
 0x111   :  { %2047 = vmatpush.bf16.msrb.mxu0 %v7901_v2  ;;  %2060 = vmatpush.bf16.msrb.mxu1 %v8029_v17  ;;  %v8481_v2 = vor.u32 %v10090_v6, %v8480_v5  ;;  %v8448_v17 = vld [vmem:[#allocation9 + $0x80] sm:$0xf] }
 0x112   :  { %2073 = vmatpush.bf16.msrb.mxu2 %v8157_v18  ;;  %v10082_v18 = vld [vmem:[#allocation9 + $0x9c] sm:$0xf0] }
 0x113   :  { %2086 = vmatpush.bf16.msrb.mxu3 %v8285_v7  ;;  %v10146_v7 = vld [vmem:[#allocation9 + $0x29c] sm:$0xf0]  ;;  %v8449_v23 = vor.u32 %v10082_v18, %v8448_v17 }
 0x114   :  { %v10797_v22 = vld [vmem:[%s13137_s9] sm:$0xf]  ;;  %v8705_v28 = vor.u32 %v10146_v7, %v8704_v21 }
 0x115   :  { %2048 = vmatpush.bf16.msrb.mxu0 %v7885_v31  ;;  %2061 = vmatpush.bf16.msrb.mxu1 %v8013_v35  ;;  %v1842_v56 = vpop.f32.mrf.mxu0  ;;  %v1855_v4 = vpop.f32.mrf.mxu1  ;;  %v8416_v24 = vld [vmem:[#allocation9 + $0x40] sm:$0xf]  ;;  %v2179_v35 = vsub.f32 %v10746_v1, %v10753_v9 }
 0x116   :  { %2074 = vmatpush.bf16.msrb.mxu2 %v8141_v38  ;;  %v1843_v3 = vadd.f32 %v1842_v56, %v1830_v47  ;;  %v10074_v27 = vld [vmem:[#allocation9 + $0x5c] sm:$0xf0]  ;;  %v2249_v38 = vperm.slane %v10797_v22, 0 }
 0x117   :  { %2087 = vmatpush.bf16.msrb.mxu3 %v8269_v39  ;;  %v8672_v29 = vld [vmem:[#allocation9 + $0x240] sm:$0xf] }
 0x118   :  { %2049 = vmatmul.bf16.vlgmr.msrb.gmra.mxu0 %v10708_v40  ;;  %2062 = vmatmul.bf16.vlgmr.msrb.gmra.mxu1 %v10712_v45  ;;  %v8801_v40 = vor.u32 %v10170_v59, %v8800_v57  ;;  %v2192_v45 = vmul.f32 %v10771_v11, %v2191_v33  ;;  %v1856_v13 = vadd.f32 %v1855_v4, %v1843_v3  ;;  %v10138_v34 = vld [vmem:[#allocation9 + $0x25c] sm:$0xf0]  ;;  %v10182_v33 = vld [vmem:[#allocation9 + $0x3c4] sm:$0xf] }
 0x119   :  { %3801 = vmatpush.bf16.msra.mxu0 %v8609_v43  ;;  %3814 = vmatpush.bf16.msra.mxu1 %v8865_v49  ;;  %v8417_v43 = vor.u32 %v10074_v27, %v8416_v24  ;;  %v8384_v44 = vld [vmem:[#allocation9] sm:$0xf]  ;;  %v8866_v57 = vld [vmem:[#allocation9 + $0x3e0] sm:$0xf0] }
 0x11a   :  { %2075 = vmatmul.bf16.vlgmr.msrb.gmra.mxu2 %v10706_v36  ;;  %2088 = vmatmul.bf16.vlgmr.msrb.gmra.mxu3 %v10710_v41  ;;  %v8768_v36 = vld [vmem:[#allocation9 + $0x300] sm:$0xf]  ;;  %v8513_v41 = vor.u32 %v10098_v61, %v8512_v51  ;;  %v2196_v10 = vsel %vm2195_vm3, %v10771_v11, %v2192_v45  ;;  %v10110_v45 = vld [vmem:[#allocation9 + $0x184] sm:$0xf] }
 0x11b   :  { %v8769_v8 = vor.u32 %v10162_v63, %v8768_v36  ;;  %v2236_v42 = vmul.f32 %v2228_v0, %v2196_v10  ;;  %v10066_v46 = vld [vmem:[#allocation9 + $0x1c] sm:$0xf0]  ;;  %v8578_v36 = vld [vmem:[#allocation9 + $0x1a0] sm:$0xf0]  ;;  %v8869_v63 = vor.u32 %v10182_v33, %v8866_v57 }
 0x11c   :  { %v8640_v1 = vld [vmem:[#allocation9 + $0x200] sm:$0xf]  ;;  %v8385_v59 = vor.u32 %v10066_v46, %v8384_v44  ;;  %v10174_v0 = vld [vmem:[#allocation9 + $0x384] sm:$0xf] }
 0x11d   :  { %3802 = vmatpush.bf16.msra.mxu0 %v8577_v52  ;;  %3815 = vmatpush.bf16.msra.mxu1 %v8833_v26  ;;  %v1881_v15 = vpop.f32.mrf.mxu3  ;;  %v1844_v16 = vpop.f32.mrf.mxu0  ;;  %v2240_v25 = vperm.slane %v2236_v42, 0  ;;  %v8673_v52 = vor.u32 %v10138_v34, %v8672_v29  ;;  %v10130_v9 = vld [vmem:[#allocation9 + $0x21c] sm:$0xf0]  ;;  %v8834_v3 = vld [vmem:[#allocation9 + $0x3a0] sm:$0xf0] }
 0x11e   :  { %v1868_v14 = vpop.f32.mrf.mxu2  ;;  %v1857_v31 = vpop.f32.mrf.mxu1  ;;  %v10102_v10 = vld [vmem:[#allocation9 + $0x144] sm:$0xf]  ;;  %v8837_v58 = vor.u32 %v10174_v0, %v8834_v3  ;;  %v9120_v46 = vld [vmem:[#allocation9 + $0x5c0] sm:$0xf] }
 0x11f   :  { %v1869_v20 = vadd.f32 %v1868_v14, %v1856_v13  ;;  %v2244_v48 = vmul.f32 %v2240_v25, %v2179_v35  ;;  %v10166_v42 = vld [vmem:[#allocation9 + $0x344] sm:$0xf] }
 0x120   :  { %v8802_v14 = vld [vmem:[#allocation9 + $0x360] sm:$0xf0] }
 0x121   :  { %3803 = vmatpush.bf16.msra.mxu0 %v8545_v60  ;;  %3816 = vmatpush.bf16.msra.mxu1 %v8801_v40  ;;  %v1882_v11 = vadd.f32 %v1881_v15, %v1869_v20  ;;  %v8613_v60 = vor.u32 %v10118_v37, %v8610_v50  ;;  %v2257_v47 = vadd.f32 %v2249_v38, %v2244_v48  ;;  %v10094_v20 = vld [vmem:[#allocation9 + $0x104] sm:$0xf]  ;;  %v10250_v48 = vld [vmem:[#allocation9 + $0x5dc] sm:$0xf0] }
 0x122   :  { %v8641_v40 = vor.u32 %v10130_v9, %v8640_v1  ;;  %v8514_v15 = vld [vmem:[#allocation9 + $0x120] sm:$0xf0]  ;;  %v8805_v21 = vor.u32 %v10166_v42, %v8802_v14  ;;  %v9121_v50 = vor.u32 %v10250_v48, %v9120_v46 }
 0x123   :  { %vm2094_vm4 = vcmp.ge.f32.partialorder %v1882_v11, 0.0  ;;  %v2098_v32 = vmul.f32 0.2, %v1882_v11  ;;  %v10808_v4 = vpack.c.bf16 %v2257_v47, %v2257_v47  ;;  %v8770_v24 = vld [vmem:[#allocation9 + $0x320] sm:$0xf0]  ;;  %v8517_v25 = vor.u32 %v10094_v20, %v8514_v15 }
 0x124   :  { %v10086_v27 = vld [vmem:[#allocation9 + $0xc4] sm:$0xf]  ;;  %3827 = vmatpush.bf16.msra.mxu2 %v9121_v50 }
 0x125   :  { %3804 = vmatpush.bf16.msra.mxu0 %v8513_v41  ;;  %3817 = vmatpush.bf16.msra.mxu1 %v8769_v8  ;;  %v10802_v39 = vsel %vm2094_vm4, %v1882_v11, %v2098_v32  ;;  %v1883_v54 = vpop.f32.mrf.mxu3  ;;  %v8581_v8 = vor.u32 %v10110_v45, %v8578_v36  ;;  %v10150_v35 = vld [vmem:[#allocation9 + $0x2c4] sm:$0xf] }
 0x126   :  { %v2113_v49 = vrot.slane %v10802_v39, 4  ;;  %v2132_v30 = vmul.f32 %v10802_v39, %v10802_v39  ;;  %v1870_v53 = vpop.f32.mrf.mxu2  ;;  %v8738_v38 = vld [vmem:[#allocation9 + $0x2e0] sm:$0xf0] }
 0x127   :  { %v8741_v37 = vor.u32 %v10150_v35, %v8738_v38  ;;  %v10142_v53 = vld [vmem:[#allocation9 + $0x284] sm:$0xf]  ;;  %v8552_v38 = vld [vmem:[#allocation9 + $0x148] sm:$0xf] }
 0x128   :  { %v2114_v55 = vadd.f32 %v2113_v49, %v10802_v39  ;;  %v2141_v26 = vrot.slane %v2132_v30, 4  ;;  %v10078_v49 = vld [vmem:[#allocation9 + $0x84] sm:$0xf] }
 0x129   :  { %3805 = vmatpush.bf16.msra.mxu0 %v8481_v2  ;;  %3818 = vmatpush.bf16.msra.mxu1 %v8737_v19  ;;  %v8549_v19 = vor.u32 %v10102_v10, %v8546_v12  ;;  %v8706_v1 = vld [vmem:[#allocation9 + $0x2a0] sm:$0xf0]  ;;  %v10123_v10 = vld [vmem:[#allocation9 + $0x1e4] sm:$0xf0] }
 0x12a   :  { %v2115_v51 = vrot.slane %v2114_v55, 2  ;;  %v2142_v61 = vadd.f32 %v2141_v26, %v2132_v30  ;;  %v8450_v30 = vld [vmem:[#allocation9 + $0xa0] sm:$0xf0]  ;;  %v10242_v26 = vld [vmem:[#allocation9 + $0x59c] sm:$0xf0] }
 0x12b   :  { %v8453_v54 = vor.u32 %v10078_v49, %v8450_v30  ;;  %v10070_v33 = vld [vmem:[#allocation9 + $0x44] sm:$0xf]  ;;  %v10210_v49 = vld [vmem:[#allocation9 + $0x49c] sm:$0xf0] }
 0x12c   :  { %v2116_v41 = vadd.f32 %v2115_v51, %v2114_v55  ;;  %v2143_v56 = vrot.slane %v2142_v61, 2  ;;  %v9088_v55 = vld [vmem:[#allocation9 + $0x580] sm:$0xf]  ;;  %v8418_v57 = vld [vmem:[#allocation9 + $0x60] sm:$0xf0] }
 0x12d   :  { %3806 = vmatpush.bf16.msra.mxu0 %v8449_v23  ;;  %3819 = vmatpush.bf16.msra.mxu1 %v8705_v28  ;;  %v10158_v23 = vld [vmem:[#allocation9 + $0x304] sm:$0xf]  ;;  %v9089_v47 = vor.u32 %v10242_v26, %v9088_v55  ;;  %v8421_v36 = vor.u32 %v10070_v33, %v8418_v57  ;;  %v8872_v55 = vld [vmem:[#allocation9 + $0x3c8] sm:$0xf] }
 0x12e   :  { %v2117_v5 = vrot.slane %v2116_v41, 1  ;;  %v2144_v6 = vadd.f32 %v2143_v56, %v2142_v61  ;;  %v8482_v28 = vld [vmem:[#allocation9 + $0xe0] sm:$0xf0]  ;;  %v8773_v31 = vor.u32 %v10158_v23, %v8770_v24  ;;  %v10115_v23 = vld [vmem:[#allocation9 + $0x1a4] sm:$0xf0] }
 0x12f   :  { %v8485_v44 = vor.u32 %v10086_v27, %v8482_v28  ;;  %v10134_v61 = vld [vmem:[#allocation9 + $0x244] sm:$0xf]  ;;  %3828 = vmatpush.bf16.msra.mxu2 %v9089_v47  ;;  %v8992_v27 = vld [vmem:[#allocation9 + $0x4c0] sm:$0xf]  ;;  %v10187_v57 = vld [vmem:[#allocation9 + $0x3e4] sm:$0xf0] }
 0x130   :  { %v2118_v13 = vadd.f32 %v2117_v5, %v2116_v41  ;;  %v2145_v2 = vrot.slane %v2144_v6, 1  ;;  %v10234_v41 = vld [vmem:[#allocation9 + $0x55c] sm:$0xf0]  ;;  %v10062_v0 = vld [vmem:[#allocation9 + $0x4] sm:$0xf] }
 0x131   :  { %3807 = vmatpush.bf16.msra.mxu0 %v8417_v43  ;;  %3820 = vmatpush.bf16.msra.mxu1 %v8673_v52  ;;  %v8386_v3 = vld [vmem:[#allocation9 + $0x20] sm:$0xf0]  ;;  %v8616_v5 = vld [vmem:[#allocation9 + $0x1c8] sm:$0xf]  ;;  %v10218_v28 = vld [vmem:[#allocation9 + $0x4dc] sm:$0xf0] }
 0x132   :  { %v2146_v17 = vadd.f32 %v2145_v2, %v2144_v6  ;;  %v10811_v18 = vmul.f32 0.125, %v2118_v13  ;;  %v8642_v13 = vld [vmem:[#allocation9 + $0x220] sm:$0xf0]  ;;  %v8389_v14 = vor.u32 %v10062_v0, %v8386_v3  ;;  %v8617_v15 = vor.u32 %v10123_v10, %v8616_v5  ;;  %v8896_v0 = vld [vmem:[#allocation9 + $0x400] sm:$0xf] }
 0x133   :  { %v8993_v35 = vor.u32 %v10218_v28, %v8992_v27  ;;  %v8456_v5 = vld [vmem:[#allocation9 + $0x88] sm:$0xf] }
 0x134   :  { %v2164_v7 = vmul.f32 0.125, %v2146_v17  ;;  %v2168_v11 = vmul.f32 %v10811_v18, %v10811_v18  ;;  %v9024_v17 = vld [vmem:[#allocation9 + $0x500] sm:$0xf]  ;;  %v10083_v10 = vld [vmem:[#allocation9 + $0xa4] sm:$0xf0] }
 0x135   :  { %3808 = vmatpush.bf16.msra.mxu0 %v8385_v59  ;;  %3821 = vmatpush.bf16.msra.mxu1 %v8641_v40  ;;  %v10815_v29 = vpop.f32.mrf.mxu0  ;;  %v10817_v34 = vpop.f32.mrf.mxu1  ;;  %v8674_v40 = vld [vmem:[#allocation9 + $0x260] sm:$0xf0]  ;;  %v8776_v28 = vld [vmem:[#allocation9 + $0x308] sm:$0xf] }
 0x136   :  { %v2172_v16 = vsub.f32 %v2164_v7, %v2168_v11  ;;  %v8677_v6 = vor.u32 %v10134_v61, %v8674_v40  ;;  %v8584_v11 = vld [vmem:[#allocation9 + $0x188] sm:$0xf] }
 0x137   :  { %v8488_v61 = vld [vmem:[#allocation9 + $0xc8] sm:$0xf] }
 0x138   :  { %3809 = vmatmul.bf16.vlgmr.msra.gmra.mxu0 %v10808_v4  ;;  %v2176_v32 = vmax.f32 %v2172_v16, 0.0  ;;  %v2229_v16 = vperm.slane %v10787_v62, 1  ;;  %v10091_v40 = vld [vmem:[#allocation9 + $0xe4] sm:$0xf0] }
 0x139   :  { %3853 = vmatpush.bf16.msrb.mxu0 %v8613_v60  ;;  %3866 = vmatpush.bf16.msrb.mxu1 %v8869_v63  ;;  %v8709_v60 = vor.u32 %v10142_v53, %v8706_v1  ;;  %v9056_v63 = vld [vmem:[#allocation9 + $0x540] sm:$0xf]  ;;  %v2250_v53 = vperm.slane %v10797_v22, 1  ;;  %v8520_v1 = vld [vmem:[#allocation9 + $0x108] sm:$0xf]  ;;  %v8489_v3 = vor.u32 %v10091_v40, %v8488_v61 }
 0x13a   :  { %v10819_v43 = vadd.f32 1e-05, %v2176_v32  ;;  %v8585_v32 = vor.u32 %v10115_v23, %v8584_v11  ;;  %v8424_v11 = vld [vmem:[#allocation9 + $0x48] sm:$0xf]  ;;  %v10111_v40 = vld [vmem:[#allocation9 + $0x18c] sm:$0xf] }
 0x13b   :  { %v10075_v23 = vld [vmem:[#allocation9 + $0x64] sm:$0xf0] }
 0x13c   :  { %10421 = vrsqrt.f32 %v10819_v43  ;;  %vm2203_vm6 = vweird.f32 %v10819_v43 }
 0x13d   :  { %3854 = vmatpush.bf16.msrb.mxu0 %v8581_v8  ;;  %3867 = vmatpush.bf16.msrb.mxu1 %v8837_v58  ;;  %v10824_v9 = vpop.f32.mrf.mxu3  ;;  %v1896_v59 = vpop.f32.mrf.mxu0  ;;  %v9057_v8 = vor.u32 %v10234_v41, %v9056_v63  ;;  %v10126_v58 = vld [vmem:[#allocation9 + $0x204] sm:$0xf] }
 0x13e   :  { %v10822_v52 = vpop.f32.mrf.mxu2  ;;  %v1909_v51 = vpop.f32.mrf.mxu1  ;;  %v10202_v59 = vld [vmem:[#allocation9 + $0x45c] sm:$0xf0] }
 0x13f   :  { %3829 = vmatpush.bf16.msra.mxu2 %v9057_v8 }
 0x141   :  { %3855 = vmatpush.bf16.msrb.mxu0 %v8549_v19  ;;  %3868 = vmatpush.bf16.msrb.mxu1 %v8805_v21  ;;  %v10226_v19 = vld [vmem:[#allocation9 + $0x51c] sm:$0xf0]  ;;  %v8645_v21 = vor.u32 %v10126_v58, %v8642_v13  ;;  %v9122_v58 = vld [vmem:[#allocation9 + $0x5e0] sm:$0xf0] }
 0x142   :  { %v10422_v45 = vpop.eup %10421  ;;  %v9025_v7 = vor.u32 %v10226_v19, %v9024_v17  ;;  %v10171_v17 = vld [vmem:[#allocation9 + $0x364] sm:$0xf0] }
 0x143   :  { %v2198_v56 = vmul.f32 %v10422_v45, %v10819_v43  ;;  %vm2204_vm5 = vweird.f32 %v10422_v45  ;;  %v2180_v43 = vsub.f32 %v10802_v39, %v10811_v18  ;;  %v8873_v18 = vor.u32 %v10187_v57, %v8872_v55  ;;  %v10222_v57 = vld [vmem:[#allocation9 + $0x504] sm:$0xf] }
 0x144   :  { %3830 = vmatpush.bf16.msra.mxu2 %v9025_v7  ;;  %vm2205_vm7 = vmor %vm2203_vm6, %vm2204_vm5  ;;  %v9090_v7 = vld [vmem:[#allocation9 + $0x5a0] sm:$0xf0] }
 0x145   :  { %3856 = vmatpush.bf16.msrb.mxu0 %v8517_v25  ;;  %3869 = vmatpush.bf16.msrb.mxu1 %v8773_v31  ;;  %v2199_v2 = vmul.f32 %v10422_v45, %v2198_v56  ;;  %v1935_v42 = vpop.f32.mrf.mxu3  ;;  %v1908_v25 = vadd.f32 %v10817_v34, %v10815_v29  ;;  %v8960_v34 = vld [vmem:[#allocation9 + $0x480] sm:$0xf]  ;;  %v10179_v56 = vld [vmem:[#allocation9 + $0x3a4] sm:$0xf0] }
 0x146   :  { %v1922_v12 = vpop.f32.mrf.mxu2 }
 0x147   :  { %v2200_v20 = vmul.f32 0.5, %v2199_v2  ;;  %v1921_v29 = vadd.f32 %v10822_v52, %v1908_v25  ;;  %v8928_v52 = vld [vmem:[#allocation9 + $0x440] sm:$0xf]  ;;  %v10246_v12 = vld [vmem:[#allocation9 + $0x5c4] sm:$0xf] }
 0x148   :  { %3831 = vmatpush.bf16.msra.mxu2 %v8993_v35  ;;  %v8929_v47 = vor.u32 %v10202_v59, %v8928_v52  ;;  %v9125_v2 = vor.u32 %v10246_v12, %v9122_v58  ;;  %v9026_v52 = vld [vmem:[#allocation9 + $0x520] sm:$0xf0]  ;;  %v8554_v12 = vld [vmem:[#allocation9 + $0x168] sm:$0xf0] }
 0x149   :  { %3857 = vmatpush.bf16.msrb.mxu0 %v8485_v44  ;;  %3870 = vmatpush.bf16.msrb.mxu1 %v8741_v37  ;;  %v2201_v24 = vsub.f32 1.5, %v2200_v20  ;;  %v10107_v44 = vld [vmem:[#allocation9 + $0x164] sm:$0xf0]  ;;  %v8961_v37 = vor.u32 %v10210_v49, %v8960_v34  ;;  %v1934_v33 = vadd.f32 %v10824_v9, %v1921_v29  ;;  %v10194_v9 = vld [vmem:[#allocation9 + $0x41c] sm:$0xf0] }
 0x14a   :  { %v8553_v30 = vor.u32 %v10107_v44, %v8552_v38  ;;  %v8425_v38 = vor.u32 %v10075_v23, %v8424_v11  ;;  %v10230_v44 = vld [vmem:[#allocation9 + $0x544] sm:$0xf]  ;;  %v10095_v11 = vld [vmem:[#allocation9 + $0x10c] sm:$0xf] }
 0x14b   :  { %v2202_v31 = vmul.f32 %v10422_v45, %v2201_v24  ;;  %v9058_v29 = vld [vmem:[#allocation9 + $0x560] sm:$0xf0]  ;;  %v8522_v23 = vld [vmem:[#allocation9 + $0x128] sm:$0xf0] }
 0x14c   :  { %3832 = vmatpush.bf16.msra.mxu2 %v8961_v37  ;;  %v8618_v37 = vld [vmem:[#allocation9 + $0x1e8] sm:$0xf0] }
 0x14d   :  { %3858 = vmatpush.bf16.msrb.mxu0 %v8453_v54  ;;  %3871 = vmatpush.bf16.msrb.mxu1 %v8709_v60  ;;  %v2206_v46 = vsel %vm2205_vm7, %v10422_v45, %v2202_v31  ;;  %v10099_v54 = vld [vmem:[#allocation9 + $0x124] sm:$0xf0] }
 0x14e   :  { %v2237_v48 = vmul.f32 %v2229_v16, %v2206_v46  ;;  %v8521_v60 = vor.u32 %v10099_v54, %v8520_v1  ;;  %v8840_v45 = vld [vmem:[#allocation9 + $0x388] sm:$0xf] }
 0x14f   :  { %v8841_v13 = vor.u32 %v10179_v56, %v8840_v45  ;;  %v10163_v31 = vld [vmem:[#allocation9 + $0x324] sm:$0xf0]  ;;  %v10214_v56 = vld [vmem:[#allocation9 + $0x4c4] sm:$0xf] }
 0x150   :  { %v2241_v50 = vperm.slane %v2237_v48, 0  ;;  %3833 = vmatpush.bf16.msra.mxu2 %v8929_v47  ;;  %v8392_v46 = vld [vmem:[#allocation9 + $0x8] sm:$0xf]  ;;  %v8777_v49 = vor.u32 %v10163_v31, %v8776_v28  ;;  %v10183_v28 = vld [vmem:[#allocation9 + $0x3cc] sm:$0xf] }
 0x151   :  { %3859 = vmatpush.bf16.msrb.mxu0 %v8421_v36  ;;  %3872 = vmatpush.bf16.msrb.mxu1 %v8677_v6  ;;  %v8897_v6 = vor.u32 %v10194_v9, %v8896_v0  ;;  %v10067_v48 = vld [vmem:[#allocation9 + $0x24] sm:$0xf0]  ;;  %v8994_v0 = vld [vmem:[#allocation9 + $0x4e0] sm:$0xf0]  ;;  %v8874_v31 = vld [vmem:[#allocation9 + $0x3e8] sm:$0xf0] }
 0x152   :  { %v2245_v26 = vmul.f32 %v2241_v50, %v2180_v43  ;;  %v9061_v43 = vor.u32 %v10230_v44, %v9058_v29  ;;  %v8744_v1 = vld [vmem:[#allocation9 + $0x2c8] sm:$0xf] }
 0x153   :  { %v10155_v54 = vld [vmem:[#allocation9 + $0x2e4] sm:$0xf0] }
 0x154   :  { %v2258_v51 = vadd.f32 %v2250_v53, %v2245_v26  ;;  %3834 = vmatpush.bf16.msra.mxu2 %v8897_v6  ;;  %v8393_v26 = vor.u32 %v10067_v48, %v8392_v46  ;;  %v8745_v61 = vor.u32 %v10155_v54, %v8744_v1  ;;  %v8997_v6 = vor.u32 %v10214_v56, %v8994_v0  ;;  %v10175_v54 = vld [vmem:[#allocation9 + $0x38c] sm:$0xf]  ;;  %v9344_v56 = vld [vmem:[#allocation9 + $0x780] sm:$0xf] }
 0x155   :  { %3860 = vmatpush.bf16.msrb.mxu0 %v8389_v14  ;;  %3873 = vmatpush.bf16.msrb.mxu1 %v8645_v21  ;;  %v1946_v39 = vpop.f32.mrf.mxu0  ;;  %v1959_v41 = vpop.f32.mrf.mxu1  ;;  %v8808_v14 = vld [vmem:[#allocation9 + $0x348] sm:$0xf]  ;;  %v10238_v21 = vld [vmem:[#allocation9 + $0x584] sm:$0xf]  ;;  %v8525_v46 = vor.u32 %v10095_v11, %v8522_v23  ;;  %v10306_v0 = vld [vmem:[#allocation9 + $0x79c] sm:$0xf0] }
 0x156   :  { %v10837_v36 = vpack.c.bf16 %v2258_v51, %v2258_v51  ;;  %v1947_v63 = vadd.f32 %v1946_v39, %v1934_v33  ;;  %v9093_v24 = vor.u32 %v10238_v21, %v9090_v7  ;;  %v8809_v25 = vor.u32 %v10171_v17, %v8808_v14  ;;  %v8586_v39 = vld [vmem:[#allocation9 + $0x1a8] sm:$0xf0]  ;;  %v10206_v14 = vld [vmem:[#allocation9 + $0x484] sm:$0xf]  ;;  %v10124_v11 = vld [vmem:[#allocation9 + $0x1ec] sm:$0xf0] }
 0x157   :  { %v9029_v51 = vor.u32 %v10222_v57, %v9026_v52  ;;  %v8962_v17 = vld [vmem:[#allocation9 + $0x4a0] sm:$0xf0] }
 0x158   :  { %3861 = vmatmul.bf16.vlgmr.msrb.gmra.mxu0 %v10808_v4  ;;  %v1960_v8 = vadd.f32 %v1959_v41, %v1947_v63  ;;  %3822 = vmatmul.bf16.vlgmr.msra.gmra.mxu1 %v10837_v36  ;;  %v8712_v63 = vld [vmem:[#allocation9 + $0x288] sm:$0xf]  ;;  %v8965_v21 = vor.u32 %v10206_v14, %v8962_v17  ;;  %v10298_v14 = vld [vmem:[#allocation9 + $0x75c] sm:$0xf0]  ;;  %v10063_v17 = vld [vmem:[#allocation9 + $0xc] sm:$0xf] }
 0x159   :  { %3905 = vmatpush.bf16.msra.mxu0 %v8617_v15  ;;  %3918 = vmatpush.bf16.msra.mxu1 %v8873_v18  ;;  %v8457_v15 = vor.u32 %v10083_v10, %v8456_v5  ;;  %v10147_v41 = vld [vmem:[#allocation9 + $0x2a4] sm:$0xf0]  ;;  %v8589_v5 = vor.u32 %v10111_v40, %v8586_v39  ;;  %v10103_v10 = vld [vmem:[#allocation9 + $0x14c] sm:$0xf] }
 0x15a   :  { %3879 = vmatpush.bf16.msrb.mxu2 %v9125_v2  ;;  %v8680_v2 = vld [vmem:[#allocation9 + $0x248] sm:$0xf] }
 0x15d   :  { %3906 = vmatpush.bf16.msra.mxu0 %v8585_v32  ;;  %v1985_v20 = vpop.f32.mrf.mxu3  ;;  %3919 = vmatpush.bf16.msra.mxu1 %v8841_v13  ;;  %v1948_v27 = vpop.f32.mrf.mxu0 }
 0x15e   :  { %v1972_v42 = vpop.f32.mrf.mxu2  ;;  %v1961_v32 = vpop.f32.mrf.mxu1  ;;  %3880 = vmatpush.bf16.msrb.mxu2 %v9093_v24  ;;  %v8648_v24 = vld [vmem:[#allocation9 + $0x208] sm:$0xf] }
 0x15f   :  { %v1973_v19 = vadd.f32 %v1972_v42, %v1960_v8  ;;  %v8713_v8 = vor.u32 %v10147_v41, %v8712_v63  ;;  %v10139_v42 = vld [vmem:[#allocation9 + $0x264] sm:$0xf0]  ;;  %v10198_v32 = vld [vmem:[#allocation9 + $0x444] sm:$0xf] }
 0x160   :  { %v8681_v7 = vor.u32 %v10139_v42, %v8680_v2  ;;  %v10131_v27 = vld [vmem:[#allocation9 + $0x224] sm:$0xf0]  ;;  %v9312_v42 = vld [vmem:[#allocation9 + $0x740] sm:$0xf] }
 0x161   :  { %3907 = vmatpush.bf16.msra.mxu0 %v8553_v30  ;;  %v1986_v16 = vadd.f32 %v1985_v20, %v1973_v19  ;;  %3920 = vmatpush.bf16.msra.mxu1 %v8809_v25  ;;  %v10119_v30 = vld [vmem:[#allocation9 + $0x1cc] sm:$0xf]  ;;  %v8649_v29 = vor.u32 %v10131_v27, %v8648_v24 }
 0x162   :  { %3881 = vmatpush.bf16.msrb.mxu2 %v9061_v43  ;;  %v8621_v47 = vor.u32 %v10119_v30, %v8618_v37  ;;  %v8490_v30 = vld [vmem:[#allocation9 + $0xe8] sm:$0xf0]  ;;  %v8877_v43 = vor.u32 %v10183_v28, %v8874_v31  ;;  %v9280_v31 = vld [vmem:[#allocation9 + $0x700] sm:$0xf] }
 0x163   :  { %vm2095_vm8 = vcmp.ge.f32.partialorder %v1986_v16, 0.0  ;;  %v2099_v35 = vmul.f32 0.2, %v1986_v16  ;;  %v10151_v24 = vld [vmem:[#allocation9 + $0x2cc] sm:$0xf] }
 0x165   :  { %3908 = vmatpush.bf16.msra.mxu0 %v8521_v60  ;;  %v10840_v34 = vsel %vm2095_vm8, %v1986_v16, %v2099_v35  ;;  %v1987_v33 = vpop.f32.mrf.mxu3  ;;  %3921 = vmatpush.bf16.msra.mxu1 %v8777_v49  ;;  %v8930_v35 = vld [vmem:[#allocation9 + $0x460] sm:$0xf0]  ;;  %v10087_v49 = vld [vmem:[#allocation9 + $0xcc] sm:$0xf] }
 0x166   :  { %v2119_v50 = vrot.slane %v10840_v34, 4  ;;  %v2133_v53 = vmul.f32 %v10840_v34, %v10840_v34  ;;  %v1974_v55 = vpop.f32.mrf.mxu2  ;;  %3882 = vmatpush.bf16.msrb.mxu2 %v9029_v51  ;;  %v8933_v48 = vor.u32 %v10198_v32, %v8930_v35  ;;  %v8493_v57 = vor.u32 %v10087_v49, %v8490_v30  ;;  %v8458_v51 = vld [vmem:[#allocation9 + $0xa8] sm:$0xf0]  ;;  %v10290_v32 = vld [vmem:[#allocation9 + $0x71c] sm:$0xf0] }
 0x167   :  { %v8842_v55 = vld [vmem:[#allocation9 + $0x3a8] sm:$0xf0]  ;;  %v10116_v49 = vld [vmem:[#allocation9 + $0x1ac] sm:$0xf0] }
 0x168   :  { %v2120_v59 = vadd.f32 %v2119_v50, %v10840_v34  ;;  %v2147_v60 = vrot.slane %v2133_v53, 4  ;;  %3874 = vmatmul.bf16.vlgmr.msrb.gmra.mxu1 %v10837_v36  ;;  %v10190_v50 = vld [vmem:[#allocation9 + $0x404] sm:$0xf]  ;;  %v8845_v39 = vor.u32 %v10175_v54, %v8842_v55 }
 0x169   :  { %3909 = vmatpush.bf16.msra.mxu0 %v8489_v3  ;;  %3922 = vmatpush.bf16.msra.mxu1 %v8745_v61 }
 0x16a   :  { %v2121_v18 = vrot.slane %v2120_v59, 2  ;;  %v2148_v45 = vadd.f32 %v2147_v60, %v2133_v53  ;;  %3883 = vmatpush.bf16.msrb.mxu2 %v8997_v6  ;;  %v8898_v53 = vld [vmem:[#allocation9 + $0x420] sm:$0xf0]  ;;  %v10314_v60 = vld [vmem:[#allocation9 + $0x7dc] sm:$0xf0]  ;;  %v9345_v6 = vor.u32 %v10306_v0, %v9344_v56 }
 0x16c   :  { %v2122_v9 = vadd.f32 %v2121_v18, %v2120_v59  ;;  %v2149_v3 = vrot.slane %v2148_v45, 2  ;;  %v9376_v59 = vld [vmem:[#allocation9 + $0x7c0] sm:$0xf]  ;;  %v10167_v18 = vld [vmem:[#allocation9 + $0x34c] sm:$0xf] }
 0x16d   :  { %3910 = vmatpush.bf16.msra.mxu0 %v8457_v15  ;;  %v8557_v15 = vor.u32 %v10103_v10, %v8554_v12  ;;  %3923 = vmatpush.bf16.msra.mxu1 %v8713_v8  ;;  %v9377_v61 = vor.u32 %v10314_v60, %v9376_v59  ;;  %v10159_v12 = vld [vmem:[#allocation9 + $0x30c] sm:$0xf]  ;;  %v8560_v59 = vld [vmem:[#allocation9 + $0x150] sm:$0xf] }
 0x16e   :  { %v2123_v58 = vrot.slane %v2122_v9, 1  ;;  %v2150_v13 = vadd.f32 %v2149_v3, %v2148_v45  ;;  %3884 = vmatpush.bf16.msrb.mxu2 %v8965_v21  ;;  %v8810_v45 = vld [vmem:[#allocation9 + $0x368] sm:$0xf0]  ;;  %v10108_v60 = vld [vmem:[#allocation9 + $0x16c] sm:$0xf0] }
 0x16f   :  { %3840 = vmatpush.bf16.msra.mxu3 %v9377_v61  ;;  %v10071_v3 = vld [vmem:[#allocation9 + $0x4c] sm:$0xf]  ;;  %v8813_v8 = vor.u32 %v10167_v18, %v8810_v45  ;;  %v9216_v18 = vld [vmem:[#allocation9 + $0x680] sm:$0xf] }
 0x170   :  { %v2124_v19 = vadd.f32 %v2123_v58, %v2122_v9  ;;  %v2151_v20 = vrot.slane %v2150_v13, 1  ;;  %v8778_v58 = vld [vmem:[#allocation9 + $0x328] sm:$0xf0]  ;;  %v10274_v45 = vld [vmem:[#allocation9 + $0x69c] sm:$0xf0] }
 0x171   :  { %3911 = vmatpush.bf16.msra.mxu0 %v8425_v38  ;;  %3924 = vmatpush.bf16.msra.mxu1 %v8681_v7  ;;  %v8781_v21 = vor.u32 %v10159_v12, %v8778_v58  ;;  %v8624_v7 = vld [vmem:[#allocation9 + $0x1d0] sm:$0xf]  ;;  %v10135_v61 = vld [vmem:[#allocation9 + $0x24c] sm:$0xf]  ;;  %v9217_v56 = vor.u32 %v10274_v45, %v9216_v18 }
 0x172   :  { %v2152_v16 = vadd.f32 %v2151_v20, %v2150_v13  ;;  %v10848_v25 = vmul.f32 0.125, %v2124_v19  ;;  %3885 = vmatpush.bf16.msrb.mxu2 %v8933_v48  ;;  %v8394_v19 = vld [vmem:[#allocation9 + $0x28] sm:$0xf0]  ;;  %v9313_v20 = vor.u32 %v10298_v14, %v9312_v42  ;;  %v10266_v42 = vld [vmem:[#allocation9 + $0x65c] sm:$0xf0] }
 0x173   :  { %3841 = vmatpush.bf16.msra.mxu3 %v9345_v6  ;;  %v8397_v27 = vor.u32 %v10063_v17, %v8394_v19  ;;  %v10127_v6 = vld [vmem:[#allocation9 + $0x20c] sm:$0xf]  ;;  %v8496_v17 = vld [vmem:[#allocation9 + $0xd0] sm:$0xf] }
 0x174   :  { %v2165_v38 = vmul.f32 0.125, %v2152_v16  ;;  %v2169_v44 = vmul.f32 %v10848_v25, %v10848_v25  ;;  %v8746_v16 = vld [vmem:[#allocation9 + $0x2e8] sm:$0xf0]  ;;  %v2181_v12 = vsub.f32 %v10840_v34, %v10848_v25  ;;  %v8848_v34 = vld [vmem:[#allocation9 + $0x390] sm:$0xf] }
 0x175   :  { %3912 = vmatpush.bf16.msra.mxu0 %v8393_v26  ;;  %v10852_v1 = vpop.f32.mrf.mxu0  ;;  %v8901_v26 = vor.u32 %v10190_v50, %v8898_v53  ;;  %v10854_v52 = vpop.f32.mrf.mxu1  ;;  %3925 = vmatpush.bf16.msra.mxu1 %v8649_v29  ;;  %v8749_v48 = vor.u32 %v10151_v24, %v8746_v16  ;;  %v8592_v29 = vld [vmem:[#allocation9 + $0x190] sm:$0xf]  ;;  %v9248_v50 = vld [vmem:[#allocation9 + $0x6c0] sm:$0xf] }
 0x176   :  { %v2173_v37 = vsub.f32 %v2165_v38, %v2169_v44  ;;  %v8625_v38 = vor.u32 %v10124_v11, %v8624_v7  ;;  %v10282_v53 = vld [vmem:[#allocation9 + $0x6dc] sm:$0xf0]  ;;  %v8593_v55 = vor.u32 %v10116_v49, %v8592_v29  ;;  %v10251_v7 = vld [vmem:[#allocation9 + $0x5e4] sm:$0xf0]  ;;  %v10180_v16 = vld [vmem:[#allocation9 + $0x3ac] sm:$0xf0] }
 0x177   :  { %3886 = vmatpush.bf16.msrb.mxu2 %v8901_v26  ;;  %3842 = vmatpush.bf16.msra.mxu3 %v9313_v20  ;;  %v9249_v26 = vor.u32 %v10282_v53, %v9248_v50  ;;  %v10243_v29 = vld [vmem:[#allocation9 + $0x5a4] sm:$0xf0]  ;;  %v10310_v49 = vld [vmem:[#allocation9 + $0x7c4] sm:$0xf]  ;;  %v10172_v50 = vld [vmem:[#allocation9 + $0x36c] sm:$0xf0] }
 0x178   :  { %3913 = vmatmul.bf16.vlgmr.msra.gmra.mxu0 %v10808_v4  ;;  %v2177_v33 = vmax.f32 %v2173_v37, 0.0  ;;  %3926 = vmatmul.bf16.vlgmr.msra.gmra.mxu1 %v10837_v36  ;;  %v10143_v37 = vld [vmem:[#allocation9 + $0x28c] sm:$0xf] }
 0x179   :  { %3957 = vmatpush.bf16.msrb.mxu0 %v8621_v47  ;;  %v10079_v47 = vld [vmem:[#allocation9 + $0x8c] sm:$0xf]  ;;  %3970 = vmatpush.bf16.msrb.mxu1 %v8877_v43 }
 0x17a   :  { %v10856_v40 = vadd.f32 1e-05, %v2177_v33  ;;  %v8461_v63 = vor.u32 %v10079_v47, %v8458_v51  ;;  %v8714_v43 = vld [vmem:[#allocation9 + $0x2a8] sm:$0xf0]  ;;  %v2230_v33 = vperm.slane %v10787_v62, 2  ;;  %v2012_v51 = vadd.f32 %v10854_v52, %v10852_v1 }
 0x17b   :  { %v8650_v52 = vld [vmem:[#allocation9 + $0x228] sm:$0xf0] }
 0x17c   :  { %10423 = vrsqrt.f32 %v10856_v40  ;;  %vm2213_vm10 = vweird.f32 %v10856_v40 }
 0x17d   :  { %3958 = vmatpush.bf16.msrb.mxu0 %v8589_v5  ;;  %v10862_v9 = vpop.f32.mrf.mxu3  ;;  %v8426_v5 = vld [vmem:[#allocation9 + $0x68] sm:$0xf0]  ;;  %3971 = vmatpush.bf16.msrb.mxu1 %v8845_v39  ;;  %v2000_v10 = vpop.f32.mrf.mxu0 }
 0x17e   :  { %v10860_v41 = vpop.f32.mrf.mxu2  ;;  %v8429_v13 = vor.u32 %v10071_v3, %v8426_v5  ;;  %v2013_v2 = vpop.f32.mrf.mxu1  ;;  %v8682_v39 = vld [vmem:[#allocation9 + $0x268] sm:$0xf0]  ;;  %v10100_v5 = vld [vmem:[#allocation9 + $0x12c] sm:$0xf0] }
 0x17f   :  { %v8685_v3 = vor.u32 %v10135_v61, %v8682_v39  ;;  %v2025_v1 = vadd.f32 %v10860_v41, %v2012_v51  ;;  %v10188_v10 = vld [vmem:[#allocation9 + $0x3ec] sm:$0xf0]  ;;  %v9184_v2 = vld [vmem:[#allocation9 + $0x640] sm:$0xf]  ;;  %v9064_v51 = vld [vmem:[#allocation9 + $0x548] sm:$0xf] }
 0x180   :  { %v9185_v19 = vor.u32 %v10266_v42, %v9184_v2  ;;  %v10092_v41 = vld [vmem:[#allocation9 + $0xec] sm:$0xf0]  ;;  %v10235_v61 = vld [vmem:[#allocation9 + $0x564] sm:$0xf0] }
 0x181   :  { %3959 = vmatpush.bf16.msrb.mxu0 %v8557_v15  ;;  %3972 = vmatpush.bf16.msrb.mxu1 %v8813_v8  ;;  %v8880_v8 = vld [vmem:[#allocation9 + $0x3d0] sm:$0xf]  ;;  %v2038_v11 = vadd.f32 %v10862_v9, %v2025_v1  ;;  %v9096_v9 = vld [vmem:[#allocation9 + $0x588] sm:$0xf]  ;;  %v9065_v1 = vor.u32 %v10235_v61, %v9064_v51 }
 0x182   :  { %v10424_v15 = vpop.eup %10423  ;;  %v8881_v24 = vor.u32 %v10188_v10, %v8880_v8  ;;  %v10294_v8 = vld [vmem:[#allocation9 + $0x744] sm:$0xf]  ;;  %v10140_v51 = vld [vmem:[#allocation9 + $0x26c] sm:$0xf0] }
 0x183   :  { %v2208_v23 = vmul.f32 %v10424_v15, %v10856_v40  ;;  %vm2214_vm9 = vweird.f32 %v10424_v15  ;;  %v8528_v40 = vld [vmem:[#allocation9 + $0x110] sm:$0xf]  ;;  %v9314_v10 = vld [vmem:[#allocation9 + $0x760] sm:$0xf0] }
 0x184   :  { %vm2215_vm11 = vmor %vm2213_vm10, %vm2214_vm9  ;;  %v8529_v14 = vor.u32 %v10100_v5, %v8528_v40  ;;  %v10164_v40 = vld [vmem:[#allocation9 + $0x32c] sm:$0xf0]  ;;  %v9317_v2 = vor.u32 %v10294_v8, %v9314_v10  ;;  %v8904_v10 = vld [vmem:[#allocation9 + $0x408] sm:$0xf] }
 0x185   :  { %3960 = vmatpush.bf16.msrb.mxu0 %v8525_v46  ;;  %v2209_v35 = vmul.f32 %v10424_v15, %v2208_v23  ;;  %v2039_v44 = vpop.f32.mrf.mxu3  ;;  %v9281_v46 = vor.u32 %v10290_v32, %v9280_v31  ;;  %3973 = vmatpush.bf16.msrb.mxu1 %v8781_v21  ;;  %v9128_v21 = vld [vmem:[#allocation9 + $0x5c8] sm:$0xf]  ;;  %v8497_v32 = vor.u32 %v10092_v41, %v8496_v17  ;;  %v8626_v17 = vld [vmem:[#allocation9 + $0x1f0] sm:$0xf0] }
 0x186   :  { %v2026_v28 = vpop.f32.mrf.mxu2  ;;  %v10084_v44 = vld [vmem:[#allocation9 + $0xac] sm:$0xf0] }
 0x187   :  { %v2210_v30 = vmul.f32 0.5, %v2209_v35  ;;  %3843 = vmatpush.bf16.msra.mxu3 %v9281_v46  ;;  %v10258_v28 = vld [vmem:[#allocation9 + $0x61c] sm:$0xf0]  ;;  %v9129_v35 = vor.u32 %v10251_v7, %v9128_v21  ;;  %v10286_v7 = vld [vmem:[#allocation9 + $0x704] sm:$0xf] }
 0x189   :  { %3961 = vmatpush.bf16.msrb.mxu0 %v8493_v57  ;;  %v2211_v54 = vsub.f32 1.5, %v2210_v30  ;;  %3974 = vmatpush.bf16.msrb.mxu1 %v8749_v48  ;;  %v8717_v57 = vor.u32 %v10143_v37, %v8714_v43  ;;  %v8849_v30 = vor.u32 %v10180_v16, %v8848_v34  ;;  %v9378_v37 = vld [vmem:[#allocation9 + $0x7e0] sm:$0xf0]  ;;  %v8816_v43 = vld [vmem:[#allocation9 + $0x350] sm:$0xf] }
 0x18a   :  { %v9381_v53 = vor.u32 %v10310_v49, %v9378_v37  ;;  %v10219_v16 = vld [vmem:[#allocation9 + $0x4e4] sm:$0xf0]  ;;  %v10278_v49 = vld [vmem:[#allocation9 + $0x6c4] sm:$0xf] }
 0x18b   :  { %v2212_v47 = vmul.f32 %v10424_v15, %v2211_v54  ;;  %3844 = vmatpush.bf16.msra.mxu3 %v9249_v26  ;;  %v9097_v26 = vor.u32 %v10243_v29, %v9096_v9  ;;  %v10148_v9 = vld [vmem:[#allocation9 + $0x2ac] sm:$0xf0] }
 0x18d   :  { %3962 = vmatpush.bf16.msrb.mxu0 %v8461_v63  ;;  %v2216_v62 = vsel %vm2215_vm11, %v10424_v15, %v2212_v47  ;;  %v8561_v63 = vor.u32 %v10108_v60, %v8560_v59  ;;  %3975 = vmatpush.bf16.msrb.mxu1 %v8717_v57  ;;  %v8653_v15 = vor.u32 %v10127_v6, %v8650_v52  ;;  %v10302_v57 = vld [vmem:[#allocation9 + $0x784] sm:$0xf]  ;;  %v10076_v47 = vld [vmem:[#allocation9 + $0x6c] sm:$0xf0] }
 0x18e   :  { %v2238_v0 = vmul.f32 %v2230_v33, %v2216_v62  ;;  %v8432_v33 = vld [vmem:[#allocation9 + $0x50] sm:$0xf]  ;;  %v9346_v59 = vld [vmem:[#allocation9 + $0x7a0] sm:$0xf0] }
 0x18f   :  { %3845 = vmatpush.bf16.msra.mxu3 %v9217_v56  ;;  %v9349_v39 = vor.u32 %v10302_v57, %v9346_v59  ;;  %v8433_v6 = vor.u32 %v10076_v47, %v8432_v33  ;;  %v10068_v52 = vld [vmem:[#allocation9 + $0x2c] sm:$0xf0]  ;;  %v10104_v33 = vld [vmem:[#allocation9 + $0x154] sm:$0xf] }
 0x190   :  { %v2242_v58 = vperm.slane %v2238_v0, 0  ;;  %v8400_v0 = vld [vmem:[#allocation9 + $0x10] sm:$0xf]  ;;  %v8562_v57 = vld [vmem:[#allocation9 + $0x170] sm:$0xf0] }
 0x191   :  { %3963 = vmatpush.bf16.msrb.mxu0 %v8429_v13  ;;  %v2251_v13 = vperm.slane %v10797_v22, 2  ;;  %3976 = vmatpush.bf16.msrb.mxu1 %v8685_v3  ;;  %v8784_v3 = vld [vmem:[#allocation9 + $0x310] sm:$0xf]  ;;  %v8401_v41 = vor.u32 %v10068_v52, %v8400_v0  ;;  %v10203_v0 = vld [vmem:[#allocation9 + $0x464] sm:$0xf0] }
 0x192   :  { %v2246_v20 = vmul.f32 %v2242_v58, %v2181_v12  ;;  %v9032_v12 = vld [vmem:[#allocation9 + $0x508] sm:$0xf]  ;;  %v8688_v47 = vld [vmem:[#allocation9 + $0x250] sm:$0xf] }
 0x193   :  { %3846 = vmatpush.bf16.msra.mxu3 %v9185_v19  ;;  %v10227_v58 = vld [vmem:[#allocation9 + $0x524] sm:$0xf0]  ;;  %v8752_v19 = vld [vmem:[#allocation9 + $0x2d0] sm:$0xf] }
 0x194   :  { %v2259_v25 = vadd.f32 %v2251_v13, %v2246_v20  ;;  %v10120_v13 = vld [vmem:[#allocation9 + $0x1d4] sm:$0xf]  ;;  %v10156_v20 = vld [vmem:[#allocation9 + $0x2ec] sm:$0xf0]  ;;  %v9033_v21 = vor.u32 %v10227_v58, %v9032_v12 }
 0x195   :  { %3964 = vmatpush.bf16.msrb.mxu0 %v8397_v27  ;;  %v2050_v23 = vpop.f32.mrf.mxu0  ;;  %v2063_v22 = vpop.f32.mrf.mxu1  ;;  %v9152_v27 = vld [vmem:[#allocation9 + $0x600] sm:$0xf]  ;;  %3977 = vmatpush.bf16.msrb.mxu1 %v8653_v15  ;;  %v10132_v12 = vld [vmem:[#allocation9 + $0x22c] sm:$0xf0]  ;;  %v10184_v58 = vld [vmem:[#allocation9 + $0x3d4] sm:$0xf] }
 0x196   :  { %v2051_v31 = vadd.f32 %v2050_v23, %v2038_v11  ;;  %v9153_v46 = vor.u32 %v10258_v28, %v9152_v27  ;;  %v10876_v48 = vpack.c.bf16 %v2259_v25, %v2259_v25  ;;  %v9282_v11 = vld [vmem:[#allocation9 + $0x720] sm:$0xf0]  ;;  %v8629_v25 = vor.u32 %v10120_v13, %v8626_v17 }
 0x197   :  { %v9285_v27 = vor.u32 %v10286_v7, %v9282_v11 }
 0x198   :  { %3965 = vmatmul.bf16.vlgmr.msrb.gmra.mxu0 %v10808_v4  ;;  %3847 = vmatpush.bf16.msra.mxu3 %v9153_v46  ;;  %v2064_v54 = vadd.f32 %v2063_v22, %v2051_v31  ;;  %v9000_v22 = vld [vmem:[#allocation9 + $0x4c8] sm:$0xf]  ;;  %v8753_v31 = vor.u32 %v10156_v20, %v8752_v19  ;;  %v8720_v46 = vld [vmem:[#allocation9 + $0x290] sm:$0xf] }
 0x199   :  { %4009 = vmatpush.bf16.msra.mxu0 %v8625_v38  ;;  %v8464_v38 = vld [vmem:[#allocation9 + $0x90] sm:$0xf]  ;;  %4022 = vmatpush.bf16.msra.mxu1 %v8881_v24  ;;  %v9001_v29 = vor.u32 %v10219_v16, %v9000_v22 }
 0x19a   :  { %3835 = vmatmul.bf16.vlgmr.msra.gmra.mxu2 %v10876_v48  ;;  %3978 = vmatmul.bf16.vlgmr.msrb.gmra.mxu1 %v10837_v36 }
 0x19b   :  { %3931 = vmatpush.bf16.msra.mxu2 %v9129_v35  ;;  %v8594_v35 = vld [vmem:[#allocation9 + $0x1b0] sm:$0xf0] }
 0x19c   :  { %3892 = vmatpush.bf16.msrb.mxu3 %v9381_v53  ;;  %v8968_v53 = vld [vmem:[#allocation9 + $0x488] sm:$0xf] }
 0x19d   :  { %4010 = vmatpush.bf16.msra.mxu0 %v8593_v55  ;;  %v8465_v55 = vor.u32 %v10084_v44, %v8464_v38  ;;  %v2076_v60 = vpop.f32.mrf.mxu2  ;;  %v2089_v45 = vpop.f32.mrf.mxu3  ;;  %4023 = vmatpush.bf16.msra.mxu1 %v8849_v30  ;;  %v9250_v30 = vld [vmem:[#allocation9 + $0x6e0] sm:$0xf0] }
 0x19e   :  { %v2077_v18 = vadd.f32 %v2076_v60, %v2064_v54  ;;  %v2052_v62 = vpop.f32.mrf.mxu0  ;;  %v2065_v56 = vpop.f32.mrf.mxu1  ;;  %v10211_v54 = vld [vmem:[#allocation9 + $0x4a4] sm:$0xf0] }
 0x19f   :  { %3932 = vmatpush.bf16.msra.mxu2 %v9097_v26  ;;  %v8721_v26 = vor.u32 %v10148_v9, %v8720_v46  ;;  %v8969_v61 = vor.u32 %v10211_v54, %v8968_v53  ;;  %v8936_v56 = vld [vmem:[#allocation9 + $0x448] sm:$0xf]  ;;  %v10168_v54 = vld [vmem:[#allocation9 + $0x354] sm:$0xf] }
 0x1a0   :  { %v2090_v5 = vadd.f32 %v2089_v45, %v2077_v18  ;;  %3893 = vmatpush.bf16.msrb.mxu3 %v9349_v39  ;;  %v10270_v39 = vld [vmem:[#allocation9 + $0x684] sm:$0xf]  ;;  %v8937_v13 = vor.u32 %v10203_v0, %v8936_v56  ;;  %v10064_v56 = vld [vmem:[#allocation9 + $0x14] sm:$0xf] }
 0x1a1   :  { %4011 = vmatpush.bf16.msra.mxu0 %v8561_v63  ;;  %v8817_v63 = vor.u32 %v10172_v50, %v8816_v43  ;;  %v9218_v18 = vld [vmem:[#allocation9 + $0x6a0] sm:$0xf0]  ;;  %v8402_v0 = vld [vmem:[#allocation9 + $0x30] sm:$0xf0] }
 0x1a2   :  { %vm2096_vm12 = vcmp.ge.f32.partialorder %v2090_v5, 0.0  ;;  %v2100_v42 = vmul.f32 0.2, %v2090_v5 }
 0x1a3   :  { %4024 = vmatpush.bf16.msra.mxu1 %v8817_v63  ;;  %3933 = vmatpush.bf16.msra.mxu2 %v9065_v1  ;;  %v8565_v63 = vor.u32 %v10104_v33, %v8562_v57  ;;  %v8656_v1 = vld [vmem:[#allocation9 + $0x210] sm:$0xf] }
 0x1a4   :  { %v10880_v15 = vsel %vm2096_vm12, %v2090_v5, %v2100_v42  ;;  %3894 = vmatpush.bf16.msrb.mxu3 %v9317_v2  ;;  %v10096_v5 = vld [vmem:[#allocation9 + $0x114] sm:$0xf]  ;;  %v10262_v42 = vld [vmem:[#allocation9 + $0x644] sm:$0xf]  ;;  %v8657_v11 = vor.u32 %v10132_v12, %v8656_v1  ;;  %v10125_v1 = vld [vmem:[#allocation9 + $0x1f4] sm:$0xf0]  ;;  %v8405_v12 = vor.u32 %v10064_v56, %v8402_v0 }
 0x1a5   :  { %4012 = vmatpush.bf16.msra.mxu0 %v8529_v14  ;;  %v8785_v14 = vor.u32 %v10164_v40, %v8784_v3  ;;  %v2125_v23 = vrot.slane %v10880_v15, 4  ;;  %v2134_v24 = vmul.f32 %v10880_v15, %v10880_v15  ;;  %v2078_v34 = vpop.f32.mrf.mxu2  ;;  %v2091_v28 = vpop.f32.mrf.mxu3  ;;  %v9221_v3 = vor.u32 %v10270_v39, %v9218_v18  ;;  %v8882_v2 = vld [vmem:[#allocation9 + $0x3f0] sm:$0xf0] }
 0x1a6   :  { %v8689_v40 = vor.u32 %v10140_v51, %v8688_v47  ;;  %v9130_v34 = vld [vmem:[#allocation9 + $0x5e8] sm:$0xf0]  ;;  %v8885_v16 = vor.u32 %v10184_v58, %v8882_v2  ;;  %v10160_v18 = vld [vmem:[#allocation9 + $0x314] sm:$0xf] }
 0x1a7   :  { %4025 = vmatpush.bf16.msra.mxu1 %v8785_v14  ;;  %v2126_v38 = vadd.f32 %v2125_v23, %v10880_v15  ;;  %v2153_v44 = vrot.slane %v2134_v24, 4  ;;  %3934 = vmatpush.bf16.msra.mxu2 %v9033_v21  ;;  %v9186_v14 = vld [vmem:[#allocation9 + $0x660] sm:$0xf0]  ;;  %v10088_v21 = vld [vmem:[#allocation9 + $0xd4] sm:$0xf] }
 0x1a8   :  { %3895 = vmatpush.bf16.msrb.mxu3 %v9285_v27  ;;  %v9189_v7 = vor.u32 %v10262_v42, %v9186_v14  ;;  %v8498_v23 = vld [vmem:[#allocation9 + $0xf0] sm:$0xf0]  ;;  %v10231_v47 = vld [vmem:[#allocation9 + $0x54c] sm:$0xf] }
 0x1a9   :  { %4013 = vmatpush.bf16.msra.mxu0 %v8497_v32  ;;  %v10112_v32 = vld [vmem:[#allocation9 + $0x194] sm:$0xf]  ;;  %v2127_v37 = vrot.slane %v2126_v38, 2  ;;  %v2154_v43 = vadd.f32 %v2153_v44, %v2134_v24  ;;  %v10247_v24 = vld [vmem:[#allocation9 + $0x5cc] sm:$0xf]  ;;  %v8501_v46 = vor.u32 %v10088_v21, %v8498_v23 }
 0x1aa   :  { %v8597_v50 = vor.u32 %v10112_v32, %v8594_v35  ;;  %3887 = vmatmul.bf16.vlgmr.msrb.gmra.mxu2 %v10876_v48  ;;  %v10176_v27 = vld [vmem:[#allocation9 + $0x394] sm:$0xf]  ;;  %v10254_v35 = vld [vmem:[#allocation9 + $0x604] sm:$0xf]  ;;  %v9133_v9 = vor.u32 %v10247_v24, %v9130_v34  ;;  %v9066_v51 = vld [vmem:[#allocation9 + $0x568] sm:$0xf0] }
 0x1ab   :  { %4026 = vmatpush.bf16.msra.mxu1 %v8753_v31  ;;  %v2128_v59 = vadd.f32 %v2127_v37, %v2126_v38  ;;  %v2155_v60 = vrot.slane %v2154_v43, 2  ;;  %3935 = vmatpush.bf16.msra.mxu2 %v9001_v29  ;;  %v8850_v32 = vld [vmem:[#allocation9 + $0x3b0] sm:$0xf0]  ;;  %v9154_v38 = vld [vmem:[#allocation9 + $0x620] sm:$0xf0] }
 0x1ac   :  { %v10080_v29 = vld [vmem:[#allocation9 + $0x94] sm:$0xf]  ;;  %v9098_v37 = vld [vmem:[#allocation9 + $0x5a8] sm:$0xf0]  ;;  %v8853_v53 = vor.u32 %v10176_v27, %v8850_v32  ;;  %v8568_v27 = vld [vmem:[#allocation9 + $0x158] sm:$0xf] }
 0x1ad   :  { %4014 = vmatpush.bf16.msra.mxu0 %v8465_v55  ;;  %v9253_v55 = vor.u32 %v10278_v49, %v9250_v30  ;;  %v2129_v45 = vrot.slane %v2128_v59, 1  ;;  %v2156_v62 = vadd.f32 %v2155_v60, %v2154_v43  ;;  %v8466_v49 = vld [vmem:[#allocation9 + $0xb0] sm:$0xf0]  ;;  %v10239_v30 = vld [vmem:[#allocation9 + $0x58c] sm:$0xf]  ;;  %v9157_v43 = vor.u32 %v10254_v35, %v9154_v38 }
 0x1ae   :  { %v8469_v33 = vor.u32 %v10080_v29, %v8466_v49  ;;  %v9101_v57 = vor.u32 %v10239_v30, %v9098_v37  ;;  %v8434_v60 = vld [vmem:[#allocation9 + $0x70] sm:$0xf0]  ;;  %v10215_v42 = vld [vmem:[#allocation9 + $0x4cc] sm:$0xf] }
 0x1af   :  { %3896 = vmatpush.bf16.msrb.mxu3 %v9253_v55  ;;  %4027 = vmatpush.bf16.msra.mxu1 %v8721_v26  ;;  %v2130_v52 = vadd.f32 %v2129_v45, %v2128_v59  ;;  %v2157_v8 = vrot.slane %v2156_v62, 1  ;;  %v8818_v55 = vld [vmem:[#allocation9 + $0x370] sm:$0xf0]  ;;  %v9002_v14 = vld [vmem:[#allocation9 + $0x4e8] sm:$0xf0] }
 0x1b0   :  { %3936 = vmatpush.bf16.msra.mxu2 %v8969_v61  ;;  %v10072_v59 = vld [vmem:[#allocation9 + $0x54] sm:$0xf]  ;;  %v8821_v61 = vor.u32 %v10168_v54, %v8818_v55  ;;  %v9005_v23 = vor.u32 %v10215_v42, %v9002_v14  ;;  %v10199_v30 = vld [vmem:[#allocation9 + $0x44c] sm:$0xf]  ;;  %v10085_v42 = vld [vmem:[#allocation9 + $0xb4] sm:$0xf0] }
 0x1b1   :  { %4015 = vmatpush.bf16.msra.mxu0 %v8433_v6  ;;  %v8530_v6 = vld [vmem:[#allocation9 + $0x130] sm:$0xf0]  ;;  %v2158_v17 = vadd.f32 %v2157_v8, %v2156_v62  ;;  %v10888_v19 = vmul.f32 0.125, %v2130_v52  ;;  %v8437_v62 = vor.u32 %v10072_v59, %v8434_v60  ;;  %v8938_v37 = vld [vmem:[#allocation9 + $0x468] sm:$0xf0] }
 0x1b2   :  { %v8533_v20 = vor.u32 %v10096_v5, %v8530_v6  ;;  %v8786_v45 = vld [vmem:[#allocation9 + $0x330] sm:$0xf0]  ;;  %v8632_v6 = vld [vmem:[#allocation9 + $0x1d8] sm:$0xf]  ;;  %v8941_v59 = vor.u32 %v10199_v30, %v8938_v37  ;;  %v10191_v60 = vld [vmem:[#allocation9 + $0x40c] sm:$0xf] }
 0x1b3   :  { %3897 = vmatpush.bf16.msrb.mxu3 %v9221_v3  ;;  %4028 = vmatpush.bf16.msra.mxu1 %v8689_v40  ;;  %v2170_v22 = vmul.f32 %v10888_v19, %v10888_v19  ;;  %v10223_v3 = vld [vmem:[#allocation9 + $0x50c] sm:$0xf]  ;;  %v8789_v5 = vor.u32 %v10160_v18, %v8786_v45  ;;  %v10152_v52 = vld [vmem:[#allocation9 + $0x2d4] sm:$0xf]  ;;  %v8633_v2 = vor.u32 %v10125_v1, %v8632_v6  ;;  %v10093_v18 = vld [vmem:[#allocation9 + $0xf4] sm:$0xf0] }
 0x1b4   :  { %3937 = vmatpush.bf16.msra.mxu2 %v8937_v13  ;;  %v9034_v40 = vld [vmem:[#allocation9 + $0x528] sm:$0xf0]  ;;  %v8754_v8 = vld [vmem:[#allocation9 + $0x2f0] sm:$0xf0]  ;;  %v2182_v45 = vsub.f32 %v10880_v15, %v10888_v19  ;;  %v9104_v14 = vld [vmem:[#allocation9 + $0x590] sm:$0xf] }
 0x1b5   :  { %4016 = vmatpush.bf16.msra.mxu0 %v8401_v41  ;;  %v10195_v41 = vld [vmem:[#allocation9 + $0x424] sm:$0xf0]  ;;  %v10892_v28 = vpop.f32.mrf.mxu0  ;;  %v9037_v58 = vor.u32 %v10223_v3, %v9034_v40  ;;  %v10136_v35 = vld [vmem:[#allocation9 + $0x254] sm:$0xf]  ;;  %v9136_v3 = vld [vmem:[#allocation9 + $0x5d0] sm:$0xf] }
 0x1b6   :  { %v8905_v31 = vor.u32 %v10195_v41, %v8904_v10  ;;  %v10117_v41 = vld [vmem:[#allocation9 + $0x1b4] sm:$0xf0]  ;;  %v8690_v38 = vld [vmem:[#allocation9 + $0x270] sm:$0xf0]  ;;  %v10252_v40 = vld [vmem:[#allocation9 + $0x5ec] sm:$0xf0] }
 0x1b7   :  { %3898 = vmatpush.bf16.msrb.mxu3 %v9189_v7  ;;  %4029 = vmatpush.bf16.msra.mxu1 %v8657_v11  ;;  %v10144_v7 = vld [vmem:[#allocation9 + $0x294] sm:$0xf]  ;;  %v9137_v19 = vor.u32 %v10252_v40, %v9136_v3  ;;  %v8792_v30 = vld [vmem:[#allocation9 + $0x318] sm:$0xf]  ;;  %v8602_v3 = vld [vmem:[#allocation9 + $0x1b8] sm:$0xf0] }
 0x1b8   :  { %4017 = vmatmul.bf16.vlgmr.msra.gmra.mxu0 %v10808_v4  ;;  %3938 = vmatpush.bf16.msra.mxu2 %v8905_v31  ;;  %v8722_v11 = vld [vmem:[#allocation9 + $0x2b0] sm:$0xf0]  ;;  %v10109_v31 = vld [vmem:[#allocation9 + $0x174] sm:$0xf0]  ;;  %v9256_v40 = vld [vmem:[#allocation9 + $0x6c8] sm:$0xf] }
 0x1b9   :  { %4061 = vmatpush.bf16.msrb.mxu0 %v8629_v25  ;;  %v2166_v25 = vmul.f32 0.125, %v2158_v17  ;;  %v8757_v17 = vor.u32 %v10152_v52, %v8754_v8  ;;  %v8569_v49 = vor.u32 %v10109_v31, %v8568_v27  ;;  %v10128_v55 = vld [vmem:[#allocation9 + $0x214] sm:$0xf]  ;;  %v9384_v8 = vld [vmem:[#allocation9 + $0x7c8] sm:$0xf] }
 0x1ba   :  { %4030 = vmatmul.bf16.vlgmr.msra.gmra.mxu1 %v10837_v36  ;;  %v9072_v27 = vld [vmem:[#allocation9 + $0x550] sm:$0xf]  ;;  %v10165_v37 = vld [vmem:[#allocation9 + $0x334] sm:$0xf0] }
 0x1bb   :  { %v2174_v44 = vsub.f32 %v2166_v25, %v2170_v22  ;;  %4074 = vmatpush.bf16.msrb.mxu1 %v8885_v16  ;;  %3899 = vmatpush.bf16.msrb.mxu3 %v9157_v43  ;;  %v10207_v25 = vld [vmem:[#allocation9 + $0x48c] sm:$0xf]  ;;  %v8725_v16 = vor.u32 %v10144_v7, %v8722_v11  ;;  %v8693_v43 = vor.u32 %v10136_v35, %v8690_v38  ;;  %v10307_v7 = vld [vmem:[#allocation9 + $0x7a4] sm:$0xf0]  ;;  %v10236_v31 = vld [vmem:[#allocation9 + $0x56c] sm:$0xf0] }
 0x1bc   :  { %3983 = vmatpush.bf16.msrb.mxu2 %v9133_v9  ;;  %v8970_v22 = vld [vmem:[#allocation9 + $0x4a8] sm:$0xf0]  ;;  %v9320_v38 = vld [vmem:[#allocation9 + $0x748] sm:$0xf] }
 0x1bd   :  { %4062 = vmatpush.bf16.msrb.mxu0 %v8597_v50  ;;  %v2178_v50 = vmax.f32 %v2174_v44, 0.0  ;;  %3939 = vmatmul.bf16.vlgmr.msra.gmra.mxu2 %v10876_v48  ;;  %v3812_v39 = vpop.f32.mrf.mxu0  ;;  %v10489_v44 = vld [vmem:[%s13136_s8] sm:$0xf]  ;;  %v8973_v9 = vor.u32 %v10207_v25, %v8970_v22  ;;  %v8824_v25 = vld [vmem:[#allocation9 + $0x358] sm:$0xf] }
 0x1be   :  { %v8504_v39 = vld [vmem:[#allocation9 + $0xd8] sm:$0xf] }
 0x1bf   :  { %v10894_v26 = vadd.f32 1e-05, %v2178_v50  ;;  %4075 = vmatpush.bf16.msrb.mxu1 %v8853_v53  ;;  %v8536_v50 = vld [vmem:[#allocation9 + $0x118] sm:$0xf]  ;;  %v8505_v15 = vor.u32 %v10093_v18, %v8504_v39 }
 0x1c0   :  { %3984 = vmatpush.bf16.msrb.mxu2 %v9101_v57  ;;  %v10101_v53 = vld [vmem:[#allocation9 + $0x134] sm:$0xf0] }
 0x1c1   :  { %4063 = vmatpush.bf16.msrb.mxu0 %v8565_v63  ;;  %10425 = vrsqrt.f32 %v10894_v26  ;;  %v9069_v63 = vor.u32 %v10231_v47, %v9066_v51  ;;  %vm2223_vm14 = vweird.f32 %v10894_v26  ;;  %v8888_v47 = vld [vmem:[#allocation9 + $0x3d8] sm:$0xf] }
 0x1c2   :  { %v10189_v51 = vld [vmem:[#allocation9 + $0x3f4] sm:$0xf0] }
 0x1c3   :  { %4076 = vmatpush.bf16.msrb.mxu1 %v8821_v61  ;;  %v8906_v61 = vld [vmem:[#allocation9 + $0x428] sm:$0xf0]  ;;  %v10173_v22 = vld [vmem:[#allocation9 + $0x374] sm:$0xf0] }
 0x1c4   :  { %3985 = vmatpush.bf16.msrb.mxu2 %v9069_v63  ;;  %v10490_v63 = vld [vmem:[%s13137_s9] sm:$0xf]  ;;  %v8909_v52 = vor.u32 %v10191_v60, %v8906_v61  ;;  %v9288_v60 = vld [vmem:[#allocation9 + $0x708] sm:$0xf]  ;;  %v8760_v39 = vld [vmem:[#allocation9 + $0x2d8] sm:$0xf] }
 0x1c5   :  { %4064 = vmatpush.bf16.msrb.mxu0 %v8533_v20  ;;  %v8600_v20 = vld [vmem:[#allocation9 + $0x198] sm:$0xf]  ;;  %v2252_v56 = vperm.slane %v10490_v63, 3  ;;  %v10220_v63 = vld [vmem:[#allocation9 + $0x4ec] sm:$0xf0] }
 0x1c6   :  { %v8601_v34 = vor.u32 %v10117_v41, %v8600_v20  ;;  %v10157_v18 = vld [vmem:[#allocation9 + $0x2f4] sm:$0xf0] }
 0x1c7   :  { %v10426_v10 = vpop.eup %10425  ;;  %4077 = vmatpush.bf16.msrb.mxu1 %v8789_v5  ;;  %v8889_v5 = vor.u32 %v10189_v51, %v8888_v47  ;;  %v10291_v47 = vld [vmem:[#allocation9 + $0x724] sm:$0xf0]  ;;  %v8793_v51 = vor.u32 %v10165_v37, %v8792_v30  ;;  %v8890_v30 = vld [vmem:[#allocation9 + $0x3f8] sm:$0xf0] }
 0x1c8   :  { %v2218_v13 = vmul.f32 %v10426_v10, %v10894_v26  ;;  %3986 = vmatpush.bf16.msrb.mxu2 %v9037_v58  ;;  %vm2224_vm13 = vweird.f32 %v10426_v10  ;;  %v8537_v26 = vor.u32 %v10101_v53, %v8536_v50  ;;  %v8856_v58 = vld [vmem:[#allocation9 + $0x398] sm:$0xf]  ;;  %v9040_v50 = vld [vmem:[#allocation9 + $0x510] sm:$0xf] }
 0x1c9   :  { %4065 = vmatpush.bf16.msrb.mxu0 %v8501_v46  ;;  %v2231_v46 = vperm.slane %v10489_v44, 3  ;;  %vm2225_vm15 = vmor %vm2223_vm14, %vm2224_vm13  ;;  %v10299_v44 = vld [vmem:[#allocation9 + $0x764] sm:$0xf0]  ;;  %v10228_v53 = vld [vmem:[#allocation9 + $0x52c] sm:$0xf0] }
 0x1ca   :  { %v2219_v21 = vmul.f32 %v10426_v10, %v2218_v13  ;;  %v10181_v13 = vld [vmem:[#allocation9 + $0x3b4] sm:$0xf0]  ;;  %v9041_v61 = vor.u32 %v10228_v53, %v9040_v50  ;;  %v8506_v50 = vld [vmem:[#allocation9 + $0xf8] sm:$0xf0]  ;;  %v10248_v53 = vld [vmem:[#allocation9 + $0x5d4] sm:$0xf] }
 0x1cb   :  { %4078 = vmatpush.bf16.msrb.mxu1 %v8757_v17  ;;  %v10244_v17 = vld [vmem:[#allocation9 + $0x5ac] sm:$0xf0]  ;;  %v8857_v11 = vor.u32 %v10181_v13, %v8856_v58  ;;  %v10105_v13 = vld [vmem:[#allocation9 + $0x15c] sm:$0xf] }
 0x1cc   :  { %v2220_v24 = vmul.f32 0.5, %v2219_v21  ;;  %3987 = vmatpush.bf16.msrb.mxu2 %v9005_v23  ;;  %v9352_v21 = vld [vmem:[#allocation9 + $0x788] sm:$0xf] }
 0x1cd   :  { %4066 = vmatpush.bf16.msrb.mxu0 %v8469_v33  ;;  %v8658_v33 = vld [vmem:[#allocation9 + $0x230] sm:$0xf0] }
 0x1ce   :  { %v2221_v32 = vsub.f32 1.5, %v2220_v24  ;;  %v8661_v0 = vor.u32 %v10128_v55, %v8658_v33  ;;  %v9105_v24 = vor.u32 %v10244_v17, %v9104_v14  ;;  %v10121_v33 = vld [vmem:[#allocation9 + $0x1dc] sm:$0xf]  ;;  %v10275_v14 = vld [vmem:[#allocation9 + $0x6a4] sm:$0xf0] }
 0x1cf   :  { %4079 = vmatpush.bf16.msrb.mxu1 %v8725_v16  ;;  %v10077_v16 = vld [vmem:[#allocation9 + $0x74] sm:$0xf0] }
 0x1d0   :  { %v2222_v29 = vmul.f32 %v10426_v10, %v2221_v32  ;;  %3988 = vmatpush.bf16.msrb.mxu2 %v8973_v9  ;;  %v9353_v32 = vor.u32 %v10307_v7, %v9352_v21  ;;  %v8696_v21 = vld [vmem:[#allocation9 + $0x258] sm:$0xf] }
 0x1d1   :  { %4067 = vmatpush.bf16.msrb.mxu0 %v8437_v62  ;;  %v10141_v7 = vld [vmem:[#allocation9 + $0x274] sm:$0xf0] }
 0x1d2   :  { %v2226_v54 = vsel %vm2225_vm15, %v10426_v10, %v2222_v29  ;;  %v10315_v10 = vld [vmem:[#allocation9 + $0x7e4] sm:$0xf0]  ;;  %v9073_v29 = vor.u32 %v10236_v31, %v9072_v27  ;;  %v8697_v31 = vor.u32 %v10141_v7, %v8696_v21  ;;  %v9322_v21 = vld [vmem:[#allocation9 + $0x768] sm:$0xf0] }
 0x1d3   :  { %v2239_v57 = vmul.f32 %v2231_v46, %v2226_v54  ;;  %4080 = vmatpush.bf16.msrb.mxu1 %v8693_v43  ;;  %v9385_v20 = vor.u32 %v10315_v10, %v9384_v8  ;;  %v8825_v46 = vor.u32 %v10173_v22, %v8824_v25  ;;  %v10069_v43 = vld [vmem:[#allocation9 + $0x34] sm:$0xf0]  ;;  %v9321_v54 = vor.u32 %v10299_v44, %v9320_v38  ;;  %v10097_v25 = vld [vmem:[#allocation9 + $0x11c] sm:$0xf]  ;;  %v10267_v27 = vld [vmem:[#allocation9 + $0x664] sm:$0xf0] }
 0x1d4   :  { %3989 = vmatpush.bf16.msrb.mxu2 %v8941_v59  ;;  %v10149_v8 = vld [vmem:[#allocation9 + $0x2b4] sm:$0xf0]  ;;  %v8538_v22 = vld [vmem:[#allocation9 + $0x138] sm:$0xf0]  ;;  %v10196_v38 = vld [vmem:[#allocation9 + $0x42c] sm:$0xf0] }
 0x1d5   :  { %4068 = vmatpush.bf16.msrb.mxu0 %v8405_v12  ;;  %v2243_v62 = vperm.slane %v2239_v57, 0  ;;  %v10910_v1 = vpop.f32.mrf.mxu0  ;;  %v8472_v12 = vld [vmem:[#allocation9 + $0x98] sm:$0xf]  ;;  %v3823_v55 = vpop.f32.mrf.mxu1  ;;  %v8634_v57 = vld [vmem:[#allocation9 + $0x1f8] sm:$0xf0] }
 0x1d6   :  { %v8473_v23 = vor.u32 %v10085_v42, %v8472_v12  ;;  %v10918_v59 = vadd.f32 %v3823_v55, %v10892_v28  ;;  %v10283_v28 = vld [vmem:[#allocation9 + $0x6e4] sm:$0xf0]  ;;  %v8664_v44 = vld [vmem:[#allocation9 + $0x218] sm:$0xf] }
 0x1d7   :  { %v2247_v6 = vmul.f32 %v2243_v62, %v2182_v45  ;;  %4081 = vmatpush.bf16.msrb.mxu1 %v8661_v0  ;;  %v8637_v45 = vor.u32 %v10121_v33, %v8634_v57  ;;  %v9008_v62 = vld [vmem:[#allocation9 + $0x4d0] sm:$0xf]  ;;  %v10113_v0 = vld [vmem:[#allocation9 + $0x19c] sm:$0xf]  ;;  %v9257_v12 = vor.u32 %v10283_v28, %v9256_v40  ;;  %v9224_v42 = vld [vmem:[#allocation9 + $0x688] sm:$0xf] }
 0x1d8   :  { %4069 = vmatmul.bf16.vlgmr.msrb.gmra.mxu0 %v10808_v4  ;;  %3990 = vmatpush.bf16.msrb.mxu2 %v8909_v52  ;;  %v8728_v52 = vld [vmem:[#allocation9 + $0x298] sm:$0xf]  ;;  %v8605_v10 = vor.u32 %v10113_v0, %v8602_v3  ;;  %v9160_v33 = vld [vmem:[#allocation9 + $0x608] sm:$0xf]  ;;  %v10081_v0 = vld [vmem:[#allocation9 + $0x9c] sm:$0xf] }
 0x1d9   :  { %4113 = vmatpush.bf16.msra.mxu0 %v8633_v2  ;;  %v2260_v2 = vadd.f32 %v2252_v56, %v2247_v6  ;;  %v9289_v56 = vor.u32 %v10291_v47, %v9288_v60  ;;  %v9009_v6 = vor.u32 %v10220_v63, %v9008_v62  ;;  %v8729_v17 = vor.u32 %v10149_v8, %v8728_v52  ;;  %v10259_v57 = vld [vmem:[#allocation9 + $0x624] sm:$0xf0]  ;;  %v10177_v62 = vld [vmem:[#allocation9 + $0x39c] sm:$0xf]  ;;  %v10240_v40 = vld [vmem:[#allocation9 + $0x594] sm:$0xf] }
 0x1da   :  { %4082 = vmatmul.bf16.vlgmr.msrb.gmra.mxu1 %v10837_v36  ;;  %v8858_v63 = vld [vmem:[#allocation9 + $0x3b8] sm:$0xf0]  ;;  %v9106_v28 = vld [vmem:[#allocation9 + $0x5b0] sm:$0xf0] }
 0x1db   :  { %4126 = vmatpush.bf16.msra.mxu1 %v8889_v5  ;;  %v10912_v41 = vpack.c.bf16 %v2260_v2, %v2260_v2  ;;  %3991 = vmatmul.bf16.vlgmr.msrb.gmra.mxu2 %v10876_v48  ;;  %v8761_v5 = vor.u32 %v10157_v18, %v8760_v39  ;;  %v8570_v2 = vld [vmem:[#allocation9 + $0x178] sm:$0xf0]  ;;  %v8861_v52 = vor.u32 %v10177_v62, %v8858_v63 }
 0x1dc   :  { %4035 = vmatpush.bf16.msra.mxu2 %v9137_v19  ;;  %v10212_v19 = vld [vmem:[#allocation9 + $0x4ac] sm:$0xf0]  ;;  %v10137_v62 = vld [vmem:[#allocation9 + $0x25c] sm:$0xf] }
 0x1dd   :  { %4114 = vmatpush.bf16.msra.mxu0 %v8601_v34  ;;  %v8440_v34 = vld [vmem:[#allocation9 + $0x58] sm:$0xf]  ;;  %3848 = vmatmul.bf16.vlgmr.msra.gmra.mxu3 %v10912_v41  ;;  %v3864_v35 = vpop.f32.mrf.mxu0  ;;  %v3825_v58 = vpop.f32.mrf.mxu1  ;;  %v8698_v63 = vld [vmem:[#allocation9 + $0x278] sm:$0xf0] }
 0x1de   :  { %3944 = vmatpush.bf16.msra.mxu3 %v9385_v20  ;;  %v8441_v9 = vor.u32 %v10077_v16, %v8440_v34  ;;  %v9225_v34 = vor.u32 %v10275_v14, %v9224_v42  ;;  %v9192_v16 = vld [vmem:[#allocation9 + $0x648] sm:$0xf]  ;;  %v10073_v58 = vld [vmem:[#allocation9 + $0x5c] sm:$0xf]  ;;  %v10232_v42 = vld [vmem:[#allocation9 + $0x554] sm:$0xf] }
 0x1df   :  { %4127 = vmatpush.bf16.msra.mxu1 %v8857_v11  ;;  %v8573_v11 = vor.u32 %v10105_v13, %v8570_v2  ;;  %v9193_v37 = vor.u32 %v10267_v27, %v9192_v16  ;;  %v8442_v13 = vld [vmem:[#allocation9 + $0x78] sm:$0xf0]  ;;  %v9074_v14 = vld [vmem:[#allocation9 + $0x570] sm:$0xf0] }
 0x1e0   :  { %4036 = vmatpush.bf16.msra.mxu2 %v9105_v24  ;;  %v10204_v24 = vld [vmem:[#allocation9 + $0x46c] sm:$0xf0]  ;;  %v10224_v27 = vld [vmem:[#allocation9 + $0x514] sm:$0xf] }
 0x1e1   :  { %4115 = vmatpush.bf16.msra.mxu0 %v8569_v49  ;;  %v8408_v49 = vld [vmem:[#allocation9 + $0x18] sm:$0xf] }
 0x1e2   :  { %3945 = vmatpush.bf16.msra.mxu3 %v9353_v32  ;;  %v8912_v32 = vld [vmem:[#allocation9 + $0x410] sm:$0xf] }
 0x1e3   :  { %4128 = vmatpush.bf16.msra.mxu1 %v8825_v46  ;;  %v10133_v46 = vld [vmem:[#allocation9 + $0x234] sm:$0xf0] }
 0x1e4   :  { %4037 = vmatpush.bf16.msra.mxu2 %v9073_v29  ;;  %v10089_v29 = vld [vmem:[#allocation9 + $0xdc] sm:$0xf]  ;;  %v8665_v60 = vor.u32 %v10133_v46, %v8664_v44 }
 0x1e5   :  { %4116 = vmatpush.bf16.msra.mxu0 %v8537_v26  ;;  %v8409_v26 = vor.u32 %v10069_v43, %v8408_v49  ;;  %v10185_v49 = vld [vmem:[#allocation9 + $0x3dc] sm:$0xf]  ;;  %v3875_v43 = vpop.f32.mrf.mxu1  ;;  %v8509_v18 = vor.u32 %v10089_v29, %v8506_v50  ;;  %v9010_v50 = vld [vmem:[#allocation9 + $0x4f0] sm:$0xf0] }
 0x1e6   :  { %3946 = vmatpush.bf16.msra.mxu3 %v9321_v54  ;;  %v9138_v54 = vld [vmem:[#allocation9 + $0x5f0] sm:$0xf0]  ;;  %v10923_v55 = vadd.f32 %v3875_v43, %v10910_v1  ;;  %v8893_v39 = vor.u32 %v10185_v49, %v8890_v30  ;;  %v8474_v1 = vld [vmem:[#allocation9 + $0xb8] sm:$0xf0] }
 0x1e7   :  { %4129 = vmatpush.bf16.msra.mxu1 %v8793_v51  ;;  %v8913_v51 = vor.u32 %v10196_v38, %v8912_v32  ;;  %v8477_v8 = vor.u32 %v10081_v0, %v8474_v1  ;;  %v10287_v32 = vld [vmem:[#allocation9 + $0x70c] sm:$0xf]  ;;  %v10153_v46 = vld [vmem:[#allocation9 + $0x2dc] sm:$0xf]  ;;  %v10216_v43 = vld [vmem:[#allocation9 + $0x4d4] sm:$0xf] }
 0x1e8   :  { %4038 = vmatpush.bf16.msra.mxu2 %v9041_v61  ;;  %v9386_v61 = vld [vmem:[#allocation9 + $0x7e8] sm:$0xf0] }
 0x1e9   :  { %4117 = vmatpush.bf16.msra.mxu0 %v8505_v15  ;;  %v8976_v15 = vld [vmem:[#allocation9 + $0x490] sm:$0xf] }
 0x1ea   :  { %3947 = vmatpush.bf16.msra.mxu3 %v9289_v56  ;;  %v8977_v20 = vor.u32 %v10212_v19, %v8976_v15  ;;  %v9161_v56 = vor.u32 %v10259_v57, %v9160_v33  ;;  %v8826_v15 = vld [vmem:[#allocation9 + $0x378] sm:$0xf0] }
 0x1eb   :  { %4130 = vmatpush.bf16.msra.mxu1 %v8761_v5  ;;  %v10303_v5 = vld [vmem:[#allocation9 + $0x78c] sm:$0xf]  ;;  %v10145_v57 = vld [vmem:[#allocation9 + $0x29c] sm:$0xf] }
 0x1ec   :  { %4039 = vmatpush.bf16.msra.mxu2 %v9009_v6  ;;  %v9354_v6 = vld [vmem:[#allocation9 + $0x7a8] sm:$0xf0] }
 0x1ed   :  { %4118 = vmatpush.bf16.msra.mxu0 %v8473_v23  ;;  %3900 = vmatmul.bf16.vlgmr.msrb.gmra.mxu3 %v10912_v41  ;;  %v8944_v23 = vld [vmem:[#allocation9 + $0x450] sm:$0xf]  ;;  %v3877_v19 = vpop.f32.mrf.mxu1  ;;  %v9357_v2 = vor.u32 %v10303_v5, %v9354_v6  ;;  %v9194_v5 = vld [vmem:[#allocation9 + $0x668] sm:$0xf0]  ;;  %v8701_v6 = vor.u32 %v10137_v62, %v8698_v63 }
 0x1ee   :  { %3948 = vmatpush.bf16.msra.mxu3 %v9257_v12  ;;  %v8945_v35 = vor.u32 %v10204_v24, %v8944_v23  ;;  %v9109_v12 = vor.u32 %v10240_v40, %v9106_v28  ;;  %v10161_v23 = vld [vmem:[#allocation9 + $0x31c] sm:$0xf]  ;;  %v8946_v40 = vld [vmem:[#allocation9 + $0x470] sm:$0xf0]  ;;  %v10263_v28 = vld [vmem:[#allocation9 + $0x64c] sm:$0xf] }
 0x1ef   :  { %4131 = vmatpush.bf16.msra.mxu1 %v8729_v17  ;;  %v8794_v24 = vld [vmem:[#allocation9 + $0x338] sm:$0xf0]  ;;  %v10192_v19 = vld [vmem:[#allocation9 + $0x414] sm:$0xf]  ;;  %v9232_v62 = vld [vmem:[#allocation9 + $0x690] sm:$0xf] }
 0x1f0   :  { %4040 = vmatpush.bf16.msra.mxu2 %v8977_v20  ;;  %v10295_v20 = vld [vmem:[#allocation9 + $0x74c] sm:$0xf]  ;;  %v8797_v38 = vor.u32 %v10161_v23, %v8794_v24  ;;  %v9112_v24 = vld [vmem:[#allocation9 + $0x598] sm:$0xf]  ;;  %v10276_v63 = vld [vmem:[#allocation9 + $0x6ac] sm:$0xf0] }
 0x1f1   :  { %4119 = vmatpush.bf16.msra.mxu0 %v8441_v9  ;;  %v8541_v9 = vor.u32 %v10097_v25, %v8538_v22  ;;  %v10065_v25 = vld [vmem:[#allocation9 + $0x1c] sm:$0xf]  ;;  %v9325_v16 = vor.u32 %v10295_v20, %v9322_v21  ;;  %v10316_v20 = vld [vmem:[#allocation9 + $0x7ec] sm:$0xf0] }
 0x1f2   :  { %3949 = vmatpush.bf16.msra.mxu3 %v9225_v34  ;;  %v9077_v34 = vor.u32 %v10232_v42, %v9074_v14  ;;  %v8410_v22 = vld [vmem:[#allocation9 + $0x38] sm:$0xf0]  ;;  %v10253_v42 = vld [vmem:[#allocation9 + $0x5f4] sm:$0xf0] }
 0x1f3   :  { %4132 = vmatpush.bf16.msra.mxu1 %v8697_v31  ;;  %v9042_v31 = vld [vmem:[#allocation9 + $0x530] sm:$0xf0]  ;;  %v8413_v44 = vor.u32 %v10065_v25, %v8410_v22  ;;  %v9360_v25 = vld [vmem:[#allocation9 + $0x790] sm:$0xf] }
 0x1f4   :  { %4041 = vmatpush.bf16.msra.mxu2 %v8945_v35  ;;  %v9290_v35 = vld [vmem:[#allocation9 + $0x728] sm:$0xf0]  ;;  %v9045_v49 = vor.u32 %v10224_v27, %v9042_v31  ;;  %v10308_v22 = vld [vmem:[#allocation9 + $0x7ac] sm:$0xf0]  ;;  %v9080_v31 = vld [vmem:[#allocation9 + $0x558] sm:$0xf] }
 0x1f5   :  { %4120 = vmatpush.bf16.msra.mxu0 %v8409_v26  ;;  %v10925_v47 = vpop.f32.mrf.mxu0  ;;  %v10311_v26 = vld [vmem:[#allocation9 + $0x7cc] sm:$0xf]  ;;  %v3927_v29 = vpop.f32.mrf.mxu1  ;;  %v9361_v27 = vor.u32 %v10308_v22, %v9360_v25 }
 0x1f6   :  { %3950 = vmatpush.bf16.msra.mxu3 %v9193_v37  ;;  %v9389_v3 = vor.u32 %v10311_v26, %v9386_v61  ;;  %v10931_v30 = vadd.f32 %v3927_v29, %v10925_v47  ;;  %v9293_v37 = vor.u32 %v10287_v32, %v9290_v35  ;;  %v10208_v61 = vld [vmem:[#allocation9 + $0x494] sm:$0xf]  ;;  %v10271_v47 = vld [vmem:[#allocation9 + $0x68c] sm:$0xf]  ;;  %v10237_v32 = vld [vmem:[#allocation9 + $0x574] sm:$0xf0] }
 0x1f7   :  { %4133 = vmatpush.bf16.msra.mxu1 %v8665_v60  ;;  %v8730_v60 = vld [vmem:[#allocation9 + $0x2b8] sm:$0xf0]  ;;  %v9048_v29 = vld [vmem:[#allocation9 + $0x518] sm:$0xf] }
 0x1f8   :  { %4121 = vmatmul.bf16.vlgmr.msra.gmra.mxu0 %v10808_v4  ;;  %4042 = vmatpush.bf16.msra.mxu2 %v8913_v51  ;;  %v9013_v51 = vor.u32 %v10216_v43, %v9010_v50  ;;  %v10292_v43 = vld [vmem:[#allocation9 + $0x72c] sm:$0xf0] }
 0x1f9   :  { %4165 = vmatpush.bf16.msrb.mxu0 %v8637_v45  ;;  %v9141_v45 = vor.u32 %v10248_v53, %v9138_v54  ;;  %v10279_v53 = vld [vmem:[#allocation9 + $0x6cc] sm:$0xf] }
 0x1fa   :  { %3951 = vmatpush.bf16.msra.mxu3 %v9161_v56  ;;  %4134 = vmatmul.bf16.vlgmr.msra.gmra.mxu1 %v10837_v36  ;;  %v9258_v54 = vld [vmem:[#allocation9 + $0x6e8] sm:$0xf0] }
 0x1fb   :  { %4178 = vmatpush.bf16.msrb.mxu1 %v8893_v39  ;;  %4043 = vmatmul.bf16.vlgmr.msra.gmra.mxu2 %v10876_v48  ;;  %v9261_v26 = vor.u32 %v10279_v53, %v9258_v54  ;;  %v8978_v39 = vld [vmem:[#allocation9 + $0x4b0] sm:$0xf0]  ;;  %v9016_v54 = vld [vmem:[#allocation9 + $0x4d8] sm:$0xf] }
 0x1fc   :  { %4087 = vmatpush.bf16.msrb.mxu2 %v9141_v45  ;;  %v8733_v45 = vor.u32 %v10145_v57, %v8730_v60  ;;  %v8981_v0 = vor.u32 %v10208_v61, %v8978_v39  ;;  %v9264_v60 = vld [vmem:[#allocation9 + $0x6d0] sm:$0xf] }
 0x1fd   :  { %4166 = vmatpush.bf16.msrb.mxu0 %v8605_v10  ;;  %v10169_v10 = vld [vmem:[#allocation9 + $0x35c] sm:$0xf]  ;;  %v3916_v17 = vpop.f32.mrf.mxu0  ;;  %3952 = vmatmul.bf16.vlgmr.msra.gmra.mxu3 %v10912_v41  ;;  %v3929_v56 = vpop.f32.mrf.mxu1 }
 0x1fe   :  { %3996 = vmatpush.bf16.msrb.mxu3 %v9389_v3  ;;  %v8829_v7 = vor.u32 %v10169_v10, %v8826_v15  ;;  %v10200_v3 = vld [vmem:[#allocation9 + $0x454] sm:$0xf]  ;;  %v9197_v10 = vor.u32 %v10263_v28, %v9194_v5  ;;  %v10255_v15 = vld [vmem:[#allocation9 + $0x60c] sm:$0xf]  ;;  %v9392_v17 = vld [vmem:[#allocation9 + $0x7d0] sm:$0xf] }
 0x1ff   :  { %4179 = vmatpush.bf16.msrb.mxu1 %v8861_v52  ;;  %v10129_v52 = vld [vmem:[#allocation9 + $0x21c] sm:$0xf]  ;;  %v9393_v23 = vor.u32 %v10316_v20, %v9392_v17  ;;  %v9200_v28 = vld [vmem:[#allocation9 + $0x650] sm:$0xf] }
 0x200   :  { %4088 = vmatpush.bf16.msrb.mxu2 %v9109_v12  ;;  %v8914_v12 = vld [vmem:[#allocation9 + $0x430] sm:$0xf0]  ;;  %v10268_v5 = vld [vmem:[#allocation9 + $0x66c] sm:$0xf0] }
 0x201   :  { %4167 = vmatpush.bf16.msrb.mxu0 %v8573_v11  ;;  %v8445_v11 = vor.u32 %v10073_v58, %v8442_v13  ;;  %v9162_v58 = vld [vmem:[#allocation9 + $0x628] sm:$0xf0]  ;;  %v8917_v21 = vor.u32 %v10192_v19, %v8914_v12  ;;  %v10249_v19 = vld [vmem:[#allocation9 + $0x5dc] sm:$0xf] }
 0x202   :  { %3997 = vmatpush.bf16.msrb.mxu3 %v9357_v2  ;;  %v9144_v2 = vld [vmem:[#allocation9 + $0x5d8] sm:$0xf]  ;;  %v9146_v12 = vld [vmem:[#allocation9 + $0x5f8] sm:$0xf0] }
 0x203   :  { %4180 = vmatpush.bf16.msrb.mxu1 %v8829_v7  ;;  %v9165_v7 = vor.u32 %v10255_v15, %v9162_v58  ;;  %v10260_v15 = vld [vmem:[#allocation9 + $0x62c] sm:$0xf0]  ;;  %v9149_v17 = vor.u32 %v10249_v19, %v9146_v12  ;;  %v9400_v19 = vld [vmem:[#allocation9 + $0x7d8] sm:$0xf] }
 0x204   :  { %4089 = vmatpush.bf16.msrb.mxu2 %v9077_v34  ;;  %v10245_v34 = vld [vmem:[#allocation9 + $0x5b4] sm:$0xf0] }
 0x205   :  { %4168 = vmatpush.bf16.msrb.mxu0 %v8541_v9  ;;  %v8762_v9 = vld [vmem:[#allocation9 + $0x2f8] sm:$0xf0]  ;;  %v10317_v12 = vld [vmem:[#allocation9 + $0x7f4] sm:$0xf0] }
 0x206   :  { %3998 = vmatpush.bf16.msrb.mxu3 %v9325_v16  ;;  %v8765_v33 = vor.u32 %v10153_v46, %v8762_v9  ;;  %v9113_v16 = vor.u32 %v10245_v34, %v9112_v24  ;;  %v9081_v46 = vor.u32 %v10237_v32, %v9080_v31  ;;  %v10296_v32 = vld [vmem:[#allocation9 + $0x754] sm:$0xf] }
 0x207   :  { %4181 = vmatpush.bf16.msrb.mxu1 %v8797_v38  ;;  %v9328_v38 = vld [vmem:[#allocation9 + $0x750] sm:$0xf] }
 0x208   :  { %4090 = vmatpush.bf16.msrb.mxu2 %v9045_v49  ;;  %v10229_v49 = vld [vmem:[#allocation9 + $0x534] sm:$0xf0] }
 0x209   :  { %4169 = vmatpush.bf16.msrb.mxu0 %v8509_v18  ;;  %v9226_v18 = vld [vmem:[#allocation9 + $0x6a8] sm:$0xf0] }
 0x20a   :  { %3999 = vmatpush.bf16.msrb.mxu3 %v9293_v37  ;;  %v9229_v1 = vor.u32 %v10271_v47, %v9226_v18  ;;  %v9296_v37 = vld [vmem:[#allocation9 + $0x710] sm:$0xf]  ;;  %v8984_v47 = vld [vmem:[#allocation9 + $0x498] sm:$0xf] }
 0x20b   :  { %4182 = vmatpush.bf16.msrb.mxu1 %v8765_v33  ;;  %v9297_v53 = vor.u32 %v10292_v43, %v9296_v37  ;;  %v10221_v33 = vld [vmem:[#allocation9 + $0x4f4] sm:$0xf0] }
 0x20c   :  { %4091 = vmatpush.bf16.msrb.mxu2 %v9013_v51  ;;  %v10284_v51 = vld [vmem:[#allocation9 + $0x6ec] sm:$0xf0]  ;;  %v10213_v18 = vld [vmem:[#allocation9 + $0x4b4] sm:$0xf0] }
 0x20d   :  { %4170 = vmatpush.bf16.msrb.mxu0 %v8477_v8  ;;  %v8666_v8 = vld [vmem:[#allocation9 + $0x238] sm:$0xf0]  ;;  %v9265_v39 = vor.u32 %v10284_v51, %v9264_v60  ;;  %v8985_v56 = vor.u32 %v10213_v18, %v8984_v47  ;;  %v9266_v60 = vld [vmem:[#allocation9 + $0x6f0] sm:$0xf0] }
 0x20e   :  { %4000 = vmatpush.bf16.msrb.mxu3 %v9261_v26  ;;  %v8669_v13 = vor.u32 %v10129_v52, %v8666_v8  ;;  %v9017_v26 = vor.u32 %v10221_v33, %v9016_v54  ;;  %v9201_v8 = vor.u32 %v10268_v5, %v9200_v28  ;;  %v10280_v33 = vld [vmem:[#allocation9 + $0x6d4] sm:$0xf] }
 0x20f   :  { %4183 = vmatpush.bf16.msrb.mxu1 %v8733_v45  ;;  %v10272_v47 = vld [vmem:[#allocation9 + $0x694] sm:$0xf] }
 0x210   :  { %4092 = vmatpush.bf16.msrb.mxu2 %v8981_v0  ;;  %v9234_v18 = vld [vmem:[#allocation9 + $0x6b0] sm:$0xf0] }
 0x211   :  { %4171 = vmatpush.bf16.msrb.mxu0 %v8445_v11  ;;  %v9145_v11 = vor.u32 %v10253_v42, %v9144_v2  ;;  %v9394_v2 = vld [vmem:[#allocation9 + $0x7f0] sm:$0xf0] }
 0x212   :  { %4001 = vmatpush.bf16.msrb.mxu3 %v9229_v1  ;;  %v9233_v1 = vor.u32 %v10276_v63, %v9232_v62  ;;  %v10264_v28 = vld [vmem:[#allocation9 + $0x654] sm:$0xf] }
 0x213   :  { %4184 = vmatpush.bf16.msrb.mxu1 %v8701_v6  ;;  %v9202_v5 = vld [vmem:[#allocation9 + $0x670] sm:$0xf0] }
 0x215   :  { %4172 = vmatpush.bf16.msrb.mxu0 %v8413_v44  ;;  %v3966_v14 = vpop.f32.mrf.mxu0  ;;  %v10300_v44 = vld [vmem:[#allocation9 + $0x76c] sm:$0xf0] }
 0x216   :  { %4002 = vmatpush.bf16.msrb.mxu3 %v9197_v10  ;;  %v9329_v9 = vor.u32 %v10300_v44, %v9328_v38  ;;  %v8920_v10 = vld [vmem:[#allocation9 + $0x418] sm:$0xf] }
 0x217   :  { %4185 = vmatpush.bf16.msrb.mxu1 %v8669_v13  ;;  %v3979_v50 = vpop.f32.mrf.mxu1  ;;  %v10312_v13 = vld [vmem:[#allocation9 + $0x7d4] sm:$0xf] }
 0x218   :  { %4173 = vmatmul.bf16.vlgmr.msrb.gmra.mxu0 %v10808_v4  ;;  %v8949_v4 = vor.u32 %v10200_v3, %v8946_v40  ;;  %v10937_v57 = vadd.f32 %v3979_v50, %v3966_v14  ;;  %v8952_v3 = vld [vmem:[#allocation9 + $0x458] sm:$0xf]  ;;  %v9397_v20 = vor.u32 %v10312_v13, %v9394_v2  ;;  %v10217_v50 = vld [vmem:[#allocation9 + $0x4dc] sm:$0xf]  ;;  %v9401_v2 = vor.u32 %v10317_v12, %v9400_v19 }
 0x219   :  { %v10205_v40 = vld [vmem:[#allocation9 + $0x474] sm:$0xf0]  ;;  %v9242_v19 = vld [vmem:[#allocation9 + $0x6b8] sm:$0xf0] }
 0x21a   :  { %4093 = vmatpush.bf16.msrb.mxu2 %v8949_v4  ;;  %4003 = vmatpush.bf16.msrb.mxu3 %v9165_v7  ;;  %v8953_v6 = vor.u32 %v10205_v40, %v8952_v3  ;;  %v9168_v4 = vld [vmem:[#allocation9 + $0x610] sm:$0xf]  ;;  %v9114_v7 = vld [vmem:[#allocation9 + $0x5b8] sm:$0xf0] }
 0x21b   :  { %4186 = vmatmul.bf16.vlgmr.msrb.gmra.mxu1 %v10837_v36  ;;  %v9049_v36 = vor.u32 %v10229_v49, %v9048_v29  ;;  %v9169_v14 = vor.u32 %v10260_v15, %v9168_v4  ;;  %v10288_v29 = vld [vmem:[#allocation9 + $0x714] sm:$0xf]  ;;  %v10201_v3 = vld [vmem:[#allocation9 + $0x45c] sm:$0xf] }
 0x21c   :  { %v9298_v49 = vld [vmem:[#allocation9 + $0x730] sm:$0xf0]  ;;  %v8954_v40 = vld [vmem:[#allocation9 + $0x478] sm:$0xf0] }
 0x21d   :  { %v3968_v35 = vpop.f32.mrf.mxu0  ;;  %4004 = vmatmul.bf16.vlgmr.msrb.gmra.mxu3 %v10912_v41  ;;  %v3836_v61 = vpop.f32.mrf.mxu2  ;;  %v8922_v4 = vld [vmem:[#allocation9 + $0x438] sm:$0xf0] }
 0x21e   :  { %4094 = vmatpush.bf16.msrb.mxu2 %v8917_v21  ;;  %4048 = vmatpush.bf16.msra.mxu3 %v9393_v23  ;;  %v10940_v45 = vadd.f32 %v3836_v61, %v10918_v59  ;;  %v10197_v59 = vld [vmem:[#allocation9 + $0x434] sm:$0xf0]  ;;  %v10241_v21 = vld [vmem:[#allocation9 + $0x59c] sm:$0xf]  ;;  %v9362_v23 = vld [vmem:[#allocation9 + $0x7b0] sm:$0xf0] }
 0x21f   :  { %v3981_v0 = vpop.f32.mrf.mxu1  ;;  %v8921_v42 = vor.u32 %v10197_v59, %v8920_v10  ;;  %v9117_v34 = vor.u32 %v10241_v21, %v9114_v7  ;;  %v9330_v35 = vld [vmem:[#allocation9 + $0x770] sm:$0xf0]  ;;  %v10209_v61 = vld [vmem:[#allocation9 + $0x49c] sm:$0xf]  ;;  %v9336_v21 = vld [vmem:[#allocation9 + $0x758] sm:$0xf] }
 0x220   :  { %v9333_v44 = vor.u32 %v10296_v32, %v9330_v35  ;;  %v10256_v10 = vld [vmem:[#allocation9 + $0x614] sm:$0xf]  ;;  %v10301_v7 = vld [vmem:[#allocation9 + $0x774] sm:$0xf0] }
 0x221   :  { %4095 = vmatmul.bf16.vlgmr.msrb.gmra.mxu2 %v10876_v48  ;;  %v9170_v59 = vld [vmem:[#allocation9 + $0x630] sm:$0xf0]  ;;  %v9240_v35 = vld [vmem:[#allocation9 + $0x698] sm:$0xf] }
 0x222   :  { %4139 = vmatpush.bf16.msra.mxu2 %v9145_v11  ;;  %4049 = vmatpush.bf16.msra.mxu3 %v9361_v27  ;;  %v10304_v11 = vld [vmem:[#allocation9 + $0x794] sm:$0xf]  ;;  %v9082_v27 = vld [vmem:[#allocation9 + $0x578] sm:$0xf0]  ;;  %v9173_v13 = vor.u32 %v10256_v10, %v9170_v59 }
 0x223   :  { %v9365_v22 = vor.u32 %v10304_v11, %v9362_v23  ;;  %v9337_v11 = vor.u32 %v10301_v7, %v9336_v21  ;;  %v9304_v23 = vld [vmem:[#allocation9 + $0x718] sm:$0xf]  ;;  %v9274_v10 = vld [vmem:[#allocation9 + $0x6f8] sm:$0xf0] }
 0x225   :  { %v3838_v52 = vpop.f32.mrf.mxu2 }
 0x226   :  { %4140 = vmatpush.bf16.msra.mxu2 %v9113_v16  ;;  %4050 = vmatpush.bf16.msra.mxu3 %v9329_v9  ;;  %v10233_v16 = vld [vmem:[#allocation9 + $0x55c] sm:$0xf]  ;;  %v9205_v52 = vor.u32 %v10264_v28, %v9202_v5 }
 0x227   :  { %v9085_v38 = vor.u32 %v10233_v16, %v9082_v27  ;;  %v9050_v9 = vld [vmem:[#allocation9 + $0x538] sm:$0xf0]  ;;  %v9272_v27 = vld [vmem:[#allocation9 + $0x6d8] sm:$0xf] }
 0x228   :  { %v9306_v28 = vld [vmem:[#allocation9 + $0x738] sm:$0xf0] }
 0x22a   :  { %4141 = vmatpush.bf16.msra.mxu2 %v9081_v46  ;;  %4051 = vmatpush.bf16.msra.mxu3 %v9297_v53  ;;  %v10225_v46 = vld [vmem:[#allocation9 + $0x51c] sm:$0xf] }
 0x22b   :  { %v9053_v37 = vor.u32 %v10225_v46, %v9050_v9  ;;  %v9018_v53 = vld [vmem:[#allocation9 + $0x4f8] sm:$0xf0] }
 0x22c   :  { %v9021_v51 = vor.u32 %v10217_v50, %v9018_v53  ;;  %v10261_v50 = vld [vmem:[#allocation9 + $0x634] sm:$0xf0] }
 0x22d   :  { %v3888_v24 = vpop.f32.mrf.mxu2 }
 0x22e   :  { %4142 = vmatpush.bf16.msra.mxu2 %v9049_v36  ;;  %4052 = vmatpush.bf16.msra.mxu3 %v9265_v39  ;;  %v10943_v25 = vadd.f32 %v3888_v24, %v10923_v55  ;;  %v9301_v36 = vor.u32 %v10288_v29, %v9298_v49  ;;  %v8986_v39 = vld [vmem:[#allocation9 + $0x4b8] sm:$0xf0]  ;;  %v10293_v24 = vld [vmem:[#allocation9 + $0x734] sm:$0xf0] }
 0x22f   :  { %v8989_v63 = vor.u32 %v10209_v61, %v8986_v39  ;;  %v10305_v39 = vld [vmem:[#allocation9 + $0x79c] sm:$0xf] }
 0x232   :  { %4143 = vmatpush.bf16.msra.mxu2 %v9017_v26  ;;  %4053 = vmatpush.bf16.msra.mxu3 %v9233_v1  ;;  %v9269_v26 = vor.u32 %v10280_v33, %v9266_v60  ;;  %v9237_v1 = vor.u32 %v10272_v47, %v9234_v18  ;;  %v10313_v60 = vld [vmem:[#allocation9 + $0x7dc] sm:$0xf] }
 0x233   :  { %v9370_v47 = vld [vmem:[#allocation9 + $0x7b8] sm:$0xf0] }
 0x235   :  { %v4018_v58 = vpop.f32.mrf.mxu0  ;;  %v3890_v55 = vpop.f32.mrf.mxu2 }
 0x236   :  { %4144 = vmatpush.bf16.msra.mxu2 %v8985_v56  ;;  %4054 = vmatpush.bf16.msra.mxu3 %v9201_v8  ;;  %v10193_v8 = vld [vmem:[#allocation9 + $0x41c] sm:$0xf]  ;;  %v9208_v55 = vld [vmem:[#allocation9 + $0x658] sm:$0xf] }
 0x237   :  { %v4031_v43 = vpop.f32.mrf.mxu1 }
 0x238   :  { %v10947_v54 = vadd.f32 %v4031_v43, %v4018_v58  ;;  %v8925_v58 = vor.u32 %v10193_v8, %v8922_v4  ;;  %v10281_v4 = vld [vmem:[#allocation9 + $0x6dc] sm:$0xf] }
 0x239   :  { %v9277_v59 = vor.u32 %v10281_v4, %v9274_v10 }
 0x23a   :  { %4145 = vmatpush.bf16.msra.mxu2 %v8953_v6  ;;  %4055 = vmatpush.bf16.msra.mxu3 %v9169_v14  ;;  %v8957_v6 = vor.u32 %v10201_v3, %v8954_v40  ;;  %v10309_v14 = vld [vmem:[#allocation9 + $0x7b4] sm:$0xf0]  ;;  %v10289_v40 = vld [vmem:[#allocation9 + $0x71c] sm:$0xf] }
 0x23d   :  { %v4020_v31 = vpop.f32.mrf.mxu0  ;;  %4056 = vmatmul.bf16.vlgmr.msra.gmra.mxu3 %v10912_v41 }
 0x23e   :  { %4146 = vmatpush.bf16.msra.mxu2 %v8921_v42  ;;  %4100 = vmatpush.bf16.msrb.mxu3 %v9397_v20  ;;  %v9368_v42 = vld [vmem:[#allocation9 + $0x798] sm:$0xf] }
 0x23f   :  { %v4033_v0 = vpop.f32.mrf.mxu1  ;;  %v10285_v31 = vld [vmem:[#allocation9 + $0x6f4] sm:$0xf0] }
 0x240   :  { %v3940_v62 = vpop.f32.mrf.mxu2  ;;  %v9273_v32 = vor.u32 %v10285_v31, %v9272_v27  ;;  %v9338_v0 = vld [vmem:[#allocation9 + $0x778] sm:$0xf0] }
 0x241   :  { %4147 = vmatmul.bf16.vlgmr.msra.gmra.mxu2 %v10876_v48  ;;  %v10950_v56 = vadd.f32 %v3940_v62, %v10931_v30 }
 0x242   :  { %4191 = vmatpush.bf16.msrb.mxu2 %v9149_v17  ;;  %4101 = vmatpush.bf16.msrb.mxu3 %v9365_v22  ;;  %v9369_v17 = vor.u32 %v10309_v14, %v9368_v42  ;;  %v9305_v22 = vor.u32 %v10293_v24, %v9304_v23  ;;  %v10265_v42 = vld [vmem:[#allocation9 + $0x65c] sm:$0xf] }
 0x243   :  { %v9210_v14 = vld [vmem:[#allocation9 + $0x678] sm:$0xf0] }
 0x244   :  { %v9213_v7 = vor.u32 %v10265_v42, %v9210_v14  ;;  %v9178_v23 = vld [vmem:[#allocation9 + $0x638] sm:$0xf0]  ;;  %v10342_v42 = vld [vmem:[#allocation11 + $0xc4] sm:$0xf] }
 0x246   :  { %4192 = vmatpush.bf16.msrb.mxu2 %v9117_v34  ;;  %4102 = vmatpush.bf16.msrb.mxu3 %v9333_v44 }
 0x248   :  { %v3942_v30 = vpop.f32.mrf.mxu2 }
 0x24a   :  { %4193 = vmatpush.bf16.msrb.mxu2 %v9085_v38  ;;  %4103 = vmatpush.bf16.msrb.mxu3 %v9301_v36  ;;  %v10277_v38 = vld [vmem:[#allocation9 + $0x6b4] sm:$0xf0] }
 0x24b   :  { %v9241_v49 = vor.u32 %v10277_v38, %v9240_v35  ;;  %v9176_v36 = vld [vmem:[#allocation9 + $0x618] sm:$0xf] }
 0x24e   :  { %4194 = vmatpush.bf16.msrb.mxu2 %v9053_v37  ;;  %4104 = vmatpush.bf16.msrb.mxu3 %v9269_v26  ;;  %v10269_v37 = vld [vmem:[#allocation9 + $0x674] sm:$0xf0] }
 0x24f   :  { %v9209_v43 = vor.u32 %v10269_v37, %v9208_v55 }
 0x252   :  { %4195 = vmatpush.bf16.msrb.mxu2 %v9021_v51  ;;  %4105 = vmatpush.bf16.msrb.mxu3 %v9237_v1  ;;  %v9402_v51 = vld [vmem:[#allocation9 + $0x7f8] sm:$0xf0] }
 0x253   :  { %v9405_v61 = vor.u32 %v10313_v60, %v9402_v51 }
 0x255   :  { %v4070_v15 = vpop.f32.mrf.mxu0 }
 0x256   :  { %4196 = vmatpush.bf16.msrb.mxu2 %v8989_v63  ;;  %4106 = vmatpush.bf16.msrb.mxu3 %v9205_v52  ;;  %v10297_v63 = vld [vmem:[#allocation9 + $0x75c] sm:$0xf] }
 0x257   :  { %v4083_v34 = vpop.f32.mrf.mxu1  ;;  %v9341_v3 = vor.u32 %v10297_v63, %v9338_v0 }
 0x258   :  { %v10954_v16 = vadd.f32 %v4083_v34, %v4070_v15  ;;  %v10273_v15 = vld [vmem:[#allocation9 + $0x69c] sm:$0xf] }
 0x25a   :  { %4197 = vmatpush.bf16.msrb.mxu2 %v8957_v6  ;;  %4107 = vmatpush.bf16.msrb.mxu3 %v9173_v13  ;;  %v9309_v6 = vor.u32 %v10289_v40, %v9306_v28  ;;  %v9245_v13 = vor.u32 %v10273_v15, %v9242_v19  ;;  %v9520_v15 = vld [vmem:[#allocation11 + $0xe0] sm:$0xf]  ;;  %v10348_v19 = vld [vmem:[#allocation11 + $0xec] sm:$0xf0] }
 0x25d   :  { %v4072_v20 = vpop.f32.mrf.mxu0  ;;  %4108 = vmatmul.bf16.vlgmr.msrb.gmra.mxu3 %v10912_v41 }
 0x25e   :  { %4198 = vmatpush.bf16.msrb.mxu2 %v8925_v58  ;;  %4152 = vmatpush.bf16.msra.mxu3 %v9401_v2  ;;  %v3992_v46 = vpop.f32.mrf.mxu2 }
 0x25f   :  { %v10958_v9 = vadd.f32 %v3992_v46, %v10937_v57  ;;  %v4085_v29 = vpop.f32.mrf.mxu1  ;;  %v9373_v57 = vor.u32 %v10305_v39, %v9370_v47 }
 0x261   :  { %4199 = vmatmul.bf16.vlgmr.msrb.gmra.mxu2 %v10876_v48  ;;  %v3849_v48 = vpop.f32.mrf.mxu3 }
 0x262   :  { %4153 = vmatpush.bf16.msra.mxu3 %v9369_v17  ;;  %v3850_v44 = vadd.f32 %v3849_v48, %v10940_v45  ;;  %v9177_v45 = vor.u32 %v10261_v50, %v9176_v36 }
 0x264   :  { %vm4217_vm0 = vcmp.ge.f32.partialorder %v3850_v44, 0.0 }
 0x266   :  { %4154 = vmatpush.bf16.msra.mxu3 %v9337_v11  ;;  %v3994_v26 = vpop.f32.mrf.mxu2  ;;  %v10257_v11 = vld [vmem:[#allocation9 + $0x61c] sm:$0xf] }
 0x267   :  { %v9181_v31 = vor.u32 %v10257_v11, %v9178_v23  ;;  %v9488_v23 = vld [vmem:[#allocation11 + $0xa0] sm:$0xf] }
 0x269   :  { %v3851_v53 = vpop.f32.mrf.mxu3 }
 0x26a   :  { %4155 = vmatpush.bf16.msra.mxu3 %v9305_v22 }
 0x26e   :  { %4156 = vmatpush.bf16.msra.mxu3 %v9273_v32 }
 0x271   :  { %v3901_v18 = vpop.f32.mrf.mxu3 }
 0x272   :  { %4157 = vmatpush.bf16.msra.mxu3 %v9241_v49  ;;  %v3902_v1 = vadd.f32 %v3901_v18, %v10943_v25  ;;  %v4225_v25 = vmul.f32 0.2, %v3850_v44 }
 0x274   :  { %v10966_v20 = vsel %vm4217_vm0, %v3850_v44, %v4225_v25  ;;  %v4226_v46 = vmul.f32 0.2, %v3902_v1  ;;  %vm4218_vm2 = vcmp.ge.f32.partialorder %v3902_v1, 0.0  ;;  %v9521_v25 = vor.u32 %v10348_v19, %v9520_v15  ;;  %v9424_v15 = vld [vmem:[#allocation11 + $0x20] sm:$0xf] }
 0x275   :  { %v4122_v33 = vpop.f32.mrf.mxu0  ;;  %v10324_v19 = vld [vmem:[#allocation11 + $0x2c] sm:$0xf0] }
 0x276   :  { %4158 = vmatpush.bf16.msra.mxu3 %v9209_v43  ;;  %v10981_v36 = vsel %vm4218_vm2, %v3902_v1, %v4226_v46  ;;  %4761 = vmatpush.bf16.msra.mxu0 %v9521_v25  ;;  %v10322_v25 = vld [vmem:[#allocation11 + $0x24] sm:$0xf] }
 0x277   :  { %v4135_v5 = vpop.f32.mrf.mxu1 }
 0x278   :  { %v10962_v8 = vadd.f32 %v4135_v5, %v4122_v33 }
 0x279   :  { %v3903_v52 = vpop.f32.mrf.mxu3 }
 0x27a   :  { %4159 = vmatpush.bf16.msra.mxu3 %v9177_v45 }
 0x27d   :  { %v4124_v62 = vpop.f32.mrf.mxu0  ;;  %4160 = vmatmul.bf16.vlgmr.msra.gmra.mxu3 %v10912_v41 }
 0x27e   :  { %4204 = vmatpush.bf16.msrb.mxu3 %v9405_v61  ;;  %v4044_v12 = vpop.f32.mrf.mxu2 }
 0x27f   :  { %v4045_v30 = vadd.f32 %v4044_v12, %v10947_v54  ;;  %v4137_v58 = vpop.f32.mrf.mxu1  ;;  %v4277_v54 = vmul.f32 %v10966_v20, %v10966_v20  ;;  %v10346_v12 = vld [vmem:[#allocation11 + $0xe4] sm:$0xf] }
 0x281   :  { %v3953_v2 = vpop.f32.mrf.mxu3 }
 0x282   :  { %4205 = vmatpush.bf16.msrb.mxu3 %v9373_v57  ;;  %v3954_v17 = vadd.f32 %v3953_v2, %v10950_v56  ;;  %v10344_v2 = vld [vmem:[#allocation11 + $0xcc] sm:$0xf0] }
 0x284   :  { %vm4219_vm1 = vcmp.ge.f32.partialorder %v3954_v17, 0.0  ;;  %v4227_v21 = vmul.f32 0.2, %v3954_v17 }
 0x286   :  { %4206 = vmatpush.bf16.msrb.mxu3 %v9341_v3  ;;  %v10968_v24 = vsel %vm4219_vm1, %v3954_v17, %v4227_v21  ;;  %v4046_v27 = vpop.f32.mrf.mxu2  ;;  %v9506_v17 = vld [vmem:[#allocation11 + $0xd0] sm:$0xf0] }
 0x287   :  { %v4259_v22 = vadd.f32 %v10968_v24, %v10966_v20  ;;  %v4279_v56 = vmul.f32 %v10968_v24, %v10968_v24  ;;  %v9509_v21 = vor.u32 %v10342_v42, %v9506_v17  ;;  %v9490_v27 = vld [vmem:[#allocation11 + $0xb0] sm:$0xf0]  ;;  %v9408_v17 = vld [vmem:[#allocation11] sm:$0xf] }
 0x289   :  { %v4285_v32 = vadd.f32 %v4279_v56, %v4277_v54  ;;  %v3955_v35 = vpop.f32.mrf.mxu3  ;;  %v10338_v54 = vld [vmem:[#allocation11 + $0xa4] sm:$0xf] }
 0x28a   :  { %4207 = vmatpush.bf16.msrb.mxu3 %v9309_v6  ;;  %v9472_v35 = vld [vmem:[#allocation11 + $0x80] sm:$0xf] }
 0x28e   :  { %4208 = vmatpush.bf16.msrb.mxu3 %v9277_v59 }
 0x292   :  { %4209 = vmatpush.bf16.msrb.mxu3 %v9245_v13  ;;  %v9504_v13 = vld [vmem:[#allocation11 + $0xc0] sm:$0xf] }
 0x293   :  { %v9505_v14 = vor.u32 %v10344_v2, %v9504_v13 }
 0x295   :  { %v4174_v34 = vpop.f32.mrf.mxu0  ;;  %4762 = vmatpush.bf16.msra.mxu0 %v9505_v14 }
 0x296   :  { %4210 = vmatpush.bf16.msrb.mxu3 %v9213_v7 }
 0x298   :  { %v4187_v48 = vpop.f32.mrf.mxu1 }
 0x299   :  { %v10977_v44 = vadd.f32 %v4187_v48, %v4174_v34  ;;  %v10340_v34 = vld [vmem:[#allocation11 + $0xac] sm:$0xf0]  ;;  %v10334_v48 = vld [vmem:[#allocation11 + $0x84] sm:$0xf] }
 0x29a   :  { %4211 = vmatpush.bf16.msrb.mxu3 %v9181_v31  ;;  %v9489_v56 = vor.u32 %v10340_v34, %v9488_v23  ;;  %v9493_v31 = vor.u32 %v10338_v54, %v9490_v27  ;;  %v9410_v23 = vld [vmem:[#allocation11 + $0x10] sm:$0xf0]  ;;  %v9648_v34 = vld [vmem:[#allocation11 + $0x1e0] sm:$0xf] }
 0x29c   :  { %4763 = vmatpush.bf16.msra.mxu0 %v9489_v56 }
 0x29d   :  { %v4176_v38 = vpop.f32.mrf.mxu0  ;;  %4212 = vmatmul.bf16.vlgmr.msrb.gmra.mxu3 %v10912_v41  ;;  %v4278_v41 = vmul.f32 %v10981_v36, %v10981_v36 }
 0x29e   :  { %v10336_v38 = vld [vmem:[#allocation11 + $0x8c] sm:$0xf0] }
 0x2a0   :  { %v4005_v49 = vpop.f32.mrf.mxu3  ;;  %v4189_v37 = vpop.f32.mrf.mxu1 }
 0x2a1   :  { %v4006_v43 = vadd.f32 %v4005_v49, %v10958_v9 }
 0x2a3   :  { %vm4220_vm3 = vcmp.ge.f32.partialorder %v4006_v43, 0.0  ;;  %v4228_v50 = vmul.f32 0.2, %v4006_v43 }
 0x2a4   :  { %v4096_v29 = vpop.f32.mrf.mxu2 }
 0x2a5   :  { %v4097_v55 = vadd.f32 %v4096_v29, %v10954_v16  ;;  %v10983_v53 = vsel %vm4220_vm3, %v4006_v43, %v4228_v50  ;;  %v9474_v29 = vld [vmem:[#allocation11 + $0x90] sm:$0xf0] }
 0x2a6   :  { %v4268_v33 = vadd.f32 %v10983_v53, %v10981_v36  ;;  %v4280_v60 = vmul.f32 %v10983_v53, %v10983_v53  ;;  %v9477_v37 = vor.u32 %v10334_v48, %v9474_v29 }
 0x2a8   :  { %v4294_v16 = vadd.f32 %v4280_v60, %v4278_v41  ;;  %v4007_v26 = vpop.f32.mrf.mxu3  ;;  %v10332_v60 = vld [vmem:[#allocation11 + $0x6c] sm:$0xf0] }
 0x2a9   :  { %v9458_v26 = vld [vmem:[#allocation11 + $0x70] sm:$0xf0] }
 0x2ac   :  { %v4098_v51 = vpop.f32.mrf.mxu2 }
 0x2c0   :  { %v4057_v9 = vpop.f32.mrf.mxu3 }
 0x2c1   :  { %v4058_v61 = vadd.f32 %v4057_v9, %v4045_v30  ;;  %v9522_v30 = vld [vmem:[#allocation11 + $0xf0] sm:$0xf0] }
 0x2c2   :  { %v9525_v58 = vor.u32 %v10346_v12, %v9522_v30  ;;  %v9425_v12 = vor.u32 %v10324_v19, %v9424_v15  ;;  %v9426_v30 = vld [vmem:[#allocation11 + $0x30] sm:$0xf0]  ;;  %v10370_v15 = vld [vmem:[#allocation11 + $0x1a4] sm:$0xf] }
 0x2c3   :  { %vm4221_vm4 = vcmp.ge.f32.partialorder %v4058_v61, 0.0  ;;  %v4229_v39 = vmul.f32 0.2, %v4058_v61  ;;  %v9429_v2 = vor.u32 %v10322_v25, %v9426_v30  ;;  %v9618_v19 = vld [vmem:[#allocation11 + $0x1b0] sm:$0xf0] }
 0x2c4   :  { %v4148_v45 = vpop.f32.mrf.mxu2  ;;  %4799 = vmatpush.bf16.msra.mxu2 %v9525_v58  ;;  %v9621_v25 = vor.u32 %v10370_v15, %v9618_v19  ;;  %v9496_v30 = vld [vmem:[#allocation11 + $0xa8] sm:$0xf] }
 0x2c5   :  { %v10991_v47 = vsel %vm4221_vm4, %v4058_v61, %v4229_v39  ;;  %v4149_v7 = vadd.f32 %v4148_v45, %v10962_v8  ;;  %v9473_v8 = vor.u32 %v10336_v38, %v9472_v35  ;;  %v9650_v38 = vld [vmem:[#allocation11 + $0x1f0] sm:$0xf0] }
 0x2c6   :  { %v4260_v57 = vadd.f32 %v4259_v22, %v10991_v47  ;;  %v4281_v18 = vmul.f32 %v10991_v47, %v10991_v47 }
 0x2c7   :  { %4764 = vmatpush.bf16.msra.mxu0 %v9473_v8 }
 0x2c8   :  { %v4286_v63 = vadd.f32 %v4285_v32, %v4281_v18  ;;  %v4059_v0 = vpop.f32.mrf.mxu3  ;;  %4800 = vmatpush.bf16.msra.mxu2 %v9509_v21  ;;  %v9440_v18 = vld [vmem:[#allocation11 + $0x40] sm:$0xf]  ;;  %v10320_v21 = vld [vmem:[#allocation11 + $0xc] sm:$0xf0] }
 0x2cc   :  { %v4150_v62 = vpop.f32.mrf.mxu2  ;;  %4801 = vmatpush.bf16.msra.mxu2 %v9493_v31  ;;  %v10380_v31 = vld [vmem:[#allocation11 + $0x1ec] sm:$0xf0] }
 0x2cd   :  { %v10328_v62 = vld [vmem:[#allocation11 + $0x4c] sm:$0xf0]  ;;  %v9649_v35 = vor.u32 %v10380_v31, %v9648_v34 }
 0x2ce   :  { %v9441_v0 = vor.u32 %v10328_v62, %v9440_v18 }
 0x2cf   :  { %4780 = vmatpush.bf16.msra.mxu1 %v9649_v35 }
 0x2d0   :  { %4802 = vmatpush.bf16.msra.mxu2 %v9477_v37  ;;  %v9528_v37 = vld [vmem:[#allocation11 + $0xe8] sm:$0xf] }
 0x2e0   :  { %v4109_v3 = vpop.f32.mrf.mxu3 }
 0x2e1   :  { %v4110_v40 = vadd.f32 %v4109_v3, %v4097_v55  ;;  %v10326_v3 = vld [vmem:[#allocation11 + $0x44] sm:$0xf] }
 0x2e3   :  { %vm4222_vm5 = vcmp.ge.f32.partialorder %v4110_v40, 0.0  ;;  %v4230_v28 = vmul.f32 0.2, %v4110_v40 }
 0x2e4   :  { %v10996_v1 = vpop.f32.mrf.mxu2 }
 0x2e5   :  { %v10998_v5 = vsel %vm4222_vm5, %v4110_v40, %v4230_v28  ;;  %v9442_v40 = vld [vmem:[#allocation11 + $0x50] sm:$0xf0] }
 0x2e6   :  { %v11001_v6 = vadd.f32 %v4268_v33, %v10998_v5  ;;  %v4282_v52 = vmul.f32 %v10998_v5, %v10998_v5  ;;  %v9456_v33 = vld [vmem:[#allocation11 + $0x60] sm:$0xf] }
 0x2e7   :  { %v9457_v51 = vor.u32 %v10332_v60, %v9456_v33  ;;  %v9530_v60 = vld [vmem:[#allocation11 + $0xf8] sm:$0xf0] }
 0x2e8   :  { %v11005_v10 = vadd.f32 %v4294_v16, %v4282_v52  ;;  %v4111_v59 = vpop.f32.mrf.mxu3  ;;  %v10330_v16 = vld [vmem:[#allocation11 + $0x64] sm:$0xf]  ;;  %v9445_v52 = vor.u32 %v10326_v3, %v9442_v40  ;;  %v10345_v3 = vld [vmem:[#allocation11 + $0xd4] sm:$0xf0]  ;;  %v10343_v40 = vld [vmem:[#allocation11 + $0xcc] sm:$0xf] }
 0x2e9   :  { %v9461_v61 = vor.u32 %v10330_v16, %v9458_v26  ;;  %4765 = vmatpush.bf16.msra.mxu0 %v9457_v51  ;;  %v9632_v51 = vld [vmem:[#allocation11 + $0x1c0] sm:$0xf]  ;;  %v10376_v26 = vld [vmem:[#allocation11 + $0x1cc] sm:$0xf0] }
 0x2eb   :  { %4803 = vmatpush.bf16.msra.mxu2 %v9461_v61  ;;  %v4201_v61 = vadd.f32 %v10996_v1, %v10977_v44 }
 0x2ec   :  { %v4202_v4 = vpop.f32.mrf.mxu2 }
 0x2ed   :  { %4766 = vmatpush.bf16.msra.mxu0 %v9441_v0  ;;  %v9512_v0 = vld [vmem:[#allocation11 + $0xc8] sm:$0xf] }
 0x2ef   :  { %4804 = vmatpush.bf16.msra.mxu2 %v9445_v52  ;;  %v9514_v52 = vld [vmem:[#allocation11 + $0xd8] sm:$0xf0] }
 0x2f0   :  { %v9517_v44 = vor.u32 %v10343_v40, %v9514_v52  ;;  %v9464_v40 = vld [vmem:[#allocation11 + $0x68] sm:$0xf] }
 0x2f1   :  { %4767 = vmatpush.bf16.msra.mxu0 %v9425_v12 }
 0x2f3   :  { %4805 = vmatpush.bf16.msra.mxu2 %v9429_v2 }
 0x300   :  { %v4161_v11 = vpop.f32.mrf.mxu3 }
 0x301   :  { %v4162_v22 = vadd.f32 %v4161_v11, %v4149_v7  ;;  %v9409_v7 = vor.u32 %v10320_v21, %v9408_v17  ;;  %v10318_v11 = vld [vmem:[#allocation11 + $0x4] sm:$0xf]  ;;  %v9498_v17 = vld [vmem:[#allocation11 + $0xb8] sm:$0xf0]  ;;  %v9600_v21 = vld [vmem:[#allocation11 + $0x180] sm:$0xf] }
 0x302   :  { %v9413_v27 = vor.u32 %v10318_v11, %v9410_v23 }
 0x303   :  { %vm4223_vm6 = vcmp.ge.f32.partialorder %v4162_v22, 0.0  ;;  %v4231_v32 = vmul.f32 0.2, %v4162_v22  ;;  %4768 = vmatpush.bf16.msra.mxu0 %v9409_v7  ;;  %v10368_v7 = vld [vmem:[#allocation11 + $0x18c] sm:$0xf0] }
 0x304   :  { %4806 = vmatpush.bf16.msra.mxu2 %v9413_v27  ;;  %v9602_v27 = vld [vmem:[#allocation11 + $0x190] sm:$0xf0] }
 0x305   :  { %v11008_v46 = vsel %vm4223_vm6, %v4162_v22, %v4231_v32  ;;  %v10378_v32 = vld [vmem:[#allocation11 + $0x1e4] sm:$0xf] }
 0x306   :  { %v4261_v49 = vadd.f32 %v4260_v57, %v11008_v46  ;;  %v4283_v55 = vmul.f32 %v11008_v46, %v11008_v46 }
 0x308   :  { %v4262_v43 = vrot.slane %v4261_v49, 4  ;;  %v4287_v50 = vadd.f32 %v4286_v63, %v4283_v55  ;;  %v4163_v41 = vpop.f32.mrf.mxu3 }
 0x30a   :  { %v4263_v45 = vadd.f32 %v4262_v43, %v4261_v49  ;;  %v4288_v9 = vrot.slane %v4287_v50, 4  ;;  %v9653_v49 = vor.u32 %v10378_v32, %v9650_v38  ;;  %v10349_v43 = vld [vmem:[#allocation11 + $0xf4] sm:$0xf0] }
 0x30b   :  { %v9529_v33 = vor.u32 %v10349_v43, %v9528_v37  ;;  %v10337_v37 = vld [vmem:[#allocation11 + $0x94] sm:$0xf0] }
 0x30c   :  { %v4264_v39 = vrot.slane %v4263_v45, 2  ;;  %v4289_v57 = vadd.f32 %v4288_v9, %v4287_v50  ;;  %v10347_v50 = vld [vmem:[#allocation11 + $0xec] sm:$0xf]  ;;  %4818 = vmatpush.bf16.msra.mxu3 %v9653_v49  ;;  %v9634_v9 = vld [vmem:[#allocation11 + $0x1d0] sm:$0xf0] }
 0x30d   :  { %v9533_v16 = vor.u32 %v10347_v50, %v9530_v60  ;;  %4837 = vmatpush.bf16.msrb.mxu0 %v9529_v33  ;;  %v10335_v50 = vld [vmem:[#allocation11 + $0x8c] sm:$0xf] }
 0x30e   :  { %v4265_v63 = vadd.f32 %v4264_v39, %v4263_v45  ;;  %v4290_v28 = vrot.slane %v4289_v57, 2  ;;  %v10374_v45 = vld [vmem:[#allocation11 + $0x1c4] sm:$0xf] }
 0x30f   :  { %v9637_v18 = vor.u32 %v10374_v45, %v9634_v9  ;;  %4875 = vmatpush.bf16.msrb.mxu2 %v9533_v16  ;;  %v10364_v45 = vld [vmem:[#allocation11 + $0x16c] sm:$0xf0] }
 0x310   :  { %v4266_v4 = vrot.slane %v4265_v63, 1  ;;  %v4291_v59 = vadd.f32 %v4290_v28, %v4289_v57  ;;  %v9633_v57 = vor.u32 %v10376_v26, %v9632_v51  ;;  %v9513_v28 = vor.u32 %v10345_v3, %v9512_v0  ;;  %v9584_v26 = vld [vmem:[#allocation11 + $0x160] sm:$0xf] }
 0x311   :  { %4819 = vmatpush.bf16.msra.mxu3 %v9637_v18  ;;  %v9585_v9 = vor.u32 %v10364_v45, %v9584_v26  ;;  %v10325_v26 = vld [vmem:[#allocation11 + $0x34] sm:$0xf0] }
 0x312   :  { %v4267_v58 = vadd.f32 %v4266_v4, %v4265_v63  ;;  %v4292_v13 = vrot.slane %v4291_v59, 1  ;;  %4781 = vmatpush.bf16.msra.mxu1 %v9633_v57  ;;  %v9616_v4 = vld [vmem:[#allocation11 + $0x1a0] sm:$0xf]  ;;  %4838 = vmatpush.bf16.msrb.mxu0 %v9513_v28  ;;  %v9586_v57 = vld [vmem:[#allocation11 + $0x170] sm:$0xf0] }
 0x313   :  { %4876 = vmatpush.bf16.msrb.mxu2 %v9517_v44  ;;  %v10331_v28 = vld [vmem:[#allocation11 + $0x6c] sm:$0xf] }
 0x314   :  { %v4293_v42 = vadd.f32 %v4292_v13, %v4291_v59  ;;  %v11013_v14 = vmul.f32 0.03125, %v4267_v58  ;;  %v10372_v59 = vld [vmem:[#allocation11 + $0x1ac] sm:$0xf0]  ;;  %v10341_v58 = vld [vmem:[#allocation11 + $0xb4] sm:$0xf0] }
 0x315   :  { %v9617_v1 = vor.u32 %v10372_v59, %v9616_v4  ;;  %v10339_v13 = vld [vmem:[#allocation11 + $0xac] sm:$0xf]  ;;  %4820 = vmatpush.bf16.msra.mxu3 %v9621_v25  ;;  %v10360_v25 = vld [vmem:[#allocation11 + $0x14c] sm:$0xf0] }
 0x316   :  { %v4305_v54 = vmul.f32 0.03125, %v4293_v42  ;;  %v4307_v22 = vmul.f32 %v11013_v14, %v11013_v14  ;;  %v4319_v56 = vsub.f32 %v11008_v46, %v11013_v14  ;;  %v4313_v48 = vsub.f32 %v10966_v20, %v11013_v14 }
 0x317   :  { %v4315_v8 = vsub.f32 %v10968_v24, %v11013_v14  ;;  %v4317_v55 = vsub.f32 %v10991_v47, %v11013_v14  ;;  %4782 = vmatpush.bf16.msra.mxu1 %v9617_v1  ;;  %v9497_v42 = vor.u32 %v10341_v58, %v9496_v30  ;;  %v9501_v34 = vor.u32 %v10339_v13, %v9498_v17  ;;  %v9466_v1 = vld [vmem:[#allocation11 + $0x78] sm:$0xf0]  ;;  %v10358_v30 = vld [vmem:[#allocation11 + $0x144] sm:$0xf]  ;;  %v9416_v14 = vld [vmem:[#allocation11 + $0x8] sm:$0xf] }
 0x318   :  { %v4309_v29 = vsub.f32 %v4305_v54, %v4307_v22  ;;  %v9601_v54 = vor.u32 %v10368_v7, %v9600_v21  ;;  %v10366_v22 = vld [vmem:[#allocation11 + $0x184] sm:$0xf]  ;;  %v9469_v19 = vor.u32 %v10331_v28, %v9466_v1  ;;  %v11060_v21 = vld [vmem:[%s13139_s11] sm:$0x3]  ;;  %v9570_v7 = vld [vmem:[#allocation11 + $0x150] sm:$0xf0] }
 0x319   :  { %4839 = vmatpush.bf16.msrb.mxu0 %v9497_v42  ;;  %v9605_v32 = vor.u32 %v10366_v22, %v9602_v27  ;;  %4877 = vmatpush.bf16.msrb.mxu2 %v9501_v34  ;;  %v10329_v34 = vld [vmem:[#allocation11 + $0x54] sm:$0xf0]  ;;  %v4361_v45 = vperm.slane %v11060_v21, 0  ;;  %v9538_v1 = vld [vmem:[#allocation11 + $0x110] sm:$0xf0] }
 0x31a   :  { %v4311_v41 = vmax.f32 %v4309_v29, 0.0 }
 0x31b   :  { %4783 = vmatpush.bf16.msra.mxu1 %v9601_v54  ;;  %4821 = vmatpush.bf16.msra.mxu3 %v9605_v32  ;;  %v10327_v54 = vld [vmem:[#allocation11 + $0x4c] sm:$0xf] }
 0x31c   :  { %v11027_v39 = vadd.f32 1e-05, %v4311_v41  ;;  %v9482_v41 = vld [vmem:[#allocation11 + $0x98] sm:$0xf0] }
 0x31d   :  { %v9485_v16 = vor.u32 %v10335_v50, %v9482_v41  ;;  %v9554_v50 = vld [vmem:[#allocation11 + $0x130] sm:$0xf0] }
 0x31e   :  { %10427 = vrsqrt.f32 %v11027_v39  ;;  %vm4329_vm9 = vweird.f32 %v11027_v39 }
 0x31f   :  { %4878 = vmatpush.bf16.msrb.mxu2 %v9485_v16  ;;  %4784 = vmatpush.bf16.msra.mxu1 %v9585_v9  ;;  %v9432_v16 = vld [vmem:[#allocation11 + $0x28] sm:$0xf] }
 0x320   :  { %v4213_v62 = vpop.f32.mrf.mxu3  ;;  %v9433_v9 = vor.u32 %v10325_v26, %v9432_v16  ;;  %v9608_v26 = vld [vmem:[#allocation11 + $0x188] sm:$0xf] }
 0x321   :  { %v4214_v63 = vadd.f32 %v4213_v62, %v4201_v61  ;;  %v10362_v61 = vld [vmem:[#allocation11 + $0x164] sm:$0xf] }
 0x322   :  { %v9589_v3 = vor.u32 %v10362_v61, %v9586_v57  ;;  %v10323_v61 = vld [vmem:[#allocation11 + $0x2c] sm:$0xf]  ;;  %v9434_v57 = vld [vmem:[#allocation11 + $0x38] sm:$0xf0] }
 0x323   :  { %vm4224_vm7 = vcmp.ge.f32.partialorder %v4214_v63, 0.0  ;;  %v4232_v12 = vmul.f32 0.2, %v4214_v63  ;;  %4879 = vmatpush.bf16.msrb.mxu2 %v9469_v19 }
 0x324   :  { %v11036_v31 = vpop.eup %10427  ;;  %4822 = vmatpush.bf16.msra.mxu3 %v9589_v3  ;;  %v9437_v3 = vor.u32 %v10323_v61, %v9434_v57  ;;  %v9610_v61 = vld [vmem:[#allocation11 + $0x198] sm:$0xf0] }
 0x325   :  { %v11030_v2 = vsel %vm4224_vm7, %v4214_v63, %v4232_v12  ;;  %v4324_v35 = vmul.f32 %v11036_v31, %v11027_v39  ;;  %vm4330_vm8 = vweird.f32 %v11036_v31  ;;  %v10333_v63 = vld [vmem:[#allocation11 + $0x74] sm:$0xf0]  ;;  %v9568_v12 = vld [vmem:[#allocation11 + $0x140] sm:$0xf] }
 0x326   :  { %v4270_v11 = vadd.f32 %v11001_v6, %v11030_v2  ;;  %v4284_v23 = vmul.f32 %v11030_v2, %v11030_v2  ;;  %v9480_v6 = vld [vmem:[#allocation11 + $0x88] sm:$0xf]  ;;  %v9465_v15 = vor.u32 %v10333_v63, %v9464_v40  ;;  %vm11053_vm10 = vmor %vm4329_vm9, %vm4330_vm8  ;;  %v9569_v39 = vor.u32 %v10360_v25, %v9568_v12  ;;  %v9536_v40 = vld [vmem:[#allocation11 + $0x100] sm:$0xf] }
 0x327   :  { %v9481_v43 = vor.u32 %v10337_v37, %v9480_v6  ;;  %v4325_v33 = vmul.f32 %v11036_v31, %v4324_v35  ;;  %v10356_v37 = vld [vmem:[#allocation11 + $0x12c] sm:$0xf0] }
 0x328   :  { %v4271_v38 = vrot.slane %v4270_v11, 4  ;;  %v4296_v29 = vadd.f32 %v11005_v10, %v4284_v23  ;;  %v4215_v49 = vpop.f32.mrf.mxu3  ;;  %v11045_v10 = vld [vmem:[%s13138_s10] sm:$0x3]  ;;  %v9448_v23 = vld [vmem:[#allocation11 + $0x48] sm:$0xf]  ;;  %4785 = vmatpush.bf16.msra.mxu1 %v9569_v39 }
 0x329   :  { %4840 = vmatpush.bf16.msrb.mxu0 %v9481_v43  ;;  %v4326_v18 = vmul.f32 0.5, %v4325_v33  ;;  %v4344_v4 = vperm.slane %v11045_v10, 0  ;;  %v9449_v35 = vor.u32 %v10329_v34, %v9448_v23  ;;  %v10354_v43 = vld [vmem:[#allocation11 + $0x124] sm:$0xf]  ;;  %v10352_v63 = vld [vmem:[#allocation11 + $0x10c] sm:$0xf0] }
 0x32a   :  { %v4272_v60 = vadd.f32 %v4271_v38, %v4270_v11  ;;  %v4297_v51 = vrot.slane %v4296_v29, 4  ;;  %v9573_v11 = vor.u32 %v10358_v30, %v9570_v7  ;;  %v9450_v38 = vld [vmem:[#allocation11 + $0x58] sm:$0xf0]  ;;  %v9537_v19 = vor.u32 %v10352_v63, %v9536_v40  ;;  %v9656_v39 = vld [vmem:[#allocation11 + $0x1e8] sm:$0xf] }
 0x32b   :  { %v4327_v52 = vsub.f32 1.5, %v4326_v18  ;;  %v9453_v6 = vor.u32 %v10327_v54, %v9450_v38  ;;  %v10381_v23 = vld [vmem:[#allocation11 + $0x1f4] sm:$0xf0]  ;;  %v10379_v34 = vld [vmem:[#allocation11 + $0x1ec] sm:$0xf] }
 0x32c   :  { %v4273_v62 = vrot.slane %v4272_v60, 2  ;;  %v4298_v0 = vadd.f32 %v4297_v51, %v4296_v29  ;;  %v9552_v29 = vld [vmem:[#allocation11 + $0x120] sm:$0xf]  ;;  %4823 = vmatpush.bf16.msra.mxu3 %v9573_v11  ;;  %v9557_v51 = vor.u32 %v10354_v43, %v9554_v50  ;;  %v9657_v54 = vor.u32 %v10381_v23, %v9656_v39  ;;  %v10375_v38 = vld [vmem:[#allocation11 + $0x1cc] sm:$0xf] }
 0x32d   :  { %v4328_v58 = vmul.f32 %v11036_v31, %v4327_v52  ;;  %4841 = vmatpush.bf16.msrb.mxu0 %v9465_v15  ;;  %4880 = vmatpush.bf16.msrb.mxu2 %v9453_v6  ;;  %v10373_v43 = vld [vmem:[#allocation11 + $0x1b4] sm:$0xf0]  ;;  %v10371_v50 = vld [vmem:[#allocation11 + $0x1ac] sm:$0xf]  ;;  %v9592_v40 = vld [vmem:[#allocation11 + $0x168] sm:$0xf] }
 0x32e   :  { %v4274_v59 = vadd.f32 %v4273_v62, %v4272_v60  ;;  %v4299_v44 = vrot.slane %v4298_v0, 2  ;;  %v9553_v60 = vor.u32 %v10356_v37, %v9552_v29  ;;  %v9642_v29 = vld [vmem:[#allocation11 + $0x1d8] sm:$0xf0]  ;;  %v9624_v37 = vld [vmem:[#allocation11 + $0x1a8] sm:$0xf]  ;;  %v4362_v39 = vperm.slane %v11060_v21, 1 }
 0x32f   :  { %v4332_v22 = vsel %vm11053_vm10, %v11036_v31, %v4328_v58  ;;  %v9645_v6 = vor.u32 %v10375_v38, %v9642_v29  ;;  %v10365_v63 = vld [vmem:[#allocation11 + $0x174] sm:$0xf0]  ;;  %v9544_v21 = vld [vmem:[#allocation11 + $0x108] sm:$0xf] }
 0x330   :  { %v4275_v42 = vrot.slane %v4274_v59, 1  ;;  %v4300_v17 = vadd.f32 %v4299_v44, %v4298_v0  ;;  %v4348_v49 = vmul.f32 %v4344_v4, %v4332_v22  ;;  %4786 = vmatpush.bf16.msra.mxu1 %v9553_v60  ;;  %4824 = vmatpush.bf16.msra.mxu3 %v9557_v51  ;;  %v10350_v44 = vld [vmem:[#allocation11 + $0x104] sm:$0xf]  ;;  %v9658_v22 = vld [vmem:[#allocation11 + $0x1f8] sm:$0xf0]  ;;  %v9625_v60 = vor.u32 %v10373_v43, %v9624_v37 }
 0x331   :  { %4842 = vmatpush.bf16.msrb.mxu0 %v9449_v35  ;;  %v9541_v12 = vor.u32 %v10350_v44, %v9538_v1  ;;  %4881 = vmatpush.bf16.msrb.mxu2 %v9437_v3  ;;  %v9661_v35 = vor.u32 %v10379_v34, %v9658_v22  ;;  %v4345_v44 = vperm.slane %v11045_v10, 1 }
 0x332   :  { %v4276_v27 = vadd.f32 %v4275_v42, %v4274_v59  ;;  %v4301_v32 = vrot.slane %v4300_v17, 1  ;;  %v4350_v31 = vperm.slane %v4348_v49, 0  ;;  %v10319_v42 = vld [vmem:[#allocation11 + $0xc] sm:$0xf] }
 0x334   :  { %v4302_v41 = vadd.f32 %v4301_v32, %v4300_v17  ;;  %v11065_v33 = vmul.f32 0.03125, %v4276_v27  ;;  %v4358_v28 = vmul.f32 %v4350_v31, %v4319_v56  ;;  %v4352_v52 = vmul.f32 %v4350_v31, %v4313_v48  ;;  %4787 = vmatpush.bf16.msra.mxu1 %v9537_v19  ;;  %4825 = vmatpush.bf16.msra.mxu3 %v9541_v12  ;;  %v9418_v17 = vld [vmem:[#allocation11 + $0x18] sm:$0xf0]  ;;  %v9640_v27 = vld [vmem:[#allocation11 + $0x1c8] sm:$0xf] }
 0x335   :  { %v4354_v4 = vmul.f32 %v4350_v31, %v4315_v8  ;;  %v4356_v59 = vmul.f32 %v4350_v31, %v4317_v55  ;;  %4843 = vmatpush.bf16.msrb.mxu0 %v9433_v9  ;;  %v10321_v8 = vld [vmem:[#allocation11 + $0x14] sm:$0xf0]  ;;  %v9421_v11 = vor.u32 %v10319_v42, %v9418_v17  ;;  %v10367_v9 = vld [vmem:[#allocation11 + $0x18c] sm:$0xf]  ;;  %v9576_v19 = vld [vmem:[#allocation11 + $0x148] sm:$0xf] }
 0x336   :  { %v4306_v18 = vmul.f32 0.03125, %v4302_v41  ;;  %v4308_v62 = vmul.f32 %v11065_v33, %v11065_v33  ;;  %v4320_v0 = vsub.f32 %v11030_v2, %v11065_v33  ;;  %v4314_v46 = vsub.f32 %v10981_v36, %v11065_v33  ;;  %v10377_v32 = vld [vmem:[#allocation11 + $0x1d4] sm:$0xf0]  ;;  %v9626_v41 = vld [vmem:[#allocation11 + $0x1b8] sm:$0xf0] }
 0x337   :  { %v4365_v56 = vadd.f32 %v4361_v45, %v4352_v52  ;;  %v4367_v20 = vadd.f32 %v4361_v45, %v4354_v4  ;;  %v4369_v48 = vadd.f32 %v4361_v45, %v4356_v59  ;;  %v4371_v25 = vadd.f32 %v4361_v45, %v4358_v28  ;;  %4882 = vmatpush.bf16.msrb.mxu2 %v9421_v11  ;;  %v10369_v31 = vld [vmem:[#allocation11 + $0x194] sm:$0xf0]  ;;  %v10363_v28 = vld [vmem:[#allocation11 + $0x16c] sm:$0xf]  ;;  %v9594_v59 = vld [vmem:[#allocation11 + $0x178] sm:$0xf0] }
 0x338   :  { %v4310_v15 = vsub.f32 %v4306_v18, %v4308_v62  ;;  %v4316_v47 = vsub.f32 %v10983_v53, %v11065_v33  ;;  %v4318_v55 = vsub.f32 %v10998_v5, %v11065_v33  ;;  %v9417_v13 = vor.u32 %v10321_v8, %v9416_v14  ;;  %4856 = vmatpush.bf16.msrb.mxu1 %v9657_v54  ;;  %v10361_v12 = vld [vmem:[#allocation11 + $0x154] sm:$0xf0]  ;;  %v9562_v42 = vld [vmem:[#allocation11 + $0x138] sm:$0xf0] }
 0x339   :  { %v11090_v30 = vpack.c.bf16 %v4367_v20, %v4365_v56  ;;  %v11092_v58 = vpack.c.bf16 %v4371_v25, %v4369_v48  ;;  %v9641_v49 = vor.u32 %v10377_v32, %v9640_v27  ;;  %4894 = vmatpush.bf16.msrb.mxu3 %v9661_v35  ;;  %v9629_v16 = vor.u32 %v10371_v50, %v9626_v41  ;;  %v10359_v56 = vld [vmem:[#allocation11 + $0x14c] sm:$0xf]  ;;  %v9578_v20 = vld [vmem:[#allocation11 + $0x158] sm:$0xf0]  ;;  %v10357_v8 = vld [vmem:[#allocation11 + $0x134] sm:$0xf0] }
 0x33a   :  { %v4312_v24 = vmax.f32 %v4310_v15, 0.0  ;;  %4844 = vmatpush.bf16.msrb.mxu0 %v9417_v13  ;;  %v9609_v18 = vor.u32 %v10369_v31, %v9608_v26  ;;  %v9613_v62 = vor.u32 %v10367_v9, %v9610_v61  ;;  %v9593_v4 = vor.u32 %v10365_v63, %v9592_v40  ;;  %v10355_v13 = vld [vmem:[#allocation11 + $0x12c] sm:$0xf]  ;;  %v10353_v27 = vld [vmem:[#allocation11 + $0x114] sm:$0xf0] }
 0x33b   :  { %4769 = vmatmul.bf16.vlgmr.msra.gmra.mxu0 %v11090_v30  ;;  %4807 = vmatmul.bf16.vlgmr.msra.gmra.mxu2 %v11090_v30  ;;  %v9597_v1 = vor.u32 %v10363_v28, %v9594_v59  ;;  %v9577_v25 = vor.u32 %v10361_v12, %v9576_v19  ;;  %v9581_v10 = vor.u32 %v10359_v56, %v9578_v20  ;;  %v10351_v32 = vld [vmem:[#allocation11 + $0x10c] sm:$0xf]  ;;  %v9546_v35 = vld [vmem:[#allocation11 + $0x118] sm:$0xf0] }
 0x33c   :  { %v4322_v7 = vadd.f32 1e-05, %v4312_v24  ;;  %4857 = vmatpush.bf16.msrb.mxu1 %v9641_v49  ;;  %v9560_v24 = vld [vmem:[#allocation11 + $0x128] sm:$0xf]  ;;  %v9565_v11 = vor.u32 %v10355_v13, %v9562_v42  ;;  %v9545_v36 = vor.u32 %v10353_v27, %v9544_v21  ;;  %v9549_v53 = vor.u32 %v10351_v32, %v9546_v35 }
 0x33d   :  { %4895 = vmatpush.bf16.msrb.mxu3 %v9645_v6 }
 0x33e   :  { %10429 = vrsqrt.f32 %v4322_v7  ;;  %vm4339_vm12 = vweird.f32 %v4322_v7 }
 0x340   :  { %4858 = vmatpush.bf16.msrb.mxu1 %v9625_v60 }
 0x341   :  { %4896 = vmatpush.bf16.msrb.mxu3 %v9629_v16 }
 0x344   :  { %v10430_v51 = vpop.eup %10429  ;;  %4859 = vmatpush.bf16.msrb.mxu1 %v9609_v18 }
 0x345   :  { %v4334_v45 = vmul.f32 %v10430_v51, %v4322_v7  ;;  %vm4340_vm11 = vweird.f32 %v10430_v51  ;;  %4897 = vmatpush.bf16.msrb.mxu3 %v9613_v62  ;;  %v9561_v7 = vor.u32 %v10357_v8, %v9560_v24 }
 0x346   :  { %vm4341_vm13 = vmor %vm4339_vm12, %vm4340_vm11 }
 0x347   :  { %v4335_v57 = vmul.f32 %v10430_v51, %v4334_v45 }
 0x348   :  { %4860 = vmatpush.bf16.msrb.mxu1 %v9593_v4 }
 0x349   :  { %v4336_v3 = vmul.f32 0.5, %v4335_v57  ;;  %4898 = vmatpush.bf16.msrb.mxu3 %v9597_v1 }
 0x34b   :  { %v4337_v52 = vsub.f32 1.5, %v4336_v3  ;;  %4774 = vmatmul.bf16.gmra.mxu0 %v11092_v58  ;;  %4812 = vmatmul.bf16.gmra.mxu2 %v11092_v58 }
 0x34c   :  { %4861 = vmatpush.bf16.msrb.mxu1 %v9577_v25 }
 0x34d   :  { %v4338_v15 = vmul.f32 %v10430_v51, %v4337_v52  ;;  %4899 = vmatpush.bf16.msrb.mxu3 %v9581_v10 }
 0x34f   :  { %v4342_v48 = vsel %vm4341_vm13, %v10430_v51, %v4338_v15 }
 0x350   :  { %v4349_v14 = vmul.f32 %v4345_v44, %v4342_v48  ;;  %4862 = vmatpush.bf16.msrb.mxu1 %v9561_v7 }
 0x351   :  { %4900 = vmatpush.bf16.msrb.mxu3 %v9565_v11 }
 0x352   :  { %v4351_v17 = vperm.slane %v4349_v14, 0 }
 0x354   :  { %v4359_v23 = vmul.f32 %v4351_v17, %v4320_v0  ;;  %v4353_v34 = vmul.f32 %v4351_v17, %v4314_v46  ;;  %v4355_v54 = vmul.f32 %v4351_v17, %v4316_v47  ;;  %v4357_v22 = vmul.f32 %v4351_v17, %v4318_v55  ;;  %4863 = vmatpush.bf16.msrb.mxu1 %v9545_v36 }
 0x355   :  { %4901 = vmatpush.bf16.msrb.mxu3 %v9549_v53 }
 0x356   :  { %v4366_v38 = vadd.f32 %v4362_v39, %v4353_v34  ;;  %v4368_v2 = vadd.f32 %v4362_v39, %v4355_v54  ;;  %v4370_v0 = vadd.f32 %v4362_v39, %v4357_v22  ;;  %v4372_v29 = vadd.f32 %v4362_v39, %v4359_v23 }
 0x358   :  { %v4374_v46 = vpack.c.bf16 %v4368_v2, %v4366_v38  ;;  %v4376_v49 = vpack.c.bf16 %v4372_v29, %v4370_v0 }
 0x35a   :  { %4788 = vmatmul.bf16.vlgmr.msra.gmra.mxu1 %v4374_v46  ;;  %4826 = vmatmul.bf16.vlgmr.msra.gmra.mxu3 %v4374_v46 }
 0x35b   :  { %4845 = vmatmul.bf16.vlgmr.msrb.gmra.mxu0 %v11090_v30  ;;  %4883 = vmatmul.bf16.vlgmr.msrb.gmra.mxu2 %v11090_v30 }
 0x36a   :  { %4793 = vmatmul.bf16.gmra.mxu1 %v4376_v49  ;;  %4831 = vmatmul.bf16.gmra.mxu3 %v4376_v49 }
 0x36b   :  { %4850 = vmatmul.bf16.gmra.mxu0 %v11092_v58  ;;  %4888 = vmatmul.bf16.gmra.mxu2 %v11092_v58 }
 0x37a   :  { %4864 = vmatmul.bf16.vlgmr.msrb.gmra.mxu1 %v4374_v46  ;;  %4902 = vmatmul.bf16.vlgmr.msrb.gmra.mxu3 %v4374_v46 }
 0x38a   :  { %4869 = vmatmul.bf16.gmra.mxu1 %v4376_v49  ;;  %4907 = vmatmul.bf16.gmra.mxu3 %v4376_v49 }
 0x3b8   :  { %v4770_v5 = vpop.f32.mrf.mxu0 }
 0x3be   :  { %v4808_v33 = vpop.f32.mrf.mxu2 }
 0x3c0   :  { %v4772_v47 = vpop.f32.mrf.mxu0 }
 0x3c6   :  { %v4810_v6 = vpop.f32.mrf.mxu2 }
 0x3c8   :  { %v4775_v37 = vpop.f32.mrf.mxu0 }
 0x3ce   :  { %v4813_v41 = vpop.f32.mrf.mxu2 }
 0x3d0   :  { %v4777_v60 = vpop.f32.mrf.mxu0 }
 0x3d6   :  { %v4815_v58 = vpop.f32.mrf.mxu2 }
 0x3d7   :  { %v4789_v55 = vpop.f32.mrf.mxu1 }
 0x3d8   :  { %v4790_v26 = vadd.f32 %v4789_v55, %v4770_v5  ;;  %v4846_v3 = vpop.f32.mrf.mxu0 }
 0x3da   :  { %v4929_v57 = vmul.f32 0.2, %v4790_v26  ;;  %vm4913_vm15 = vcmp.ge.f32.partialorder %v4790_v26, 0.0 }
 0x3dc   :  { %v11118_v28 = vsel %vm4913_vm15, %v4790_v26, %v4929_v57 }
 0x3dd   :  { %v4827_v43 = vpop.f32.mrf.mxu3  ;;  %v5016_v15 = vmul.f32 %v11118_v28, %v11118_v28 }
 0x3de   :  { %v4828_v52 = vadd.f32 %v4827_v43, %v4808_v33  ;;  %v4884_v12 = vpop.f32.mrf.mxu2 }
 0x3df   :  { %v4791_v50 = vpop.f32.mrf.mxu1 }
 0x3e0   :  { %v4792_v16 = vadd.f32 %v4791_v50, %v4772_v47  ;;  %v4930_v48 = vmul.f32 0.2, %v4828_v52  ;;  %vm4914_vm2 = vcmp.ge.f32.partialorder %v4828_v52, 0.0  ;;  %v4848_v8 = vpop.f32.mrf.mxu0 }
 0x3e2   :  { %v4933_v9 = vmul.f32 0.2, %v4792_v16  ;;  %vm4917_vm14 = vcmp.ge.f32.partialorder %v4792_v16, 0.0  ;;  %v11136_v17 = vsel %vm4914_vm2, %v4828_v52, %v4930_v48 }
 0x3e3   :  { %v5020_v34 = vmul.f32 %v11136_v17, %v11136_v17 }
 0x3e4   :  { %v11116_v40 = vsel %vm4917_vm14, %v4792_v16, %v4933_v9 }
 0x3e5   :  { %v4829_v30 = vpop.f32.mrf.mxu3  ;;  %v5017_v59 = vmul.f32 %v11116_v40, %v11116_v40  ;;  %v4995_v19 = vadd.f32 %v11116_v40, %v11118_v28 }
 0x3e6   :  { %v4830_v25 = vadd.f32 %v4829_v30, %v4810_v6  ;;  %v4886_v35 = vpop.f32.mrf.mxu2 }
 0x3e7   :  { %v4794_v51 = vpop.f32.mrf.mxu1  ;;  %v5032_v24 = vadd.f32 %v5017_v59, %v5016_v15 }
 0x3e8   :  { %v4795_v31 = vadd.f32 %v4794_v51, %v4775_v37  ;;  %v4934_v39 = vmul.f32 0.2, %v4830_v25  ;;  %vm4918_vm3 = vcmp.ge.f32.partialorder %v4830_v25, 0.0  ;;  %v4851_v53 = vpop.f32.mrf.mxu0 }
 0x3ea   :  { %v4937_v18 = vmul.f32 0.2, %v4795_v31  ;;  %vm4921_vm0 = vcmp.ge.f32.partialorder %v4795_v31, 0.0  ;;  %v11141_v21 = vsel %vm4918_vm3, %v4830_v25, %v4934_v39 }
 0x3eb   :  { %v5021_v2 = vmul.f32 %v11141_v21, %v11141_v21 }
 0x3ec   :  { %v11120_v4 = vsel %vm4921_vm0, %v4795_v31, %v4937_v18 }
 0x3ed   :  { %v4832_v45 = vpop.f32.mrf.mxu3  ;;  %v5018_v56 = vmul.f32 %v11120_v4, %v11120_v4  ;;  %v4996_v14 = vadd.f32 %v4995_v19, %v11120_v4 }
 0x3ee   :  { %v4833_v7 = vadd.f32 %v4832_v45, %v4813_v41  ;;  %v4889_v51 = vpop.f32.mrf.mxu2 }
 0x3ef   :  { %v4796_v61 = vpop.f32.mrf.mxu1  ;;  %v5033_v13 = vadd.f32 %v5032_v24, %v5018_v56 }
 0x3f0   :  { %v4797_v62 = vadd.f32 %v4796_v61, %v4777_v60  ;;  %v4938_v27 = vmul.f32 0.2, %v4833_v7  ;;  %vm4922_vm4 = vcmp.ge.f32.partialorder %v4833_v7, 0.0 }
 0x3f2   :  { %v4941_v63 = vmul.f32 0.2, %v4797_v62  ;;  %vm4925_vm1 = vcmp.ge.f32.partialorder %v4797_v62, 0.0  ;;  %v11146_v29 = vsel %vm4922_vm4, %v4833_v7, %v4938_v27 }
 0x3f3   :  { %v5022_v47 = vmul.f32 %v11146_v29, %v11146_v29 }
 0x3f4   :  { %v11124_v1 = vsel %vm4925_vm1, %v4797_v62, %v4941_v63  ;;  %v4853_v62 = vpop.f32.mrf.mxu0 }
 0x3f5   :  { %v4834_v44 = vpop.f32.mrf.mxu3  ;;  %v5019_v10 = vmul.f32 %v11124_v1, %v11124_v1  ;;  %v4997_v42 = vadd.f32 %v4996_v14, %v11124_v1 }
 0x3f6   :  { %v4835_v32 = vadd.f32 %v4834_v44, %v4815_v58 }
 0x3f7   :  { %v4865_v20 = vpop.f32.mrf.mxu1  ;;  %v5034_v11 = vadd.f32 %v5033_v13, %v5019_v10  ;;  %v4998_v54 = vadd.f32 %v4997_v42, %v11136_v17  ;;  %v4891_v42 = vpop.f32.mrf.mxu2 }
 0x3f8   :  { %v4942_v36 = vmul.f32 0.2, %v4835_v32  ;;  %v4866_v46 = vadd.f32 %v4865_v20, %v4846_v3  ;;  %vm4926_vm5 = vcmp.ge.f32.partialorder %v4835_v32, 0.0 }
 0x3f9   :  { %v5035_v38 = vadd.f32 %v5034_v11, %v5020_v34  ;;  %v4999_v0 = vadd.f32 %v4998_v54, %v11141_v21 }
 0x3fa   :  { %v11151_v37 = vsel %vm4926_vm5, %v4835_v32, %v4942_v36  ;;  %v4931_v43 = vmul.f32 0.2, %v4866_v46  ;;  %vm4915_vm6 = vcmp.ge.f32.partialorder %v4866_v46, 0.0 }
 0x3fb   :  { %v5036_v5 = vadd.f32 %v5035_v38, %v5021_v2  ;;  %v5000_v55 = vadd.f32 %v4999_v0, %v11146_v29  ;;  %v5023_v26 = vmul.f32 %v11151_v37, %v11151_v37 }
 0x3fc   :  { %v11156_v31 = vsel %vm4915_vm6, %v4866_v46, %v4931_v43 }
 0x3fd   :  { %v4903_v23 = vpop.f32.mrf.mxu3  ;;  %v5037_v30 = vadd.f32 %v5036_v5, %v5022_v47  ;;  %v5001_v16 = vadd.f32 %v5000_v55, %v11151_v37  ;;  %v5024_v63 = vmul.f32 %v11156_v31, %v11156_v31 }
 0x3fe   :  { %v4904_v58 = vadd.f32 %v4903_v23, %v4884_v12 }
 0x3ff   :  { %v4867_v22 = vpop.f32.mrf.mxu1  ;;  %v5038_v9 = vadd.f32 %v5037_v30, %v5023_v26  ;;  %v5002_v3 = vadd.f32 %v5001_v16, %v11156_v31 }
 0x400   :  { %v4868_v49 = vadd.f32 %v4867_v22, %v4848_v8  ;;  %v4932_v44 = vmul.f32 0.2, %v4904_v58  ;;  %vm4916_vm9 = vcmp.ge.f32.partialorder %v4904_v58, 0.0 }
 0x401   :  { %v5039_v12 = vadd.f32 %v5038_v9, %v5024_v63 }
 0x402   :  { %v4935_v50 = vmul.f32 0.2, %v4868_v49  ;;  %vm4919_vm7 = vcmp.ge.f32.partialorder %v4868_v49, 0.0  ;;  %v11171_v10 = vsel %vm4916_vm9, %v4904_v58, %v4932_v44 }
 0x403   :  { %v5028_v22 = vmul.f32 %v11171_v10, %v11171_v10 }
 0x404   :  { %v11158_v45 = vsel %vm4919_vm7, %v4868_v49, %v4935_v50 }
 0x405   :  { %v4905_v33 = vpop.f32.mrf.mxu3  ;;  %v5025_v52 = vmul.f32 %v11158_v45, %v11158_v45  ;;  %v5003_v56 = vadd.f32 %v5002_v3, %v11158_v45 }
 0x406   :  { %v4906_v57 = vadd.f32 %v4905_v33, %v4886_v35 }
 0x407   :  { %v4870_v6 = vpop.f32.mrf.mxu1  ;;  %v5040_v24 = vadd.f32 %v5039_v12, %v5025_v52 }
 0x408   :  { %v4871_v41 = vadd.f32 %v4870_v6, %v4851_v53  ;;  %v4936_v48 = vmul.f32 0.2, %v4906_v57  ;;  %vm4920_vm11 = vcmp.ge.f32.partialorder %v4906_v57, 0.0 }
 0x40a   :  { %v4939_v60 = vmul.f32 0.2, %v4871_v41  ;;  %vm4923_vm8 = vcmp.ge.f32.partialorder %v4871_v41, 0.0  ;;  %v11178_v34 = vsel %vm4920_vm11, %v4906_v57, %v4936_v48 }
 0x40b   :  { %v5029_v2 = vmul.f32 %v11178_v34, %v11178_v34 }
 0x40c   :  { %v11160_v18 = vsel %vm4923_vm8, %v4871_v41, %v4939_v60 }
 0x40d   :  { %v4908_v61 = vpop.f32.mrf.mxu3  ;;  %v5026_v20 = vmul.f32 %v11160_v18, %v11160_v18  ;;  %v5004_v14 = vadd.f32 %v5003_v56, %v11160_v18 }
 0x40e   :  { %v4909_v15 = vadd.f32 %v4908_v61, %v4889_v51 }
 0x40f   :  { %v4872_v59 = vpop.f32.mrf.mxu1  ;;  %v5041_v39 = vadd.f32 %v5040_v24, %v5026_v20 }
 0x410   :  { %v4873_v19 = vadd.f32 %v4872_v59, %v4853_v62  ;;  %v4940_v8 = vmul.f32 0.2, %v4909_v15  ;;  %vm4924_vm12 = vcmp.ge.f32.partialorder %v4909_v15, 0.0 }
 0x412   :  { %vm4927_vm10 = vcmp.ge.f32.partialorder %v4873_v19, 0.0  ;;  %v4943_v25 = vmul.f32 0.2, %v4873_v19  ;;  %v4956_v35 = vsel %vm4924_vm12, %v4909_v15, %v4940_v8 }
 0x413   :  { %v5030_v49 = vmul.f32 %v4956_v35, %v4956_v35 }
 0x414   :  { %v11173_v13 = vsel %vm4927_vm10, %v4873_v19, %v4943_v25  ;;  %v4993_v25 = vld [vmem:[%s13140_s12] sm:$0x1] }
 0x415   :  { %v5005_v7 = vadd.f32 %v5004_v14, %v11173_v13  ;;  %v5027_v11 = vmul.f32 %v11173_v13, %v11173_v13  ;;  %v4910_v23 = vpop.f32.mrf.mxu3 }
 0x416   :  { %v4911_v54 = vadd.f32 %v4910_v23, %v4891_v42 }
 0x417   :  { %v5006_v27 = vadd.f32 %v5005_v7, %v11171_v10  ;;  %v5042_v32 = vadd.f32 %v5041_v39, %v5027_v11  ;;  %v10417_v7 = vld [vmem:[%s13141_s13] ss:$0 sm:$0xff] }
 0x418   :  { %vm4928_vm13 = vcmp.ge.f32.partialorder %v4911_v54, 0.0  ;;  %v4944_v38 = vmul.f32 0.2, %v4911_v54 }
 0x419   :  { %v5043_v0 = vadd.f32 %v5042_v32, %v5028_v22  ;;  %v5007_v36 = vadd.f32 %v5006_v27, %v11178_v34 }
 0x41a   :  { %v4960_v46 = vsel %vm4928_vm13, %v4911_v54, %v4944_v38 }
 0x41b   :  { %v5008_v53 = vadd.f32 %v5007_v36, %v4956_v35  ;;  %v5044_v5 = vadd.f32 %v5043_v0, %v5029_v2  ;;  %v5031_v47 = vmul.f32 %v4960_v46, %v4960_v46 }
 0x41d   :  { %v5009_v33 = vadd.f32 %v5008_v53, %v4960_v46  ;;  %v5045_v55 = vadd.f32 %v5044_v5, %v5030_v49 }
 0x41f   :  { %v5010_v6 = vrot.slane %v5009_v33, 4  ;;  %v5046_v43 = vadd.f32 %v5045_v55, %v5031_v47 }
 0x421   :  { %v5011_v50 = vadd.f32 %v5010_v6, %v5009_v33  ;;  %v5047_v41 = vrot.slane %v5046_v43, 4 }
 0x423   :  { %v5012_v30 = vrot.slane %v5011_v50, 2  ;;  %v5048_v60 = vadd.f32 %v5047_v41, %v5046_v43 }
 0x425   :  { %v5013_v51 = vadd.f32 %v5012_v30, %v5011_v50  ;;  %v5049_v16 = vrot.slane %v5048_v60, 2 }
 0x427   :  { %v5014_v26 = vrot.slane %v5013_v51, 1  ;;  %v5050_v58 = vadd.f32 %v5049_v16, %v5048_v60 }
 0x429   :  { %v5015_v9 = vadd.f32 %v5014_v26, %v5013_v51  ;;  %v5051_v61 = vrot.slane %v5050_v58, 1 }
 0x42b   :  { %v5052_v57 = vadd.f32 %v5051_v61, %v5050_v58  ;;  %v11186_v62 = vmul.f32 0.0078125, %v5015_v9 }
 0x42d   :  { %v5054_v3 = vmul.f32 0.0078125, %v5052_v57  ;;  %v5055_v63 = vmul.f32 %v11186_v62, %v11186_v62  ;;  %v5061_v44 = vsub.f32 %v11124_v1, %v11186_v62  ;;  %v5073_v42 = vsub.f32 %v4960_v46, %v11186_v62 }
 0x42e   :  { %v5072_v39 = vsub.f32 %v4956_v35, %v11186_v62  ;;  %v5070_v11 = vsub.f32 %v11171_v10, %v11186_v62  ;;  %v5071_v23 = vsub.f32 %v11178_v34, %v11186_v62  ;;  %v5068_v54 = vsub.f32 %v11160_v18, %v11186_v62 }
 0x42f   :  { %v5056_v52 = vsub.f32 %v5054_v3, %v5055_v63  ;;  %v5069_v22 = vsub.f32 %v11173_v13, %v11186_v62  ;;  %v5066_v27 = vsub.f32 %v11156_v31, %v11186_v62  ;;  %v5067_v32 = vsub.f32 %v11158_v45, %v11186_v62 }
 0x430   :  { %v5064_v10 = vsub.f32 %v11146_v29, %v11186_v62  ;;  %v5065_v34 = vsub.f32 %v11151_v37, %v11186_v62  ;;  %v5060_v31 = vsub.f32 %v11120_v4, %v11186_v62  ;;  %v5062_v57 = vsub.f32 %v11136_v17, %v11186_v62 }
 0x431   :  { %v5057_v59 = vmax.f32 %v5056_v52, 0.0  ;;  %v5063_v3 = vsub.f32 %v11141_v21, %v11186_v62  ;;  %v10382_v21 = vld [vmem:[%s13132_s4] sm:$0xff] }
 0x433   :  { %v5074_v15 = vadd.f32 1e-05, %v5057_v59 }
 0x435   :  { %10431 = vrsqrt.f32 %v5074_v15  ;;  %vm5081_vm15 = vweird.f32 %v5074_v15 }
 0x43b   :  { %v10432_v19 = vpop.eup %10431 }
 0x43c   :  { %v5076_v12 = vmul.f32 %v10432_v19, %v5074_v15  ;;  %vm5082_vm14 = vweird.f32 %v10432_v19 }
 0x43d   :  { %vm5083_vm0 = vmor %vm5081_vm15, %vm5082_vm14 }
 0x43e   :  { %v5077_v56 = vmul.f32 %v10432_v19, %v5076_v12  ;;  %v5059_v12 = vsub.f32 %v11116_v40, %v11186_v62  ;;  %v10384_v40 = vld [vmem:[%s13132_s4 + $0x10] sm:$0xff] }
 0x440   :  { %v5078_v20 = vmul.f32 0.5, %v5077_v56 }
 0x442   :  { %v5079_v48 = vsub.f32 1.5, %v5078_v20 }
 0x444   :  { %v5080_v24 = vmul.f32 %v10432_v19, %v5079_v48 }
 0x446   :  { %v5084_v14 = vsel %vm5083_vm0, %v10432_v19, %v5080_v24  ;;  %v5058_v19 = vsub.f32 %v11118_v28, %v11186_v62  ;;  %v10383_v24 = vld [vmem:[%s13132_s4 + $0x8] sm:$0xff]  ;;  %v10385_v28 = vld [vmem:[%s13132_s4 + $0x18] sm:$0xff]  ;;  %v10386_v62 = vld [vmem:[%s13132_s4 + $0x20] sm:$0xff] }
 0x447   :  { %v5085_v8 = vmul.f32 %v5084_v14, %v4993_v25  ;;  %v10387_v14 = vld [vmem:[%s13132_s4 + $0x28] sm:$0xff] }
 0x449   :  { %v5086_v1 = vperm.slane %v5085_v8, 0  ;;  %v10388_v8 = vld [vmem:[%s13132_s4 + $0x30] sm:$0xff] }
 0x44b   :  { %v5102_v35 = vmul.f32 %v5086_v1, %v5073_v42  ;;  %v5101_v38 = vmul.f32 %v5086_v1, %v5072_v39  ;;  %v5097_v2 = vmul.f32 %v5086_v1, %v5068_v54  ;;  %v5098_v0 = vmul.f32 %v5086_v1, %v5069_v22  ;;  %v10389_v42 = vld [vmem:[%s13132_s4 + $0x38] sm:$0xff]  ;;  %v10392_v22 = vld [vmem:[%s13132_s4 + $0x50] sm:$0xff] }
 0x44c   :  { %v5095_v18 = vmul.f32 %v5086_v1, %v5066_v27  ;;  %v5096_v36 = vmul.f32 %v5086_v1, %v5067_v32  ;;  %v5099_v49 = vmul.f32 %v5086_v1, %v5070_v11  ;;  %v5100_v55 = vmul.f32 %v5086_v1, %v5071_v23  ;;  %v10391_v11 = vld [vmem:[%s13132_s4 + $0x48] sm:$0xff] }
 0x44d   :  { %v5120_v46 = vadd.f32 %v10417_v7, %v5101_v38  ;;  %v5121_v13 = vadd.f32 %v10417_v7, %v5102_v35  ;;  %v5116_v53 = vadd.f32 %v10417_v7, %v5097_v2  ;;  %v5117_v45 = vadd.f32 %v10417_v7, %v5098_v0  ;;  %v10393_v35 = vld [vmem:[%s13132_s4 + $0x58] sm:$0xff] }
 0x44e   :  { %v5114_v5 = vadd.f32 %v10417_v7, %v5095_v18  ;;  %v5115_v33 = vadd.f32 %v10417_v7, %v5096_v36  ;;  %v5093_v29 = vmul.f32 %v5086_v1, %v5064_v10  ;;  %v5094_v6 = vmul.f32 %v5086_v1, %v5065_v34  ;;  %v10394_v34 = vld [vmem:[%s13132_s4 + $0x60] sm:$0xff]  ;;  %v10395_v18 = vld [vmem:[%s13132_s4 + $0x68] sm:$0xff] }
 0x44f   :  { %v5161_v47 = vpack.c.bf16 %v5121_v13, %v5120_v46  ;;  %v5159_v43 = vpack.c.bf16 %v5117_v45, %v5116_v53  ;;  %v5089_v30 = vmul.f32 %v5086_v1, %v5060_v31  ;;  %v5090_v60 = vmul.f32 %v5086_v1, %v5061_v44  ;;  %v10396_v13 = vld [vmem:[%s13132_s4 + $0x70] sm:$0xff]  ;;  %v10397_v53 = vld [vmem:[%s13132_s4 + $0x78] sm:$0xff] }
 0x450   :  { %v5158_v37 = vpack.c.bf16 %v5115_v33, %v5114_v5  ;;  %v5112_v50 = vadd.f32 %v10417_v7, %v5093_v29  ;;  %v5113_v41 = vadd.f32 %v10417_v7, %v5094_v6  ;;  %v5118_v51 = vadd.f32 %v10417_v7, %v5099_v49 }
 0x451   :  { %5258 = vmatpush.bf16.xpose.msra.mxu0 %v5161_v47  ;;  %v5119_v16 = vadd.f32 %v10417_v7, %v5100_v55  ;;  %v5108_v58 = vadd.f32 %v10417_v7, %v5089_v30  ;;  %v5109_v4 = vadd.f32 %v10417_v7, %v5090_v60  ;;  %v5091_v63 = vmul.f32 %v5086_v1, %v5062_v57 }
 0x452   :  { %v5157_v26 = vpack.c.bf16 %v5113_v41, %v5112_v50  ;;  %v5092_v52 = vmul.f32 %v5086_v1, %v5063_v3  ;;  %v5087_v56 = vmul.f32 %v5086_v1, %v5058_v19  ;;  %v5088_v20 = vmul.f32 %v5086_v1, %v5059_v12  ;;  %v10390_v1 = vld [vmem:[%s13132_s4 + $0x40] sm:$0xff] }
 0x453   :  { %v5155_v9 = vpack.c.bf16 %v5109_v4, %v5108_v58  ;;  %v5160_v61 = vpack.c.bf16 %v5119_v16, %v5118_v51  ;;  %v5110_v59 = vadd.f32 %v10417_v7, %v5091_v63 }
 0x454   :  { %v5111_v44 = vadd.f32 %v10417_v7, %v5092_v52  ;;  %v5106_v17 = vadd.f32 %v10417_v7, %v5087_v56  ;;  %v5107_v48 = vadd.f32 %v10417_v7, %v5088_v20 }
 0x456   :  { %v5156_v15 = vpack.c.bf16 %v5111_v44, %v5110_v59  ;;  %v5154_v25 = vpack.c.bf16 %v5107_v48, %v5106_v17 }
 0x459   :  { %5259 = vmatpush.bf16.xpose.msra.mxu0 %v5160_v61 }
 0x461   :  { %5260 = vmatpush.bf16.xpose.msra.mxu0 %v5159_v43 }
 0x469   :  { %5261 = vmatpush.bf16.xpose.msra.mxu0 %v5158_v37 }
 0x471   :  { %5262 = vmatpush.bf16.xpose.msra.mxu0 %v5157_v26 }
 0x479   :  { %5263 = vmatpush.bf16.xpose.msra.mxu0 %v5156_v15 }
 0x481   :  { %5264 = vmatpush.bf16.xpose.msra.mxu0 %v5155_v9 }
 0x489   :  { %5265 = vmatpush.bf16.xpose.msra.mxu0 %v5154_v25 }
 0x490   :  { %5266 = vmatmul.bf16.vlgmr.msra.gmra.mxu0 %v10382_v21 }
 0x4a0   :  { %5271 = vmatmul.bf16.gmra.mxu0 %v10383_v24 }
 0x4b0   :  { %5276 = vmatmul.bf16.gmra.mxu0 %v10384_v40 }
 0x4c0   :  { %5281 = vmatmul.bf16.gmra.mxu0 %v10385_v28 }
 0x4d0   :  { %5286 = vmatmul.bf16.gmra.mxu0 %v10386_v62 }
 0x4e0   :  { %5291 = vmatmul.bf16.gmra.mxu0 %v10387_v14 }
 0x4f0   :  { %5296 = vmatmul.bf16.gmra.mxu0 %v10388_v8 }
 0x500   :  { %5301 = vmatmul.bf16.gmra.mxu0 %v10389_v42 }
 0x50d   :  { %v11253_v39 = vpop.f32.mrf.mxu0 }
 0x50e   :  { %vm5347_vm13 = vcmp.ge.f32.partialorder %v11253_v39, 0.0 }
 0x510   :  { %5306 = vmatmul.bf16.gmra.mxu0 %v10390_v1 }
 0x515   :  { %v11255_v7 = vpop.f32.mrf.mxu0 }
 0x51d   :  { %v5272_v23 = vpop.f32.mrf.mxu0 }
 0x51e   :  { %v5381_v60 = vmul.f32 0.2, %v5272_v23  ;;  %vm5349_vm2 = vcmp.ge.f32.partialorder %v5272_v23, 0.0 }
 0x520   :  { %5311 = vmatmul.bf16.gmra.mxu0 %v10391_v11  ;;  %v11314_v58 = vsel %vm5349_vm2, %v5272_v23, %v5381_v60 }
 0x521   :  { %v5571_v61 = vmul.f32 %v11314_v58, %v11314_v58 }
 0x525   :  { %v5274_v54 = vpop.f32.mrf.mxu0 }
 0x526   :  { %v5382_v3 = vmul.f32 0.2, %v5274_v54  ;;  %vm5350_vm5 = vcmp.ge.f32.partialorder %v5274_v54, 0.0 }
 0x528   :  { %v11331_v17 = vsel %vm5350_vm5, %v5274_v54, %v5382_v3 }
 0x529   :  { %v5575_v14 = vmul.f32 %v11331_v17, %v11331_v17 }
 0x52d   :  { %v11263_v27 = vpop.f32.mrf.mxu0 }
 0x52e   :  { %v5383_v8 = vmul.f32 0.2, %v11263_v27  ;;  %vm5351_vm10 = vcmp.ge.f32.partialorder %v11263_v27, 0.0 }
 0x530   :  { %5316 = vmatmul.bf16.gmra.mxu0 %v10392_v22 }
 0x535   :  { %v11265_v32 = vpop.f32.mrf.mxu0 }
 0x536   :  { %vm5352_vm15 = vcmp.ge.f32.partialorder %v11265_v32, 0.0 }
 0x53d   :  { %v11270_v38 = vpop.f32.mrf.mxu0 }
 0x53e   :  { %vm5353_vm2 = vcmp.ge.f32.partialorder %v11270_v38, 0.0 }
 0x540   :  { %5321 = vmatmul.bf16.gmra.mxu0 %v10393_v35 }
 0x545   :  { %v11272_v10 = vpop.f32.mrf.mxu0 }
 0x54d   :  { %v11277_v2 = vpop.f32.mrf.mxu0 }
 0x550   :  { %5326 = vmatmul.bf16.gmra.mxu0 %v10394_v34 }
 0x555   :  { %v11279_v0 = vpop.f32.mrf.mxu0 }
 0x55d   :  { %v5292_v36 = vpop.f32.mrf.mxu0 }
 0x55e   :  { %v5389_v30 = vmul.f32 0.2, %v5292_v36  ;;  %vm5357_vm1 = vcmp.ge.f32.partialorder %v5292_v36, 0.0 }
 0x560   :  { %5331 = vmatmul.bf16.gmra.mxu0 %v10395_v18  ;;  %v11312_v26 = vsel %vm5357_vm1, %v5292_v36, %v5389_v30  ;;  %vm5355_vm1 = vcmp.ge.f32.partialorder %v11277_v2, 0.0 }
 0x561   :  { %v5572_v9 = vmul.f32 %v11312_v26, %v11312_v26  ;;  %v5533_v52 = vadd.f32 %v11312_v26, %v11314_v58 }
 0x563   :  { %v5605_v12 = vadd.f32 %v5572_v9, %v5571_v61 }
 0x565   :  { %v5294_v46 = vpop.f32.mrf.mxu0 }
 0x566   :  { %v5390_v57 = vmul.f32 0.2, %v5294_v46  ;;  %vm5358_vm4 = vcmp.ge.f32.partialorder %v5294_v46, 0.0 }
 0x568   :  { %v11327_v56 = vsel %vm5358_vm4, %v5294_v46, %v5390_v57 }
 0x569   :  { %v5576_v40 = vmul.f32 %v11327_v56, %v11327_v56  ;;  %v5538_v1 = vadd.f32 %v11327_v56, %v11331_v17 }
 0x56b   :  { %v5610_v35 = vadd.f32 %v5576_v40, %v5575_v14 }
 0x56d   :  { %v11287_v49 = vpop.f32.mrf.mxu0 }
 0x56e   :  { %v5391_v62 = vmul.f32 0.2, %v11287_v49  ;;  %vm5359_vm8 = vcmp.ge.f32.partialorder %v11287_v49, 0.0 }
 0x570   :  { %5336 = vmatmul.bf16.gmra.mxu0 %v10396_v13  ;;  %v11352_v34 = vsel %vm5359_vm8, %v11287_v49, %v5391_v62  ;;  %vm5354_vm8 = vcmp.ge.f32.partialorder %v11272_v10, 0.0 }
 0x575   :  { %v11289_v31 = vpop.f32.mrf.mxu0 }
 0x576   :  { %v5392_v49 = vmul.f32 0.2, %v11289_v31  ;;  %vm5360_vm12 = vcmp.ge.f32.partialorder %v11289_v31, 0.0 }
 0x57d   :  { %v11294_v45 = vpop.f32.mrf.mxu0 }
 0x57e   :  { %v5393_v14 = vmul.f32 0.2, %v11294_v45 }
 0x580   :  { %5341 = vmatmul.bf16.gmra.mxu0 %v10397_v53  ;;  %v11360_v53 = vsel %vm5351_vm10, %v11263_v27, %v5383_v8 }
 0x581   :  { %v5579_v60 = vmul.f32 %v11360_v53, %v11360_v53  ;;  %v5543_v3 = vadd.f32 %v11352_v34, %v11360_v53 }
 0x585   :  { %v11296_v5 = vpop.f32.mrf.mxu0 }
 0x58d   :  { %v11298_v33 = vpop.f32.mrf.mxu0 }
 0x58e   :  { %vm5363_vm4 = vcmp.ge.f32.partialorder %v11298_v33, 0.0 }
 0x595   :  { %v11300_v47 = vpop.f32.mrf.mxu0 }
 0x59d   :  { %v5312_v55 = vpop.f32.mrf.mxu0 }
 0x59e   :  { %v5397_v16 = vmul.f32 0.2, %v5312_v55  ;;  %vm5365_vm3 = vcmp.ge.f32.partialorder %v5312_v55, 0.0 }
 0x5a0   :  { %v11316_v4 = vsel %vm5365_vm3, %v5312_v55, %v5397_v16  ;;  %v5384_v16 = vmul.f32 0.2, %v11265_v32  ;;  %vm5361_vm3 = vcmp.ge.f32.partialorder %v11294_v45, 0.0 }
 0x5a1   :  { %v5573_v59 = vmul.f32 %v11316_v4, %v11316_v4  ;;  %v5534_v19 = vadd.f32 %v5533_v52, %v11316_v4  ;;  %v5387_v52 = vmul.f32 0.2, %v11277_v2 }
 0x5a3   :  { %v5606_v21 = vadd.f32 %v5605_v12, %v5573_v59  ;;  %v11382_v59 = vsel %vm5360_vm12, %v11289_v31, %v5392_v49 }
 0x5a4   :  { %v5584_v31 = vmul.f32 %v11382_v59, %v11382_v59 }
 0x5a5   :  { %v5314_v29 = vpop.f32.mrf.mxu0 }
 0x5a6   :  { %v5398_v44 = vmul.f32 0.2, %v5314_v29  ;;  %vm5366_vm7 = vcmp.ge.f32.partialorder %v5314_v29, 0.0 }
 0x5a8   :  { %v11336_v24 = vsel %vm5366_vm7, %v5314_v29, %v5398_v44  ;;  %v5580_v29 = vmul.f32 %v11352_v34, %v11352_v34 }
 0x5a9   :  { %v5577_v11 = vmul.f32 %v11336_v24, %v11336_v24  ;;  %v5539_v22 = vadd.f32 %v5538_v1, %v11336_v24 }
 0x5aa   :  { %v5615_v57 = vadd.f32 %v5580_v29, %v5579_v60 }
 0x5ab   :  { %v5611_v13 = vadd.f32 %v5610_v35, %v5577_v11  ;;  %v11427_v35 = vsel %vm5361_vm3, %v11294_v45, %v5393_v14 }
 0x5ad   :  { %v5317_v6 = vpop.f32.mrf.mxu0 }
 0x5ae   :  { %v5399_v23 = vmul.f32 0.2, %v5317_v6  ;;  %vm5367_vm11 = vcmp.ge.f32.partialorder %v5317_v6, 0.0 }
 0x5b0   :  { %v11362_v55 = vsel %vm5367_vm11, %v5317_v6, %v5399_v23  ;;  %vm5362_vm11 = vcmp.ge.f32.partialorder %v11296_v5, 0.0 }
 0x5b1   :  { %v5581_v27 = vmul.f32 %v11362_v55, %v11362_v55  ;;  %v5544_v12 = vadd.f32 %v5543_v3, %v11362_v55 }
 0x5b5   :  { %v11302_v43 = vpop.f32.mrf.mxu0 }
 0x5b6   :  { %v5400_v6 = vmul.f32 0.2, %v11302_v43  ;;  %vm5368_vm0 = vcmp.ge.f32.partialorder %v11302_v43, 0.0 }
 0x5bd   :  { %v11304_v37 = vpop.f32.mrf.mxu0 }
 0x5be   :  { %v5401_v1 = vmul.f32 0.2, %v11304_v37 }
 0x5c5   :  { %v11306_v50 = vpop.f32.mrf.mxu0 }
 0x5c6   :  { %vm5370_vm12 = vcmp.ge.f32.partialorder %v11306_v50, 0.0 }
 0x5cd   :  { %v11308_v41 = vpop.f32.mrf.mxu0 }
 0x5ce   :  { %vm5371_vm7 = vcmp.ge.f32.partialorder %v11308_v41, 0.0 }
 0x5d5   :  { %v11310_v51 = vpop.f32.mrf.mxu0 }
 0x5dd   :  { %v5332_v63 = vpop.f32.mrf.mxu0 }
 0x5de   :  { %vm5373_vm6 = vcmp.ge.f32.partialorder %v5332_v63, 0.0  ;;  %v5405_v15 = vmul.f32 0.2, %v5332_v63 }
 0x5e0   :  { %v11329_v20 = vsel %vm5373_vm6, %v5332_v63, %v5405_v15  ;;  %v5379_v63 = vmul.f32 0.2, %v11253_v39  ;;  %vm5369_vm6 = vcmp.ge.f32.partialorder %v11304_v37, 0.0 }
 0x5e1   :  { %v5535_v48 = vadd.f32 %v5534_v19, %v11329_v20  ;;  %v5574_v25 = vmul.f32 %v11329_v20, %v11329_v20  ;;  %v5616_v19 = vadd.f32 %v5615_v57, %v5581_v27  ;;  %v11440_v49 = vsel %vm5369_vm6, %v11304_v37, %v5401_v1 }
 0x5e2   :  { %v11404_v62 = vsel %vm5347_vm13, %v11253_v39, %v5379_v63  ;;  %v5589_v63 = vmul.f32 %v11440_v49, %v11440_v49  ;;  %v5396_v1 = vmul.f32 0.2, %v11300_v47  ;;  %vm5348_vm13 = vcmp.ge.f32.partialorder %v11255_v7, 0.0 }
 0x5e3   :  { %5536 = vadd.xlane.f32.xlu2 %v5535_v48  ;;  %v5607_v28 = vadd.f32 %v5606_v21, %v5574_v25  ;;  %v11391_v48 = vsel %vm5352_vm15, %v11265_v32, %v5384_v16  ;;  %v5385_v25 = vmul.f32 0.2, %v11270_v38  ;;  %v11395_v21 = vsel %vm5368_vm0, %v11302_v43, %v5400_v6 }
 0x5e4   :  { %v11407_v32 = vsel %vm5355_vm1, %v11277_v2, %v5387_v52  ;;  %v5395_v43 = vmul.f32 0.2, %v11298_v33  ;;  %v5585_v39 = vmul.f32 %v11395_v21, %v11395_v21  ;;  %v5563_v45 = vmul.f32 %v11404_v62, %v11404_v62 }
 0x5e5   :  { %5608 = vadd.xlane.f32.xlu1 %v5607_v28  ;;  %v5334_v42 = vpop.f32.mrf.mxu0  ;;  %v11418_v2 = vsel %vm5353_vm2, %v11270_v38, %v5385_v25  ;;  %v5564_v23 = vmul.f32 %v11407_v32, %v11407_v32  ;;  %v5403_v38 = vmul.f32 0.2, %v11308_v41  ;;  %v5386_v6 = vmul.f32 0.2, %v11272_v10 }
 0x5e6   :  { %vm5374_vm9 = vcmp.ge.f32.partialorder %v5334_v42, 0.0  ;;  %v5406_v54 = vmul.f32 0.2, %v5334_v42  ;;  %v5553_v57 = vadd.f32 %v11427_v35, %v11418_v2  ;;  %v5388_v25 = vmul.f32 0.2, %v11279_v0 }
 0x5e7   :  { %v11451_v27 = vsel %vm5371_vm7, %v11308_v41, %v5403_v38  ;;  %v5595_v3 = vadd.f32 %v5564_v23, %v5563_v45  ;;  %v5394_v41 = vmul.f32 0.2, %v11296_v5  ;;  %v5404_v38 = vmul.f32 0.2, %v11310_v51 }
 0x5e8   :  { %v11354_v18 = vsel %vm5374_vm9, %v5334_v42, %v5406_v54  ;;  %v5583_v42 = vmul.f32 %v11391_v48, %v11391_v48  ;;  %vm5356_vm9 = vcmp.ge.f32.partialorder %v11279_v0, 0.0  ;;  %vm5372_vm15 = vcmp.ge.f32.partialorder %v11310_v51, 0.0 }
 0x5e9   :  { %v5540_v36 = vadd.f32 %v5539_v22, %v11354_v18  ;;  %v5578_v46 = vmul.f32 %v11354_v18, %v11354_v18  ;;  %v5548_v22 = vadd.f32 %v11382_v59, %v11391_v48 }
 0x5ea   :  { %v5620_v54 = vadd.f32 %v5584_v31, %v5583_v42  ;;  %v5402_v31 = vmul.f32 0.2, %v11306_v50  ;;  %v5380_v42 = vmul.f32 0.2, %v11255_v7 }
 0x5eb   :  { %5541 = vadd.xlane.f32.xlu0 %v5540_v36  ;;  %v5612_v30 = vadd.f32 %v5611_v13, %v5578_v46  ;;  %v11430_v36 = vsel %vm5363_vm4, %v11298_v33, %v5395_v43  ;;  %v5588_v33 = vmul.f32 %v11427_v35, %v11427_v35 }
 0x5ec   :  { %v5621_v29 = vadd.f32 %v5620_v54, %v5585_v39  ;;  %v5565_v37 = vmul.f32 %v11430_v36, %v11430_v36  ;;  %v11476_v39 = vsel %vm5362_vm11, %v11296_v5, %v5394_v41  ;;  %v11484_v54 = vsel %vm5354_vm8, %v11272_v10, %v5386_v6 }
 0x5ed   :  { %5613 = vadd.xlane.f32.xlu2 %v5612_v30  ;;  %v5337_v9 = vpop.f32.mrf.mxu0  ;;  %v5549_v30 = vadd.f32 %v5548_v22, %v11395_v21  ;;  %v11489_v22 = vsel %vm5356_vm9, %v11279_v0, %v5388_v25  ;;  %v11492_v5 = vsel %vm5370_vm12, %v11306_v50, %v5402_v31  ;;  %v11499_v10 = vsel %vm5348_vm13, %v11255_v7, %v5380_v42 }
 0x5ee   :  { %vm5375_vm14 = vcmp.ge.f32.partialorder %v5337_v9, 0.0  ;;  %v5407_v61 = vmul.f32 0.2, %v5337_v9  ;;  %v5528_v45 = vadd.f32 %v11489_v22, %v11499_v10  ;;  %v5593_v6 = vmul.f32 %v11492_v5, %v11492_v5 }
 0x5f0   :  { %v11384_v44 = vsel %vm5375_vm14, %v5337_v9, %v5407_v61  ;;  %v5587_v9 = vmul.f32 %v11418_v2, %v11418_v2  ;;  %vm5364_vm14 = vcmp.ge.f32.partialorder %v11300_v47, 0.0 }
 0x5f1   :  { %v5582_v15 = vmul.f32 %v11384_v44, %v11384_v44  ;;  %v5545_v28 = vadd.f32 %v5544_v12, %v11384_v44 }
 0x5f2   :  { %v5625_v12 = vadd.f32 %v5588_v33, %v5587_v9  ;;  %v11508_v33 = vsel %vm5372_vm15, %v11310_v51, %v5404_v38  ;;  %v5591_v51 = vmul.f32 %v11484_v54, %v11484_v54 }
 0x5f3   :  { %v5617_v40 = vadd.f32 %v5616_v19, %v5582_v15  ;;  %v5554_v15 = vadd.f32 %v5553_v57, %v11440_v49  ;;  %v5566_v19 = vmul.f32 %v11451_v27, %v11451_v27  ;;  %13225 = vst [vmem:[#allocation14_spill] sm:$0xff] %v11508_v33  ;;  %v5570_v25 = vmul.f32 %v11508_v33, %v11508_v33 }
 0x5f5   :  { %5618 = vadd.xlane.f32.xlu0 %v5617_v40  ;;  %5546 = vadd.xlane.f32.xlu2 %v5545_v28  ;;  %v5339_v8 = vpop.f32.mrf.mxu0  ;;  %v5596_v28 = vadd.f32 %v5595_v3, %v5565_v37  ;;  %v5523_v37 = vadd.f32 %v11407_v32, %v11404_v62 }
 0x5f6   :  { %vm5376_vm5 = vcmp.ge.f32.partialorder %v5339_v8, 0.0  ;;  %v5408_v11 = vmul.f32 0.2, %v5339_v8 }
 0x5f8   :  { %v11433_v46 = vsel %vm5376_vm5, %v5339_v8, %v5408_v11  ;;  %v5626_v8 = vadd.f32 %v5625_v12, %v5589_v63  ;;  %v5597_v11 = vadd.f32 %v5596_v28, %v5566_v19  ;;  %v5568_v63 = vmul.f32 %v11489_v22, %v11489_v22 }
 0x5f9   :  { %v5586_v13 = vmul.f32 %v11433_v46, %v11433_v46  ;;  %v5550_v16 = vadd.f32 %v5549_v30, %v11433_v46  ;;  %v11502_v30 = vsel %vm5364_vm14, %v11300_v47, %v5396_v1  ;;  %v5592_v47 = vmul.f32 %v11476_v39, %v11476_v39  ;;  %v5521_v1 = vld [vmem:[%s13143_s15 + $0x30] sm:$0xff] }
 0x5fa   :  { %v5529_v7 = vadd.f32 %v5528_v45, %v11502_v30  ;;  %v5567_v19 = vmul.f32 %v11499_v10, %v11499_v10  ;;  %v5569_v12 = vmul.f32 %v11502_v30, %v11502_v30 }
 0x5fb   :  { %v5622_v60 = vadd.f32 %v5621_v29, %v5586_v13  ;;  %v5558_v29 = vadd.f32 %v11476_v39, %v11484_v54  ;;  %v5630_v3 = vadd.f32 %v5592_v47, %v5591_v51 }
 0x5fc   :  { %v5530_v9 = vadd.f32 %v5529_v7, %v11508_v33  ;;  %v5600_v31 = vadd.f32 %v5568_v63, %v5567_v19 }
 0x5fd   :  { %5623 = vadd.xlane.f32.xlu1 %v5622_v60  ;;  %5551 = vadd.xlane.f32.xlu2 %v5550_v16  ;;  %v5342_v61 = vpop.f32.mrf.mxu0  ;;  %v5559_v50 = vadd.f32 %v5558_v29, %v11492_v5 }
 0x5fe   :  { %vm5377_vm10 = vcmp.ge.f32.partialorder %v5342_v61, 0.0  ;;  %v5409_v52 = vmul.f32 0.2, %v5342_v61  ;;  %v5601_v28 = vadd.f32 %v5600_v31, %v5569_v12  ;;  %v5520_v31 = vld [vmem:[%s13143_s15 + $0x28] sm:$0xff] }
 0x600   :  { %v11468_v40 = vsel %vm5377_vm10, %v5342_v61, %v5409_v52  ;;  %v5524_v61 = vadd.f32 %v5523_v37, %v11430_v36  ;;  %v5631_v52 = vadd.f32 %v5630_v3, %v5593_v6  ;;  %v5522_v6 = vld [vmem:[%s13143_s15 + $0x38] sm:$0xff] }
 0x601   :  { %v5555_v14 = vadd.f32 %v5554_v15, %v11468_v40  ;;  %v5590_v43 = vmul.f32 %v11468_v40, %v11468_v40 }
 0x602   :  { %v5525_v41 = vadd.f32 %v5524_v61, %v11451_v27 }
 0x603   :  { %5556 = vadd.xlane.f32.xlu0 %v5555_v14  ;;  %v5627_v23 = vadd.f32 %v5626_v8, %v5590_v43  ;;  %v5602_v14 = vadd.f32 %v5601_v28, %v5570_v25  ;;  %v10574_v43 = vmov 0   ;;  %v5519_v8 = vld [vmem:[%s13143_s15 + $0x20] sm:$0xff] }
 0x604   :  { %10416 = vset.pattern.permute.xlu1 %v10574_v43  ;;  %10414 = vset.pattern.permute.xlu0 %v10574_v43 }
 0x605   :  { %5598 = vadd.xlane.f32.xlu2 %v5597_v11  ;;  %5628 = vadd.xlane.f32.xlu1 %v5627_v23  ;;  %v5344_v13 = vpop.f32.mrf.mxu0 }
 0x606   :  { %vm5378_vm0 = vcmp.ge.f32.partialorder %v5344_v13, 0.0  ;;  %v5410_v0 = vmul.f32 0.2, %v5344_v13  ;;  %10415 = vset.pattern.permute.xlu2 %v10574_v43 }
 0x608   :  { %v11510_v60 = vsel %vm5378_vm0, %v5344_v13, %v5410_v0 }
 0x609   :  { %v5560_v16 = vadd.f32 %v5559_v50, %v11510_v60  ;;  %v5594_v57 = vmul.f32 %v11510_v60, %v11510_v60 }
 0x60b   :  { %5561 = vadd.xlane.f32.xlu0 %v5560_v16  ;;  %v5632_v15 = vadd.f32 %v5631_v52, %v5594_v57 }
 0x60d   :  { %5531 = vadd.xlane.f32.xlu1 %v5530_v9 }
 0x613   :  { %5526 = vadd.xlane.f32.xlu0 %v5525_v41 }
 0x615   :  { %5633 = vadd.xlane.f32.xlu1 %v5632_v15 }
 0x61b   :  { %5603 = vadd.xlane.f32.xlu0 %v5602_v14 }
 0x61d   :  { %5912 = vperm.xlu2 %10415, %v5522_v6  }
 0x625   :  { %5902 = vperm.xlu2 %10415, %v5520_v31  }
 0x62e   :  { %5897 = vperm.xlu1 %10416, %v5519_v8  }
 0x62f   :  { %5907 = vperm.xlu0 %10414, %v5521_v1  }
 0x656   :  { %v5537_v42 = vpop.xlane.xlu2 %5536 }
 0x657   :  { %v11541_v11 = vmul.f32 0.001953125, %v5537_v42 }
 0x658   :  { %v5609_v23 = vpop.xlane.xlu1 %5608 }
 0x659   :  { %v5645_v38 = vmul.f32 0.001953125, %v5609_v23  ;;  %v5653_v13 = vmul.f32 %v11541_v11, %v11541_v11 }
 0x65b   :  { %v5661_v29 = vsub.f32 %v5645_v38, %v5653_v13  ;;  %v5509_v38 = vld [vmem:[%s13142_s14 + $0x10] sm:$0xff] }
 0x65d   :  { %v5669_v0 = vmax.f32 %v5661_v29, 0.0 }
 0x65e   :  { %v5542_v50 = vpop.xlane.xlu0 %5541 }
 0x65f   :  { %v5709_v45 = vadd.f32 1e-05, %v5669_v0  ;;  %v11545_v16 = vmul.f32 0.001953125, %v5542_v50 }
 0x660   :  { %v5614_v7 = vpop.xlane.xlu2 %5613 }
 0x661   :  { %10433 = vrsqrt.f32 %v5709_v45  ;;  %v5646_v47 = vmul.f32 0.001953125, %v5614_v7  ;;  %v5654_v9 = vmul.f32 %v11545_v16, %v11545_v16  ;;  %vm5741_vm2 = vweird.f32 %v5709_v45 }
 0x663   :  { %v5662_v37 = vsub.f32 %v5646_v47, %v5654_v9 }
 0x665   :  { %v5670_v51 = vmax.f32 %v5662_v37, 0.0 }
 0x667   :  { %v10434_v61 = vpop.eup %10433  ;;  %v5710_v57 = vadd.f32 1e-05, %v5670_v51 }
 0x668   :  { %v5736_v3 = vmul.f32 %v10434_v61, %v5709_v45  ;;  %v5619_v63 = vpop.xlane.xlu0 %5618  ;;  %v5547_v41 = vpop.xlane.xlu2 %5546  ;;  %vm5742_vm1 = vweird.f32 %v10434_v61 }
 0x669   :  { %10435 = vrsqrt.f32 %v5710_v57  ;;  %v11552_v52 = vmul.f32 0.001953125, %v5547_v41  ;;  %v5647_v19 = vmul.f32 0.001953125, %v5619_v63  ;;  %vm5743_vm3 = vmor %vm5741_vm2, %vm5742_vm1  ;;  %vm5751_vm5 = vweird.f32 %v5710_v57 }
 0x66a   :  { %v5737_v15 = vmul.f32 %v10434_v61, %v5736_v3 }
 0x66b   :  { %v5655_v12 = vmul.f32 %v11552_v52, %v11552_v52 }
 0x66c   :  { %v5738_v25 = vmul.f32 0.5, %v5737_v15 }
 0x66d   :  { %v5663_v28 = vsub.f32 %v5647_v19, %v5655_v12 }
 0x66e   :  { %v5739_v14 = vsub.f32 1.5, %v5738_v25 }
 0x66f   :  { %v10436_v43 = vpop.eup %10435  ;;  %v5671_v8 = vmax.f32 %v5663_v28, 0.0 }
 0x670   :  { %v5746_v42 = vmul.f32 %v10436_v43, %v5710_v57  ;;  %v5624_v1 = vpop.xlane.xlu1 %5623  ;;  %v5552_v23 = vpop.xlane.xlu2 %5551  ;;  %v5740_v13 = vmul.f32 %v10434_v61, %v5739_v14  ;;  %vm5752_vm4 = vweird.f32 %v10436_v43 }
 0x671   :  { %v11562_v29 = vmul.f32 0.001953125, %v5552_v23  ;;  %v5711_v0 = vadd.f32 1e-05, %v5671_v8  ;;  %v5648_v47 = vmul.f32 0.001953125, %v5624_v1  ;;  %vm5753_vm6 = vmor %vm5751_vm5, %vm5752_vm4 }
 0x672   :  { %v5747_v50 = vmul.f32 %v10436_v43, %v5746_v42  ;;  %v5744_v7 = vsel %vm5743_vm3, %v10434_v61, %v5740_v13  ;;  %v5510_v61 = vld [vmem:[%s13142_s14 + $0x18] sm:$0xff] }
 0x673   :  { %v5656_v9 = vmul.f32 %v11562_v29, %v11562_v29  ;;  %v5797_v37 = vmul.f32 %v5744_v7, %v5509_v38  ;;  %10437 = vrsqrt.f32 %v5711_v0  ;;  %vm5761_vm8 = vweird.f32 %v5711_v0 }
 0x674   :  { %v5748_v45 = vmul.f32 0.5, %v5747_v50 }
 0x675   :  { %5815 = vperm.xlu1 %10416, %v5797_v37   ;;  %v5664_v51 = vsub.f32 %v5648_v47, %v5656_v9  ;;  %v5511_v37 = vld [vmem:[%s13142_s14 + $0x20] sm:$0xff] }
 0x676   :  { %v5749_v6 = vsub.f32 1.5, %v5748_v45  ;;  %v5557_v3 = vpop.xlane.xlu0 %5556 }
 0x677   :  { %v11566_v63 = vmul.f32 0.001953125, %v5557_v3  ;;  %v5672_v41 = vmax.f32 %v5664_v51, 0.0 }
 0x678   :  { %v5629_v15 = vpop.xlane.xlu1 %5628  ;;  %v5750_v19 = vmul.f32 %v10436_v43, %v5749_v6 }
 0x679   :  { %v10438_v12 = vpop.eup %10437  ;;  %v5649_v25 = vmul.f32 0.001953125, %v5629_v15  ;;  %v5657_v31 = vmul.f32 %v11566_v63, %v11566_v63  ;;  %v5712_v28 = vadd.f32 1e-05, %v5672_v41  ;;  %v5599_v15 = vpop.xlane.xlu2 %5598 }
 0x67a   :  { %v5754_v14 = vsel %vm5753_vm6, %v10436_v43, %v5750_v19  ;;  %v5756_v8 = vmul.f32 %v10438_v12, %v5711_v0  ;;  %vm5762_vm7 = vweird.f32 %v10438_v12 }
 0x67b   :  { %v5665_v42 = vsub.f32 %v5649_v25, %v5657_v31  ;;  %v5798_v1 = vmul.f32 %v5754_v14, %v5510_v61  ;;  %10439 = vrsqrt.f32 %v5712_v28  ;;  %vm5763_vm9 = vmor %vm5761_vm8, %vm5762_vm7  ;;  %vm5771_vm11 = vweird.f32 %v5712_v28 }
 0x67c   :  { %v5757_v23 = vmul.f32 %v10438_v12, %v5756_v8 }
 0x67d   :  { %v5673_v57 = vmax.f32 %v5665_v42, 0.0  ;;  %5820 = vperm.xlu0 %10414, %v5798_v1   ;;  %v5643_v1 = vmul.f32 0.001953125, %v5599_v15 }
 0x67e   :  { %v5562_v38 = vpop.xlane.xlu0 %5561  ;;  %v5758_v13 = vmul.f32 0.5, %v5757_v23 }
 0x67f   :  { %v5713_v50 = vadd.f32 1e-05, %v5673_v57  ;;  %v11576_v3 = vmul.f32 0.001953125, %v5562_v38  ;;  %v5512_v38 = vld [vmem:[%s13142_s14 + $0x28] sm:$0xff] }
 0x680   :  { %v5532_v7 = vpop.xlane.xlu1 %5531  ;;  %v5759_v47 = vsub.f32 1.5, %v5758_v13 }
 0x681   :  { %v10440_v9 = vpop.eup %10439  ;;  %10441 = vrsqrt.f32 %v5713_v50  ;;  %v5658_v23 = vmul.f32 %v11576_v3, %v11576_v3  ;;  %vm5781_vm14 = vweird.f32 %v5713_v50 }
 0x682   :  { %v5760_v43 = vmul.f32 %v10438_v12, %v5759_v47  ;;  %v5766_v45 = vmul.f32 %v10440_v9, %v5712_v28  ;;  %vm5772_vm10 = vweird.f32 %v10440_v9  ;;  %v11587_v47 = vmul.f32 0.001953125, %v5532_v7  ;;  %v5513_v7 = vld [vmem:[%s13142_s14 + $0x30] sm:$0xff] }
 0x683   :  { %vm5773_vm12 = vmor %vm5771_vm11, %vm5772_vm10 }
 0x684   :  { %v5764_v51 = vsel %vm5763_vm9, %v10438_v12, %v5760_v43  ;;  %v5767_v6 = vmul.f32 %v10440_v9, %v5766_v45  ;;  %vm6019_vm9 = vcmask 523264  }
 0x685   :  { %v5799_v41 = vmul.f32 %v5764_v51, %v5511_v37 }
 0x686   :  { %v5527_v61 = vpop.xlane.xlu0 %5526  ;;  %v5768_v19 = vmul.f32 0.5, %v5767_v6 }
 0x687   :  { %v10442_v25 = vpop.eup %10441  ;;  %v11578_v31 = vmul.f32 0.001953125, %v5527_v61  ;;  %5825 = vperm.xlu1 %10416, %v5799_v41  }
 0x688   :  { %v5776_v14 = vmul.f32 %v10442_v25, %v5713_v50  ;;  %v5634_v8 = vpop.xlane.xlu1 %5633  ;;  %v5769_v42 = vsub.f32 1.5, %v5768_v19  ;;  %vm5782_vm13 = vweird.f32 %v10442_v25 }
 0x689   :  { %v5651_v0 = vmul.f32 %v11578_v31, %v11578_v31  ;;  %v5650_v12 = vmul.f32 0.001953125, %v5634_v8  ;;  %v5652_v8 = vmul.f32 %v11587_v47, %v11587_v47  ;;  %vm5783_vm15 = vmor %vm5781_vm14, %vm5782_vm13 }
 0x68a   :  { %v5777_v57 = vmul.f32 %v10442_v25, %v5776_v14  ;;  %v5770_v13 = vmul.f32 %v10440_v9, %v5769_v42 }
 0x68b   :  { %v5666_v37 = vsub.f32 %v5650_v12, %v5658_v23  ;;  %v5659_v43 = vsub.f32 %v5643_v1, %v5651_v0 }
 0x68c   :  { %v5778_v45 = vmul.f32 0.5, %v5777_v57  ;;  %v5774_v51 = vsel %vm5773_vm12, %v10440_v9, %v5770_v13 }
 0x68d   :  { %v5674_v6 = vmax.f32 %v5666_v37, 0.0  ;;  %v5800_v41 = vmul.f32 %v5774_v51, %v5512_v38  ;;  %v5667_v15 = vmax.f32 %v5659_v43, 0.0  ;;  %v5518_v43 = vld [vmem:[%s13143_s15 + $0x18] sm:$0xff] }
 0x68e   :  { %v5779_v61 = vsub.f32 1.5, %v5778_v45  ;;  %v5604_v19 = vpop.xlane.xlu0 %5603 }
 0x68f   :  { %v5714_v14 = vadd.f32 1e-05, %v5674_v6  ;;  %v5644_v33 = vmul.f32 0.001953125, %v5604_v19  ;;  %5830 = vperm.xlu2 %10415, %v5800_v41   ;;  %v5707_v28 = vadd.f32 1e-05, %v5667_v15  ;;  %v5514_v19 = vld [vmem:[%s13142_s14 + $0x38] sm:$0xff] }
 0x690   :  { %v5780_v42 = vmul.f32 %v10442_v25, %v5779_v61 }
 0x691   :  { %10443 = vrsqrt.f32 %v5714_v14  ;;  %v5660_v9 = vsub.f32 %v5644_v33, %v5652_v8  ;;  %vm5791_vm2 = vweird.f32 %v5714_v14  ;;  %vm5721_vm4 = vweird.f32 %v5707_v28 }
 0x692   :  { %v5784_v1 = vsel %vm5783_vm15, %v10442_v25, %v5780_v42  ;;  %10445 = vrsqrt.f32 %v5707_v28 }
 0x693   :  { %v5668_v0 = vmax.f32 %v5660_v9, 0.0  ;;  %v5801_v12 = vmul.f32 %v5784_v1, %v5513_v7  ;;  %v5507_v7 = vld [vmem:[%s13142_s14] sm:$0xff] }
 0x694   :  { %v5515_v9 = vld [vmem:[%s13143_s15] sm:$0xff] }
 0x695   :  { %v5708_v23 = vadd.f32 1e-05, %v5668_v0  ;;  %5835 = vperm.xlu1 %10416, %v5801_v12  }
 0x697   :  { %v10444_v57 = vpop.eup %10443  ;;  %10447 = vrsqrt.f32 %v5708_v23  ;;  %vm5731_vm7 = vweird.f32 %v5708_v23 }
 0x698   :  { %v10446_v38 = vpop.eup %10445  ;;  %v5786_v13 = vmul.f32 %v10444_v57, %v5714_v14  ;;  %vm5792_vm0 = vweird.f32 %v10444_v57 }
 0x699   :  { %v5716_v37 = vmul.f32 %v10446_v38, %v5707_v28  ;;  %vm5722_vm1 = vweird.f32 %v10446_v38  ;;  %vm5793_vm3 = vmor %vm5791_vm2, %vm5792_vm0  ;;  %v5516_v28 = vld [vmem:[%s13143_s15 + $0x8] sm:$0xff] }
 0x69a   :  { %v5787_v50 = vmul.f32 %v10444_v57, %v5786_v13  ;;  %vm5723_vm5 = vmor %vm5721_vm4, %vm5722_vm1 }
 0x69b   :  { %v5717_v45 = vmul.f32 %v10446_v38, %v5716_v37 }
 0x69c   :  { %v5788_v51 = vmul.f32 0.5, %v5787_v50  ;;  %v5517_v50 = vld [vmem:[%s13143_s15 + $0x10] sm:$0xff] }
 0x69d   :  { %v10448_v33 = vpop.eup %10447  ;;  %5892 = vperm.xlu1 %10416, %v5518_v43   ;;  %v5718_v25 = vmul.f32 0.5, %v5717_v45 }
 0x69e   :  { %v5789_v6 = vsub.f32 1.5, %v5788_v51  ;;  %v5726_v41 = vmul.f32 %v10448_v33, %v5708_v23  ;;  %vm5732_vm6 = vweird.f32 %v10448_v33  ;;  %v5913_v51 = vpop.permute.xlu2 %5912  ;;  %v5696_v23 = vsub.f32 %v11382_v59, %v11562_v29 }
 0x69f   :  { %v5719_v15 = vsub.f32 1.5, %v5718_v25  ;;  %vm5733_vm8 = vmor %vm5731_vm7, %vm5732_vm6  ;;  %v5694_v59 = vsub.f32 %v11384_v44, %v11552_v52 }
 0x6a0   :  { %v5727_v61 = vmul.f32 %v10448_v33, %v5726_v41  ;;  %v5790_v8 = vmul.f32 %v10444_v57, %v5789_v6  ;;  %v5898_v25 = vpop.permute.xlu1 %5897 }
 0x6a1   :  { %v5720_v42 = vmul.f32 %v10446_v38, %v5719_v15 }
 0x6a2   :  { %v5794_v1 = vsel %vm5793_vm3, %v10444_v57, %v5790_v8  ;;  %v5728_v12 = vmul.f32 0.5, %v5727_v61  ;;  %v5508_v57 = vld [vmem:[%s13142_s14 + $0x8] sm:$0xff]  ;;  %v5695_v61 = vsub.f32 %v11391_v48, %v11562_v29  ;;  %v5693_v48 = vsub.f32 %v11362_v55, %v11552_v52 }
 0x6a3   :  { %v5802_v14 = vmul.f32 %v5794_v1, %v5514_v19  ;;  %v5724_v0 = vsel %vm5723_vm5, %v10446_v38, %v5720_v42  ;;  %v5697_v19 = vsub.f32 %v11395_v21, %v11562_v29  ;;  %v5691_v1 = vsub.f32 %v11360_v53, %v11552_v52 }
 0x6a4   :  { %v5795_v13 = vmul.f32 %v5724_v0, %v5507_v7  ;;  %v5729_v37 = vsub.f32 1.5, %v5728_v12 }
 0x6a5   :  { %5877 = vperm.xlu1 %10416, %v5515_v9   ;;  %5840 = vperm.xlu2 %10415, %v5802_v14   ;;  %v5692_v14 = vsub.f32 %v11352_v34, %v11552_v52 }
 0x6a6   :  { %5805 = vperm.xlu0 %10414, %v5795_v13   ;;  %v5730_v43 = vmul.f32 %v10448_v33, %v5729_v37  ;;  %v5903_v6 = vpop.permute.xlu2 %5902 }
 0x6a8   :  { %v5734_v38 = vsel %vm5733_vm8, %v10448_v33, %v5730_v43  ;;  %v5698_v33 = vsub.f32 %v11433_v46, %v11562_v29 }
 0x6a9   :  { %v5796_v45 = vmul.f32 %v5734_v38, %v5508_v57 }
 0x6ad   :  { %5887 = vperm.xlu2 %10415, %v5517_v50  }
 0x6ae   :  { %5882 = vperm.xlu0 %10414, %v5516_v28  }
 0x6b5   :  { %5810 = vperm.xlu2 %10415, %v5796_v45   ;;  %v5908_v45 = vpop.permute.xlu0 %5907 }
 0x6e7   :  { %v11615_v41 = vpop.permute.xlu1 %5815 }
 0x6e9   :  { %v5831_v15 = vpop.permute.xlu2 %5830 }
 0x6ea   :  { %v5863_v8 = vmul.f32 %v5831_v15, %v5695_v61  ;;  %v5864_v7 = vmul.f32 %v5831_v15, %v5696_v23  ;;  %v5865_v42 = vmul.f32 %v5831_v15, %v5697_v19  ;;  %v5866_v9 = vmul.f32 %v5831_v15, %v5698_v33 }
 0x6eb   :  { %v5703_v15 = vsub.f32 %v11484_v54, %v11576_v3  ;;  %v5705_v61 = vsub.f32 %v11492_v5, %v11576_v3  ;;  %v5706_v23 = vsub.f32 %v11510_v60, %v11576_v3  ;;  %v5701_v54 = vsub.f32 %v11440_v49, %v11566_v63 }
 0x6ec   :  { %v11633_v13 = vadd.f32 %v5903_v6, %v5863_v8  ;;  %v11635_v37 = vadd.f32 %v5903_v6, %v5864_v7  ;;  %v11637_v50 = vadd.f32 %v5903_v6, %v5865_v42  ;;  %v11639_v53 = vadd.f32 %v5903_v6, %v5866_v9 }
 0x6ed   :  { %v5699_v42 = vsub.f32 %v11418_v2, %v11566_v63  ;;  %v5700_v9 = vsub.f32 %v11427_v35, %v11566_v63  ;;  %v5683_v5 = vsub.f32 %v11314_v58, %v11541_v11  ;;  %v5684_v60 = vsub.f32 %v11312_v26, %v11541_v11 }
 0x6ee   :  { %v5686_v2 = vsub.f32 %v11329_v20, %v11541_v11  ;;  %v5688_v20 = vsub.f32 %v11327_v56, %v11545_v16 }
 0x6ef   :  { %v5821_v58 = vpop.permute.xlu0 %5820 }
 0x6f9   :  { %v5826_v21 = vpop.permute.xlu1 %5825 }
 0x6fa   :  { %v5859_v0 = vmul.f32 %v5826_v21, %v5691_v1  ;;  %v5860_v12 = vmul.f32 %v5826_v21, %v5692_v14  ;;  %v5861_v46 = vmul.f32 %v5826_v21, %v5693_v48  ;;  %v5862_v29 = vmul.f32 %v5826_v21, %v5694_v59 }
 0x6fc   :  { %v11641_v34 = vadd.f32 %v5898_v25, %v5859_v0  ;;  %v11643_v28 = vadd.f32 %v5898_v25, %v5860_v12  ;;  %v11645_v55 = vadd.f32 %v5898_v25, %v5861_v46  ;;  %v11647_v44 = vadd.f32 %v5898_v25, %v5862_v29 }
 0x6fd   :  { %v5704_v25 = vsub.f32 %v11476_v39, %v11576_v3  ;;  %v5702_v39 = vsub.f32 %v11468_v40, %v11566_v63  ;;  %v5685_v3 = vsub.f32 %v11316_v4, %v11541_v11  ;;  %v5687_v4 = vsub.f32 %v11331_v17, %v11545_v16 }
 0x6fe   :  { %v5971_v52 = vpack.c.bf16 %v11633_v13, %v11641_v34  ;;  %v5972_v43 = vpack.c.bf16 %v11635_v37, %v11643_v28  ;;  %v5973_v57 = vpack.c.bf16 %v11637_v50, %v11645_v55  ;;  %v5974_v38 = vpack.c.bf16 %v11639_v53, %v11647_v44  ;;  %v10401_v53 = vld [vmem:[%s13133_s5 + $0x18] sm:$0xff]  ;;  %v10402_v44 = vld [vmem:[%s13133_s5 + $0x20] sm:$0xff] }
 0x6ff   :  { %v5841_v6 = vpop.permute.xlu2 %5840  ;;  %v5689_v11 = vsub.f32 %v11336_v24, %v11545_v16  ;;  %v5690_v29 = vsub.f32 %v11354_v18, %v11545_v16  ;;  %v5852_v17 = vmul.f32 %v11615_v41, %v5684_v60  ;;  %v5855_v56 = vmul.f32 %v5821_v58, %v5687_v4 }
 0x700   :  { %v5871_v19 = vmul.f32 %v5841_v6, %v5703_v15  ;;  %v5872_v33 = vmul.f32 %v5841_v6, %v5704_v25  ;;  %v5873_v8 = vmul.f32 %v5841_v6, %v5705_v61  ;;  %v5874_v7 = vmul.f32 %v5841_v6, %v5706_v23 }
 0x701   :  { %v5851_v61 = vmul.f32 %v11615_v41, %v5683_v5  ;;  %v5853_v23 = vmul.f32 %v11615_v41, %v5685_v3  ;;  %v5858_v24 = vmul.f32 %v5821_v58, %v5690_v29  ;;  %v5854_v18 = vmul.f32 %v11615_v41, %v5686_v2 }
 0x702   :  { %v5943_v59 = vadd.f32 %v5913_v51, %v5871_v19  ;;  %v5944_v21 = vadd.f32 %v5913_v51, %v5872_v33  ;;  %v5945_v40 = vadd.f32 %v5913_v51, %v5873_v8  ;;  %v11681_v63 = vadd.f32 %v5913_v51, %v5874_v7 }
 0x703   :  { %v5856_v19 = vmul.f32 %v5821_v58, %v5688_v20  ;;  %v5857_v33 = vmul.f32 %v5821_v58, %v5689_v11  ;;  %v5675_v13 = vsub.f32 %v11404_v62, %v11578_v31  ;;  %v5676_v34 = vsub.f32 %v11407_v32, %v11578_v31 }
 0x704   :  { %v5677_v37 = vsub.f32 %v11430_v36, %v11578_v31  ;;  %v5678_v28 = vsub.f32 %v11451_v27, %v11578_v31  ;;  %v5680_v62 = vsub.f32 %v11489_v22, %v11587_v47  ;;  %v5681_v32 = vsub.f32 %v11502_v30, %v11587_v47 }
 0x707   :  { %v5836_v1 = vpop.permute.xlu1 %5835  ;;  %v5888_v51 = vpop.permute.xlu2 %5887 }
 0x708   :  { %v5867_v35 = vmul.f32 %v5836_v1, %v5699_v42  ;;  %v5868_v14 = vmul.f32 %v5836_v1, %v5700_v9  ;;  %v5869_v48 = vmul.f32 %v5836_v1, %v5701_v54  ;;  %v5870_v49 = vmul.f32 %v5836_v1, %v5702_v39 }
 0x709   :  { %v5923_v16 = vadd.f32 %v5888_v51, %v5851_v61  ;;  %v5924_v8 = vadd.f32 %v5888_v51, %v5852_v17  ;;  %v5925_v7 = vadd.f32 %v5888_v51, %v5853_v23  ;;  %v5926_v60 = vadd.f32 %v5888_v51, %v5854_v18 }
 0x70a   :  { %v5939_v0 = vadd.f32 %v5908_v45, %v5867_v35  ;;  %v5940_v12 = vadd.f32 %v5908_v45, %v5868_v14  ;;  %v5941_v26 = vadd.f32 %v5908_v45, %v5869_v48  ;;  %v11683_v46 = vadd.f32 %v5908_v45, %v5870_v49  ;;  %v13226_v48 = vld [vmem:[#allocation14_spill] sm:$0xff] }
 0x70b   :  { %v5679_v14 = vsub.f32 %v11499_v10, %v11587_v47  ;;  %v5682_v36 = vsub.f32 %v13226_v48, %v11587_v47  ;;  %v10398_v47 = vld [vmem:[%s13133_s5] sm:$0xff] }
 0x70c   :  { %v5975_v6 = vpack.c.bf16 %v5943_v59, %v5939_v0  ;;  %v5976_v15 = vpack.c.bf16 %v5944_v21, %v5940_v12  ;;  %v5977_v25 = vpack.c.bf16 %v5945_v40, %v5941_v26  ;;  %v5978_v45 = vpack.c.bf16 %v11681_v63, %v11683_v46  ;;  %v10400_v63 = vld [vmem:[%s13133_s5 + $0x10] sm:$0xff] }
 0x70d   :  { %v10404_v46 = vld [vmem:[%s13133_s5 + $0x30] sm:$0xff] }
 0x70e   :  { %6048 = vmatpush.bf16.msra.mxu1 %v5975_v6  ;;  %6097 = vmatpush.bf16.msra.mxu2 %v5976_v15  ;;  %v10399_v6 = vld [vmem:[%s13133_s5 + $0x8] sm:$0xff]  ;;  %v10405_v15 = vld [vmem:[%s13133_s5 + $0x38] sm:$0xff] }
 0x70f   :  { %6146 = vmatpush.bf16.msra.mxu3 %v5977_v25  ;;  %v5893_v42 = vpop.permute.xlu1 %5892 }
 0x710   :  { %v5927_v9 = vadd.f32 %v5893_v42, %v5855_v56  ;;  %v5928_v54 = vadd.f32 %v5893_v42, %v5856_v19  ;;  %v5929_v39 = vadd.f32 %v5893_v42, %v5857_v33  ;;  %v5930_v5 = vadd.f32 %v5893_v42, %v5858_v24 }
 0x712   :  { %6049 = vmatpush.bf16.msra.mxu1 %v5971_v52  ;;  %6098 = vmatpush.bf16.msra.mxu2 %v5972_v43  ;;  %v5967_v3 = vpack.c.bf16 %v5927_v9, %v5923_v16  ;;  %v5968_v41 = vpack.c.bf16 %v5928_v54, %v5924_v8  ;;  %v5969_v2 = vpack.c.bf16 %v5929_v39, %v5925_v7  ;;  %v5811_v52 = vpop.permute.xlu2 %5810 }
 0x713   :  { %6147 = vmatpush.bf16.msra.mxu3 %v5973_v57  ;;  %v5970_v1 = vpack.c.bf16 %v5930_v5, %v5926_v60  ;;  %v5847_v49 = vmul.f32 %v5811_v52, %v5679_v14  ;;  %v5848_v59 = vmul.f32 %v5811_v52, %v5680_v62  ;;  %v5849_v27 = vmul.f32 %v5811_v52, %v5681_v32 }
 0x714   :  { %v5850_v31 = vmul.f32 %v5811_v52, %v5682_v36 }
 0x716   :  { %6050 = vmatpush.bf16.msra.mxu1 %v5967_v3  ;;  %6099 = vmatpush.bf16.msra.mxu2 %v5968_v41 }
 0x717   :  { %6148 = vmatpush.bf16.msra.mxu3 %v5969_v2  ;;  %v5878_v21 = vpop.permute.xlu1 %5877 }
 0x718   :  { %v5806_v35 = vpop.permute.xlu0 %5805 }
 0x719   :  { %v5843_v50 = vmul.f32 %v5806_v35, %v5675_v13  ;;  %v5844_v55 = vmul.f32 %v5806_v35, %v5676_v34  ;;  %v5845_v43 = vmul.f32 %v5806_v35, %v5677_v37  ;;  %v5846_v57 = vmul.f32 %v5806_v35, %v5678_v28 }
 0x71b   :  { %v5915_v58 = vadd.f32 %v5878_v21, %v5843_v50  ;;  %v5916_v0 = vadd.f32 %v5878_v21, %v5844_v55  ;;  %v5917_v12 = vadd.f32 %v5878_v21, %v5845_v43  ;;  %v5918_v26 = vadd.f32 %v5878_v21, %v5846_v57 }
 0x720   :  { %v5883_v40 = vpop.permute.xlu0 %5882 }
 0x721   :  { %v5919_v10 = vadd.f32 %v5883_v40, %v5847_v49  ;;  %v5920_v4 = vadd.f32 %v5883_v40, %v5848_v59  ;;  %v5921_v20 = vadd.f32 %v5883_v40, %v5849_v27  ;;  %v5922_v22 = vadd.f32 %v5883_v40, %v5850_v31 }
 0x723   :  { %v5963_v11 = vpack.c.bf16 %v5919_v10, %v5915_v58  ;;  %v5964_v29 = vpack.c.bf16 %v5920_v4, %v5916_v0  ;;  %v5965_v30 = vpack.c.bf16 %v5921_v20, %v5917_v12  ;;  %v5966_v51 = vpack.c.bf16 %v5922_v22, %v5918_v26 }
 0x725   :  { %6051 = vmatpush.bf16.msra.mxu1 %v5963_v11  ;;  %6100 = vmatpush.bf16.msra.mxu2 %v5964_v29 }
 0x726   :  { %6149 = vmatpush.bf16.msra.mxu3 %v5965_v30 }
 0x728   :  { %9758 = vmatmul.msk.bf16.vlgmr.msra.gmra.mxu1 %vm6019_vm9, %v10398_v47  ;;  %9766 = vmatmul.msk.bf16.vlgmr.msra.gmra.mxu2 %vm6019_vm9, %v10398_v47 }
 0x729   :  { %6195 = vmatpush.bf16.msrb.mxu1 %v5978_v45  ;;  %9774 = vmatmul.msk.bf16.vlgmr.msra.gmra.mxu3 %vm6019_vm9, %v10398_v47 }
 0x72d   :  { %6196 = vmatpush.bf16.msrb.mxu1 %v5974_v38  ;;  %v10403_v38 = vld [vmem:[%s13133_s5 + $0x28] sm:$0xff] }
 0x731   :  { %6197 = vmatpush.bf16.msrb.mxu1 %v5970_v1 }
 0x735   :  { %6198 = vmatpush.bf16.msrb.mxu1 %v5966_v51 }
 0x738   :  { %9759 = vmatmul.msk.bf16.gmra.mxu1 %vm6019_vm9, %v10399_v6  ;;  %9767 = vmatmul.msk.bf16.gmra.mxu2 %vm6019_vm9, %v10399_v6 }
 0x739   :  { %9775 = vmatmul.msk.bf16.gmra.mxu3 %vm6019_vm9, %v10399_v6 }
 0x748   :  { %9760 = vmatmul.msk.bf16.gmra.mxu1 %vm6019_vm9, %v10400_v63  ;;  %9768 = vmatmul.msk.bf16.gmra.mxu2 %vm6019_vm9, %v10400_v63 }
 0x749   :  { %9776 = vmatmul.msk.bf16.gmra.mxu3 %vm6019_vm9, %v10400_v63 }
 0x758   :  { %9761 = vmatmul.msk.bf16.gmra.mxu1 %vm6019_vm9, %v10401_v53  ;;  %9769 = vmatmul.msk.bf16.gmra.mxu2 %vm6019_vm9, %v10401_v53 }
 0x759   :  { %9777 = vmatmul.msk.bf16.gmra.mxu3 %vm6019_vm9, %v10401_v53 }
 0x768   :  { %9762 = vmatmul.msk.bf16.gmra.mxu1 %vm6019_vm9, %v10402_v44  ;;  %9770 = vmatmul.msk.bf16.gmra.mxu2 %vm6019_vm9, %v10402_v44 }
 0x769   :  { %9778 = vmatmul.msk.bf16.gmra.mxu3 %vm6019_vm9, %v10402_v44 }
 0x778   :  { %9763 = vmatmul.msk.bf16.gmra.mxu1 %vm6019_vm9, %v10403_v38  ;;  %9771 = vmatmul.msk.bf16.gmra.mxu2 %vm6019_vm9, %v10403_v38 }
 0x779   :  { %9779 = vmatmul.msk.bf16.gmra.mxu3 %vm6019_vm9, %v10403_v38 }
 0x788   :  { %9764 = vmatmul.msk.bf16.gmra.mxu1 %vm6019_vm9, %v10404_v46  ;;  %9772 = vmatmul.msk.bf16.gmra.mxu2 %vm6019_vm9, %v10404_v46 }
 0x789   :  { %9780 = vmatmul.msk.bf16.gmra.mxu3 %vm6019_vm9, %v10404_v46 }
 0x798   :  { %9765 = vmatmul.msk.bf16.gmra.mxu1 %vm6019_vm9, %v10405_v15  ;;  %9773 = vmatmul.msk.bf16.gmra.mxu2 %vm6019_vm9, %v10405_v15 }
 0x799   :  { %9781 = vmatmul.msk.bf16.gmra.mxu3 %vm6019_vm9, %v10405_v15 }
 0x7a5   :  { %v6053_v25 = vpop.f32.mrf.mxu1 }
 0x7a6   :  { %v6304_v48 = vmul.f32 0.2, %v6053_v25  ;;  %vm6240_vm11 = vcmp.ge.f32.partialorder %v6053_v25, 0.0 }
 0x7a8   :  { %9782 = vmatmul.msk.bf16.vlgmr.msrb.gmra.mxu1 %vm6019_vm9, %v10398_v47  ;;  %v11846_v31 = vsel %vm6240_vm11, %v6053_v25, %v6304_v48 }
 0x7a9   :  { %13228 = vst [vmem:[#allocation15_spill] sm:$0xff] %v11846_v31  ;;  %v6636_v12 = vmul.f32 %v11846_v31, %v11846_v31 }
 0x7ab   :  { %v6102_v8 = vpop.f32.mrf.mxu2 }
 0x7ac   :  { %v6151_v42 = vpop.f32.mrf.mxu3  ;;  %v6305_v32 = vmul.f32 0.2, %v6102_v8  ;;  %vm6241_vm10 = vcmp.ge.f32.partialorder %v6102_v8, 0.0 }
 0x7ad   :  { %v6055_v45 = vpop.f32.mrf.mxu1  ;;  %v6306_v59 = vmul.f32 0.2, %v6151_v42  ;;  %vm6242_vm12 = vcmp.ge.f32.partialorder %v6151_v42, 0.0 }
 0x7ae   :  { %v11842_v49 = vsel %vm6241_vm10, %v6102_v8, %v6305_v32  ;;  %v6308_v21 = vmul.f32 0.2, %v6055_v45  ;;  %vm6244_vm13 = vcmp.ge.f32.partialorder %v6055_v45, 0.0 }
 0x7af   :  { %13227 = vst [vmem:[#allocation14_spill] sm:$0xff] %v11842_v49  ;;  %v6637_v0 = vmul.f32 %v11842_v49, %v11842_v49  ;;  %v6568_v26 = vadd.f32 %v11842_v49, %v11846_v31  ;;  %v11856_v10 = vsel %vm6242_vm12, %v6151_v42, %v6306_v59 }
 0x7b0   :  { %13229 = vst [vmem:[#allocation16_spill] sm:$0xff] %v11856_v10  ;;  %v11858_v20 = vsel %vm6244_vm13, %v6055_v45, %v6308_v21  ;;  %v6638_v47 = vmul.f32 %v11856_v10, %v11856_v10 }
 0x7b1   :  { %13230 = vst [vmem:[#allocation17_spill] sm:$0xff] %v11858_v20  ;;  %v6700_v51 = vadd.f32 %v6637_v0, %v6636_v12 }
 0x7b3   :  { %v6104_v9 = vpop.f32.mrf.mxu2 }
 0x7b4   :  { %v6153_v39 = vpop.f32.mrf.mxu3  ;;  %v6309_v40 = vmul.f32 0.2, %v6104_v9  ;;  %vm6245_vm14 = vcmp.ge.f32.partialorder %v6104_v9, 0.0 }
 0x7b5   :  { %v11779_v61 = vpop.f32.mrf.mxu1  ;;  %v6310_v4 = vmul.f32 0.2, %v6153_v39  ;;  %vm6246_vm15 = vcmp.ge.f32.partialorder %v6153_v39, 0.0 }
 0x7b6   :  { %v11860_v22 = vsel %vm6245_vm14, %v6104_v9, %v6309_v40  ;;  %v6312_v29 = vmul.f32 0.2, %v11779_v61  ;;  %vm6248_vm1 = vcmp.ge.f32.partialorder %v11779_v61, 0.0 }
 0x7b7   :  { %13231 = vst [vmem:[#allocation18_spill] sm:$0xff] %v11860_v22  ;;  %v6585_v32 = vadd.f32 %v11860_v22, %v11858_v20 }
 0x7b8   :  { %9783 = vmatmul.msk.bf16.gmra.mxu1 %vm6019_vm9, %v10399_v6  ;;  %v6652_v6 = vmul.f32 %v11858_v20, %v11858_v20  ;;  %v11885_v8 = vsel %vm6248_vm1, %v11779_v61, %v6312_v29 }
 0x7b9   :  { %13234 = vst [vmem:[#allocation21_spill] sm:$0xff] %v11885_v8  ;;  %v6668_v40 = vmul.f32 %v11885_v8, %v11885_v8 }
 0x7bb   :  { %v6107_v5 = vpop.f32.mrf.mxu2 }
 0x7bc   :  { %v11809_v3 = vpop.f32.mrf.mxu3  ;;  %v6313_v11 = vmul.f32 0.2, %v6107_v5  ;;  %vm6249_vm0 = vcmp.ge.f32.partialorder %v6107_v5, 0.0 }
 0x7bd   :  { %v11782_v17 = vpop.f32.mrf.mxu1  ;;  %v6314_v45 = vmul.f32 0.2, %v11809_v3  ;;  %vm6250_vm4 = vcmp.ge.f32.partialorder %v11809_v3, 0.0 }
 0x7be   :  { %v11880_v25 = vsel %vm6249_vm0, %v6107_v5, %v6313_v11  ;;  %vm6252_vm3 = vcmp.ge.f32.partialorder %v11782_v17, 0.0 }
 0x7bf   :  { %13233 = vst [vmem:[#allocation20_spill] sm:$0xff] %v11880_v25  ;;  %v6602_v61 = vadd.f32 %v11880_v25, %v11885_v8  ;;  %v11910_v0 = vsel %vm6250_vm4, %v11809_v3, %v6314_v45 }
 0x7c0   :  { %13237 = vst [vmem:[#allocation24_spill] sm:$0xff] %v11910_v0 }
 0x7c3   :  { %v6109_v2 = vpop.f32.mrf.mxu2 }
 0x7c4   :  { %v11814_v1 = vpop.f32.mrf.mxu3  ;;  %v6317_v30 = vmul.f32 0.2, %v6109_v2  ;;  %vm6253_vm2 = vcmp.ge.f32.partialorder %v6109_v2, 0.0 }
 0x7c5   :  { %v11784_v23 = vpop.f32.mrf.mxu1  ;;  %v6318_v9 = vmul.f32 0.2, %v11814_v1  ;;  %vm6254_vm5 = vcmp.ge.f32.partialorder %v11814_v1, 0.0 }
 0x7c6   :  { %v11888_v42 = vsel %vm6253_vm2, %v6109_v2, %v6317_v30  ;;  %v6669_v2 = vmul.f32 %v11880_v25, %v11880_v25  ;;  %vm6256_vm6 = vcmp.ge.f32.partialorder %v11784_v23, 0.0 }
 0x7c7   :  { %13235 = vst [vmem:[#allocation22_spill] sm:$0xff] %v11888_v42  ;;  %v6685_v12 = vmul.f32 %v11888_v42, %v11888_v42 }
 0x7c8   :  { %9784 = vmatmul.msk.bf16.gmra.mxu1 %vm6019_vm9, %v10400_v63  ;;  %v6653_v63 = vmul.f32 %v11860_v22, %v11860_v22  ;;  %v6734_v30 = vadd.f32 %v6669_v2, %v6668_v40 }
 0x7ca   :  { %v6717_v48 = vadd.f32 %v6653_v63, %v6652_v6 }
 0x7cb   :  { %v11818_v13 = vpop.f32.mrf.mxu2 }
 0x7cc   :  { %v11822_v37 = vpop.f32.mrf.mxu3  ;;  %vm6257_vm0 = vcmp.ge.f32.partialorder %v11818_v13, 0.0 }
 0x7cd   :  { %v11787_v56 = vpop.f32.mrf.mxu1  ;;  %vm6258_vm1 = vcmp.ge.f32.partialorder %v11822_v37, 0.0 }
 0x7ce   :  { %vm6260_vm7 = vcmp.ge.f32.partialorder %v11787_v56, 0.0 }
 0x7d3   :  { %v11824_v28 = vpop.f32.mrf.mxu2 }
 0x7d4   :  { %v11828_v50 = vpop.f32.mrf.mxu3  ;;  %vm6261_vm4 = vcmp.ge.f32.partialorder %v11824_v28, 0.0 }
 0x7d5   :  { %v11789_v19 = vpop.f32.mrf.mxu1 }
 0x7d6   :  { %v6328_v11 = vmul.f32 0.2, %v11789_v19  ;;  %vm6264_vm8 = vcmp.ge.f32.partialorder %v11789_v19, 0.0 }
 0x7d8   :  { %9785 = vmatmul.msk.bf16.gmra.mxu1 %vm6019_vm9, %v10401_v53  ;;  %v11870_v53 = vsel %vm6246_vm15, %v6153_v39, %v6310_v4  ;;  %v11891_v39 = vadd.f32 %v6700_v51, %v6638_v47  ;;  %v11917_v4 = vsel %vm6254_vm5, %v11814_v1, %v6318_v9  ;;  %v11929_v51 = vadd.f32 %v6602_v61, %v11910_v0 }
 0x7d9   :  { %13232 = vst [vmem:[#allocation19_spill] sm:$0xff] %v11870_v53  ;;  %v6654_v5 = vmul.f32 %v11870_v53, %v11870_v53  ;;  %v11926_v3 = vadd.f32 %v6585_v32, %v11870_v53  ;;  %v6670_v1 = vmul.f32 %v11910_v0, %v11910_v0  ;;  %v6686_v9 = vmul.f32 %v11917_v4, %v11917_v4 }
 0x7da   :  { %13238 = vst [vmem:[#allocation25_spill] sm:$0xff] %v11917_v4  ;;  %v11948_v61 = vsel %vm6264_vm8, %v11789_v19, %v6328_v11  ;;  %v6326_v0 = vmul.f32 0.2, %v11828_v50  ;;  %vm6262_vm5 = vcmp.ge.f32.partialorder %v11828_v50, 0.0 }
 0x7db   :  { %v11830_v55 = vpop.f32.mrf.mxu2  ;;  %v11933_v47 = vadd.f32 %v6717_v48, %v6654_v5 }
 0x7dc   :  { %v11834_v57 = vpop.f32.mrf.mxu3  ;;  %v6329_v31 = vmul.f32 0.2, %v11830_v55 }
 0x7dd   :  { %v11792_v33 = vpop.f32.mrf.mxu1 }
 0x7de   :  { %v6332_v5 = vmul.f32 0.2, %v11792_v33 }
 0x7e3   :  { %v11838_v62 = vpop.f32.mrf.mxu2 }
 0x7e4   :  { %v11840_v36 = vpop.f32.mrf.mxu3 }
 0x7e5   :  { %v11794_v24 = vpop.f32.mrf.mxu1 }
 0x7e6   :  { %v6336_v48 = vmul.f32 0.2, %v11794_v24  ;;  %vm6272_vm10 = vcmp.ge.f32.partialorder %v11794_v24, 0.0 }
 0x7e8   :  { %9786 = vmatmul.msk.bf16.gmra.mxu1 %vm6019_vm9, %v10402_v44  ;;  %v6316_v44 = vmul.f32 0.2, %v11782_v17 }
 0x7ea   :  { %v11903_v59 = vsel %vm6252_vm3, %v11782_v17, %v6316_v44  ;;  %v6324_v17 = vmul.f32 0.2, %v11787_v56 }
 0x7eb   :  { %v11848_v58 = vpop.f32.mrf.mxu2  ;;  %13236 = vst [vmem:[#allocation23_spill] sm:$0xff] %v11903_v59  ;;  %v6684_v29 = vmul.f32 %v11903_v59, %v11903_v59  ;;  %v6619_v63 = vadd.f32 %v11888_v42, %v11903_v59 }
 0x7ec   :  { %v11945_v32 = vsel %vm6260_vm7, %v11787_v56, %v6324_v17 }
 0x7ed   :  { %v11797_v18 = vpop.f32.mrf.mxu1  ;;  %v6751_v44 = vadd.f32 %v6685_v12, %v6684_v29  ;;  %13240 = vst [vmem:[#allocation27_spill] sm:$0xff] %v11945_v32  ;;  %v11958_v12 = vadd.f32 %v6734_v30, %v6670_v1  ;;  %v11975_v11 = vmul.f32 %v11945_v32, %v11945_v32  ;;  %v11979_v29 = vmul.f32 %v11948_v61, %v11948_v61 }
 0x7ee   :  { %vm6276_vm11 = vcmp.ge.f32.partialorder %v11797_v18, 0.0  ;;  %v11985_v1 = vsel %vm6272_vm10, %v11794_v24, %v6336_v48  ;;  %vm6266_vm10 = vcmp.ge.f32.partialorder %v11834_v57, 0.0 }
 0x7ef   :  { %v11971_v17 = vadd.f32 %v6751_v44, %v6686_v9 }
 0x7f3   :  { %v11905_v21 = vpop.f32.mrf.mxu2 }
 0x7f5   :  { %v11799_v16 = vpop.f32.mrf.mxu1 }
 0x7f6   :  { %v6344_v56 = vmul.f32 0.2, %v11799_v16  ;;  %vm6280_vm13 = vcmp.ge.f32.partialorder %v11799_v16, 0.0 }
 0x7f8   :  { %9787 = vmatmul.msk.bf16.gmra.mxu1 %vm6019_vm9, %v10403_v38  ;;  %v11873_v38 = vpop.f32.mrf.mxu3  ;;  %v11998_v20 = vsel %vm6280_vm13, %v11799_v16, %v6344_v56  ;;  %v6322_v16 = vmul.f32 0.2, %v11822_v37  ;;  %vm6270_vm13 = vcmp.ge.f32.partialorder %v11840_v36, 0.0 }
 0x7fb   :  { %v11987_v53 = vpop.f32.mrf.mxu2 }
 0x7fd   :  { %v11802_v7 = vpop.f32.mrf.mxu1 }
 0x7fe   :  { %v6348_v44 = vmul.f32 0.2, %v11802_v7  ;;  %vm6284_vm14 = vcmp.ge.f32.partialorder %v11802_v7, 0.0 }
 0x800   :  { %v11952_v2 = vpop.f32.mrf.mxu3  ;;  %v12028_v56 = vsel %vm6284_vm14, %v11802_v7, %v6348_v44  ;;  %v12044_v7 = vsel %vm6258_vm1, %v11822_v37, %v6322_v16  ;;  %vm6273_vm14 = vcmp.ge.f32.partialorder %v11848_v58, 0.0 }
 0x801   :  { %13243 = vst [vmem:[#allocation30_spill] sm:$0xff] %v12028_v56 }
 0x805   :  { %v11804_v54 = vpop.f32.mrf.mxu1 }
 0x806   :  { %v6352_v9 = vmul.f32 0.2, %v11804_v54  ;;  %vm6288_vm15 = vcmp.ge.f32.partialorder %v11804_v54, 0.0 }
 0x808   :  { %9788 = vmatmul.msk.bf16.gmra.mxu1 %vm6019_vm9, %v10404_v46  ;;  %v12040_v25 = vpop.f32.mrf.mxu3 }
 0x80d   :  { %v11807_v60 = vpop.f32.mrf.mxu1 }
 0x80e   :  { %v6356_v42 = vmul.f32 0.2, %v11807_v60  ;;  %vm6292_vm3 = vcmp.ge.f32.partialorder %v11807_v60, 0.0 }
 0x815   :  { %v11811_v41 = vpop.f32.mrf.mxu1 }
 0x816   :  { %v6360_v48 = vmul.f32 0.2, %v11811_v41  ;;  %vm6296_vm2 = vcmp.ge.f32.partialorder %v11811_v41, 0.0 }
 0x818   :  { %9789 = vmatmul.msk.bf16.gmra.mxu1 %vm6019_vm9, %v10405_v15  ;;  %v11878_v15 = vadd.f32 %v6568_v26, %v11856_v10  ;;  %v6320_v26 = vmul.f32 0.2, %v11784_v23  ;;  %vm6268_vm9 = vcmp.ge.f32.partialorder %v11792_v33, 0.0 }
 0x819   :  { %v11982_v30 = vsel %vm6268_vm9, %v11792_v33, %v6332_v5  ;;  %v6321_v33 = vmul.f32 0.2, %v11818_v13  ;;  %v12011_v5 = vmul.f32 %v11985_v1, %v11985_v1  ;;  %vm6265_vm9 = vcmp.ge.f32.partialorder %v11830_v55, 0.0 }
 0x81a   :  { %v11940_v45 = vsel %vm6256_vm6, %v11784_v23, %v6320_v26  ;;  %v6340_v23 = vmul.f32 0.2, %v11797_v18  ;;  %v11969_v26 = vadd.f32 %v6619_v63, %v11917_v4  ;;  %v12031_v4 = vsel %vm6288_vm15, %v11804_v54, %v6352_v9 }
 0x81b   :  { %13239 = vst [vmem:[#allocation26_spill] sm:$0xff] %v11940_v45  ;;  %v11965_v19 = vmul.f32 %v11940_v45, %v11940_v45  ;;  %v12036_v59 = vsel %vm6257_vm0, %v11818_v13, %v6321_v33  ;;  %v12049_v54 = vsel %vm6296_vm2, %v11811_v41, %v6360_v48  ;;  %v12057_v33 = vmul.f32 %v12028_v56, %v12028_v56 }
 0x81c   :  { %v11990_v63 = vsel %vm6276_vm11, %v11797_v18, %v6340_v23  ;;  %v12007_v18 = vmul.f32 %v11982_v30, %v11982_v30  ;;  %13244 = vst [vmem:[#allocation31_spill] sm:$0xff] %v12036_v59  ;;  %v12061_v37 = vmul.f32 %v12031_v4, %v12031_v4  ;;  %v6641_v16 = vmul.f32 %v12036_v59, %v12036_v59 }
 0x81d   :  { %v11816_v35 = vpop.f32.mrf.mxu1  ;;  %13241 = vst [vmem:[#allocation28_spill] sm:$0xff] %v11990_v63  ;;  %v12067_v41 = vsel %vm6292_vm3, %v11807_v60, %v6356_v42  ;;  %v12082_v10 = vmul.f32 %v12049_v54, %v12049_v54  ;;  %v6642_v60 = vmul.f32 %v12044_v7, %v12044_v7  ;;  %vm6274_vm0 = vcmp.ge.f32.partialorder %v11873_v38, 0.0 }
 0x81e   :  { %13245 = vst [vmem:[#allocation32_spill] sm:$0xff] %v12049_v54  ;;  %vm6300_vm11 = vcmp.ge.f32.partialorder %v11816_v35, 0.0  ;;  %v12125_v54 = vsel %vm6265_vm9, %v11830_v55, %v6329_v31  ;;  %v6337_v31 = vmul.f32 0.2, %v11848_v58  ;;  %vm6277_vm3 = vcmp.ge.f32.partialorder %v11905_v21, 0.0 }
 0x81f   :  { %13246 = vst [vmem:[#allocation33_spill] sm:$0xff] %v12061_v37  ;;  %v12120_v37 = vpop.f32.mrf.mxu3 }
 0x820   :  { %13247 = vst [vmem:[#allocation34_spill] sm:$0xff] %v12067_v41  ;;  %v6330_v41 = vmul.f32 0.2, %v11834_v57 }
 0x821   :  { %13250 = vst [vmem:[#allocation37_spill] sm:$0xff] %v12082_v10 }
 0x825   :  { %v11820_v34 = vpop.f32.mrf.mxu1 }
 0x826   :  { %v6307_v40 = vmul.f32 0.2, %v11820_v34  ;;  %vm6243_vm12 = vcmp.ge.f32.partialorder %v11820_v34, 0.0 }
 0x828   :  { %v11995_v22 = vsel %vm6243_vm12, %v11820_v34, %v6307_v40  ;;  %v12017_v34 = vmul.f32 %v11990_v63, %v11990_v63  ;;  %v12025_v40 = vmul.f32 %v11998_v20, %v11998_v20  ;;  %vm6269_vm12 = vcmp.ge.f32.partialorder %v11838_v62, 0.0 }
 0x829   :  { %13242 = vst [vmem:[#allocation29_spill] sm:$0xff] %v11995_v22  ;;  %v6570_v23 = vadd.f32 %v11878_v15, %v11995_v22  ;;  %v6325_v15 = vmul.f32 0.2, %v11824_v28  ;;  %v6639_v13 = vmul.f32 %v11995_v22, %v11995_v22 }
 0x82b   :  { %v6571_v44 = vadd.f32 %v6570_v23, %v11940_v45  ;;  %v12070_v48 = vsel %vm6261_vm4, %v11824_v28, %v6325_v15  ;;  %v12073_v23 = vsel %vm6262_vm5, %v11828_v50, %v6326_v0  ;;  %v12076_v45 = vpop.f32.mrf.mxu2  ;;  %v6702_v50 = vadd.f32 %v11891_v39, %v6639_v13 }
 0x82c   :  { %13248 = vst [vmem:[#allocation35_spill] sm:$0xff] %v12070_v48  ;;  %v6657_v15 = vmul.f32 %v12070_v48, %v12070_v48  ;;  %v12098_v49 = vmul.f32 %v12073_v23, %v12073_v23  ;;  %vm6281_vm4 = vcmp.ge.f32.partialorder %v11987_v53, 0.0  ;;  %vm6278_vm5 = vcmp.ge.f32.partialorder %v11952_v2, 0.0 }
 0x82d   :  { %v11826_v52 = vpop.f32.mrf.mxu1  ;;  %13249 = vst [vmem:[#allocation36_spill] sm:$0xff] %v12073_v23  ;;  %v6572_v42 = vadd.f32 %v6571_v44, %v12036_v59 }
 0x82e   :  { %v6311_v9 = vmul.f32 0.2, %v11826_v52  ;;  %vm6247_vm6 = vcmp.ge.f32.partialorder %v11826_v52, 0.0 }
 0x830   :  { %v12091_v0 = vsel %vm6247_vm6, %v11826_v52, %v6311_v9  ;;  %v6333_v52 = vmul.f32 0.2, %v11838_v62  ;;  %v6364_v9 = vmul.f32 0.2, %v11816_v35  ;;  %vm6282_vm6 = vcmp.ge.f32.partialorder %v12040_v25, 0.0 }
 0x831   :  { %13251 = vst [vmem:[#allocation38_spill] sm:$0xff] %v12091_v0  ;;  %v6655_v13 = vmul.f32 %v12091_v0, %v12091_v0  ;;  %v6587_v59 = vadd.f32 %v11926_v3, %v12091_v0 }
 0x835   :  { %v11832_v43 = vpop.f32.mrf.mxu1 }
 0x836   :  { %v6315_v8 = vmul.f32 0.2, %v11832_v43  ;;  %vm6251_vm7 = vcmp.ge.f32.partialorder %v11832_v43, 0.0 }
 0x838   :  { %v12103_v39 = vsel %vm6251_vm7, %v11832_v43, %v6315_v8  ;;  %v6703_v43 = vadd.f32 %v6702_v50, %v11965_v19  ;;  %v6573_v8 = vadd.f32 %v6572_v42, %v12044_v7  ;;  %v12132_v19 = vsel %vm6269_vm12, %v11838_v62, %v6333_v52 }
 0x839   :  { %v6671_v10 = vmul.f32 %v12103_v39, %v12103_v39  ;;  %13252 = vst [vmem:[#allocation39_spill] sm:$0xff] %v12132_v19  ;;  %v6719_v42 = vadd.f32 %v11933_v47, %v6655_v13  ;;  %v6604_v55 = vadd.f32 %v11929_v51, %v12103_v39  ;;  %v6588_v62 = vadd.f32 %v6587_v59, %v11945_v32 }
 0x83a   :  { %v6338_v52 = vmul.f32 0.2, %v11873_v38  ;;  %v12152_v47 = vsel %vm6300_vm11, %v11816_v35, %v6364_v9  ;;  %v6673_v59 = vmul.f32 %v12125_v54, %v12125_v54 }
 0x83b   :  { %13253 = vst [vmem:[#allocation40_spill] sm:$0xff] %v12152_v47  ;;  %v6736_v51 = vadd.f32 %v11958_v12, %v6671_v10  ;;  %v6720_v9 = vadd.f32 %v6719_v42, %v11975_v11  ;;  %v6605_v10 = vadd.f32 %v6604_v55, %v11948_v61  ;;  %v12176_v12 = vsel %vm6273_vm14, %v11848_v58, %v6337_v31 }
 0x83c   :  { %v6589_v32 = vadd.f32 %v6588_v62, %v12070_v48  ;;  %v12186_v11 = vsel %vm6274_vm0, %v11873_v38, %v6338_v52  ;;  %v12207_v62 = vmul.f32 %v12176_v12, %v12176_v12 }
 0x83d   :  { %v11836_v14 = vpop.f32.mrf.mxu1  ;;  %v6606_v31 = vadd.f32 %v6605_v10, %v12125_v54 }
 0x83e   :  { %vm6255_vm15 = vcmp.ge.f32.partialorder %v11836_v14, 0.0  ;;  %v12210_v52 = vadd.f32 %v6589_v32, %v12073_v23 }
 0x845   :  { %v11844_v27 = vpop.f32.mrf.mxu1 }
 0x846   :  { %v6323_v28 = vmul.f32 0.2, %v11844_v27  ;;  %vm6259_vm8 = vcmp.ge.f32.partialorder %v11844_v27, 0.0 }
 0x848   :  { %v12113_v44 = vsel %vm6259_vm8, %v11844_v27, %v6323_v28  ;;  %v12128_v27 = vsel %vm6266_vm10, %v11834_v57, %v6330_v41  ;;  %v6334_v28 = vmul.f32 0.2, %v11840_v36  ;;  %v6319_v57 = vmul.f32 0.2, %v11836_v14 }
 0x849   :  { %v6574_v3 = vadd.f32 %v6573_v8, %v12113_v44  ;;  %v6704_v41 = vadd.f32 %v6703_v43, %v6641_v16  ;;  %v12147_v8 = vpop.f32.mrf.mxu2  ;;  %v6674_v16 = vmul.f32 %v12128_v27, %v12128_v27  ;;  %v12165_v43 = vmul.f32 %v12132_v19, %v12132_v19 }
 0x84a   :  { %v12156_v13 = vsel %vm6270_vm13, %v11840_v36, %v6334_v28  ;;  %v12171_v36 = vsel %vm6255_vm15, %v11836_v14, %v6319_v57  ;;  %v6341_v14 = vmul.f32 0.2, %v11905_v21  ;;  %v12197_v57 = vpop.f32.mrf.mxu3  ;;  %vm6289_vm8 = vcmp.ge.f32.partialorder %v12147_v8, 0.0 }
 0x84b   :  { %13254 = vst [vmem:[#allocation41_spill] sm:$0xff] %v12156_v13  ;;  %v6575_v35 = vadd.f32 %v6574_v3, %v11985_v1  ;;  %v12178_v28 = vadd.f32 %v6704_v41, %v6642_v60  ;;  %v12183_v0 = vmul.f32 %v12156_v13, %v12156_v13  ;;  %v6737_v3 = vadd.f32 %v6736_v51, %v11979_v29 }
 0x84c   :  { %v6687_v60 = vmul.f32 %v12171_v36, %v12171_v36  ;;  %v6721_v29 = vadd.f32 %v6720_v9, %v6657_v15  ;;  %v6621_v41 = vadd.f32 %v11969_v26, %v12171_v36  ;;  %v6342_v51 = vmul.f32 0.2, %v11952_v2 }
 0x84d   :  { %v11875_v46 = vpop.f32.mrf.mxu1  ;;  %v6576_v55 = vadd.f32 %v6575_v35, %v12176_v12  ;;  %v6345_v35 = vmul.f32 0.2, %v11987_v53  ;;  %v6738_v48 = vadd.f32 %v6737_v3, %v6673_v59  ;;  %v12224_v32 = vsel %vm6277_vm3, %v11905_v21, %v6341_v14 }
 0x84e   :  { %v6753_v9 = vadd.f32 %v11971_v17, %v6687_v60  ;;  %13255 = vst [vmem:[#allocation42_spill] sm:$0xff] %v12224_v32  ;;  %v6607_v59 = vadd.f32 %v6606_v31, %v12128_v27  ;;  %v12232_v3 = vadd.f32 %v6721_v29, %v12098_v49  ;;  %v6353_v49 = vmul.f32 0.2, %v12147_v8 }
 0x84f   :  { %v6577_v10 = vadd.f32 %v6576_v55, %v12186_v11  ;;  %v6739_v14 = vadd.f32 %v6738_v48, %v6674_v16  ;;  %v6327_v48 = vmul.f32 0.2, %v11875_v46  ;;  %vm6263_vm9 = vcmp.ge.f32.partialorder %v11875_v46, 0.0 }
 0x850   :  { %v6754_v55 = vadd.f32 %v6753_v9, %v12007_v18  ;;  %v6643_v9 = vmul.f32 %v12113_v44, %v12113_v44  ;;  %vm6285_vm10 = vcmp.ge.f32.partialorder %v12076_v45, 0.0  ;;  %vm6290_vm11 = vcmp.ge.f32.partialorder %v12197_v57, 0.0 }
 0x851   :  { %v12227_v23 = vpop.f32.mrf.mxu2  ;;  %vm6286_vm13 = vcmp.ge.f32.partialorder %v12120_v37, 0.0 }
 0x855   :  { %v11935_v6 = vpop.f32.mrf.mxu1 }
 0x856   :  { %v6331_v42 = vmul.f32 0.2, %v11935_v6  ;;  %vm6267_vm1 = vcmp.ge.f32.partialorder %v11935_v6, 0.0 }
 0x858   :  { %v12215_v15 = vsel %vm6267_vm1, %v11935_v6, %v6331_v42  ;;  %v6622_v6 = vadd.f32 %v6621_v41, %v11982_v30  ;;  %v12238_v42 = vsel %vm6281_vm4, %v11987_v53, %v6345_v35  ;;  %v6349_v41 = vmul.f32 0.2, %v12076_v45 }
 0x859   :  { %v6675_v17 = vmul.f32 %v12215_v15, %v12215_v15  ;;  %v6608_v29 = vadd.f32 %v6607_v59, %v12215_v15  ;;  %v12271_v59 = vsel %vm6289_vm8, %v12147_v8, %v6353_v49  ;;  %vm6293_vm4 = vcmp.ge.f32.partialorder %v12227_v23, 0.0 }
 0x85a   :  { %v6623_v31 = vadd.f32 %v6622_v6, %v12132_v19  ;;  %v6755_v6 = vadd.f32 %v6754_v55, %v12165_v43  ;;  %v12292_v55 = vsel %vm6285_vm10, %v12076_v45, %v6349_v41 }
 0x85b   :  { %v6740_v18 = vadd.f32 %v6739_v14, %v6675_v17  ;;  %v12279_v17 = vsel %vm6263_vm9, %v11875_v46, %v6327_v48  ;;  %v6706_v46 = vadd.f32 %v12178_v28, %v6643_v9  ;;  %13258 = vst [vmem:[#allocation45_spill] sm:$0xff] %v12292_v55  ;;  %v6693_v9 = vmul.f32 %v12292_v55, %v12292_v55 }
 0x85c   :  { %13257 = vst [vmem:[#allocation44_spill] sm:$0xff] %v12279_v17  ;;  %v6659_v28 = vmul.f32 %v12279_v17, %v12279_v17 }
 0x85d   :  { %v12003_v24 = vpop.f32.mrf.mxu1  ;;  %v6741_v14 = vadd.f32 %v6740_v18, %v12025_v40  ;;  %v6756_v18 = vadd.f32 %v6755_v6, %v12183_v0  ;;  %v6707_v0 = vadd.f32 %v6706_v46, %v12011_v5 }
 0x85e   :  { %v6335_v60 = vmul.f32 0.2, %v12003_v24  ;;  %vm6271_vm7 = vcmp.ge.f32.partialorder %v12003_v24, 0.0  ;;  %v6723_v5 = vadd.f32 %v12232_v3, %v6659_v28 }
 0x865   :  { %v12078_v22 = vpop.f32.mrf.mxu1 }
 0x866   :  { %v6339_v58 = vmul.f32 0.2, %v12078_v22  ;;  %vm6275_vm2 = vcmp.ge.f32.partialorder %v12078_v22, 0.0 }
 0x868   :  { %v12219_v26 = vsel %vm6275_vm2, %v12078_v22, %v6339_v58  ;;  %v6346_v22 = vmul.f32 0.2, %v12040_v25  ;;  %v12243_v58 = vsel %vm6278_vm5, %v11952_v2, %v6342_v51  ;;  %v6677_v2 = vmul.f32 %v12238_v42, %v12238_v42  ;;  %v12262_v51 = vpop.f32.mrf.mxu3 }
 0x869   :  { %v6578_v21 = vadd.f32 %v6577_v10, %v12219_v26  ;;  %v12268_v10 = vsel %vm6271_vm7, %v12003_v24, %v6335_v60  ;;  %v6137_v60 = vpop.f32.mrf.mxu2  ;;  %v6662_v3 = vmul.f32 %v12243_v58, %v12243_v58  ;;  %vm6294_vm7 = vcmp.ge.f32.partialorder %v12262_v51, 0.0 }
 0x86a   :  { %v12258_v16 = vsel %vm6282_vm6, %v12040_v25, %v6346_v22  ;;  %13256 = vst [vmem:[#allocation43_spill] sm:$0xff] %v12268_v10  ;;  %v6354_v25 = vmul.f32 0.2, %v12197_v57  ;;  %v6609_v22 = vadd.f32 %v6608_v29, %v11998_v20  ;;  %v6691_v43 = vmul.f32 %v12268_v10, %v12268_v10 }
 0x86b   :  { %v6579_v35 = vadd.f32 %v6578_v21, %v12031_v4  ;;  %v6678_v24 = vmul.f32 %v12258_v16, %v12258_v16  ;;  %v6624_v21 = vadd.f32 %v6623_v31, %v12156_v13  ;;  %v6350_v29 = vmul.f32 0.2, %v12120_v37 }
 0x86c   :  { %v12296_v31 = vsel %vm6290_vm11, %v12197_v57, %v6354_v25  ;;  %v6610_v40 = vadd.f32 %v6609_v22, %v12238_v42  ;;  %v6757_v57 = vadd.f32 %v6756_v18, %v6691_v43  ;;  %v6361_v22 = vmul.f32 0.2, %v6137_v60 }
 0x86d   :  { %v12137_v50 = vpop.f32.mrf.mxu1  ;;  %v6580_v49 = vadd.f32 %v6579_v35, %v12271_v59  ;;  %v6625_v48 = vadd.f32 %v6624_v21, %v12268_v10  ;;  %v6742_v35 = vadd.f32 %v6741_v14, %v6677_v2  ;;  %v12312_v6 = vsel %vm6286_vm13, %v12120_v37, %v6350_v29 }
 0x86e   :  { %13259 = vst [vmem:[#allocation46_spill] sm:$0xff] %v12312_v6  ;;  %vm6297_vm15 = vcmp.ge.f32.partialorder %v6137_v60, 0.0  ;;  %v6758_v46 = vadd.f32 %v6757_v57, %v12057_v33  ;;  %v6694_v33 = vmul.f32 %v12312_v6, %v12312_v6  ;;  %v6708_v57 = vadd.f32 %v6707_v0, %v12207_v62 }
 0x86f   :  { %v6581_v25 = vadd.f32 %v6580_v49, %v12296_v31  ;;  %v6591_v49 = vadd.f32 %v12210_v52, %v12279_v17  ;;  %v6661_v52 = vmul.f32 %v12224_v32, %v12224_v32  ;;  %v12339_v28 = vsel %vm6297_vm15, %v6137_v60, %v6361_v22 }
 0x870   :  { %v6186_v14 = vpop.f32.mrf.mxu3  ;;  %v6724_v17 = vadd.f32 %v6723_v5, %v12017_v34  ;;  %v6647_v60 = vmul.f32 %v12219_v26, %v12219_v26  ;;  %v6343_v22 = vmul.f32 0.2, %v12137_v50  ;;  %v6681_v62 = vmul.f32 %v12339_v28, %v12339_v28 }
 0x871   :  { %vm6298_vm1 = vcmp.ge.f32.partialorder %v6186_v14, 0.0  ;;  %vm6279_vm2 = vcmp.ge.f32.partialorder %v12137_v50, 0.0  ;;  %v6649_v5 = vmul.f32 %v12271_v59, %v12271_v59 }
 0x872   :  { %v12368_v19 = vsel %vm6279_vm2, %v12137_v50, %v6343_v22  ;;  %v13264_v22 = vld [vmem:[#allocation33_spill] sm:$0xff] }
 0x875   :  { %v12199_v38 = vpop.f32.mrf.mxu1 }
 0x876   :  { %v6347_v8 = vmul.f32 0.2, %v12199_v38  ;;  %vm6283_vm12 = vcmp.ge.f32.partialorder %v12199_v38, 0.0 }
 0x878   :  { %v12305_v45 = vsel %vm6283_vm12, %v12199_v38, %v6347_v8  ;;  %v6611_v38 = vadd.f32 %v6610_v40, %v12258_v16  ;;  %v6626_v8 = vadd.f32 %v6625_v48, %v12028_v56  ;;  %v6696_v40 = vmul.f32 %v12152_v47, %v12152_v47 }
 0x879   :  { %v6679_v2 = vmul.f32 %v12305_v45, %v12305_v45  ;;  %v6646_v48 = vmul.f32 %v12186_v11, %v12186_v11 }
 0x87a   :  { %v6612_v29 = vadd.f32 %v6611_v38, %v12305_v45  ;;  %v6362_v38 = vmul.f32 0.2, %v6186_v14 }
 0x87d   :  { %v12251_v53 = vpop.f32.mrf.mxu1 }
 0x87e   :  { %v6351_v37 = vmul.f32 0.2, %v12251_v53  ;;  %vm6287_vm0 = vcmp.ge.f32.partialorder %v12251_v53, 0.0 }
 0x885   :  { %v6230_v13 = vpop.f32.mrf.mxu1 }
 0x886   :  { %vm6291_vm14 = vcmp.ge.f32.partialorder %v6230_v13, 0.0  ;;  %v6355_v41 = vmul.f32 0.2, %v6230_v13 }
 0x888   :  { %v12314_v21 = vsel %vm6291_vm14, %v6230_v13, %v6355_v41  ;;  %v6743_v13 = vadd.f32 %v6742_v35, %v6678_v24  ;;  %v6627_v24 = vadd.f32 %v6626_v8, %v12292_v55  ;;  %v6139_v41 = vpop.f32.mrf.mxu2  ;;  %v6759_v8 = vadd.f32 %v6758_v46, %v6693_v9  ;;  %v13261_v55 = vld [vmem:[#allocation32_spill] sm:$0xff] }
 0x889   :  { %v6582_v43 = vadd.f32 %v6581_v25, %v12314_v21  ;;  %v6592_v25 = vadd.f32 %v6591_v49, %v11990_v63  ;;  %v6613_v56 = vadd.f32 %v6612_v29, %v13261_v55  ;;  %v6365_v0 = vmul.f32 0.2, %v6139_v41 }
 0x88a   :  { %v6744_v18 = vadd.f32 %v6743_v13, %v6679_v2  ;;  %v6628_v2 = vadd.f32 %v6627_v24, %v12312_v6  ;;  %v6709_v49 = vadd.f32 %v6708_v57, %v6646_v48  ;;  %vm6301_vm3 = vcmp.ge.f32.partialorder %v6139_v41, 0.0  ;;  %v6188_v24 = vpop.f32.mrf.mxu3 }
 0x88b   :  { %6583 = vadd.xlane.f32.xlu1 %v6582_v43  ;;  %v12346_v43 = vsel %vm6287_vm0, %v12251_v53, %v6351_v37  ;;  %v13262_v53 = vld [vmem:[#allocation37_spill] sm:$0xff]  ;;  %v12362_v37 = vsel %vm6298_vm1, %v6186_v14, %v6362_v38  ;;  %v6593_v13 = vadd.f32 %v6592_v25, %v12224_v32  ;;  %v6760_v46 = vadd.f32 %v6759_v8, %v6694_v33 }
 0x88c   :  { %13260 = vst [vmem:[#allocation47_spill] sm:$0xff] %v12346_v43  ;;  %v6695_v34 = vmul.f32 %v12346_v43, %v12346_v43  ;;  %v6745_v9 = vadd.f32 %v6744_v18, %v13262_v53  ;;  %v6629_v29 = vadd.f32 %v6628_v2, %v12346_v43  ;;  %v6614_v63 = vadd.f32 %v6613_v56, %v12339_v28 }
 0x88d   :  { %v12341_v35 = vpop.f32.mrf.mxu1  ;;  %v6725_v6 = vadd.f32 %v6724_v17, %v6661_v52  ;;  %v6710_v10 = vadd.f32 %v6709_v49, %v6647_v60  ;;  %v6357_v48 = vmul.f32 0.2, %v12227_v23  ;;  %v12371_v57 = vsel %vm6301_vm3, %v6139_v41, %v6365_v0 }
 0x88e   :  { %v6761_v18 = vadd.f32 %v6760_v46, %v6695_v34  ;;  %13263 = vst [vmem:[#allocation32_spill] sm:$0xff] %v12371_v57  ;;  %v6682_v25 = vmul.f32 %v12362_v37, %v12362_v37  ;;  %v6746_v33 = vadd.f32 %v6745_v9, %v6681_v62  ;;  %v6366_v38 = vmul.f32 0.2, %v6188_v24  ;;  %v13266_v46 = vld [vmem:[#allocation34_spill] sm:$0xff] }
 0x88f   :  { %v6663_v17 = vmul.f32 %v12368_v19, %v12368_v19  ;;  %vm6302_vm6 = vcmp.ge.f32.partialorder %v6188_v24, 0.0  ;;  %v6615_v50 = vadd.f32 %v6614_v63, %v12362_v37  ;;  %v6630_v52 = vadd.f32 %v6629_v29, %v12152_v47 }
 0x890   :  { %v6726_v41 = vadd.f32 %v6725_v6, %v6662_v3  ;;  %v6697_v8 = vmul.f32 %v12371_v57, %v12371_v57  ;;  %v6711_v62 = vadd.f32 %v6710_v10, %v13264_v22  ;;  %v6747_v34 = vadd.f32 %v6746_v33, %v6682_v25 }
 0x891   :  { %v6762_v53 = vadd.f32 %v6761_v18, %v6696_v40  ;;  %v6594_v9 = vadd.f32 %v6593_v13, %v12243_v58  ;;  %v12389_v63 = vsel %vm6302_vm6, %v6188_v24, %v6366_v38  ;;  %v12394_v6 = vsel %vm6293_vm4, %v12227_v23, %v6357_v48 }
 0x892   :  { %13265 = vst [vmem:[#allocation37_spill] sm:$0xff] %v12389_v63  ;;  %v6727_v49 = vadd.f32 %v6726_v41, %v6663_v17  ;;  %v6631_v10 = vadd.f32 %v6630_v52, %v12371_v57  ;;  %v6664_v29 = vmul.f32 %v13266_v46, %v13266_v46  ;;  %v6650_v40 = vmul.f32 %v12296_v31, %v12296_v31 }
 0x893   :  { %v6712_v13 = vadd.f32 %v6711_v62, %v6649_v5  ;;  %v6595_v24 = vadd.f32 %v6594_v9, %v12368_v19  ;;  %v6698_v48 = vmul.f32 %v12389_v63, %v12389_v63  ;;  %v6763_v18 = vadd.f32 %v6762_v53, %v6697_v8 }
 0x894   :  { %v6665_v25 = vmul.f32 %v12394_v6, %v12394_v6  ;;  %v6359_v33 = vmul.f32 0.2, %v12341_v35  ;;  %vm6295_vm9 = vcmp.ge.f32.partialorder %v12341_v35, 0.0  ;;  %v6632_v5 = vadd.f32 %v6631_v10, %v12389_v63 }
 0x895   :  { %v6235_v14 = vpop.f32.mrf.mxu1  ;;  %v6728_v17 = vadd.f32 %v6727_v49, %v6664_v29  ;;  %v6713_v41 = vadd.f32 %v6712_v13, %v6650_v40  ;;  %v6764_v62 = vadd.f32 %v6763_v18, %v6698_v48  ;;  %v6567_v40 = vld [vmem:[%s13145_s17 + $0x18] sm:$0xff]  ;;  %v6566_v13 = vld [vmem:[%s13145_s17 + $0x10] sm:$0xff]  ;;  %vm7108_vm6 = vcmask 261120  }
 0x896   :  { %vm6299_vm5 = vcmp.ge.f32.partialorder %v6235_v14, 0.0  ;;  %v6363_v56 = vmul.f32 0.2, %v6235_v14 }
 0x897   :  { %v6729_v9 = vadd.f32 %v6728_v17, %v6665_v25 }
 0x898   :  { %v12382_v60 = vsel %vm6299_vm5, %v6235_v14, %v6363_v56  ;;  %v6358_v14 = vmul.f32 0.2, %v12262_v51  ;;  %v6651_v56 = vmul.f32 %v12314_v21, %v12314_v21 }
 0x899   :  { %v6616_v0 = vadd.f32 %v6615_v50, %v12382_v60  ;;  %v6683_v2 = vmul.f32 %v12382_v60, %v12382_v60 }
 0x89a   :  { %v12414_v50 = vsel %vm6294_vm7, %v12262_v51, %v6358_v14 }
 0x89b   :  { %6617 = vadd.xlane.f32.xlu2 %v6616_v0  ;;  %v6748_v3 = vadd.f32 %v6747_v34, %v6683_v2  ;;  %v6596_v0 = vadd.f32 %v6595_v24, %v13266_v46  ;;  %v12423_v2 = vsel %vm6295_vm9, %v12341_v35, %v6359_v33  ;;  %v6714_v34 = vadd.f32 %v6713_v41, %v6651_v56 }
 0x89c   :  { %v6666_v51 = vmul.f32 %v12414_v50, %v12414_v50  ;;  %v6667_v49 = vmul.f32 %v12423_v2, %v12423_v2 }
 0x89d   :  { %6749 = vadd.xlane.f32.xlu0 %v6748_v3  ;;  %v6237_v23 = vpop.f32.mrf.mxu1  ;;  %v6597_v3 = vadd.f32 %v6596_v0, %v12394_v6 }
 0x89e   :  { %vm6303_vm8 = vcmp.ge.f32.partialorder %v6237_v23, 0.0  ;;  %v6367_v38 = vmul.f32 0.2, %v6237_v23  ;;  %v6730_v10 = vadd.f32 %v6729_v9, %v6666_v51 }
 0x89f   :  { %v6598_v14 = vadd.f32 %v6597_v3, %v12414_v50 }
 0x8a0   :  { %v12416_v52 = vsel %vm6303_vm8, %v6237_v23, %v6367_v38  ;;  %v6731_v29 = vadd.f32 %v6730_v10, %v6667_v49 }
 0x8a1   :  { %13267 = vst [vmem:[#allocation33_spill] sm:$0xff] %v12416_v52  ;;  %v6633_v8 = vadd.f32 %v6632_v5, %v12416_v52  ;;  %v6699_v22 = vmul.f32 %v12416_v52, %v12416_v52  ;;  %v6599_v35 = vadd.f32 %v6598_v14, %v12423_v2 }
 0x8a3   :  { %6634 = vadd.xlane.f32.xlu1 %v6633_v8  ;;  %v6765_v53 = vadd.f32 %v6764_v62, %v6699_v22 }
 0x8a5   :  { %6715 = vadd.xlane.f32.xlu0 %v6714_v34  ;;  %6766 = vadd.xlane.f32.xlu2 %v6765_v53 }
 0x8ab   :  { %6732 = vadd.xlane.f32.xlu1 %v6731_v29 }
 0x8ad   :  { %6600 = vadd.xlane.f32.xlu2 %v6599_v35 }
 0x8b9   :  { %7001 = vperm.xlu0 %10414, %v6567_v40  }
 0x8c4   :  { %6996 = vperm.xlu1 %10416, %v6566_v13  }
 0x8fe   :  { %v6584_v24 = vpop.xlane.xlu1 %6583 }
 0x8ff   :  { %v12442_v5 = vmul.f32 0.00048828125, %v6584_v24 }
 0x901   :  { %v6776_v0 = vmul.f32 %v12442_v5, %v12442_v5 }
 0x90e   :  { %v6618_v23 = vpop.xlane.xlu2 %6617 }
 0x90f   :  { %v12438_v48 = vmul.f32 0.00048828125, %v6618_v23 }
 0x910   :  { %v6750_v18 = vpop.xlane.xlu0 %6749 }
 0x911   :  { %v6774_v25 = vmul.f32 0.00048828125, %v6750_v18  ;;  %v6778_v33 = vmul.f32 %v12438_v48, %v12438_v48 }
 0x913   :  { %v6782_v38 = vsub.f32 %v6774_v25, %v6778_v33 }
 0x915   :  { %v6786_v56 = vmax.f32 %v6782_v38, 0.0 }
 0x916   :  { %v6635_v17 = vpop.xlane.xlu1 %6634 }
 0x917   :  { %v12444_v41 = vadd.f32 1e-05, %v6786_v56  ;;  %v12446_v8 = vmul.f32 0.00048828125, %v6635_v17 }
 0x918   :  { %v6716_v22 = vpop.xlane.xlu0 %6715  ;;  %v6767_v62 = vpop.xlane.xlu2 %6766 }
 0x919   :  { %v6772_v34 = vmul.f32 0.00048828125, %v6716_v22  ;;  %v6775_v53 = vmul.f32 0.00048828125, %v6767_v62  ;;  %v6779_v51 = vmul.f32 %v12446_v8, %v12446_v8  ;;  %10449 = vrsqrt.f32 %v12444_v41 }
 0x91a   :  { %vm6882_vm1 = vweird.f32 %v12444_v41 }
 0x91b   :  { %v6780_v9 = vsub.f32 %v6772_v34, %v6776_v0  ;;  %v6783_v49 = vsub.f32 %v6775_v53, %v6779_v51 }
 0x91d   :  { %v6784_v3 = vmax.f32 %v6780_v9, 0.0  ;;  %v6787_v10 = vmax.f32 %v6783_v49, 0.0 }
 0x91e   :  { %v6733_v35 = vpop.xlane.xlu1 %6732 }
 0x91f   :  { %v6852_v29 = vadd.f32 1e-05, %v6784_v3  ;;  %v6855_v14 = vadd.f32 1e-05, %v6787_v10  ;;  %v10450_v13 = vpop.eup %10449  ;;  %v6773_v23 = vmul.f32 0.00048828125, %v6733_v35 }
 0x920   :  { %v6601_v40 = vpop.xlane.xlu2 %6600  ;;  %v6877_v25 = vmul.f32 %v10450_v13, %v12444_v41  ;;  %vm6883_vm0 = vweird.f32 %v10450_v13  ;;  %v6564_v41 = vld [vmem:[%s13145_s17] sm:$0xff] }
 0x921   :  { %10451 = vrsqrt.f32 %v6852_v29  ;;  %v12453_v24 = vmul.f32 0.00048828125, %v6601_v40  ;;  %vm6862_vm12 = vweird.f32 %v6852_v29  ;;  %vm6892_vm13 = vweird.f32 %v6855_v14  ;;  %vm6884_vm2 = vmor %vm6882_vm1, %vm6883_vm0 }
 0x922   :  { %10453 = vrsqrt.f32 %v6855_v14  ;;  %v6878_v22 = vmul.f32 %v10450_v13, %v6877_v25 }
 0x923   :  { %v6777_v18 = vmul.f32 %v12453_v24, %v12453_v24 }
 0x924   :  { %v6879_v9 = vmul.f32 0.5, %v6878_v22 }
 0x925   :  { %v6781_v33 = vsub.f32 %v6773_v23, %v6777_v18  ;;  %v6560_v23 = vld [vmem:[%s13144_s16] sm:$0xff] }
 0x926   :  { %v6880_v40 = vsub.f32 1.5, %v6879_v9 }
 0x927   :  { %v10452_v38 = vpop.eup %10451  ;;  %v6785_v56 = vmax.f32 %v6781_v33, 0.0  ;;  %v6563_v33 = vld [vmem:[%s13144_s16 + $0x18] sm:$0xff] }
 0x928   :  { %v10454_v17 = vpop.eup %10453  ;;  %v6857_v62 = vmul.f32 %v10452_v38, %v6852_v29  ;;  %vm6863_vm10 = vweird.f32 %v10452_v38  ;;  %v6881_v29 = vmul.f32 %v10450_v13, %v6880_v40 }
 0x929   :  { %v6887_v0 = vmul.f32 %v10454_v17, %v6855_v14  ;;  %v6853_v34 = vadd.f32 1e-05, %v6785_v56  ;;  %vm6893_vm11 = vweird.f32 %v10454_v17  ;;  %vm6864_vm14 = vmor %vm6862_vm12, %vm6863_vm10 }
 0x92a   :  { %v6858_v53 = vmul.f32 %v10452_v38, %v6857_v62  ;;  %vm6894_vm15 = vmor %vm6892_vm13, %vm6893_vm11 }
 0x92b   :  { %v6888_v51 = vmul.f32 %v10454_v17, %v6887_v0  ;;  %10455 = vrsqrt.f32 %v6853_v34  ;;  %vm6872_vm4 = vweird.f32 %v6853_v34 }
 0x92c   :  { %v6859_v49 = vmul.f32 0.5, %v6858_v53 }
 0x92d   :  { %v6889_v3 = vmul.f32 0.5, %v6888_v51 }
 0x92e   :  { %v6860_v10 = vsub.f32 1.5, %v6859_v49  ;;  %v6562_v49 = vld [vmem:[%s13144_s16 + $0x10] sm:$0xff] }
 0x92f   :  { %v6890_v35 = vsub.f32 1.5, %v6889_v3  ;;  %v6885_v3 = vsel %vm6884_vm2, %v10450_v13, %v6881_v29  ;;  %v6565_v13 = vld [vmem:[%s13145_s17 + $0x8] sm:$0xff]  ;;  %v13287_v29 = vld [vmem:[#allocation41_spill] sm:$0xff] }
 0x930   :  { %v6861_v18 = vmul.f32 %v10452_v38, %v6860_v10 }
 0x931   :  { %v10456_v25 = vpop.eup %10455  ;;  %v6891_v56 = vmul.f32 %v10454_v17, %v6890_v35  ;;  %v6898_v35 = vmul.f32 %v6885_v3, %v6562_v49 }
 0x932   :  { %v6865_v22 = vsel %vm6864_vm14, %v10452_v38, %v6861_v18  ;;  %v6867_v62 = vmul.f32 %v10456_v25, %v6853_v34  ;;  %vm6873_vm3 = vweird.f32 %v10456_v25  ;;  %v10418_v18 = vld [vmem:[#allocation6] ss:$0 sm:$0xff]  ;;  %v13268_v34 = vld [vmem:[#allocation15_spill] sm:$0xff] }
 0x933   :  { %v6896_v0 = vmul.f32 %v6865_v22, %v6560_v23  ;;  %v6895_v53 = vsel %vm6894_vm15, %v10454_v17, %v6891_v56  ;;  %v6561_v17 = vld [vmem:[%s13144_s16 + $0x8] sm:$0xff]  ;;  %vm6874_vm5 = vmor %vm6872_vm4, %vm6873_vm3 }
 0x934   :  { %v6899_v51 = vmul.f32 %v6895_v53, %v6563_v33  ;;  %v6868_v9 = vmul.f32 %v10456_v25, %v6867_v62  ;;  %v13269_v56 = vld [vmem:[#allocation14_spill] sm:$0xff]  ;;  %v13270_v62 = vld [vmem:[#allocation16_spill] sm:$0xff]  ;;  %v13290_v53 = vld [vmem:[#allocation45_spill] sm:$0xff]  ;;  %v13302_v33 = vsub.f32 %v13268_v34, %v12442_v5 }
 0x935   :  { %6902 = vperm.xlu2 %10415, %v6896_v0   ;;  %v13271_v0 = vld [vmem:[#allocation29_spill] sm:$0xff]  ;;  %v13303_v63 = vsub.f32 %v13269_v56, %v12442_v5 }
 0x936   :  { %6917 = vperm.xlu0 %10414, %v6899_v51   ;;  %v6869_v14 = vmul.f32 0.5, %v6868_v9  ;;  %v13272_v51 = vld [vmem:[#allocation26_spill] sm:$0xff]  ;;  %v13273_v9 = vld [vmem:[#allocation31_spill] sm:$0xff]  ;;  %v13305_v34 = vsub.f32 %v13271_v0, %v12442_v5 }
 0x937   :  { %v13306_v56 = vsub.f32 %v13272_v51, %v12442_v5 }
 0x938   :  { %v6870_v38 = vsub.f32 1.5, %v6869_v14  ;;  %v13286_v14 = vld [vmem:[#allocation39_spill] sm:$0xff] }
 0x93a   :  { %v6871_v10 = vmul.f32 %v10456_v25, %v6870_v38 }
 0x93c   :  { %v6875_v40 = vsel %vm6874_vm5, %v10456_v25, %v6871_v10  ;;  %v13274_v10 = vld [vmem:[#allocation21_spill] sm:$0xff] }
 0x93d   :  { %6912 = vperm.xlu2 %10415, %v6898_v35   ;;  %v6897_v23 = vmul.f32 %v6875_v40, %v6561_v17  ;;  %v6798_v35 = vsub.f32 %v12186_v11, %v12442_v5  ;;  %v6800_v40 = vsub.f32 %v12031_v4, %v12442_v5  ;;  %v13275_v11 = vld [vmem:[#allocation20_spill] sm:$0xff]  ;;  %v13308_v0 = vsub.f32 %v13274_v10, %v12438_v48 }
 0x93e   :  { %6986 = vperm.xlu0 %10414, %v6564_v41   ;;  %v6799_v41 = vsub.f32 %v12219_v26, %v12442_v5  ;;  %v13276_v26 = vld [vmem:[#allocation24_spill] sm:$0xff]  ;;  %v13313_v10 = vsub.f32 %v12125_v54, %v12438_v48  ;;  %v13318_v54 = vsub.f32 %v12258_v16, %v12438_v48  ;;  %v13322_v16 = vsub.f32 %v11985_v1, %v12442_v5 }
 0x93f   :  { %6907 = vperm.xlu1 %10416, %v6897_v23   ;;  %v6801_v23 = vsub.f32 %v12271_v59, %v12442_v5  ;;  %v13310_v51 = vsub.f32 %v13276_v26, %v12438_v48  ;;  %v13315_v26 = vsub.f32 %v12215_v15, %v12438_v48  ;;  %v13320_v15 = vsub.f32 %v12044_v7, %v12442_v5 }
 0x945   :  { %6991 = vperm.xlu2 %10415, %v6565_v13   ;;  %v6802_v13 = vsub.f32 %v12296_v31, %v12442_v5  ;;  %v6833_v31 = vsub.f32 %v12339_v28, %v12438_v48  ;;  %v6997_v28 = vpop.permute.xlu1 %6996 }
 0x947   :  { %7105 = vperm.xlu1 %10416, %v10418_v18   ;;  %v6803_v18 = vsub.f32 %v12314_v21, %v12442_v5 }
 0x98f   :  { %v12493_v38 = vpop.permute.xlu2 %6902 }
 0x990   :  { %v12524_v21 = vmul.f32 %v12493_v38, %v6798_v35  ;;  %v12527_v17 = vmul.f32 %v12493_v38, %v6799_v41  ;;  %v12530_v3 = vmul.f32 %v12493_v38, %v6800_v40  ;;  %v12533_v49 = vmul.f32 %v12493_v38, %v6801_v23  ;;  %v13283_v35 = vld [vmem:[#allocation23_spill] sm:$0xff]  ;;  %v13284_v41 = vld [vmem:[#allocation22_spill] sm:$0xff] }
 0x991   :  { %v12536_v4 = vmul.f32 %v12493_v38, %v6802_v13  ;;  %v12539_v59 = vmul.f32 %v12493_v38, %v6803_v18  ;;  %v6832_v18 = vsub.f32 %v13261_v55, %v12438_v48  ;;  %v6834_v40 = vsub.f32 %v12362_v37, %v12438_v48  ;;  %v13285_v13 = vld [vmem:[#allocation25_spill] sm:$0xff]  ;;  %v13288_v37 = vld [vmem:[#allocation43_spill] sm:$0xff]  ;;  %v13291_v55 = vld [vmem:[#allocation46_spill] sm:$0xff] }
 0x992   :  { %13277 = vst [vmem:[#allocation34_spill] sm:$0xff] %v12524_v21  ;;  %v6835_v23 = vsub.f32 %v12382_v60, %v12438_v48  ;;  %v13289_v60 = vld [vmem:[#allocation30_spill] sm:$0xff]  ;;  %v13298_v21 = vld [vmem:[#allocation36_spill] sm:$0xff]  ;;  %v12641_v52 = vmul.f32 %v12493_v38, %v13303_v63  ;;  %v12661_v63 = vmul.f32 %v12493_v38, %v13306_v56 }
 0x993   :  { %13278 = vst [vmem:[#allocation15_spill] sm:$0xff] %v12527_v17  ;;  %v13297_v17 = vld [vmem:[#allocation35_spill] sm:$0xff] }
 0x994   :  { %13279 = vst [vmem:[#allocation14_spill] sm:$0xff] %v12530_v3 }
 0x995   :  { %13280 = vst [vmem:[#allocation16_spill] sm:$0xff] %v12533_v49  ;;  %v13300_v49 = vld [vmem:[#allocation28_spill] sm:$0xff] }
 0x996   :  { %13281 = vst [vmem:[#allocation29_spill] sm:$0xff] %v12536_v4  ;;  %v13299_v4 = vld [vmem:[#allocation44_spill] sm:$0xff] }
 0x997   :  { %13282 = vst [vmem:[#allocation26_spill] sm:$0xff] %v12539_v59  ;;  %v6913_v3 = vpop.permute.xlu2 %6912  ;;  %v12635_v59 = vmul.f32 %v12493_v38, %v13302_v33  ;;  %v12655_v33 = vmul.f32 %v12493_v38, %v13305_v34  ;;  %v13309_v34 = vsub.f32 %v13275_v11, %v12438_v48  ;;  %v13314_v11 = vsub.f32 %v12128_v27, %v12438_v48 }
 0x998   :  { %v6964_v25 = vmul.f32 %v6913_v3, %v6832_v18  ;;  %v6965_v57 = vmul.f32 %v6913_v3, %v6833_v31  ;;  %v6966_v22 = vmul.f32 %v6913_v3, %v6834_v40  ;;  %v6967_v31 = vmul.f32 %v6913_v3, %v6835_v23  ;;  %v12629_v40 = vpop.permute.xlu0 %7001 }
 0x999   :  { %v6953_v47 = vmul.f32 %v6913_v3, %v13309_v34  ;;  %v6954_v56 = vmul.f32 %v6913_v3, %v13310_v51  ;;  %v6958_v34 = vmul.f32 %v6913_v3, %v13314_v11  ;;  %v6959_v51 = vmul.f32 %v6913_v3, %v13315_v26 }
 0x99a   :  { %v12623_v43 = vadd.f32 %v6997_v28, %v6964_v25  ;;  %v12625_v32 = vadd.f32 %v6997_v28, %v6965_v57  ;;  %v12627_v18 = vadd.f32 %v6997_v28, %v6966_v22  ;;  %v13304_v57 = vsub.f32 %v13270_v62, %v12442_v5 }
 0x99b   :  { %v13307_v62 = vsub.f32 %v13273_v9, %v12442_v5  ;;  %v6952_v25 = vmul.f32 %v6913_v3, %v13308_v0  ;;  %v13311_v9 = vsub.f32 %v12103_v39, %v12438_v48  ;;  %v6957_v0 = vmul.f32 %v6913_v3, %v13313_v10 }
 0x99c   :  { %13301 = vst [vmem:[#allocation31_spill] sm:$0xff] %v12627_v18  ;;  %v12647_v22 = vmul.f32 %v12493_v38, %v13304_v57  ;;  %v12669_v57 = vadd.f32 %v6997_v28, %v6967_v31  ;;  %v13312_v31 = vsub.f32 %v11948_v61, %v12438_v48  ;;  %v13316_v39 = vsub.f32 %v11998_v20, %v12438_v48 }
 0x99d   :  { %v12667_v23 = vmul.f32 %v12493_v38, %v13307_v62  ;;  %v6955_v18 = vmul.f32 %v6913_v3, %v13311_v9  ;;  %v13317_v61 = vsub.f32 %v12238_v42, %v12438_v48  ;;  %v6962_v10 = vmul.f32 %v6913_v3, %v13318_v54 }
 0x99e   :  { %v6956_v62 = vmul.f32 %v6913_v3, %v13312_v31  ;;  %v6960_v9 = vmul.f32 %v6913_v3, %v13316_v39  ;;  %v13319_v27 = vsub.f32 %v12305_v45, %v12438_v48  ;;  %v12711_v26 = vmul.f32 %v12493_v38, %v13320_v15 }
 0x99f   :  { %v6961_v31 = vmul.f32 %v6913_v3, %v13317_v61  ;;  %v13321_v20 = vsub.f32 %v12113_v44, %v12442_v5  ;;  %v12723_v39 = vmul.f32 %v12493_v38, %v13322_v16  ;;  %v13323_v45 = vsub.f32 %v12176_v12, %v12442_v5 }
 0x9a0   :  { %v6963_v11 = vmul.f32 %v6913_v3, %v13319_v27  ;;  %v7036_v48 = vadd.f32 %v6997_v28, %v6952_v25  ;;  %v7037_v3 = vadd.f32 %v6997_v28, %v6953_v47  ;;  %v12731_v61 = vadd.f32 %v6997_v28, %v6954_v56 }
 0x9a1   :  { %v12717_v42 = vmul.f32 %v12493_v38, %v13321_v20  ;;  %v12729_v7 = vmul.f32 %v12493_v38, %v13323_v45  ;;  %v12733_v44 = vadd.f32 %v6997_v28, %v6955_v18  ;;  %v12735_v54 = vadd.f32 %v6997_v28, %v6956_v62 }
 0x9a2   :  { %v12737_v27 = vadd.f32 %v6997_v28, %v6957_v0  ;;  %v12739_v1 = vadd.f32 %v6997_v28, %v6958_v34  ;;  %v12741_v15 = vadd.f32 %v6997_v28, %v6959_v51  ;;  %v12745_v12 = vadd.f32 %v6997_v28, %v6960_v9 }
 0x9a3   :  { %v12747_v5 = vadd.f32 %v6997_v28, %v6961_v31  ;;  %v12749_v38 = vadd.f32 %v6997_v28, %v6962_v10  ;;  %v12751_v47 = vadd.f32 %v6997_v28, %v6963_v11  ;;  %v13326_v18 = vsub.f32 %v13283_v35, %v12446_v8 }
 0x9a4   :  { %13324 = vst [vmem:[#allocation21_spill] sm:$0xff] %v12739_v1  ;;  %v13327_v56 = vsub.f32 %v13284_v41, %v12446_v8  ;;  %v13328_v0 = vsub.f32 %v13285_v13, %v12446_v8  ;;  %v13329_v51 = vsub.f32 %v12171_v36, %v12446_v8  ;;  %v13330_v35 = vsub.f32 %v11982_v30, %v12446_v8 }
 0x9a5   :  { %13325 = vst [vmem:[#allocation20_spill] sm:$0xff] %v12741_v15  ;;  %v13331_v41 = vsub.f32 %v13286_v14, %v12446_v8  ;;  %v13332_v13 = vsub.f32 %v13287_v29, %v12446_v8  ;;  %v13333_v36 = vsub.f32 %v13288_v37, %v12446_v8 }
 0x9a8   :  { %v12743_v20 = vpop.permute.xlu0 %6917 }
 0x9a9   :  { %v6968_v25 = vmul.f32 %v12743_v20, %v13326_v18  ;;  %v6969_v62 = vmul.f32 %v12743_v20, %v13327_v56  ;;  %v6970_v34 = vmul.f32 %v12743_v20, %v13328_v0  ;;  %v6971_v28 = vmul.f32 %v12743_v20, %v13329_v51 }
 0x9aa   :  { %v6972_v9 = vmul.f32 %v12743_v20, %v13330_v35  ;;  %v6973_v31 = vmul.f32 %v12743_v20, %v13331_v41  ;;  %v6974_v10 = vmul.f32 %v12743_v20, %v13332_v13  ;;  %v6975_v11 = vmul.f32 %v12743_v20, %v13333_v36  ;;  %v13352_v35 = vld [vmem:[#allocation38_spill] sm:$0xff] }
 0x9ab   :  { %v7052_v16 = vadd.f32 %v12629_v40, %v6968_v25  ;;  %v7053_v30 = vadd.f32 %v12629_v40, %v6969_v62  ;;  %v7054_v45 = vadd.f32 %v12629_v40, %v6970_v34  ;;  %v7055_v14 = vadd.f32 %v12629_v40, %v6971_v28  ;;  %v12873_v28 = vpop.permute.xlu2 %6991 }
 0x9ac   :  { %v12790_v18 = vadd.f32 %v12629_v40, %v6972_v9  ;;  %v12793_v29 = vadd.f32 %v12629_v40, %v6973_v31  ;;  %v12796_v56 = vadd.f32 %v12629_v40, %v6974_v10  ;;  %v12799_v37 = vadd.f32 %v12629_v40, %v6975_v11  ;;  %v13338_v10 = vld [vmem:[#allocation47_spill] sm:$0xff] }
 0x9ad   :  { %v7085_v0 = vpack.c.bf16 %v7052_v16, %v7036_v48  ;;  %v7086_v25 = vpack.c.bf16 %v7053_v30, %v7037_v3  ;;  %v7087_v62 = vpack.c.bf16 %v7054_v45, %v12731_v61  ;;  %v7088_v34 = vpack.c.bf16 %v7055_v14, %v12733_v44  ;;  %v13344_v14 = vld [vmem:[#allocation37_spill] sm:$0xff] }
 0x9ae   :  { %13334 = vst [vmem:[#allocation24_spill] sm:$0xff] %v12799_v37  ;;  %v13335_v48 = vsub.f32 %v13289_v60, %v12446_v8  ;;  %v13336_v61 = vsub.f32 %v13290_v53, %v12446_v8  ;;  %v13337_v41 = vsub.f32 %v13291_v55, %v12446_v8  ;;  %v13339_v36 = vsub.f32 %v13338_v10, %v12446_v8  ;;  %v13340_v60 = vld [vmem:[#allocation40_spill] sm:$0xff] }
 0x9af   :  { %7118 = vmatpush.bf16.msrb.mxu2 %v7085_v0  ;;  %7131 = vmatpush.bf16.msrb.mxu3 %v7086_v25  ;;  %v13341_v16 = vsub.f32 %v13340_v60, %v12446_v8  ;;  %v13342_v53 = vld [vmem:[#allocation32_spill] sm:$0xff]  ;;  %v13345_v0 = vsub.f32 %v13344_v14, %v12446_v8  ;;  %v13346_v60 = vld [vmem:[#allocation17_spill] sm:$0xff] }
 0x9b0   :  { %v6976_v3 = vmul.f32 %v12743_v20, %v13335_v48  ;;  %v6977_v44 = vmul.f32 %v12743_v20, %v13336_v61  ;;  %v6978_v31 = vmul.f32 %v12743_v20, %v13337_v41  ;;  %v12823_v13 = vpop.permute.xlu0 %6986  ;;  %v6979_v11 = vmul.f32 %v12743_v20, %v13339_v36 }
 0x9b1   :  { %v12833_v30 = vmul.f32 %v12743_v20, %v13341_v16  ;;  %v13343_v45 = vsub.f32 %v13342_v53, %v12446_v8  ;;  %v12845_v25 = vmul.f32 %v12743_v20, %v13345_v0  ;;  %v12847_v48 = vpop.permute.xlu1 %6907  ;;  %v7004_v61 = vadd.f32 %v12823_v13, %v12635_v59  ;;  %v13350_v59 = vld [vmem:[#allocation19_spill] sm:$0xff] }
 0x9b2   :  { %v7005_v41 = vadd.f32 %v12823_v13, %v12641_v52  ;;  %v7006_v10 = vadd.f32 %v12823_v13, %v12647_v22  ;;  %v7007_v36 = vadd.f32 %v12823_v13, %v12655_v33  ;;  %v13347_v16 = vsub.f32 %v13346_v60, %v12453_v24  ;;  %v13354_v60 = vld [vmem:[#allocation27_spill] sm:$0xff] }
 0x9b3   :  { %v12839_v55 = vmul.f32 %v12743_v20, %v13343_v45  ;;  %v13348_v45 = vld [vmem:[#allocation18_spill] sm:$0xff]  ;;  %v13351_v9 = vsub.f32 %v13350_v59, %v12453_v24  ;;  %v13353_v22 = vsub.f32 %v13352_v35, %v12453_v24  ;;  %v12889_v35 = vadd.f32 %v12823_v13, %v12667_v23 }
 0x9b4   :  { %v6936_v53 = vmul.f32 %v12847_v48, %v13347_v16  ;;  %v13349_v14 = vsub.f32 %v13348_v45, %v12453_v24  ;;  %v13355_v16 = vsub.f32 %v13354_v60, %v12453_v24  ;;  %v12881_v45 = vadd.f32 %v12823_v13, %v12661_v63 }
 0x9b5   :  { %v6938_v52 = vmul.f32 %v12847_v48, %v13351_v9  ;;  %v6939_v33 = vmul.f32 %v12847_v48, %v13353_v22  ;;  %v12903_v23 = vadd.f32 %v12823_v13, %v12711_v26  ;;  %v12917_v26 = vld [vmem:[%s13134_s6] sm:$0xf] }
 0x9b6   :  { %v6937_v0 = vmul.f32 %v12847_v48, %v13349_v14  ;;  %v6940_v51 = vmul.f32 %v12847_v48, %v13355_v16  ;;  %v13356_v14 = vsub.f32 %v13297_v17, %v12453_v24  ;;  %v7020_v59 = vadd.f32 %v12873_v28, %v6936_v53 }
 0x9b7   :  { %v7022_v60 = vadd.f32 %v12873_v28, %v6938_v52  ;;  %v7023_v16 = vadd.f32 %v12873_v28, %v6939_v33  ;;  %v13357_v17 = vsub.f32 %v13298_v21, %v12453_v24  ;;  %v13358_v21 = vsub.f32 %v13299_v4, %v12453_v24 }
 0x9b8   :  { %v6941_v9 = vmul.f32 %v12847_v48, %v13356_v14  ;;  %v7021_v22 = vadd.f32 %v12873_v28, %v6937_v0  ;;  %v7024_v63 = vadd.f32 %v12873_v28, %v6940_v51  ;;  %v7069_v53 = vpack.c.bf16 %v7020_v59, %v7004_v61 }
 0x9b9   :  { %v6942_v14 = vmul.f32 %v12847_v48, %v13357_v17  ;;  %v7071_v0 = vpack.c.bf16 %v7022_v60, %v7006_v10  ;;  %v7072_v1 = vpack.c.bf16 %v7023_v16, %v7007_v36  ;;  %v12921_v61 = vadd.f32 %v12823_v13, %v12717_v42  ;;  %v13363_v17 = vld [vmem:[#allocation34_spill] sm:$0xff] }
 0x9ba   :  { %v7025_v15 = vadd.f32 %v12873_v28, %v6941_v9  ;;  %v7070_v37 = vpack.c.bf16 %v7021_v22, %v7005_v41  ;;  %v7073_v52 = vpack.c.bf16 %v7024_v63, %v12881_v45  ;;  %v6943_v9 = vmul.f32 %v12847_v48, %v13358_v21  ;;  %7119 = vmatpush.bf16.msrb.mxu2 %v7069_v53 }
 0x9bb   :  { %v12908_v51 = vadd.f32 %v12873_v28, %v6942_v14  ;;  %v12927_v41 = vadd.f32 %v12629_v40, %v6977_v44  ;;  %v13359_v10 = vsub.f32 %v13300_v49, %v12453_v24  ;;  %v7062_v59 = vadd.f32 %v12629_v40, %v6978_v31 }
 0x9bc   :  { %v7074_v33 = vpack.c.bf16 %v7025_v15, %v12889_v35  ;;  %7132 = vmatpush.bf16.msrb.mxu3 %v7070_v37  ;;  %v12924_v15 = vadd.f32 %v12629_v40, %v6976_v3  ;;  %v7027_v37 = vadd.f32 %v12873_v28, %v6943_v9  ;;  %v7063_v22 = vadd.f32 %v12629_v40, %v6979_v11 }
 0x9bd   :  { %v7075_v4 = vpack.c.bf16 %v12908_v51, %v12903_v23  ;;  %v6944_v36 = vmul.f32 %v12847_v48, %v13359_v10  ;;  %v7094_v3 = vpack.c.bf16 %v12927_v41, %v12747_v5  ;;  %9790 = vmatmul.msk.bf16.vlgmr.msrb.gmra.mxu2 %vm7108_vm6, %v12917_v26  ;;  %v7013_v5 = vadd.f32 %v12823_v13, %v12729_v7  ;;  %v13367_v51 = vld [vmem:[#allocation15_spill] sm:$0xff]  ;;  %v13371_v10 = vld [vmem:[#allocation16_spill] sm:$0xff] }
 0x9be   :  { %7144 = vmatpush.bf16.msra.mxu2 %v7087_v62  ;;  %v7093_v42 = vpack.c.bf16 %v12924_v15, %v12745_v12  ;;  %v12942_v62 = vadd.f32 %v12823_v13, %v12723_v39  ;;  %v7076_v49 = vpack.c.bf16 %v7027_v37, %v12921_v61  ;;  %v13362_v60 = vsub.f32 %v12243_v58, %v12453_v24 }
 0x9bf   :  { %9791 = vmatmul.msk.bf16.vlgmr.msrb.gmra.mxu3 %vm7108_vm6, %v12917_v26  ;;  %v7028_v35 = vadd.f32 %v12873_v28, %v6944_v36  ;;  %v7014_v14 = vadd.f32 %v12823_v13, %v13363_v17  ;;  %v13364_v7 = vsub.f32 %v12368_v19, %v12453_v24  ;;  %v13365_v31 = vpack.c.bf16 %v12790_v18, %v12735_v54 }
 0x9c0   :  { %7157 = vmatpush.bf16.msra.mxu3 %v7088_v34  ;;  %v13360_v34 = vld [vmem:[#allocation42_spill] sm:$0xff]  ;;  %v6946_v16 = vmul.f32 %v12847_v48, %v13362_v60  ;;  %v13366_v58 = vpack.c.bf16 %v12793_v29, %v12737_v27  ;;  %v7096_v53 = vpack.c.bf16 %v7063_v22, %v12751_v47  ;;  %v7015_v19 = vadd.f32 %v12823_v13, %v13367_v51  ;;  %v13378_v22 = vld [vmem:[#allocation31_spill] sm:$0xff] }
 0x9c1   :  { %v13361_v44 = vsub.f32 %v13360_v34, %v12453_v24  ;;  %v7077_v63 = vpack.c.bf16 %v7028_v35, %v12942_v62  ;;  %v6947_v23 = vmul.f32 %v12847_v48, %v13364_v7  ;;  %v7064_v54 = vadd.f32 %v12629_v40, %v12833_v30  ;;  %v13369_v29 = vld [vmem:[#allocation14_spill] sm:$0xff]  ;;  %v13372_v34 = vld [vmem:[#allocation33_spill] sm:$0xff] }
 0x9c2   :  { %7145 = vmatpush.bf16.msra.mxu2 %v7071_v0  ;;  %v7030_v0 = vadd.f32 %v12873_v28, %v6946_v16  ;;  %v7065_v18 = vadd.f32 %v12629_v40, %v12839_v55  ;;  %v13368_v27 = vsub.f32 %v13266_v46, %v12453_v24  ;;  %v7016_v47 = vadd.f32 %v12823_v13, %v13369_v29 }
 0x9c3   :  { %v6945_v45 = vmul.f32 %v12847_v48, %v13361_v44  ;;  %v7031_v21 = vadd.f32 %v12873_v28, %v6947_v23  ;;  %v13370_v9 = vsub.f32 %v12394_v6, %v12453_v24  ;;  %v7097_v30 = vpack.c.bf16 %v7064_v54, %v12623_v43 }
 0x9c4   :  { %7158 = vmatpush.bf16.msra.mxu3 %v7072_v1  ;;  %v7095_v1 = vpack.c.bf16 %v7062_v59, %v12749_v38  ;;  %v6948_v38 = vmul.f32 %v12847_v48, %v13368_v27  ;;  %v7079_v41 = vpack.c.bf16 %v7030_v0, %v7014_v14  ;;  %v7017_v55 = vadd.f32 %v12823_v13, %v13371_v10  ;;  %v13377_v59 = vld [vmem:[#allocation26_spill] sm:$0xff] }
 0x9c5   :  { %v7029_v39 = vadd.f32 %v12873_v28, %v6945_v45  ;;  %v6949_v61 = vmul.f32 %v12847_v48, %v13370_v9  ;;  %v7080_v37 = vpack.c.bf16 %v7031_v21, %v7015_v19  ;;  %v7098_v46 = vpack.c.bf16 %v7065_v18, %v12625_v32 }
 0x9c6   :  { %7170 = vmatpush.bf16.msrb.mxu2 %v13365_v31  ;;  %v7032_v36 = vadd.f32 %v12873_v28, %v6948_v38  ;;  %v7066_v6 = vadd.f32 %v12629_v40, %v12845_v25  ;;  %v13373_v44 = vsub.f32 %v13372_v34, %v12446_v8  ;;  %v13374_v43 = vsub.f32 %v12414_v50, %v12453_v24 }
 0x9c7   :  { %v7078_v11 = vpack.c.bf16 %v7029_v39, %v7013_v5  ;;  %v7033_v62 = vadd.f32 %v12873_v28, %v6949_v61  ;;  %v13376_v39 = vsub.f32 %v12423_v2, %v12453_v24  ;;  %v7019_v8 = vadd.f32 %v12823_v13, %v13377_v59  ;;  %v13379_v2 = vld [vmem:[#allocation21_spill] sm:$0xff] }
 0x9c8   :  { %7183 = vmatpush.bf16.msrb.mxu3 %v13366_v58  ;;  %v6983_v45 = vmul.f32 %v12743_v20, %v13373_v44  ;;  %v7081_v35 = vpack.c.bf16 %v7032_v36, %v7016_v47  ;;  %v7099_v20 = vpack.c.bf16 %v7066_v6, %v13378_v22  ;;  %v13380_v24 = vpack.c.bf16 %v12796_v56, %v13379_v2 }
 0x9c9   :  { %v7082_v5 = vpack.c.bf16 %v7033_v62, %v7017_v55  ;;  %v6951_v25 = vmul.f32 %v12847_v48, %v13376_v39 }
 0x9ca   :  { %7171 = vmatpush.bf16.msrb.mxu2 %v7073_v52  ;;  %v6950_v52 = vmul.f32 %v12847_v48, %v13374_v43  ;;  %v7067_v60 = vadd.f32 %v12629_v40, %v6983_v45  ;;  %v13382_v40 = vld [vmem:[#allocation20_spill] sm:$0xff] }
 0x9cb   :  { %v7035_v16 = vadd.f32 %v12873_v28, %v6951_v25 }
 0x9cc   :  { %7184 = vmatpush.bf16.msrb.mxu3 %v7074_v33  ;;  %v13375_v33 = vld [vmem:[#allocation29_spill] sm:$0xff]  ;;  %v7034_v50 = vadd.f32 %v12873_v28, %v6950_v52  ;;  %v7100_v17 = vpack.c.bf16 %v7067_v60, %v12669_v57  ;;  %v13062_v57 = vpop.permute.xlu1 %7105 }
 0x9cd   :  { %v7018_v32 = vadd.f32 %v12823_v13, %v13375_v33  ;;  %v7084_v7 = vpack.c.bf16 %v7035_v16, %v7019_v8  ;;  %9792 = vmatmul.msk.bf16.vlgmr.msra.gmra.mxu2 %vm7108_vm6, %v12917_v26  ;;  %v13381_v13 = vld [vmem:[#allocation24_spill] sm:$0xff] }
 0x9ce   :  { %7196 = vmatpush.bf16.msra.mxu2 %v13380_v24  ;;  %v13383_v48 = vpack.c.bf16 %v13381_v13, %v13382_v40 }
 0x9cf   :  { %v7083_v14 = vpack.c.bf16 %v7034_v50, %v7018_v32  ;;  %9793 = vmatmul.msk.bf16.vlgmr.msra.gmra.mxu3 %vm7108_vm6, %v12917_v26 }
 0x9d0   :  { %7209 = vmatpush.bf16.msra.mxu3 %v13383_v48 }
 0x9d2   :  { %7197 = vmatpush.bf16.msra.mxu2 %v7075_v4 }
 0x9d4   :  { %7210 = vmatpush.bf16.msra.mxu3 %v7076_v49 }
 0x9dd   :  { %9794 = vmatmul.msk.bf16.vlgmr.msrb.gmra.mxu2 %vm7108_vm6, %v12917_v26 }
 0x9de   :  { %7222 = vmatpush.bf16.msrb.mxu2 %v7093_v42 }
 0x9df   :  { %9795 = vmatmul.msk.bf16.vlgmr.msrb.gmra.mxu3 %vm7108_vm6, %v12917_v26 }
 0x9e0   :  { %7235 = vmatpush.bf16.msrb.mxu3 %v7094_v3 }
 0x9e2   :  { %7223 = vmatpush.bf16.msrb.mxu2 %v7077_v63 }
 0x9e4   :  { %7236 = vmatpush.bf16.msrb.mxu3 %v7078_v11 }
 0x9ed   :  { %9796 = vmatmul.msk.bf16.vlgmr.msra.gmra.mxu2 %vm7108_vm6, %v12917_v26 }
 0x9ee   :  { %7248 = vmatpush.bf16.msra.mxu2 %v7095_v1 }
 0x9ef   :  { %9797 = vmatmul.msk.bf16.vlgmr.msra.gmra.mxu3 %vm7108_vm6, %v12917_v26 }
 0x9f0   :  { %7261 = vmatpush.bf16.msra.mxu3 %v7096_v53 }
 0x9f2   :  { %7249 = vmatpush.bf16.msra.mxu2 %v7079_v41 }
 0x9f4   :  { %7262 = vmatpush.bf16.msra.mxu3 %v7080_v37 }
 0x9fd   :  { %9798 = vmatmul.msk.bf16.vlgmr.msrb.gmra.mxu2 %vm7108_vm6, %v12917_v26 }
 0x9fe   :  { %7274 = vmatpush.bf16.msrb.mxu2 %v7097_v30 }
 0x9ff   :  { %9799 = vmatmul.msk.bf16.vlgmr.msrb.gmra.mxu3 %vm7108_vm6, %v12917_v26 }
 0xa00   :  { %7287 = vmatpush.bf16.msrb.mxu3 %v7098_v46 }
 0xa02   :  { %7275 = vmatpush.bf16.msrb.mxu2 %v7081_v35 }
 0xa04   :  { %7288 = vmatpush.bf16.msrb.mxu3 %v7082_v5 }
 0xa0d   :  { %9800 = vmatmul.msk.bf16.vlgmr.msra.gmra.mxu2 %vm7108_vm6, %v12917_v26 }
 0xa0e   :  { %7300 = vmatpush.bf16.msra.mxu2 %v7099_v20 }
 0xa0f   :  { %9801 = vmatmul.msk.bf16.vlgmr.msra.gmra.mxu3 %vm7108_vm6, %v12917_v26 }
 0xa10   :  { %7313 = vmatpush.bf16.msra.mxu3 %v7100_v17 }
 0xa12   :  { %7301 = vmatpush.bf16.msra.mxu2 %v7083_v14 }
 0xa14   :  { %7314 = vmatpush.bf16.msra.mxu3 %v7084_v7 }
 0xa1d   :  { %9802 = vmatmul.msk.bf16.vlgmr.msrb.gmra.mxu2 %vm7108_vm6, %v12917_v26 }
 0xa1f   :  { %9803 = vmatmul.msk.bf16.vlgmr.msrb.gmra.mxu3 %vm7108_vm6, %v12917_v26 }
 0xa2d   :  { %9804 = vmatmul.msk.bf16.vlgmr.msra.gmra.mxu2 %vm7108_vm6, %v12917_v26 }
 0xa2f   :  { %9805 = vmatmul.msk.bf16.vlgmr.msra.gmra.mxu3 %vm7108_vm6, %v12917_v26 }
 0xa40   :  { %v7121_v12 = vpop.f32.mrf.mxu2 }
 0xa41   :  { %v7122_v28 = vadd.f32 %v7121_v12, %v13062_v57 }
 0xa42   :  { %v7134_v56 = vpop.f32.mrf.mxu3 }
 0xa43   :  { %v7135_v15 = vadd.f32 %v7134_v56, %v13062_v57  ;;  %10457 = vtanh.f32 %v7122_v28 }
 0xa45   :  { %10459 = vtanh.f32 %v7135_v15 }
 0xa48   :  { %v7123_v4 = vpop.f32.mrf.mxu2 }
 0xa49   :  { %v10458_v3 = vpop.eup %10457 }
 0xa4a   :  { %v7136_v42 = vpop.f32.mrf.mxu3  ;;  %7336 = vst [vmem:[%s13384_s0] sm:$0xff] %v10458_v3 }
 0xa4b   :  { %v10460_v49 = vpop.eup %10459 }
 0xa4c   :  { %7337 = vst [vmem:[%s13384_s0 + $0x8] sm:$0xff] %v10460_v49 }
 0xa50   :  { %v7147_v26 = vpop.f32.mrf.mxu2 }
 0xa51   :  { %v7148_v23 = vadd.f32 %v7147_v26, %v13062_v57 }
 0xa52   :  { %v7160_v63 = vpop.f32.mrf.mxu3 }
 0xa53   :  { %v7161_v31 = vadd.f32 %v7160_v63, %v13062_v57  ;;  %10461 = vtanh.f32 %v7148_v23 }
 0xa55   :  { %10463 = vtanh.f32 %v7161_v31 }
 0xa58   :  { %v7149_v58 = vpop.f32.mrf.mxu2 }
 0xa59   :  { %v10462_v1 = vpop.eup %10461 }
 0xa5a   :  { %v7162_v11 = vpop.f32.mrf.mxu3  ;;  %7338 = vst [vmem:[%s13384_s0 + $0x10] sm:$0xff] %v10462_v1 }
 0xa5b   :  { %v10464_v53 = vpop.eup %10463 }
 0xa5c   :  { %7339 = vst [vmem:[%s13384_s0 + $0x18] sm:$0xff] %v10464_v53 }
 0xa60   :  { %v7173_v0 = vpop.f32.mrf.mxu2 }
 0xa61   :  { %v7174_v19 = vadd.f32 %v7173_v0, %v13062_v57 }
 0xa62   :  { %v7186_v51 = vpop.f32.mrf.mxu3 }
 0xa63   :  { %v7187_v21 = vadd.f32 %v7186_v51, %v13062_v57  ;;  %10465 = vtanh.f32 %v7174_v19 }
 0xa65   :  { %10467 = vtanh.f32 %v7187_v21 }
 0xa68   :  { %v7175_v54 = vpop.f32.mrf.mxu2 }
 0xa69   :  { %v10466_v27 = vpop.eup %10465 }
 0xa6a   :  { %v7188_v18 = vpop.f32.mrf.mxu3  ;;  %7340 = vst [vmem:[%s13384_s0 + $0x20] sm:$0xff] %v10466_v27 }
 0xa6b   :  { %v10468_v38 = vpop.eup %10467 }
 0xa6c   :  { %7341 = vst [vmem:[%s13384_s0 + $0x28] sm:$0xff] %v10468_v38 }
 0xa70   :  { %v7199_v29 = vpop.f32.mrf.mxu2 }
 0xa71   :  { %v7200_v9 = vadd.f32 %v7199_v29, %v13062_v57 }
 0xa72   :  { %v7212_v47 = vpop.f32.mrf.mxu3 }
 0xa73   :  { %v7213_v61 = vadd.f32 %v7212_v47, %v13062_v57  ;;  %10469 = vtanh.f32 %v7200_v9 }
 0xa75   :  { %10471 = vtanh.f32 %v7213_v61 }
 0xa78   :  { %v7201_v41 = vpop.f32.mrf.mxu2 }
 0xa79   :  { %v10470_v30 = vpop.eup %10469 }
 0xa7a   :  { %v7214_v37 = vpop.f32.mrf.mxu3  ;;  %7342 = vst [vmem:[%s13384_s0 + $0x30] sm:$0xff] %v10470_v30 }
 0xa7b   :  { %v10472_v10 = vpop.eup %10471 }
 0xa7c   :  { %7343 = vst [vmem:[%s13384_s0 + $0x38] sm:$0xff] %v10472_v10 }
 0xa80   :  { %v7225_v55 = vpop.f32.mrf.mxu2 }
 0xa81   :  { %v7226_v36 = vadd.f32 %v7225_v55, %v13062_v57 }
 0xa82   :  { %v7238_v46 = vpop.f32.mrf.mxu3 }
 0xa83   :  { %v7239_v62 = vadd.f32 %v7238_v46, %v13062_v57  ;;  %10473 = vtanh.f32 %v7226_v36 }
 0xa85   :  { %10475 = vtanh.f32 %v7239_v62 }
 0xa88   :  { %v7227_v6 = vpop.f32.mrf.mxu2 }
 0xa89   :  { %v10474_v44 = vpop.eup %10473 }
 0xa8a   :  { %v7240_v34 = vpop.f32.mrf.mxu3  ;;  %7344 = vst [vmem:[%s13384_s0 + $0x40] sm:$0xff] %v10474_v44 }
 0xa8b   :  { %v10476_v45 = vpop.eup %10475 }
 0xa8c   :  { %7345 = vst [vmem:[%s13384_s0 + $0x48] sm:$0xff] %v10476_v45 }
 0xa90   :  { %v7251_v43 = vpop.f32.mrf.mxu2 }
 0xa91   :  { %v7252_v33 = vadd.f32 %v7251_v43, %v13062_v57 }
 0xa92   :  { %v7264_v52 = vpop.f32.mrf.mxu3 }
 0xa93   :  { %v7265_v32 = vadd.f32 %v7264_v52, %v13062_v57  ;;  %10477 = vtanh.f32 %v7252_v33 }
 0xa95   :  { %10479 = vtanh.f32 %v7265_v32 }
 0xa98   :  { %v7253_v35 = vpop.f32.mrf.mxu2 }
 0xa99   :  { %v10478_v39 = vpop.eup %10477 }
 0xa9a   :  { %v7266_v5 = vpop.f32.mrf.mxu3  ;;  %7346 = vst [vmem:[%s13384_s0 + $0x50] sm:$0xff] %v10478_v39 }
 0xa9b   :  { %v10480_v25 = vpop.eup %10479 }
 0xa9c   :  { %7347 = vst [vmem:[%s13384_s0 + $0x58] sm:$0xff] %v10480_v25 }
 0xaa0   :  { %v7277_v59 = vpop.f32.mrf.mxu2 }
 0xaa1   :  { %v7278_v22 = vadd.f32 %v7277_v59, %v13062_v57 }
 0xaa2   :  { %v7290_v8 = vpop.f32.mrf.mxu3 }
 0xaa3   :  { %v7291_v20 = vadd.f32 %v7290_v8, %v13062_v57  ;;  %10481 = vtanh.f32 %v7278_v22 }
 0xaa5   :  { %10483 = vtanh.f32 %v7291_v20 }
 0xaa8   :  { %v7279_v60 = vpop.f32.mrf.mxu2 }
 0xaa9   :  { %v10482_v16 = vpop.eup %10481 }
 0xaaa   :  { %v7292_v50 = vpop.f32.mrf.mxu3  ;;  %7348 = vst [vmem:[%s13384_s0 + $0x60] sm:$0xff] %v10482_v16 }
 0xaab   :  { %v10484_v17 = vpop.eup %10483 }
 0xaac   :  { %7349 = vst [vmem:[%s13384_s0 + $0x68] sm:$0xff] %v10484_v17 }
 0xab0   :  { %v7303_v14 = vpop.f32.mrf.mxu2 }
 0xab1   :  { %v7304_v2 = vadd.f32 %v7303_v14, %v13062_v57 }
 0xab2   :  { %v7316_v7 = vpop.f32.mrf.mxu3 }
 0xab3   :  { %v7317_v24 = vadd.f32 %v7316_v7, %v13062_v57  ;;  %10485 = vtanh.f32 %v7304_v2 }
 0xab5   :  { %10487 = vtanh.f32 %v7317_v24 }
 0xab8   :  { %v7305_v13 = vpop.f32.mrf.mxu2 }
 0xab9   :  { %v10486_v48 = vpop.eup %10485 }
 0xaba   :  { %v7318_v40 = vpop.f32.mrf.mxu3  ;;  %7350 = vst [vmem:[%s13384_s0 + $0x70] sm:$0xff] %v10486_v48 }
 0xabb   :  { %v10488_v12 = vpop.eup %10487 }
 0xabc   :  { %7351 = vst [vmem:[%s13384_s0 + $0x78] sm:$0xff] %v10488_v12 }
 0xabd   :  { %7356 = vsyncpa [#allocation8], 1 }
 0xabe   :  { %7357 = vsyncpa [#allocation10], 1 }

</bundles_post_ra>
